<compile_context>
chip_gen: v7x
topology: tpu7x:2x2x1
jax: 0.10.0
libtpu: 0.0.40
codegen_flags: <defaults>
</compile_context>

<pallas_src>
import numpy as np
import jax
import jax.numpy as jnp
from jax.experimental import pallas as pl
from jax.experimental.pallas import tpu as pltpu


_C0 = 8        # sublane-aligned column where the image interior starts in padded scratch
_CIN_PAD = 8   # conv1 input channel padded 1 -> 8 (extra lanes carry zero weights)


def _round_up(n, m):
    return ((n + m - 1) // m) * m


# ----------------------------------------------------------------------------
# Fused Pallas kernel
# ----------------------------------------------------------------------------
def _unet_kernel(x_ref, w1, b1, w2, b2, w3, b3, w4, b4, wt, bt, wd, bd,
                 out_ref,
                 x1p, a1p, a2s, a3p, a4p, dtp):
    H, W = x_ref.shape
    Hh, Wh = H // 2, W // 2

    def zero_border(ref, h, w):
        """Zero only what the 3x3 'same'-conv windows can read outside the interior."""
        wp, ch = ref.shape[-2], ref.shape[-1]
        cr = max(_C0, ((_C0 + w) // 8) * 8)
        ref[0] = jnp.zeros((wp, ch), ref.dtype)                          # top pad row
        ref[h + 1] = jnp.zeros((wp, ch), ref.dtype)                      # bottom pad row
        ref[:, 0:_C0, :] = jnp.zeros((h + 2, _C0, ch), ref.dtype)        # left strip
        ref[:, cr:wp, :] = jnp.zeros((h + 2, wp - cr, ch), ref.dtype)    # right strip

    def conv3x3(xp, wref, bref, h, w):
        """'same' 3x3 conv: 3 MXU matmuls with K = 3*Cin (kx taps packed on lanes)."""
        cin = xp.shape[-1]
        xw = jnp.concatenate(
            [xp[:, _C0 - 1 + kx:_C0 - 1 + kx + w, :] for kx in range(3)],
            axis=-1).astype(jnp.bfloat16)                                # (h+2, w, 3*cin)
        acc = bref[...]                                                  # (1, cout) f32
        for ky in range(3):
            acc = acc + jnp.dot(xw[ky:ky + h].reshape(h * w, 3 * cin), wref[ky],
                                preferred_element_type=jnp.float32)
        return acc                                                       # (h*w, cout) f32

    # ---------------- zero ONLY the padding borders (interiors overwritten) ---------
    zero_border(x1p, H, W)
    zero_border(a1p, H, W)
    zero_border(a3p, Hh, Wh)
    zero_border(a4p, Hh, Wh)
    wph = dtp.shape[2]
    crh = max(_C0, ((_C0 + Wh) // 8) * 8)
    for t in range(4):
        dtp[t, 0] = jnp.zeros((wph, 64), dtp.dtype)
        dtp[t, Hh + 1] = jnp.zeros((wph, 64), dtp.dtype)
        dtp[t, :, 0:_C0, :] = jnp.zeros((Hh + 2, _C0, 64), dtp.dtype)
        dtp[t, :, crh:wph, :] = jnp.zeros((Hh + 2, wph - crh, 64), dtp.dtype)

    # ------------------------------ encoder ------------------------------
    # Broadcast the single input channel across _CIN_PAD lanes; the extra lanes
    # carry zero weights so they contribute exactly 0.
    x1p[1:H + 1, _C0:_C0 + W, :] = jnp.broadcast_to(
        x_ref[...][:, :, None], (H, W, _CIN_PAD))
    a1 = jnp.maximum(conv3x3(x1p, w1, b1, H, W), 0.0)                    # (H*W, 64)
    a1p[1:H + 1, _C0:_C0 + W, :] = a1.reshape(H, W, 64)
    a2 = jnp.maximum(conv3x3(a1p, w2, b2, H, W), 0.0)                    # (H*W, 64)
    a2s[...] = a2.reshape(H, W, 64)

    # fused 2x2 / stride-2 max pool via strided VMEM reads
    p00 = a2s[pl.ds(0, Hh, 2), pl.ds(0, Wh, 2), :]
    p01 = a2s[pl.ds(0, Hh, 2), pl.ds(1, Wh, 2), :]
    p10 = a2s[pl.ds(1, Hh, 2), pl.ds(0, Wh, 2), :]
    p11 = a2s[pl.ds(1, Hh, 2), pl.ds(1, Wh, 2), :]
    a3p[1:Hh + 1, _C0:_C0 + Wh, :] = jnp.maximum(jnp.maximum(p00, p01),
                                                 jnp.maximum(p10, p11))

    # ------------------------------ middle -------------------------------
    m1 = jnp.maximum(conv3x3(a3p, w3, b3, Hh, Wh), 0.0)                  # (Hh*Wh, 128)
    a4p[1:Hh + 1, _C0:_C0 + Wh, :] = m1.reshape(Hh, Wh, 128)
    m2 = jnp.maximum(conv3x3(a4p, w4, b4, Hh, Wh), 0.0)                  # (Hh*Wh, 128)

    # --------------- decoder: ConvTranspose2d(k=2, s=2) + ReLU -----------
    # kernel == stride -> one fused dot producing all 4 taps (N = 4*64 = 256
    # fills the wide MXU); bias + ReLU in f32; taps stored into halo-padded
    # per-tap buffers (no spatial interleave is ever materialised).
    dec = jnp.dot(m2.astype(jnp.bfloat16), wt[...],
                  preferred_element_type=jnp.float32)                    # (Hh*Wh, 256)
    dec = jnp.maximum(dec + bt[...], 0.0)
    for t in range(4):
        dtp[t, 1:Hh + 1, _C0:_C0 + Wh, :] = (
            dec[:, t * 64:(t + 1) * 64].reshape(Hh, Wh, 64))

    # -------- final 3x3 conv, computed per output parity (sub-pixel conv) --------
    # Output pixel (2i+py, 2j+px) reads interleaved-image pixels that live in the
    # tap buffers; dy'/dx' select the tap, di/dj the halo-shifted window.
    for py in range(2):
        for px in range(2):
            acc = bd[...]                                                # (1, 128) f32
            for ky in range(3):
                ra = (py + ky - 1) % 2
                di = (py + ky - 1) // 2          # -1, 0 or 1
                pieces = []
                for kx in range(3):
                    cb = (px + kx - 1) % 2
                    dj = (px + kx - 1) // 2
                    t = ra * 2 + cb
                    pieces.append(dtp[t, 1 + di:1 + di + Hh,
                                      _C0 + dj:_C0 + dj + Wh, :])
                xw = jnp.concatenate(pieces, axis=-1).astype(jnp.bfloat16)  # (Hh, Wh, 192)
                acc = acc + jnp.dot(xw.reshape(Hh * Wh, 3 * 64), wd[ky],
                                    preferred_element_type=jnp.float32)
            out_ref[2 * py + px] = acc                                   # (Hh*Wh, 128)


# ----------------------------------------------------------------------------
# Parameters (synthetic, PyTorch-default-like uniform init) + one-time packing
# ----------------------------------------------------------------------------
def init_params(key, in_channels=1, out_channels=1):
    keys = jax.random.split(key, 12)

    def conv_wb(kw_key, kb_key, kh, kwid, cin, cout):
        bound = 1.0 / np.sqrt(cin * kh * kwid)
        w = jax.random.uniform(kw_key, (kh, kwid, cin, cout), jnp.float32,
                               -bound, bound)
        b = jax.random.uniform(kb_key, (cout,), jnp.float32, -bound, bound)
        return w, b

    p = {}
    p["e1w"], p["e1b"] = conv_wb(keys[0], keys[1], 3, 3, in_channels, 64)
    p["e2w"], p["e2b"] = conv_wb(keys[2], keys[3], 3, 3, 64, 64)
    p["m1w"], p["m1b"] = conv_wb(keys[4], keys[5], 3, 3, 64, 128)
    p["m2w"], p["m2b"] = conv_wb(keys[6], keys[7], 3, 3, 128, 128)
    # ConvTranspose2d(128, 64, k=2, s=2): PyTorch weight layout (Cin, Cout, 2, 2)
    bt = 1.0 / np.sqrt(64 * 2 * 2)
    p["dtw"] = jax.random.uniform(keys[8], (128, 64, 2, 2), jnp.float32, -bt, bt)
    p["dtb"] = jax.random.uniform(keys[9], (64,), jnp.float32, -bt, bt)
    p["dcw"], p["dcb"] = conv_wb(keys[10], keys[11], 3, 3, 64, out_channels)
    return p


def prepare_params(params):
    """One-time packing: pad channels, fold kx taps into K, cast weights to bf16."""
    def pack_conv(w, cin_pad=None, cout_pad=None):
        kh, kw, cin, cout = w.shape
        if cin_pad is not None and cin_pad > cin:
            w = jnp.pad(w, ((0, 0), (0, 0), (0, cin_pad - cin), (0, 0)))
            cin = cin_pad
        if cout_pad is not None and cout_pad > cout:
            w = jnp.pad(w, ((0, 0), (0, 0), (0, 0), (0, cout_pad - cout)))
            cout = cout_pad
        # packed[ky, kx*cin + c, o] = w[ky, kx, c, o]
        return jnp.reshape(w, (3, 3 * cin, cout)).astype(jnp.bfloat16)

    def pack_bias(b, cout_pad=None):
        if cout_pad is not None and cout_pad > b.shape[0]:
            b = jnp.pad(b, (0, cout_pad - b.shape[0]))
        return jnp.reshape(b, (1, -1)).astype(jnp.float32)

    cin_t, cout_t = params["dtw"].shape[:2]
    # fused ConvTranspose weight: column (a*2+b)*Cout + o  <-  dtw[c, o, a, b]
    wt = jnp.transpose(params["dtw"], (0, 2, 3, 1)).reshape(
        cin_t, 4 * cout_t).astype(jnp.bfloat16)
    bt = jnp.tile(params["dtb"], 4).reshape(1, 4 * cout_t).astype(jnp.float32)

    return {
        "w1": pack_conv(params["e1w"], cin_pad=_CIN_PAD), "b1": pack_bias(params["e1b"]),
        "w2": pack_conv(params["e2w"]),                   "b2": pack_bias(params["e2b"]),
        "w3": pack_conv(params["m1w"]),                   "b3": pack_bias(params["m1b"]),
        "w4": pack_conv(params["m2w"]),                   "b4": pack_bias(params["m2b"]),
        "wt": wt, "bt": bt,
        "wd": pack_conv(params["dcw"], cout_pad=128),
        "bd": pack_bias(params["dcb"], cout_pad=128),
    }


# ----------------------------------------------------------------------------
# Forward wrapper (single pallas_call + one cheap output de-interleave)
# ----------------------------------------------------------------------------
def unet_forward(x, pp):
    """x: (H, W) float32 -> (H, W) float32."""
    H, W = x.shape
    assert H % 2 == 0 and W % 2 == 0
    Hh, Wh = H // 2, W // 2
    wp_full = _C0 + _round_up(W + 1, 8)   # padded scratch width, full resolution
    wp_half = _C0 + _round_up(Wh + 1, 8)  # padded scratch width, half resolution

    args = (x, pp["w1"], pp["b1"], pp["w2"], pp["b2"], pp["w3"], pp["b3"],
            pp["w4"], pp["b4"], pp["wt"], pp["bt"], pp["wd"], pp["bd"])

    in_specs = [pl.BlockSpec(a.shape, (lambda i, nd=a.ndim: (0,) * nd))
                for a in args]
    out_spec = pl.BlockSpec((4, Hh * Wh, 128), lambda i: (0, 0, 0))

    macs = (9 * H * W * _CIN_PAD * 64     # e1 (Cin padded to 8)
            + 9 * H * W * 64 * 64         # e2
            + 9 * Hh * Wh * 64 * 128      # m1
            + 9 * Hh * Wh * 128 * 128     # m2
            + Hh * Wh * 128 * 256         # fused convT taps
            + 9 * H * W * 64 * 128)       # final conv (4 parities, Cout padded to 128)
    bytes_accessed = sum(int(np.prod(a.shape)) * a.dtype.itemsize for a in args) \
        + 4 * Hh * Wh * 128 * 4

    res = pl.pallas_call(
        _unet_kernel,
        out_shape=jax.ShapeDtypeStruct((4, Hh * Wh, 128), jnp.float32),
        grid=(1,),
        in_specs=in_specs,
        out_specs=out_spec,
        scratch_shapes=[
            pltpu.VMEM((H + 2, wp_full, _CIN_PAD), jnp.float32),  # padded conv1 input
            pltpu.VMEM((H + 2, wp_full, 64), jnp.float32),        # padded enc1 activation
            pltpu.VMEM((H, W, 64), jnp.float32),                  # enc2 activation (pre-pool)
            pltpu.VMEM((Hh + 2, wp_half, 64), jnp.float32),       # padded pooled activation
            pltpu.VMEM((Hh + 2, wp_half, 128), jnp.float32),      # padded mid1 activation
            pltpu.VMEM((4, Hh + 2, wp_half, 64), jnp.float32),    # decoder tap buffers
        ],
        compiler_params=pltpu.CompilerParams(
            dimension_semantics=("arbitrary",),
            vmem_limit_bytes=64 * 1024 * 1024),
        cost_estimate=pl.CostEstimate(flops=2 * macs, transcendentals=0,
                                      bytes_accessed=int(bytes_accessed)),
    )(*args)

    # Single-channel output, parity-split: de-interleave once, outside the kernel.
    out = res[:, :, 0].reshape(2, 2, Hh, Wh)               # [py, px, i, j]
    return jnp.transpose(out, (2, 0, 3, 1)).reshape(H, W)


# ----------------------------------------------------------------------------
# Pure-JAX reference (mirrors the kernel's bf16 rounding points, f32 accumulation)
# ----------------------------------------------------------------------------
def reference_forward(x, params):
    def conv(xa, w, b, relu):
        H, W, _ = xa.shape
        cout = w.shape[-1]
        xp = jnp.pad(xa, ((1, 1), (1, 1), (0, 0))).astype(jnp.bfloat16)
        wb = w.astype(jnp.bfloat16)
        acc = jnp.zeros((H, W, cout), jnp.float32)
        for ky in range(3):
            for kx in range(3):
                acc = acc + jnp.einsum('hwc,co->hwo',
                                       xp[ky:ky + H, kx:kx + W, :], wb[ky, kx],
                                       preferred_element_type=jnp.float32)
        acc = acc + b.reshape(1, 1, cout)
        return jnp.maximum(acc, 0.0) if relu else acc

    h = x[:, :, None]
    h = conv(h, params["e1w"], params["e1b"], True)
    h = conv(h, params["e2w"], params["e2b"], True)
    H0, W0, C = h.shape
    h = jnp.max(h.reshape(H0 // 2, 2, W0 // 2, 2, C), axis=(1, 3))
    h = conv(h, params["m1w"], params["m1b"], True)
    h = conv(h, params["m2w"], params["m2b"], True)
    # ConvTranspose2d(k=2, s=2)
    Hh, Wh, _ = h.shape
    y = jnp.einsum('hwc,coab->abhwo', h.astype(jnp.bfloat16),
                   params["dtw"].astype(jnp.bfloat16),
                   preferred_element_type=jnp.float32)          # (2,2,Hh,Wh,64)
    y = jnp.transpose(y, (2, 0, 3, 1, 4)).reshape(2 * Hh, 2 * Wh, 64)
    y = jnp.maximum(y + params["dtb"].reshape(1, 1, 64), 0.0)
    out = conv(y, params["dcw"], params["dcb"], False)
    return out[:, :, 0]


if __name__ == "__main__":
    key = jax.random.PRNGKey(0)
    pkey, xkey = jax.random.split(key)
    params = init_params(pkey)

    H, W = 16, 16
    x = jax.random.normal(xkey, (H, W), jnp.float32)

    packed = prepare_params(params)
    fwd = jax.jit(lambda inp: unet_forward(inp, packed))
    out = jax.block_until_ready(fwd(x))

    assert out.shape == (H, W), out.shape
    assert out.dtype == jnp.float32
    assert bool(jnp.all(jnp.isfinite(out)))

    ref = reference_forward(x, params)
    err = float(jnp.max(jnp.abs(out - ref)))
    assert err < 2e-3, f"max abs error vs reference: {err}"

    print("KERNEL_OK")
</pallas_src>

<mosaic_0001>
module attributes {stable_mosaic.version = 11 : i64} {
  func.func @_unet_kernel(%arg0: i32, %arg1: memref<16x16xf32, #tpu.memory_space<vmem>>, %arg2: memref<3x24x64xbf16, #tpu.memory_space<vmem>>, %arg3: memref<1x64xf32, #tpu.memory_space<vmem>>, %arg4: memref<3x192x64xbf16, #tpu.memory_space<vmem>>, %arg5: memref<1x64xf32, #tpu.memory_space<vmem>>, %arg6: memref<3x192x128xbf16, #tpu.memory_space<vmem>>, %arg7: memref<1x128xf32, #tpu.memory_space<vmem>>, %arg8: memref<3x384x128xbf16, #tpu.memory_space<vmem>>, %arg9: memref<1x128xf32, #tpu.memory_space<vmem>>, %arg10: memref<128x256xbf16, #tpu.memory_space<vmem>>, %arg11: memref<1x256xf32, #tpu.memory_space<vmem>>, %arg12: memref<3x192x128xbf16, #tpu.memory_space<vmem>>, %arg13: memref<1x128xf32, #tpu.memory_space<vmem>>, %arg14: memref<4x64x128xf32, #tpu.memory_space<vmem>>, %arg15: memref<18x32x8xf32, #tpu.memory_space<vmem>>, %arg16: memref<18x32x64xf32, #tpu.memory_space<vmem>>, %arg17: memref<16x16x64xf32, #tpu.memory_space<vmem>>, %arg18: memref<10x24x64xf32, #tpu.memory_space<vmem>>, %arg19: memref<10x24x128xf32, #tpu.memory_space<vmem>>, %arg20: memref<4x10x24x64xf32, #tpu.memory_space<vmem>>) attributes {dimension_semantics = [#tpu.dimension_semantics<arbitrary>], iteration_bounds = array<i64: 1>, scalar_prefetch = 0 : i64, scratch_operands = 6 : i64, tpu.core_type = #tpu.core_type<tc>, window_params = [{pipeline_mode = #tpu.pipeline_mode<synchronous>, transform_indices = @transform_0, window_bounds = array<i64: 16, 16>}, {pipeline_mode = #tpu.pipeline_mode<synchronous>, transform_indices = @transform_1, window_bounds = array<i64: 3, 24, 64>}, {pipeline_mode = #tpu.pipeline_mode<synchronous>, transform_indices = @transform_2, window_bounds = array<i64: 1, 64>}, {pipeline_mode = #tpu.pipeline_mode<synchronous>, transform_indices = @transform_3, window_bounds = array<i64: 3, 192, 64>}, {pipeline_mode = #tpu.pipeline_mode<synchronous>, transform_indices = @transform_4, window_bounds = array<i64: 1, 64>}, {pipeline_mode = #tpu.pipeline_mode<synchronous>, transform_indices = @transform_5, window_bounds = array<i64: 3, 192, 128>}, {pipeline_mode = #tpu.pipeline_mode<synchronous>, transform_indices = @transform_6, window_bounds = array<i64: 1, 128>}, {pipeline_mode = #tpu.pipeline_mode<synchronous>, transform_indices = @transform_7, window_bounds = array<i64: 3, 384, 128>}, {pipeline_mode = #tpu.pipeline_mode<synchronous>, transform_indices = @transform_8, window_bounds = array<i64: 1, 128>}, {pipeline_mode = #tpu.pipeline_mode<synchronous>, transform_indices = @transform_9, window_bounds = array<i64: 128, 256>}, {pipeline_mode = #tpu.pipeline_mode<synchronous>, transform_indices = @transform_10, window_bounds = array<i64: 1, 256>}, {pipeline_mode = #tpu.pipeline_mode<synchronous>, transform_indices = @transform_11, window_bounds = array<i64: 3, 192, 128>}, {pipeline_mode = #tpu.pipeline_mode<synchronous>, transform_indices = @transform_12, window_bounds = array<i64: 1, 128>}, {pipeline_mode = #tpu.pipeline_mode<synchronous>, transform_indices = @transform_13, window_bounds = array<i64: 4, 64, 128>}]} {
    %cst = arith.constant 0.000000e+00 : f32
    %0 = vector.broadcast %cst : f32 to vector<32x8xf32>
    %c0 = arith.constant 0 : index
    %c0_0 = arith.constant 0 : index
    %c0_1 = arith.constant 0 : index
    %1 = vector.load %arg15[%c0, %c0_0, %c0_1] : memref<18x32x8xf32, #tpu.memory_space<vmem>>, vector<1x32x8xf32>
    %2 = vector.shape_cast %1 : vector<1x32x8xf32> to vector<32x8xf32>
    %3 = vector.shape_cast %0 : vector<32x8xf32> to vector<1x32x8xf32>
    tpu.vector_store %arg15[%c0, %c0_0, %c0_1], %3 {strides = array<i32>} : memref<18x32x8xf32, #tpu.memory_space<vmem>>, vector<1x32x8xf32>,
    %cst_2 = arith.constant 0.000000e+00 : f32
    %4 = vector.broadcast %cst_2 : f32 to vector<32x8xf32>
    %c17 = arith.constant 17 : index
    %c0_3 = arith.constant 0 : index
    %c0_4 = arith.constant 0 : index
    %5 = vector.load %arg15[%c17, %c0_3, %c0_4] : memref<18x32x8xf32, #tpu.memory_space<vmem>>, vector<1x32x8xf32>
    %6 = vector.shape_cast %5 : vector<1x32x8xf32> to vector<32x8xf32>
    %7 = vector.shape_cast %4 : vector<32x8xf32> to vector<1x32x8xf32>
    tpu.vector_store %arg15[%c17, %c0_3, %c0_4], %7 {strides = array<i32>} : memref<18x32x8xf32, #tpu.memory_space<vmem>>, vector<1x32x8xf32>,
    %cst_5 = arith.constant 0.000000e+00 : f32
    %8 = vector.broadcast %cst_5 : f32 to vector<18x8x8xf32>
    %c0_6 = arith.constant 0 : index
    %c0_7 = arith.constant 0 : index
    %c0_8 = arith.constant 0 : index
    %9 = vector.load %arg15[%c0_6, %c0_7, %c0_8] : memref<18x32x8xf32, #tpu.memory_space<vmem>>, vector<18x8x8xf32>
    tpu.vector_store %arg15[%c0_6, %c0_7, %c0_8], %8 {strides = array<i32>} : memref<18x32x8xf32, #tpu.memory_space<vmem>>, vector<18x8x8xf32>,
    %cst_9 = arith.constant 0.000000e+00 : f32
    %10 = vector.broadcast %cst_9 : f32 to vector<18x8x8xf32>
    %c0_10 = arith.constant 0 : index
    %c24 = arith.constant 24 : index
    %c0_11 = arith.constant 0 : index
    %11 = vector.load %arg15[%c0_10, %c24, %c0_11] : memref<18x32x8xf32, #tpu.memory_space<vmem>>, vector<18x8x8xf32>
    tpu.vector_store %arg15[%c0_10, %c24, %c0_11], %10 {strides = array<i32>} : memref<18x32x8xf32, #tpu.memory_space<vmem>>, vector<18x8x8xf32>,
    %cst_12 = arith.constant 0.000000e+00 : f32
    %12 = vector.broadcast %cst_12 : f32 to vector<32x64xf32>
    %c0_13 = arith.constant 0 : index
    %c0_14 = arith.constant 0 : index
    %c0_15 = arith.constant 0 : index
    %13 = vector.load %arg16[%c0_13, %c0_14, %c0_15] : memref<18x32x64xf32, #tpu.memory_space<vmem>>, vector<1x32x64xf32>
    %14 = vector.shape_cast %13 : vector<1x32x64xf32> to vector<32x64xf32>
    %15 = vector.shape_cast %12 : vector<32x64xf32> to vector<1x32x64xf32>
    tpu.vector_store %arg16[%c0_13, %c0_14, %c0_15], %15 {strides = array<i32>} : memref<18x32x64xf32, #tpu.memory_space<vmem>>, vector<1x32x64xf32>,
    %cst_16 = arith.constant 0.000000e+00 : f32
    %16 = vector.broadcast %cst_16 : f32 to vector<32x64xf32>
    %c17_17 = arith.constant 17 : index
    %c0_18 = arith.constant 0 : index
    %c0_19 = arith.constant 0 : index
    %17 = vector.load %arg16[%c17_17, %c0_18, %c0_19] : memref<18x32x64xf32, #tpu.memory_space<vmem>>, vector<1x32x64xf32>
    %18 = vector.shape_cast %17 : vector<1x32x64xf32> to vector<32x64xf32>
    %19 = vector.shape_cast %16 : vector<32x64xf32> to vector<1x32x64xf32>
    tpu.vector_store %arg16[%c17_17, %c0_18, %c0_19], %19 {strides = array<i32>} : memref<18x32x64xf32, #tpu.memory_space<vmem>>, vector<1x32x64xf32>,
    %cst_20 = arith.constant 0.000000e+00 : f32
    %20 = vector.broadcast %cst_20 : f32 to vector<18x8x64xf32>
    %c0_21 = arith.constant 0 : index
    %c0_22 = arith.constant 0 : index
    %c0_23 = arith.constant 0 : index
    %21 = vector.load %arg16[%c0_21, %c0_22, %c0_23] : memref<18x32x64xf32, #tpu.memory_space<vmem>>, vector<18x8x64xf32>
    tpu.vector_store %arg16[%c0_21, %c0_22, %c0_23], %20 {strides = array<i32>} : memref<18x32x64xf32, #tpu.memory_space<vmem>>, vector<18x8x64xf32>,
    %cst_24 = arith.constant 0.000000e+00 : f32
    %22 = vector.broadcast %cst_24 : f32 to vector<18x8x64xf32>
    %c0_25 = arith.constant 0 : index
    %c24_26 = arith.constant 24 : index
    %c0_27 = arith.constant 0 : index
    %23 = vector.load %arg16[%c0_25, %c24_26, %c0_27] : memref<18x32x64xf32, #tpu.memory_space<vmem>>, vector<18x8x64xf32>
    tpu.vector_store %arg16[%c0_25, %c24_26, %c0_27], %22 {strides = array<i32>} : memref<18x32x64xf32, #tpu.memory_space<vmem>>, vector<18x8x64xf32>,
    %cst_28 = arith.constant 0.000000e+00 : f32
    %24 = vector.broadcast %cst_28 : f32 to vector<24x64xf32>
    %c0_29 = arith.constant 0 : index
    %c0_30 = arith.constant 0 : index
    %c0_31 = arith.constant 0 : index
    %25 = vector.load %arg18[%c0_29, %c0_30, %c0_31] : memref<10x24x64xf32, #tpu.memory_space<vmem>>, vector<1x24x64xf32>
    %26 = vector.shape_cast %25 : vector<1x24x64xf32> to vector<24x64xf32>
    %27 = vector.shape_cast %24 : vector<24x64xf32> to vector<1x24x64xf32>
    tpu.vector_store %arg18[%c0_29, %c0_30, %c0_31], %27 {strides = array<i32>} : memref<10x24x64xf32, #tpu.memory_space<vmem>>, vector<1x24x64xf32>,
    %cst_32 = arith.constant 0.000000e+00 : f32
    %28 = vector.broadcast %cst_32 : f32 to vector<24x64xf32>
    %c9 = arith.constant 9 : index
    %c0_33 = arith.constant 0 : index
    %c0_34 = arith.constant 0 : index
    %29 = vector.load %arg18[%c9, %c0_33, %c0_34] : memref<10x24x64xf32, #tpu.memory_space<vmem>>, vector<1x24x64xf32>
    %30 = vector.shape_cast %29 : vector<1x24x64xf32> to vector<24x64xf32>
    %31 = vector.shape_cast %28 : vector<24x64xf32> to vector<1x24x64xf32>
    tpu.vector_store %arg18[%c9, %c0_33, %c0_34], %31 {strides = array<i32>} : memref<10x24x64xf32, #tpu.memory_space<vmem>>, vector<1x24x64xf32>,
    %cst_35 = arith.constant 0.000000e+00 : f32
    %32 = vector.broadcast %cst_35 : f32 to vector<10x8x64xf32>
    %c0_36 = arith.constant 0 : index
    %c0_37 = arith.constant 0 : index
    %c0_38 = arith.constant 0 : index
    %33 = vector.load %arg18[%c0_36, %c0_37, %c0_38] : memref<10x24x64xf32, #tpu.memory_space<vmem>>, vector<10x8x64xf32>
    tpu.vector_store %arg18[%c0_36, %c0_37, %c0_38], %32 {strides = array<i32>} : memref<10x24x64xf32, #tpu.memory_space<vmem>>, vector<10x8x64xf32>,
    %cst_39 = arith.constant 0.000000e+00 : f32
    %34 = vector.broadcast %cst_39 : f32 to vector<10x8x64xf32>
    %c0_40 = arith.constant 0 : index
    %c16 = arith.constant 16 : index
    %c0_41 = arith.constant 0 : index
    %35 = vector.load %arg18[%c0_40, %c16, %c0_41] : memref<10x24x64xf32, #tpu.memory_space<vmem>>, vector<10x8x64xf32>
    tpu.vector_store %arg18[%c0_40, %c16, %c0_41], %34 {strides = array<i32>} : memref<10x24x64xf32, #tpu.memory_space<vmem>>, vector<10x8x64xf32>,
    %cst_42 = arith.constant 0.000000e+00 : f32
    %36 = vector.broadcast %cst_42 : f32 to vector<24x128xf32>
    %c0_43 = arith.constant 0 : index
    %c0_44 = arith.constant 0 : index
    %c0_45 = arith.constant 0 : index
    %37 = vector.load %arg19[%c0_43, %c0_44, %c0_45] : memref<10x24x128xf32, #tpu.memory_space<vmem>>, vector<1x24x128xf32>
    %38 = vector.shape_cast %37 : vector<1x24x128xf32> to vector<24x128xf32>
    %39 = vector.shape_cast %36 : vector<24x128xf32> to vector<1x24x128xf32>
    tpu.vector_store %arg19[%c0_43, %c0_44, %c0_45], %39 {strides = array<i32>} : memref<10x24x128xf32, #tpu.memory_space<vmem>>, vector<1x24x128xf32>,
    %cst_46 = arith.constant 0.000000e+00 : f32
    %40 = vector.broadcast %cst_46 : f32 to vector<24x128xf32>
    %c9_47 = arith.constant 9 : index
    %c0_48 = arith.constant 0 : index
    %c0_49 = arith.constant 0 : index
    %41 = vector.load %arg19[%c9_47, %c0_48, %c0_49] : memref<10x24x128xf32, #tpu.memory_space<vmem>>, vector<1x24x128xf32>
    %42 = vector.shape_cast %41 : vector<1x24x128xf32> to vector<24x128xf32>
    %43 = vector.shape_cast %40 : vector<24x128xf32> to vector<1x24x128xf32>
    tpu.vector_store %arg19[%c9_47, %c0_48, %c0_49], %43 {strides = array<i32>} : memref<10x24x128xf32, #tpu.memory_space<vmem>>, vector<1x24x128xf32>,
    %cst_50 = arith.constant 0.000000e+00 : f32
    %44 = vector.broadcast %cst_50 : f32 to vector<10x8x128xf32>
    %c0_51 = arith.constant 0 : index
    %c0_52 = arith.constant 0 : index
    %c0_53 = arith.constant 0 : index
    %45 = vector.load %arg19[%c0_51, %c0_52, %c0_53] : memref<10x24x128xf32, #tpu.memory_space<vmem>>, vector<10x8x128xf32>
    tpu.vector_store %arg19[%c0_51, %c0_52, %c0_53], %44 {strides = array<i32>} : memref<10x24x128xf32, #tpu.memory_space<vmem>>, vector<10x8x128xf32>,
    %cst_54 = arith.constant 0.000000e+00 : f32
    %46 = vector.broadcast %cst_54 : f32 to vector<10x8x128xf32>
    %c0_55 = arith.constant 0 : index
    %c16_56 = arith.constant 16 : index
    %c0_57 = arith.constant 0 : index
    %47 = vector.load %arg19[%c0_55, %c16_56, %c0_57] : memref<10x24x128xf32, #tpu.memory_space<vmem>>, vector<10x8x128xf32>
    tpu.vector_store %arg19[%c0_55, %c16_56, %c0_57], %46 {strides = array<i32>} : memref<10x24x128xf32, #tpu.memory_space<vmem>>, vector<10x8x128xf32>,
    %cst_58 = arith.constant 0.000000e+00 : f32
    %48 = vector.broadcast %cst_58 : f32 to vector<24x64xf32>
    %c0_59 = arith.constant 0 : index
    %c0_60 = arith.constant 0 : index
    %c0_61 = arith.constant 0 : index
    %c0_62 = arith.constant 0 : index
    %49 = vector.load %arg20[%c0_59, %c0_60, %c0_61, %c0_62] : memref<4x10x24x64xf32, #tpu.memory_space<vmem>>, vector<1x1x24x64xf32>
    %50 = vector.shape_cast %49 : vector<1x1x24x64xf32> to vector<24x64xf32>
    %51 = vector.shape_cast %48 : vector<24x64xf32> to vector<1x1x24x64xf32>
    tpu.vector_store %arg20[%c0_59, %c0_60, %c0_61, %c0_62], %51 {strides = array<i32>} : memref<4x10x24x64xf32, #tpu.memory_space<vmem>>, vector<1x1x24x64xf32>,
    %cst_63 = arith.constant 0.000000e+00 : f32
    %52 = vector.broadcast %cst_63 : f32 to vector<24x64xf32>
    %c0_64 = arith.constant 0 : index
    %c9_65 = arith.constant 9 : index
    %c0_66 = arith.constant 0 : index
    %c0_67 = arith.constant 0 : index
    %53 = vector.load %arg20[%c0_64, %c9_65, %c0_66, %c0_67] : memref<4x10x24x64xf32, #tpu.memory_space<vmem>>, vector<1x1x24x64xf32>
    %54 = vector.shape_cast %53 : vector<1x1x24x64xf32> to vector<24x64xf32>
    %55 = vector.shape_cast %52 : vector<24x64xf32> to vector<1x1x24x64xf32>
    tpu.vector_store %arg20[%c0_64, %c9_65, %c0_66, %c0_67], %55 {strides = array<i32>} : memref<4x10x24x64xf32, #tpu.memory_space<vmem>>, vector<1x1x24x64xf32>,
    %cst_68 = arith.constant 0.000000e+00 : f32
    %56 = vector.broadcast %cst_68 : f32 to vector<10x8x64xf32>
    %c0_69 = arith.constant 0 : index
    %c0_70 = arith.constant 0 : index
    %c0_71 = arith.constant 0 : index
    %c0_72 = arith.constant 0 : index
    %57 = vector.load %arg20[%c0_69, %c0_70, %c0_71, %c0_72] : memref<4x10x24x64xf32, #tpu.memory_space<vmem>>, vector<1x10x8x64xf32>
    %58 = vector.shape_cast %57 : vector<1x10x8x64xf32> to vector<10x8x64xf32>
    %59 = vector.shape_cast %56 : vector<10x8x64xf32> to vector<1x10x8x64xf32>
    tpu.vector_store %arg20[%c0_69, %c0_70, %c0_71, %c0_72], %59 {strides = array<i32>} : memref<4x10x24x64xf32, #tpu.memory_space<vmem>>, vector<1x10x8x64xf32>,
    %cst_73 = arith.constant 0.000000e+00 : f32
    %60 = vector.broadcast %cst_73 : f32 to vector<10x8x64xf32>
    %c0_74 = arith.constant 0 : index
    %c0_75 = arith.constant 0 : index
    %c16_76 = arith.constant 16 : index
    %c0_77 = arith.constant 0 : index
    %61 = vector.load %arg20[%c0_74, %c0_75, %c16_76, %c0_77] : memref<4x10x24x64xf32, #tpu.memory_space<vmem>>, vector<1x10x8x64xf32>
    %62 = vector.shape_cast %61 : vector<1x10x8x64xf32> to vector<10x8x64xf32>
    %63 = vector.shape_cast %60 : vector<10x8x64xf32> to vector<1x10x8x64xf32>
    tpu.vector_store %arg20[%c0_74, %c0_75, %c16_76, %c0_77], %63 {strides = array<i32>} : memref<4x10x24x64xf32, #tpu.memory_space<vmem>>, vector<1x10x8x64xf32>,
    %cst_78 = arith.constant 0.000000e+00 : f32
    %64 = vector.broadcast %cst_78 : f32 to vector<24x64xf32>
    %c1 = arith.constant 1 : index
    %c0_79 = arith.constant 0 : index
    %c0_80 = arith.constant 0 : index
    %c0_81 = arith.constant 0 : index
    %65 = vector.load %arg20[%c1, %c0_79, %c0_80, %c0_81] : memref<4x10x24x64xf32, #tpu.memory_space<vmem>>, vector<1x1x24x64xf32>
    %66 = vector.shape_cast %65 : vector<1x1x24x64xf32> to vector<24x64xf32>
    %67 = vector.shape_cast %64 : vector<24x64xf32> to vector<1x1x24x64xf32>
    tpu.vector_store %arg20[%c1, %c0_79, %c0_80, %c0_81], %67 {strides = array<i32>} : memref<4x10x24x64xf32, #tpu.memory_space<vmem>>, vector<1x1x24x64xf32>,
    %cst_82 = arith.constant 0.000000e+00 : f32
    %68 = vector.broadcast %cst_82 : f32 to vector<24x64xf32>
    %c1_83 = arith.constant 1 : index
    %c9_84 = arith.constant 9 : index
    %c0_85 = arith.constant 0 : index
    %c0_86 = arith.constant 0 : index
    %69 = vector.load %arg20[%c1_83, %c9_84, %c0_85, %c0_86] : memref<4x10x24x64xf32, #tpu.memory_space<vmem>>, vector<1x1x24x64xf32>
    %70 = vector.shape_cast %69 : vector<1x1x24x64xf32> to vector<24x64xf32>
    %71 = vector.shape_cast %68 : vector<24x64xf32> to vector<1x1x24x64xf32>
    tpu.vector_store %arg20[%c1_83, %c9_84, %c0_85, %c0_86], %71 {strides = array<i32>} : memref<4x10x24x64xf32, #tpu.memory_space<vmem>>, vector<1x1x24x64xf32>,
    %cst_87 = arith.constant 0.000000e+00 : f32
    %72 = vector.broadcast %cst_87 : f32 to vector<10x8x64xf32>
    %c1_88 = arith.constant 1 : index
    %c0_89 = arith.constant 0 : index
    %c0_90 = arith.constant 0 : index
    %c0_91 = arith.constant 0 : index
    %73 = vector.load %arg20[%c1_88, %c0_89, %c0_90, %c0_91] : memref<4x10x24x64xf32, #tpu.memory_space<vmem>>, vector<1x10x8x64xf32>
    %74 = vector.shape_cast %73 : vector<1x10x8x64xf32> to vector<10x8x64xf32>
    %75 = vector.shape_cast %72 : vector<10x8x64xf32> to vector<1x10x8x64xf32>
    tpu.vector_store %arg20[%c1_88, %c0_89, %c0_90, %c0_91], %75 {strides = array<i32>} : memref<4x10x24x64xf32, #tpu.memory_space<vmem>>, vector<1x10x8x64xf32>,
    %cst_92 = arith.constant 0.000000e+00 : f32
    %76 = vector.broadcast %cst_92 : f32 to vector<10x8x64xf32>
    %c1_93 = arith.constant 1 : index
    %c0_94 = arith.constant 0 : index
    %c16_95 = arith.constant 16 : index
    %c0_96 = arith.constant 0 : index
    %77 = vector.load %arg20[%c1_93, %c0_94, %c16_95, %c0_96] : memref<4x10x24x64xf32, #tpu.memory_space<vmem>>, vector<1x10x8x64xf32>
    %78 = vector.shape_cast %77 : vector<1x10x8x64xf32> to vector<10x8x64xf32>
    %79 = vector.shape_cast %76 : vector<10x8x64xf32> to vector<1x10x8x64xf32>
    tpu.vector_store %arg20[%c1_93, %c0_94, %c16_95, %c0_96], %79 {strides = array<i32>} : memref<4x10x24x64xf32, #tpu.memory_space<vmem>>, vector<1x10x8x64xf32>,
    %cst_97 = arith.constant 0.000000e+00 : f32
    %80 = vector.broadcast %cst_97 : f32 to vector<24x64xf32>
    %c2 = arith.constant 2 : index
    %c0_98 = arith.constant 0 : index
    %c0_99 = arith.constant 0 : index
    %c0_100 = arith.constant 0 : index
    %81 = vector.load %arg20[%c2, %c0_98, %c0_99, %c0_100] : memref<4x10x24x64xf32, #tpu.memory_space<vmem>>, vector<1x1x24x64xf32>
    %82 = vector.shape_cast %81 : vector<1x1x24x64xf32> to vector<24x64xf32>
    %83 = vector.shape_cast %80 : vector<24x64xf32> to vector<1x1x24x64xf32>
    tpu.vector_store %arg20[%c2, %c0_98, %c0_99, %c0_100], %83 {strides = array<i32>} : memref<4x10x24x64xf32, #tpu.memory_space<vmem>>, vector<1x1x24x64xf32>,
    %cst_101 = arith.constant 0.000000e+00 : f32
    %84 = vector.broadcast %cst_101 : f32 to vector<24x64xf32>
    %c2_102 = arith.constant 2 : index
    %c9_103 = arith.constant 9 : index
    %c0_104 = arith.constant 0 : index
    %c0_105 = arith.constant 0 : index
    %85 = vector.load %arg20[%c2_102, %c9_103, %c0_104, %c0_105] : memref<4x10x24x64xf32, #tpu.memory_space<vmem>>, vector<1x1x24x64xf32>
    %86 = vector.shape_cast %85 : vector<1x1x24x64xf32> to vector<24x64xf32>
    %87 = vector.shape_cast %84 : vector<24x64xf32> to vector<1x1x24x64xf32>
    tpu.vector_store %arg20[%c2_102, %c9_103, %c0_104, %c0_105], %87 {strides = array<i32>} : memref<4x10x24x64xf32, #tpu.memory_space<vmem>>, vector<1x1x24x64xf32>,
    %cst_106 = arith.constant 0.000000e+00 : f32
    %88 = vector.broadcast %cst_106 : f32 to vector<10x8x64xf32>
    %c2_107 = arith.constant 2 : index
    %c0_108 = arith.constant 0 : index
    %c0_109 = arith.constant 0 : index
    %c0_110 = arith.constant 0 : index
    %89 = vector.load %arg20[%c2_107, %c0_108, %c0_109, %c0_110] : memref<4x10x24x64xf32, #tpu.memory_space<vmem>>, vector<1x10x8x64xf32>
    %90 = vector.shape_cast %89 : vector<1x10x8x64xf32> to vector<10x8x64xf32>
    %91 = vector.shape_cast %88 : vector<10x8x64xf32> to vector<1x10x8x64xf32>
    tpu.vector_store %arg20[%c2_107, %c0_108, %c0_109, %c0_110], %91 {strides = array<i32>} : memref<4x10x24x64xf32, #tpu.memory_space<vmem>>, vector<1x10x8x64xf32>,
    %cst_111 = arith.constant 0.000000e+00 : f32
    %92 = vector.broadcast %cst_111 : f32 to vector<10x8x64xf32>
    %c2_112 = arith.constant 2 : index
    %c0_113 = arith.constant 0 : index
    %c16_114 = arith.constant 16 : index
    %c0_115 = arith.constant 0 : index
    %93 = vector.load %arg20[%c2_112, %c0_113, %c16_114, %c0_115] : memref<4x10x24x64xf32, #tpu.memory_space<vmem>>, vector<1x10x8x64xf32>
    %94 = vector.shape_cast %93 : vector<1x10x8x64xf32> to vector<10x8x64xf32>
    %95 = vector.shape_cast %92 : vector<10x8x64xf32> to vector<1x10x8x64xf32>
    tpu.vector_store %arg20[%c2_112, %c0_113, %c16_114, %c0_115], %95 {strides = array<i32>} : memref<4x10x24x64xf32, #tpu.memory_space<vmem>>, vector<1x10x8x64xf32>,
    %cst_116 = arith.constant 0.000000e+00 : f32
    %96 = vector.broadcast %cst_116 : f32 to vector<24x64xf32>
    %c3 = arith.constant 3 : index
    %c0_117 = arith.constant 0 : index
    %c0_118 = arith.constant 0 : index
    %c0_119 = arith.constant 0 : index
    %97 = vector.load %arg20[%c3, %c0_117, %c0_118, %c0_119] : memref<4x10x24x64xf32, #tpu.memory_space<vmem>>, vector<1x1x24x64xf32>
    %98 = vector.shape_cast %97 : vector<1x1x24x64xf32> to vector<24x64xf32>
    %99 = vector.shape_cast %96 : vector<24x64xf32> to vector<1x1x24x64xf32>
    tpu.vector_store %arg20[%c3, %c0_117, %c0_118, %c0_119], %99 {strides = array<i32>} : memref<4x10x24x64xf32, #tpu.memory_space<vmem>>, vector<1x1x24x64xf32>,
    %cst_120 = arith.constant 0.000000e+00 : f32
    %100 = vector.broadcast %cst_120 : f32 to vector<24x64xf32>
    %c3_121 = arith.constant 3 : index
    %c9_122 = arith.constant 9 : index
    %c0_123 = arith.constant 0 : index
    %c0_124 = arith.constant 0 : index
    %101 = vector.load %arg20[%c3_121, %c9_122, %c0_123, %c0_124] : memref<4x10x24x64xf32, #tpu.memory_space<vmem>>, vector<1x1x24x64xf32>
    %102 = vector.shape_cast %101 : vector<1x1x24x64xf32> to vector<24x64xf32>
    %103 = vector.shape_cast %100 : vector<24x64xf32> to vector<1x1x24x64xf32>
    tpu.vector_store %arg20[%c3_121, %c9_122, %c0_123, %c0_124], %103 {strides = array<i32>} : memref<4x10x24x64xf32, #tpu.memory_space<vmem>>, vector<1x1x24x64xf32>,
    %cst_125 = arith.constant 0.000000e+00 : f32
    %104 = vector.broadcast %cst_125 : f32 to vector<10x8x64xf32>
    %c3_126 = arith.constant 3 : index
    %c0_127 = arith.constant 0 : index
    %c0_128 = arith.constant 0 : index
    %c0_129 = arith.constant 0 : index
    %105 = vector.load %arg20[%c3_126, %c0_127, %c0_128, %c0_129] : memref<4x10x24x64xf32, #tpu.memory_space<vmem>>, vector<1x10x8x64xf32>
    %106 = vector.shape_cast %105 : vector<1x10x8x64xf32> to vector<10x8x64xf32>
    %107 = vector.shape_cast %104 : vector<10x8x64xf32> to vector<1x10x8x64xf32>
    tpu.vector_store %arg20[%c3_126, %c0_127, %c0_128, %c0_129], %107 {strides = array<i32>} : memref<4x10x24x64xf32, #tpu.memory_space<vmem>>, vector<1x10x8x64xf32>,
    %cst_130 = arith.constant 0.000000e+00 : f32
    %108 = vector.broadcast %cst_130 : f32 to vector<10x8x64xf32>
    %c3_131 = arith.constant 3 : index
    %c0_132 = arith.constant 0 : index
    %c16_133 = arith.constant 16 : index
    %c0_134 = arith.constant 0 : index
    %109 = vector.load %arg20[%c3_131, %c0_132, %c16_133, %c0_134] : memref<4x10x24x64xf32, #tpu.memory_space<vmem>>, vector<1x10x8x64xf32>
    %110 = vector.shape_cast %109 : vector<1x10x8x64xf32> to vector<10x8x64xf32>
    %111 = vector.shape_cast %108 : vector<10x8x64xf32> to vector<1x10x8x64xf32>
    tpu.vector_store %arg20[%c3_131, %c0_132, %c16_133, %c0_134], %111 {strides = array<i32>} : memref<4x10x24x64xf32, #tpu.memory_space<vmem>>, vector<1x10x8x64xf32>,
    %c0_135 = arith.constant 0 : index
    %c0_136 = arith.constant 0 : index
    %112 = vector.load %arg1[%c0_135, %c0_136] : memref<16x16xf32, #tpu.memory_space<vmem>>, vector<16x16xf32>
    %113 = vector.shape_cast %112 : vector<16x16xf32> to vector<16x16x1xf32>
    %114 = vector.shape_cast %113 : vector<16x16x1xf32> to vector<16x16x1xf32>
    %115 = vector.broadcast %114 : vector<16x16x1xf32> to vector<16x16x8xf32>
    %c1_137 = arith.constant 1 : index
    %c8 = arith.constant 8 : index
    %c0_138 = arith.constant 0 : index
    %116 = vector.load %arg15[%c1_137, %c8, %c0_138] : memref<18x32x8xf32, #tpu.memory_space<vmem>>, vector<16x16x8xf32>
    tpu.vector_store %arg15[%c1_137, %c8, %c0_138], %115 {strides = array<i32>} : memref<18x32x8xf32, #tpu.memory_space<vmem>>, vector<16x16x8xf32>,
    %c0_139 = arith.constant 0 : index
    %c7 = arith.constant 7 : index
    %c0_140 = arith.constant 0 : index
    %117 = vector.load %arg15[%c0_139, %c7, %c0_140] : memref<18x32x8xf32, #tpu.memory_space<vmem>>, vector<18x16x8xf32>
    %c0_141 = arith.constant 0 : index
    %c8_142 = arith.constant 8 : index
    %c0_143 = arith.constant 0 : index
    %118 = vector.load %arg15[%c0_141, %c8_142, %c0_143] : memref<18x32x8xf32, #tpu.memory_space<vmem>>, vector<18x16x8xf32>
    %c0_144 = arith.constant 0 : index
    %c9_145 = arith.constant 9 : index
    %c0_146 = arith.constant 0 : index
    %119 = vector.load %arg15[%c0_144, %c9_145, %c0_146] : memref<18x32x8xf32, #tpu.memory_space<vmem>>, vector<18x16x8xf32>
    %120 = tpu.concatenate %117, %118, %119 in 2 : vector<18x16x8xf32>, vector<18x16x8xf32>, vector<18x16x8xf32> -> vector<18x16x24xf32>
    %121 = arith.truncf %120 : vector<18x16x24xf32> to vector<18x16x24xbf16>
    %c0_147 = arith.constant 0 : index
    %c0_148 = arith.constant 0 : index
    %122 = vector.load %arg3[%c0_147, %c0_148] : memref<1x64xf32, #tpu.memory_space<vmem>>, vector<1x64xf32>
    %123 = vector.extract_strided_slice %121 {offsets = [0, 0, 0], sizes = [16, 16, 24], strides = [1, 1, 1]} : vector<18x16x24xbf16> to vector<16x16x24xbf16>
    %124 = vector.shape_cast %123 : vector<16x16x24xbf16> to vector<256x24xbf16>
    %c0_149 = arith.constant 0 : index
    %c0_150 = arith.constant 0 : index
    %c0_151 = arith.constant 0 : index
    %125 = vector.load %arg2[%c0_149, %c0_150, %c0_151] : memref<3x24x64xbf16, #tpu.memory_space<vmem>>, vector<1x24x64xbf16>
    %126 = vector.shape_cast %125 : vector<1x24x64xbf16> to vector<24x64xbf16>
    %cst_152 = arith.constant dense<0.000000e+00> : vector<256x64xf32>
    %127 = tpu.matmul %124, %126, %cst_152 {dimension_numbers = #tpu.dot_dimension_numbers<[1], [0], [0], [1], [0, 0, 1, 1], [], []>} : vector<256x24xbf16>, vector<24x64xbf16>, vector<256x64xf32> -> vector<256x64xf32>
    %128 = vector.broadcast %122 : vector<1x64xf32> to vector<256x64xf32>
    %129 = arith.addf %128, %127 : vector<256x64xf32>
    %130 = vector.extract_strided_slice %121 {offsets = [1, 0, 0], sizes = [16, 16, 24], strides = [1, 1, 1]} : vector<18x16x24xbf16> to vector<16x16x24xbf16>
    %131 = vector.shape_cast %130 : vector<16x16x24xbf16> to vector<256x24xbf16>
    %c1_153 = arith.constant 1 : index
    %c0_154 = arith.constant 0 : index
    %c0_155 = arith.constant 0 : index
    %132 = vector.load %arg2[%c1_153, %c0_154, %c0_155] : memref<3x24x64xbf16, #tpu.memory_space<vmem>>, vector<1x24x64xbf16>
    %133 = vector.shape_cast %132 : vector<1x24x64xbf16> to vector<24x64xbf16>
    %cst_156 = arith.constant dense<0.000000e+00> : vector<256x64xf32>
    %134 = tpu.matmul %131, %133, %cst_156 {dimension_numbers = #tpu.dot_dimension_numbers<[1], [0], [0], [1], [0, 0, 1, 1], [], []>} : vector<256x24xbf16>, vector<24x64xbf16>, vector<256x64xf32> -> vector<256x64xf32>
    %135 = arith.addf %129, %134 : vector<256x64xf32>
    %136 = vector.extract_strided_slice %121 {offsets = [2, 0, 0], sizes = [16, 16, 24], strides = [1, 1, 1]} : vector<18x16x24xbf16> to vector<16x16x24xbf16>
    %137 = vector.shape_cast %136 : vector<16x16x24xbf16> to vector<256x24xbf16>
    %c2_157 = arith.constant 2 : index
    %c0_158 = arith.constant 0 : index
    %c0_159 = arith.constant 0 : index
    %138 = vector.load %arg2[%c2_157, %c0_158, %c0_159] : memref<3x24x64xbf16, #tpu.memory_space<vmem>>, vector<1x24x64xbf16>
    %139 = vector.shape_cast %138 : vector<1x24x64xbf16> to vector<24x64xbf16>
    %cst_160 = arith.constant dense<0.000000e+00> : vector<256x64xf32>
    %140 = tpu.matmul %137, %139, %cst_160 {dimension_numbers = #tpu.dot_dimension_numbers<[1], [0], [0], [1], [0, 0, 1, 1], [], []>} : vector<256x24xbf16>, vector<24x64xbf16>, vector<256x64xf32> -> vector<256x64xf32>
    %141 = arith.addf %135, %140 : vector<256x64xf32>
    %cst_161 = arith.constant 0.000000e+00 : f32
    %142 = vector.broadcast %cst_161 : f32 to vector<256x64xf32>
    %143 = arith.maximumf %141, %142 : vector<256x64xf32>
    %144 = vector.shape_cast %143 : vector<256x64xf32> to vector<16x16x64xf32>
    %c1_162 = arith.constant 1 : index
    %c8_163 = arith.constant 8 : index
    %c0_164 = arith.constant 0 : index
    %145 = vector.load %arg16[%c1_162, %c8_163, %c0_164] : memref<18x32x64xf32, #tpu.memory_space<vmem>>, vector<16x16x64xf32>
    tpu.vector_store %arg16[%c1_162, %c8_163, %c0_164], %144 {strides = array<i32>} : memref<18x32x64xf32, #tpu.memory_space<vmem>>, vector<16x16x64xf32>,
    %c0_165 = arith.constant 0 : index
    %c7_166 = arith.constant 7 : index
    %c0_167 = arith.constant 0 : index
    %146 = vector.load %arg16[%c0_165, %c7_166, %c0_167] : memref<18x32x64xf32, #tpu.memory_space<vmem>>, vector<18x16x64xf32>
    %c0_168 = arith.constant 0 : index
    %c8_169 = arith.constant 8 : index
    %c0_170 = arith.constant 0 : index
    %147 = vector.load %arg16[%c0_168, %c8_169, %c0_170] : memref<18x32x64xf32, #tpu.memory_space<vmem>>, vector<18x16x64xf32>
    %c0_171 = arith.constant 0 : index
    %c9_172 = arith.constant 9 : index
    %c0_173 = arith.constant 0 : index
    %148 = vector.load %arg16[%c0_171, %c9_172, %c0_173] : memref<18x32x64xf32, #tpu.memory_space<vmem>>, vector<18x16x64xf32>
    %149 = tpu.concatenate %146, %147, %148 in 2 : vector<18x16x64xf32>, vector<18x16x64xf32>, vector<18x16x64xf32> -> vector<18x16x192xf32>
    %150 = arith.truncf %149 : vector<18x16x192xf32> to vector<18x16x192xbf16>
    %c0_174 = arith.constant 0 : index
    %c0_175 = arith.constant 0 : index
    %151 = vector.load %arg5[%c0_174, %c0_175] : memref<1x64xf32, #tpu.memory_space<vmem>>, vector<1x64xf32>
    %152 = vector.extract_strided_slice %150 {offsets = [0, 0, 0], sizes = [16, 16, 192], strides = [1, 1, 1]} : vector<18x16x192xbf16> to vector<16x16x192xbf16>
    %153 = vector.shape_cast %152 : vector<16x16x192xbf16> to vector<256x192xbf16>
    %c0_176 = arith.constant 0 : index
    %c0_177 = arith.constant 0 : index
    %c0_178 = arith.constant 0 : index
    %154 = vector.load %arg4[%c0_176, %c0_177, %c0_178] : memref<3x192x64xbf16, #tpu.memory_space<vmem>>, vector<1x192x64xbf16>
    %155 = vector.shape_cast %154 : vector<1x192x64xbf16> to vector<192x64xbf16>
    %cst_179 = arith.constant dense<0.000000e+00> : vector<256x64xf32>
    %156 = tpu.matmul %153, %155, %cst_179 {dimension_numbers = #tpu.dot_dimension_numbers<[1], [0], [0], [1], [0, 0, 1, 1], [], []>} : vector<256x192xbf16>, vector<192x64xbf16>, vector<256x64xf32> -> vector<256x64xf32>
    %157 = vector.broadcast %151 : vector<1x64xf32> to vector<256x64xf32>
    %158 = arith.addf %157, %156 : vector<256x64xf32>
    %159 = vector.extract_strided_slice %150 {offsets = [1, 0, 0], sizes = [16, 16, 192], strides = [1, 1, 1]} : vector<18x16x192xbf16> to vector<16x16x192xbf16>
    %160 = vector.shape_cast %159 : vector<16x16x192xbf16> to vector<256x192xbf16>
    %c1_180 = arith.constant 1 : index
    %c0_181 = arith.constant 0 : index
    %c0_182 = arith.constant 0 : index
    %161 = vector.load %arg4[%c1_180, %c0_181, %c0_182] : memref<3x192x64xbf16, #tpu.memory_space<vmem>>, vector<1x192x64xbf16>
    %162 = vector.shape_cast %161 : vector<1x192x64xbf16> to vector<192x64xbf16>
    %cst_183 = arith.constant dense<0.000000e+00> : vector<256x64xf32>
    %163 = tpu.matmul %160, %162, %cst_183 {dimension_numbers = #tpu.dot_dimension_numbers<[1], [0], [0], [1], [0, 0, 1, 1], [], []>} : vector<256x192xbf16>, vector<192x64xbf16>, vector<256x64xf32> -> vector<256x64xf32>
    %164 = arith.addf %158, %163 : vector<256x64xf32>
    %165 = vector.extract_strided_slice %150 {offsets = [2, 0, 0], sizes = [16, 16, 192], strides = [1, 1, 1]} : vector<18x16x192xbf16> to vector<16x16x192xbf16>
    %166 = vector.shape_cast %165 : vector<16x16x192xbf16> to vector<256x192xbf16>
    %c2_184 = arith.constant 2 : index
    %c0_185 = arith.constant 0 : index
    %c0_186 = arith.constant 0 : index
    %167 = vector.load %arg4[%c2_184, %c0_185, %c0_186] : memref<3x192x64xbf16, #tpu.memory_space<vmem>>, vector<1x192x64xbf16>
    %168 = vector.shape_cast %167 : vector<1x192x64xbf16> to vector<192x64xbf16>
    %cst_187 = arith.constant dense<0.000000e+00> : vector<256x64xf32>
    %169 = tpu.matmul %166, %168, %cst_187 {dimension_numbers = #tpu.dot_dimension_numbers<[1], [0], [0], [1], [0, 0, 1, 1], [], []>} : vector<256x192xbf16>, vector<192x64xbf16>, vector<256x64xf32> -> vector<256x64xf32>
    %170 = arith.addf %164, %169 : vector<256x64xf32>
    %cst_188 = arith.constant 0.000000e+00 : f32
    %171 = vector.broadcast %cst_188 : f32 to vector<256x64xf32>
    %172 = arith.maximumf %170, %171 : vector<256x64xf32>
    %173 = vector.shape_cast %172 : vector<256x64xf32> to vector<16x16x64xf32>
    %c0_189 = arith.constant 0 : index
    %c0_190 = arith.constant 0 : index
    %c0_191 = arith.constant 0 : index
    %174 = vector.load %arg17[%c0_189, %c0_190, %c0_191] : memref<16x16x64xf32, #tpu.memory_space<vmem>>, vector<16x16x64xf32>
    tpu.vector_store %arg17[%c0_189, %c0_190, %c0_191], %173 {strides = array<i32>} : memref<16x16x64xf32, #tpu.memory_space<vmem>>, vector<16x16x64xf32>,
    %c0_192 = arith.constant 0 : index
    %c0_193 = arith.constant 0 : index
    %c0_194 = arith.constant 0 : index
    %175 = tpu.strided_load %arg17[%c0_192, %c0_193, %c0_194] {strides = array<i32: 2, 2, 1>} : memref<16x16x64xf32, #tpu.memory_space<vmem>>, vector<8x8x64xf32>
    %c0_195 = arith.constant 0 : index
    %c1_196 = arith.constant 1 : index
    %c0_197 = arith.constant 0 : index
    %176 = tpu.strided_load %arg17[%c0_195, %c1_196, %c0_197] {strides = array<i32: 2, 2, 1>} : memref<16x16x64xf32, #tpu.memory_space<vmem>>, vector<8x8x64xf32>
    %c1_198 = arith.constant 1 : index
    %c0_199 = arith.constant 0 : index
    %c0_200 = arith.constant 0 : index
    %177 = tpu.strided_load %arg17[%c1_198, %c0_199, %c0_200] {strides = array<i32: 2, 2, 1>} : memref<16x16x64xf32, #tpu.memory_space<vmem>>, vector<8x8x64xf32>
    %c1_201 = arith.constant 1 : index
    %c1_202 = arith.constant 1 : index
    %c0_203 = arith.constant 0 : index
    %178 = tpu.strided_load %arg17[%c1_201, %c1_202, %c0_203] {strides = array<i32: 2, 2, 1>} : memref<16x16x64xf32, #tpu.memory_space<vmem>>, vector<8x8x64xf32>
    %179 = arith.maximumf %175, %176 : vector<8x8x64xf32>
    %180 = arith.maximumf %177, %178 : vector<8x8x64xf32>
    %181 = arith.maximumf %179, %180 : vector<8x8x64xf32>
    %c1_204 = arith.constant 1 : index
    %c8_205 = arith.constant 8 : index
    %c0_206 = arith.constant 0 : index
    %182 = vector.load %arg18[%c1_204, %c8_205, %c0_206] : memref<10x24x64xf32, #tpu.memory_space<vmem>>, vector<8x8x64xf32>
    tpu.vector_store %arg18[%c1_204, %c8_205, %c0_206], %181 {strides = array<i32>} : memref<10x24x64xf32, #tpu.memory_space<vmem>>, vector<8x8x64xf32>,
    %c0_207 = arith.constant 0 : index
    %c7_208 = arith.constant 7 : index
    %c0_209 = arith.constant 0 : index
    %183 = vector.load %arg18[%c0_207, %c7_208, %c0_209] : memref<10x24x64xf32, #tpu.memory_space<vmem>>, vector<10x8x64xf32>
    %c0_210 = arith.constant 0 : index
    %c8_211 = arith.constant 8 : index
    %c0_212 = arith.constant 0 : index
    %184 = vector.load %arg18[%c0_210, %c8_211, %c0_212] : memref<10x24x64xf32, #tpu.memory_space<vmem>>, vector<10x8x64xf32>
    %c0_213 = arith.constant 0 : index
    %c9_214 = arith.constant 9 : index
    %c0_215 = arith.constant 0 : index
    %185 = vector.load %arg18[%c0_213, %c9_214, %c0_215] : memref<10x24x64xf32, #tpu.memory_space<vmem>>, vector<10x8x64xf32>
    %186 = tpu.concatenate %183, %184, %185 in 2 : vector<10x8x64xf32>, vector<10x8x64xf32>, vector<10x8x64xf32> -> vector<10x8x192xf32>
    %187 = arith.truncf %186 : vector<10x8x192xf32> to vector<10x8x192xbf16>
    %c0_216 = arith.constant 0 : index
    %c0_217 = arith.constant 0 : index
    %188 = vector.load %arg7[%c0_216, %c0_217] : memref<1x128xf32, #tpu.memory_space<vmem>>, vector<1x128xf32>
    %189 = vector.extract_strided_slice %187 {offsets = [0, 0, 0], sizes = [8, 8, 192], strides = [1, 1, 1]} : vector<10x8x192xbf16> to vector<8x8x192xbf16>
    %190 = vector.shape_cast %189 : vector<8x8x192xbf16> to vector<64x192xbf16>
    %c0_218 = arith.constant 0 : index
    %c0_219 = arith.constant 0 : index
    %c0_220 = arith.constant 0 : index
    %191 = vector.load %arg6[%c0_218, %c0_219, %c0_220] : memref<3x192x128xbf16, #tpu.memory_space<vmem>>, vector<1x192x128xbf16>
    %192 = vector.shape_cast %191 : vector<1x192x128xbf16> to vector<192x128xbf16>
    %cst_221 = arith.constant dense<0.000000e+00> : vector<64x128xf32>
    %193 = tpu.matmul %190, %192, %cst_221 {dimension_numbers = #tpu.dot_dimension_numbers<[1], [0], [0], [1], [0, 0, 1, 1], [], []>} : vector<64x192xbf16>, vector<192x128xbf16>, vector<64x128xf32> -> vector<64x128xf32>
    %194 = vector.broadcast %188 : vector<1x128xf32> to vector<64x128xf32>
    %195 = arith.addf %194, %193 : vector<64x128xf32>
    %196 = vector.extract_strided_slice %187 {offsets = [1, 0, 0], sizes = [8, 8, 192], strides = [1, 1, 1]} : vector<10x8x192xbf16> to vector<8x8x192xbf16>
    %197 = vector.shape_cast %196 : vector<8x8x192xbf16> to vector<64x192xbf16>
    %c1_222 = arith.constant 1 : index
    %c0_223 = arith.constant 0 : index
    %c0_224 = arith.constant 0 : index
    %198 = vector.load %arg6[%c1_222, %c0_223, %c0_224] : memref<3x192x128xbf16, #tpu.memory_space<vmem>>, vector<1x192x128xbf16>
    %199 = vector.shape_cast %198 : vector<1x192x128xbf16> to vector<192x128xbf16>
    %cst_225 = arith.constant dense<0.000000e+00> : vector<64x128xf32>
    %200 = tpu.matmul %197, %199, %cst_225 {dimension_numbers = #tpu.dot_dimension_numbers<[1], [0], [0], [1], [0, 0, 1, 1], [], []>} : vector<64x192xbf16>, vector<192x128xbf16>, vector<64x128xf32> -> vector<64x128xf32>
    %201 = arith.addf %195, %200 : vector<64x128xf32>
    %202 = vector.extract_strided_slice %187 {offsets = [2, 0, 0], sizes = [8, 8, 192], strides = [1, 1, 1]} : vector<10x8x192xbf16> to vector<8x8x192xbf16>
    %203 = vector.shape_cast %202 : vector<8x8x192xbf16> to vector<64x192xbf16>
    %c2_226 = arith.constant 2 : index
    %c0_227 = arith.constant 0 : index
    %c0_228 = arith.constant 0 : index
    %204 = vector.load %arg6[%c2_226, %c0_227, %c0_228] : memref<3x192x128xbf16, #tpu.memory_space<vmem>>, vector<1x192x128xbf16>
    %205 = vector.shape_cast %204 : vector<1x192x128xbf16> to vector<192x128xbf16>
    %cst_229 = arith.constant dense<0.000000e+00> : vector<64x128xf32>
    %206 = tpu.matmul %203, %205, %cst_229 {dimension_numbers = #tpu.dot_dimension_numbers<[1], [0], [0], [1], [0, 0, 1, 1], [], []>} : vector<64x192xbf16>, vector<192x128xbf16>, vector<64x128xf32> -> vector<64x128xf32>
    %207 = arith.addf %201, %206 : vector<64x128xf32>
    %cst_230 = arith.constant 0.000000e+00 : f32
    %208 = vector.broadcast %cst_230 : f32 to vector<64x128xf32>
    %209 = arith.maximumf %207, %208 : vector<64x128xf32>
    %210 = vector.shape_cast %209 : vector<64x128xf32> to vector<8x8x128xf32>
    %c1_231 = arith.constant 1 : index
    %c8_232 = arith.constant 8 : index
    %c0_233 = arith.constant 0 : index
    %211 = vector.load %arg19[%c1_231, %c8_232, %c0_233] : memref<10x24x128xf32, #tpu.memory_space<vmem>>, vector<8x8x128xf32>
    tpu.vector_store %arg19[%c1_231, %c8_232, %c0_233], %210 {strides = array<i32>} : memref<10x24x128xf32, #tpu.memory_space<vmem>>, vector<8x8x128xf32>,
    %c0_234 = arith.constant 0 : index
    %c7_235 = arith.constant 7 : index
    %c0_236 = arith.constant 0 : index
    %212 = vector.load %arg19[%c0_234, %c7_235, %c0_236] : memref<10x24x128xf32, #tpu.memory_space<vmem>>, vector<10x8x128xf32>
    %c0_237 = arith.constant 0 : index
    %c8_238 = arith.constant 8 : index
    %c0_239 = arith.constant 0 : index
    %213 = vector.load %arg19[%c0_237, %c8_238, %c0_239] : memref<10x24x128xf32, #tpu.memory_space<vmem>>, vector<10x8x128xf32>
    %c0_240 = arith.constant 0 : index
    %c9_241 = arith.constant 9 : index
    %c0_242 = arith.constant 0 : index
    %214 = vector.load %arg19[%c0_240, %c9_241, %c0_242] : memref<10x24x128xf32, #tpu.memory_space<vmem>>, vector<10x8x128xf32>
    %215 = tpu.concatenate %212, %213, %214 in 2 : vector<10x8x128xf32>, vector<10x8x128xf32>, vector<10x8x128xf32> -> vector<10x8x384xf32>
    %216 = arith.truncf %215 : vector<10x8x384xf32> to vector<10x8x384xbf16>
    %c0_243 = arith.constant 0 : index
    %c0_244 = arith.constant 0 : index
    %217 = vector.load %arg9[%c0_243, %c0_244] : memref<1x128xf32, #tpu.memory_space<vmem>>, vector<1x128xf32>
    %218 = vector.extract_strided_slice %216 {offsets = [0, 0, 0], sizes = [8, 8, 384], strides = [1, 1, 1]} : vector<10x8x384xbf16> to vector<8x8x384xbf16>
    %219 = vector.shape_cast %218 : vector<8x8x384xbf16> to vector<64x384xbf16>
    %c0_245 = arith.constant 0 : index
    %c0_246 = arith.constant 0 : index
    %c0_247 = arith.constant 0 : index
    %220 = vector.load %arg8[%c0_245, %c0_246, %c0_247] : memref<3x384x128xbf16, #tpu.memory_space<vmem>>, vector<1x384x128xbf16>
    %221 = vector.shape_cast %220 : vector<1x384x128xbf16> to vector<384x128xbf16>
    %cst_248 = arith.constant dense<0.000000e+00> : vector<64x128xf32>
    %222 = tpu.matmul %219, %221, %cst_248 {dimension_numbers = #tpu.dot_dimension_numbers<[1], [0], [0], [1], [0, 0, 1, 1], [], []>} : vector<64x384xbf16>, vector<384x128xbf16>, vector<64x128xf32> -> vector<64x128xf32>
    %223 = vector.broadcast %217 : vector<1x128xf32> to vector<64x128xf32>
    %224 = arith.addf %223, %222 : vector<64x128xf32>
    %225 = vector.extract_strided_slice %216 {offsets = [1, 0, 0], sizes = [8, 8, 384], strides = [1, 1, 1]} : vector<10x8x384xbf16> to vector<8x8x384xbf16>
    %226 = vector.shape_cast %225 : vector<8x8x384xbf16> to vector<64x384xbf16>
    %c1_249 = arith.constant 1 : index
    %c0_250 = arith.constant 0 : index
    %c0_251 = arith.constant 0 : index
    %227 = vector.load %arg8[%c1_249, %c0_250, %c0_251] : memref<3x384x128xbf16, #tpu.memory_space<vmem>>, vector<1x384x128xbf16>
    %228 = vector.shape_cast %227 : vector<1x384x128xbf16> to vector<384x128xbf16>
    %cst_252 = arith.constant dense<0.000000e+00> : vector<64x128xf32>
    %229 = tpu.matmul %226, %228, %cst_252 {dimension_numbers = #tpu.dot_dimension_numbers<[1], [0], [0], [1], [0, 0, 1, 1], [], []>} : vector<64x384xbf16>, vector<384x128xbf16>, vector<64x128xf32> -> vector<64x128xf32>
    %230 = arith.addf %224, %229 : vector<64x128xf32>
    %231 = vector.extract_strided_slice %216 {offsets = [2, 0, 0], sizes = [8, 8, 384], strides = [1, 1, 1]} : vector<10x8x384xbf16> to vector<8x8x384xbf16>
    %232 = vector.shape_cast %231 : vector<8x8x384xbf16> to vector<64x384xbf16>
    %c2_253 = arith.constant 2 : index
    %c0_254 = arith.constant 0 : index
    %c0_255 = arith.constant 0 : index
    %233 = vector.load %arg8[%c2_253, %c0_254, %c0_255] : memref<3x384x128xbf16, #tpu.memory_space<vmem>>, vector<1x384x128xbf16>
    %234 = vector.shape_cast %233 : vector<1x384x128xbf16> to vector<384x128xbf16>
    %cst_256 = arith.constant dense<0.000000e+00> : vector<64x128xf32>
    %235 = tpu.matmul %232, %234, %cst_256 {dimension_numbers = #tpu.dot_dimension_numbers<[1], [0], [0], [1], [0, 0, 1, 1], [], []>} : vector<64x384xbf16>, vector<384x128xbf16>, vector<64x128xf32> -> vector<64x128xf32>
    %236 = arith.addf %230, %235 : vector<64x128xf32>
    %cst_257 = arith.constant 0.000000e+00 : f32
    %237 = vector.broadcast %cst_257 : f32 to vector<64x128xf32>
    %238 = arith.maximumf %236, %237 : vector<64x128xf32>
    %239 = arith.truncf %238 : vector<64x128xf32> to vector<64x128xbf16>
    %c0_258 = arith.constant 0 : index
    %c0_259 = arith.constant 0 : index
    %240 = vector.load %arg10[%c0_258, %c0_259] : memref<128x256xbf16, #tpu.memory_space<vmem>>, vector<128x256xbf16>
    %cst_260 = arith.constant dense<0.000000e+00> : vector<64x256xf32>
    %241 = tpu.matmul %239, %240, %cst_260 {dimension_numbers = #tpu.dot_dimension_numbers<[1], [0], [0], [1], [0, 0, 1, 1], [], []>} : vector<64x128xbf16>, vector<128x256xbf16>, vector<64x256xf32> -> vector<64x256xf32>
    %c0_261 = arith.constant 0 : index
    %c0_262 = arith.constant 0 : index
    %242 = vector.load %arg11[%c0_261, %c0_262] : memref<1x256xf32, #tpu.memory_space<vmem>>, vector<1x256xf32>
    %243 = vector.broadcast %242 : vector<1x256xf32> to vector<64x256xf32>
    %244 = arith.addf %241, %243 : vector<64x256xf32>
    %cst_263 = arith.constant 0.000000e+00 : f32
    %245 = vector.broadcast %cst_263 : f32 to vector<64x256xf32>
    %246 = arith.maximumf %244, %245 : vector<64x256xf32>
    %247 = vector.extract_strided_slice %246 {offsets = [0, 0], sizes = [64, 64], strides = [1, 1]} : vector<64x256xf32> to vector<64x64xf32>
    %248 = vector.shape_cast %247 : vector<64x64xf32> to vector<8x8x64xf32>
    %c0_264 = arith.constant 0 : index
    %c1_265 = arith.constant 1 : index
    %c8_266 = arith.constant 8 : index
    %c0_267 = arith.constant 0 : index
    %249 = vector.load %arg20[%c0_264, %c1_265, %c8_266, %c0_267] : memref<4x10x24x64xf32, #tpu.memory_space<vmem>>, vector<1x8x8x64xf32>
    %250 = vector.shape_cast %249 : vector<1x8x8x64xf32> to vector<8x8x64xf32>
    %251 = vector.shape_cast %248 : vector<8x8x64xf32> to vector<1x8x8x64xf32>
    tpu.vector_store %arg20[%c0_264, %c1_265, %c8_266, %c0_267], %251 {strides = array<i32>} : memref<4x10x24x64xf32, #tpu.memory_space<vmem>>, vector<1x8x8x64xf32>,
    %252 = vector.extract_strided_slice %246 {offsets = [0, 64], sizes = [64, 64], strides = [1, 1]} : vector<64x256xf32> to vector<64x64xf32>
    %253 = vector.shape_cast %252 : vector<64x64xf32> to vector<8x8x64xf32>
    %c1_268 = arith.constant 1 : index
    %c1_269 = arith.constant 1 : index
    %c8_270 = arith.constant 8 : index
    %c0_271 = arith.constant 0 : index
    %254 = vector.load %arg20[%c1_268, %c1_269, %c8_270, %c0_271] : memref<4x10x24x64xf32, #tpu.memory_space<vmem>>, vector<1x8x8x64xf32>
    %255 = vector.shape_cast %254 : vector<1x8x8x64xf32> to vector<8x8x64xf32>
    %256 = vector.shape_cast %253 : vector<8x8x64xf32> to vector<1x8x8x64xf32>
    tpu.vector_store %arg20[%c1_268, %c1_269, %c8_270, %c0_271], %256 {strides = array<i32>} : memref<4x10x24x64xf32, #tpu.memory_space<vmem>>, vector<1x8x8x64xf32>,
    %257 = vector.extract_strided_slice %246 {offsets = [0, 128], sizes = [64, 64], strides = [1, 1]} : vector<64x256xf32> to vector<64x64xf32>
    %258 = vector.shape_cast %257 : vector<64x64xf32> to vector<8x8x64xf32>
    %c2_272 = arith.constant 2 : index
    %c1_273 = arith.constant 1 : index
    %c8_274 = arith.constant 8 : index
    %c0_275 = arith.constant 0 : index
    %259 = vector.load %arg20[%c2_272, %c1_273, %c8_274, %c0_275] : memref<4x10x24x64xf32, #tpu.memory_space<vmem>>, vector<1x8x8x64xf32>
    %260 = vector.shape_cast %259 : vector<1x8x8x64xf32> to vector<8x8x64xf32>
    %261 = vector.shape_cast %258 : vector<8x8x64xf32> to vector<1x8x8x64xf32>
    tpu.vector_store %arg20[%c2_272, %c1_273, %c8_274, %c0_275], %261 {strides = array<i32>} : memref<4x10x24x64xf32, #tpu.memory_space<vmem>>, vector<1x8x8x64xf32>,
    %262 = vector.extract_strided_slice %246 {offsets = [0, 192], sizes = [64, 64], strides = [1, 1]} : vector<64x256xf32> to vector<64x64xf32>
    %263 = vector.shape_cast %262 : vector<64x64xf32> to vector<8x8x64xf32>
    %c3_276 = arith.constant 3 : index
    %c1_277 = arith.constant 1 : index
    %c8_278 = arith.constant 8 : index
    %c0_279 = arith.constant 0 : index
    %264 = vector.load %arg20[%c3_276, %c1_277, %c8_278, %c0_279] : memref<4x10x24x64xf32, #tpu.memory_space<vmem>>, vector<1x8x8x64xf32>
    %265 = vector.shape_cast %264 : vector<1x8x8x64xf32> to vector<8x8x64xf32>
    %266 = vector.shape_cast %263 : vector<8x8x64xf32> to vector<1x8x8x64xf32>
    tpu.vector_store %arg20[%c3_276, %c1_277, %c8_278, %c0_279], %266 {strides = array<i32>} : memref<4x10x24x64xf32, #tpu.memory_space<vmem>>, vector<1x8x8x64xf32>,
    %c0_280 = arith.constant 0 : index
    %c0_281 = arith.constant 0 : index
    %267 = vector.load %arg13[%c0_280, %c0_281] : memref<1x128xf32, #tpu.memory_space<vmem>>, vector<1x128xf32>
    %c3_282 = arith.constant 3 : index
    %c0_283 = arith.constant 0 : index
    %c7_284 = arith.constant 7 : index
    %c0_285 = arith.constant 0 : index
    %268 = vector.load %arg20[%c3_282, %c0_283, %c7_284, %c0_285] : memref<4x10x24x64xf32, #tpu.memory_space<vmem>>, vector<1x8x8x64xf32>
    %269 = vector.shape_cast %268 : vector<1x8x8x64xf32> to vector<8x8x64xf32>
    %c2_286 = arith.constant 2 : index
    %c0_287 = arith.constant 0 : index
    %c8_288 = arith.constant 8 : index
    %c0_289 = arith.constant 0 : index
    %270 = vector.load %arg20[%c2_286, %c0_287, %c8_288, %c0_289] : memref<4x10x24x64xf32, #tpu.memory_space<vmem>>, vector<1x8x8x64xf32>
    %271 = vector.shape_cast %270 : vector<1x8x8x64xf32> to vector<8x8x64xf32>
    %c3_290 = arith.constant 3 : index
    %c0_291 = arith.constant 0 : index
    %c8_292 = arith.constant 8 : index
    %c0_293 = arith.constant 0 : index
    %272 = vector.load %arg20[%c3_290, %c0_291, %c8_292, %c0_293] : memref<4x10x24x64xf32, #tpu.memory_space<vmem>>, vector<1x8x8x64xf32>
    %273 = vector.shape_cast %272 : vector<1x8x8x64xf32> to vector<8x8x64xf32>
    %274 = tpu.concatenate %269, %271, %273 in 2 : vector<8x8x64xf32>, vector<8x8x64xf32>, vector<8x8x64xf32> -> vector<8x8x192xf32>
    %275 = arith.truncf %274 : vector<8x8x192xf32> to vector<8x8x192xbf16>
    %276 = vector.shape_cast %275 : vector<8x8x192xbf16> to vector<64x192xbf16>
    %c0_294 = arith.constant 0 : index
    %c0_295 = arith.constant 0 : index
    %c0_296 = arith.constant 0 : index
    %277 = vector.load %arg12[%c0_294, %c0_295, %c0_296] : memref<3x192x128xbf16, #tpu.memory_space<vmem>>, vector<1x192x128xbf16>
    %278 = vector.shape_cast %277 : vector<1x192x128xbf16> to vector<192x128xbf16>
    %cst_297 = arith.constant dense<0.000000e+00> : vector<64x128xf32>
    %279 = tpu.matmul %276, %278, %cst_297 {dimension_numbers = #tpu.dot_dimension_numbers<[1], [0], [0], [1], [0, 0, 1, 1], [], []>} : vector<64x192xbf16>, vector<192x128xbf16>, vector<64x128xf32> -> vector<64x128xf32>
    %280 = vector.broadcast %267 : vector<1x128xf32> to vector<64x128xf32>
    %281 = arith.addf %280, %279 : vector<64x128xf32>
    %c1_298 = arith.constant 1 : index
    %c1_299 = arith.constant 1 : index
    %c7_300 = arith.constant 7 : index
    %c0_301 = arith.constant 0 : index
    %282 = vector.load %arg20[%c1_298, %c1_299, %c7_300, %c0_301] : memref<4x10x24x64xf32, #tpu.memory_space<vmem>>, vector<1x8x8x64xf32>
    %283 = vector.shape_cast %282 : vector<1x8x8x64xf32> to vector<8x8x64xf32>
    %c0_302 = arith.constant 0 : index
    %c1_303 = arith.constant 1 : index
    %c8_304 = arith.constant 8 : index
    %c0_305 = arith.constant 0 : index
    %284 = vector.load %arg20[%c0_302, %c1_303, %c8_304, %c0_305] : memref<4x10x24x64xf32, #tpu.memory_space<vmem>>, vector<1x8x8x64xf32>
    %285 = vector.shape_cast %284 : vector<1x8x8x64xf32> to vector<8x8x64xf32>
    %c1_306 = arith.constant 1 : index
    %c1_307 = arith.constant 1 : index
    %c8_308 = arith.constant 8 : index
    %c0_309 = arith.constant 0 : index
    %286 = vector.load %arg20[%c1_306, %c1_307, %c8_308, %c0_309] : memref<4x10x24x64xf32, #tpu.memory_space<vmem>>, vector<1x8x8x64xf32>
    %287 = vector.shape_cast %286 : vector<1x8x8x64xf32> to vector<8x8x64xf32>
    %288 = tpu.concatenate %283, %285, %287 in 2 : vector<8x8x64xf32>, vector<8x8x64xf32>, vector<8x8x64xf32> -> vector<8x8x192xf32>
    %289 = arith.truncf %288 : vector<8x8x192xf32> to vector<8x8x192xbf16>
    %290 = vector.shape_cast %289 : vector<8x8x192xbf16> to vector<64x192xbf16>
    %c1_310 = arith.constant 1 : index
    %c0_311 = arith.constant 0 : index
    %c0_312 = arith.constant 0 : index
    %291 = vector.load %arg12[%c1_310, %c0_311, %c0_312] : memref<3x192x128xbf16, #tpu.memory_space<vmem>>, vector<1x192x128xbf16>
    %292 = vector.shape_cast %291 : vector<1x192x128xbf16> to vector<192x128xbf16>
    %cst_313 = arith.constant dense<0.000000e+00> : vector<64x128xf32>
    %293 = tpu.matmul %290, %292, %cst_313 {dimension_numbers = #tpu.dot_dimension_numbers<[1], [0], [0], [1], [0, 0, 1, 1], [], []>} : vector<64x192xbf16>, vector<192x128xbf16>, vector<64x128xf32> -> vector<64x128xf32>
    %294 = arith.addf %281, %293 : vector<64x128xf32>
    %c3_314 = arith.constant 3 : index
    %c1_315 = arith.constant 1 : index
    %c7_316 = arith.constant 7 : index
    %c0_317 = arith.constant 0 : index
    %295 = vector.load %arg20[%c3_314, %c1_315, %c7_316, %c0_317] : memref<4x10x24x64xf32, #tpu.memory_space<vmem>>, vector<1x8x8x64xf32>
    %296 = vector.shape_cast %295 : vector<1x8x8x64xf32> to vector<8x8x64xf32>
    %c2_318 = arith.constant 2 : index
    %c1_319 = arith.constant 1 : index
    %c8_320 = arith.constant 8 : index
    %c0_321 = arith.constant 0 : index
    %297 = vector.load %arg20[%c2_318, %c1_319, %c8_320, %c0_321] : memref<4x10x24x64xf32, #tpu.memory_space<vmem>>, vector<1x8x8x64xf32>
    %298 = vector.shape_cast %297 : vector<1x8x8x64xf32> to vector<8x8x64xf32>
    %c3_322 = arith.constant 3 : index
    %c1_323 = arith.constant 1 : index
    %c8_324 = arith.constant 8 : index
    %c0_325 = arith.constant 0 : index
    %299 = vector.load %arg20[%c3_322, %c1_323, %c8_324, %c0_325] : memref<4x10x24x64xf32, #tpu.memory_space<vmem>>, vector<1x8x8x64xf32>
    %300 = vector.shape_cast %299 : vector<1x8x8x64xf32> to vector<8x8x64xf32>
    %301 = tpu.concatenate %296, %298, %300 in 2 : vector<8x8x64xf32>, vector<8x8x64xf32>, vector<8x8x64xf32> -> vector<8x8x192xf32>
    %302 = arith.truncf %301 : vector<8x8x192xf32> to vector<8x8x192xbf16>
    %303 = vector.shape_cast %302 : vector<8x8x192xbf16> to vector<64x192xbf16>
    %c2_326 = arith.constant 2 : index
    %c0_327 = arith.constant 0 : index
    %c0_328 = arith.constant 0 : index
    %304 = vector.load %arg12[%c2_326, %c0_327, %c0_328] : memref<3x192x128xbf16, #tpu.memory_space<vmem>>, vector<1x192x128xbf16>
    %305 = vector.shape_cast %304 : vector<1x192x128xbf16> to vector<192x128xbf16>
    %cst_329 = arith.constant dense<0.000000e+00> : vector<64x128xf32>
    %306 = tpu.matmul %303, %305, %cst_329 {dimension_numbers = #tpu.dot_dimension_numbers<[1], [0], [0], [1], [0, 0, 1, 1], [], []>} : vector<64x192xbf16>, vector<192x128xbf16>, vector<64x128xf32> -> vector<64x128xf32>
    %307 = arith.addf %294, %306 : vector<64x128xf32>
    %c0_330 = arith.constant 0 : index
    %c0_331 = arith.constant 0 : index
    %c0_332 = arith.constant 0 : index
    %308 = vector.load %arg14[%c0_330, %c0_331, %c0_332] : memref<4x64x128xf32, #tpu.memory_space<vmem>>, vector<1x64x128xf32>
    %309 = vector.shape_cast %308 : vector<1x64x128xf32> to vector<64x128xf32>
    %310 = vector.shape_cast %307 : vector<64x128xf32> to vector<1x64x128xf32>
    tpu.vector_store %arg14[%c0_330, %c0_331, %c0_332], %310 {strides = array<i32>} : memref<4x64x128xf32, #tpu.memory_space<vmem>>, vector<1x64x128xf32>,
    %c0_333 = arith.constant 0 : index
    %c0_334 = arith.constant 0 : index
    %311 = vector.load %arg13[%c0_333, %c0_334] : memref<1x128xf32, #tpu.memory_space<vmem>>, vector<1x128xf32>
    %c2_335 = arith.constant 2 : index
    %c0_336 = arith.constant 0 : index
    %c8_337 = arith.constant 8 : index
    %c0_338 = arith.constant 0 : index
    %312 = vector.load %arg20[%c2_335, %c0_336, %c8_337, %c0_338] : memref<4x10x24x64xf32, #tpu.memory_space<vmem>>, vector<1x8x8x64xf32>
    %313 = vector.shape_cast %312 : vector<1x8x8x64xf32> to vector<8x8x64xf32>
    %c3_339 = arith.constant 3 : index
    %c0_340 = arith.constant 0 : index
    %c8_341 = arith.constant 8 : index
    %c0_342 = arith.constant 0 : index
    %314 = vector.load %arg20[%c3_339, %c0_340, %c8_341, %c0_342] : memref<4x10x24x64xf32, #tpu.memory_space<vmem>>, vector<1x8x8x64xf32>
    %315 = vector.shape_cast %314 : vector<1x8x8x64xf32> to vector<8x8x64xf32>
    %c2_343 = arith.constant 2 : index
    %c0_344 = arith.constant 0 : index
    %c9_345 = arith.constant 9 : index
    %c0_346 = arith.constant 0 : index
    %316 = vector.load %arg20[%c2_343, %c0_344, %c9_345, %c0_346] : memref<4x10x24x64xf32, #tpu.memory_space<vmem>>, vector<1x8x8x64xf32>
    %317 = vector.shape_cast %316 : vector<1x8x8x64xf32> to vector<8x8x64xf32>
    %318 = tpu.concatenate %313, %315, %317 in 2 : vector<8x8x64xf32>, vector<8x8x64xf32>, vector<8x8x64xf32> -> vector<8x8x192xf32>
    %319 = arith.truncf %318 : vector<8x8x192xf32> to vector<8x8x192xbf16>
    %320 = vector.shape_cast %319 : vector<8x8x192xbf16> to vector<64x192xbf16>
    %c0_347 = arith.constant 0 : index
    %c0_348 = arith.constant 0 : index
    %c0_349 = arith.constant 0 : index
    %321 = vector.load %arg12[%c0_347, %c0_348, %c0_349] : memref<3x192x128xbf16, #tpu.memory_space<vmem>>, vector<1x192x128xbf16>
    %322 = vector.shape_cast %321 : vector<1x192x128xbf16> to vector<192x128xbf16>
    %cst_350 = arith.constant dense<0.000000e+00> : vector<64x128xf32>
    %323 = tpu.matmul %320, %322, %cst_350 {dimension_numbers = #tpu.dot_dimension_numbers<[1], [0], [0], [1], [0, 0, 1, 1], [], []>} : vector<64x192xbf16>, vector<192x128xbf16>, vector<64x128xf32> -> vector<64x128xf32>
    %324 = vector.broadcast %311 : vector<1x128xf32> to vector<64x128xf32>
    %325 = arith.addf %324, %323 : vector<64x128xf32>
    %c0_351 = arith.constant 0 : index
    %c1_352 = arith.constant 1 : index
    %c8_353 = arith.constant 8 : index
    %c0_354 = arith.constant 0 : index
    %326 = vector.load %arg20[%c0_351, %c1_352, %c8_353, %c0_354] : memref<4x10x24x64xf32, #tpu.memory_space<vmem>>, vector<1x8x8x64xf32>
    %327 = vector.shape_cast %326 : vector<1x8x8x64xf32> to vector<8x8x64xf32>
    %c1_355 = arith.constant 1 : index
    %c1_356 = arith.constant 1 : index
    %c8_357 = arith.constant 8 : index
    %c0_358 = arith.constant 0 : index
    %328 = vector.load %arg20[%c1_355, %c1_356, %c8_357, %c0_358] : memref<4x10x24x64xf32, #tpu.memory_space<vmem>>, vector<1x8x8x64xf32>
    %329 = vector.shape_cast %328 : vector<1x8x8x64xf32> to vector<8x8x64xf32>
    %c0_359 = arith.constant 0 : index
    %c1_360 = arith.constant 1 : index
    %c9_361 = arith.constant 9 : index
    %c0_362 = arith.constant 0 : index
    %330 = vector.load %arg20[%c0_359, %c1_360, %c9_361, %c0_362] : memref<4x10x24x64xf32, #tpu.memory_space<vmem>>, vector<1x8x8x64xf32>
    %331 = vector.shape_cast %330 : vector<1x8x8x64xf32> to vector<8x8x64xf32>
    %332 = tpu.concatenate %327, %329, %331 in 2 : vector<8x8x64xf32>, vector<8x8x64xf32>, vector<8x8x64xf32> -> vector<8x8x192xf32>
    %333 = arith.truncf %332 : vector<8x8x192xf32> to vector<8x8x192xbf16>
    %334 = vector.shape_cast %333 : vector<8x8x192xbf16> to vector<64x192xbf16>
    %c1_363 = arith.constant 1 : index
    %c0_364 = arith.constant 0 : index
    %c0_365 = arith.constant 0 : index
    %335 = vector.load %arg12[%c1_363, %c0_364, %c0_365] : memref<3x192x128xbf16, #tpu.memory_space<vmem>>, vector<1x192x128xbf16>
    %336 = vector.shape_cast %335 : vector<1x192x128xbf16> to vector<192x128xbf16>
    %cst_366 = arith.constant dense<0.000000e+00> : vector<64x128xf32>
    %337 = tpu.matmul %334, %336, %cst_366 {dimension_numbers = #tpu.dot_dimension_numbers<[1], [0], [0], [1], [0, 0, 1, 1], [], []>} : vector<64x192xbf16>, vector<192x128xbf16>, vector<64x128xf32> -> vector<64x128xf32>
    %338 = arith.addf %325, %337 : vector<64x128xf32>
    %c2_367 = arith.constant 2 : index
    %c1_368 = arith.constant 1 : index
    %c8_369 = arith.constant 8 : index
    %c0_370 = arith.constant 0 : index
    %339 = vector.load %arg20[%c2_367, %c1_368, %c8_369, %c0_370] : memref<4x10x24x64xf32, #tpu.memory_space<vmem>>, vector<1x8x8x64xf32>
    %340 = vector.shape_cast %339 : vector<1x8x8x64xf32> to vector<8x8x64xf32>
    %c3_371 = arith.constant 3 : index
    %c1_372 = arith.constant 1 : index
    %c8_373 = arith.constant 8 : index
    %c0_374 = arith.constant 0 : index
    %341 = vector.load %arg20[%c3_371, %c1_372, %c8_373, %c0_374] : memref<4x10x24x64xf32, #tpu.memory_space<vmem>>, vector<1x8x8x64xf32>
    %342 = vector.shape_cast %341 : vector<1x8x8x64xf32> to vector<8x8x64xf32>
    %c2_375 = arith.constant 2 : index
    %c1_376 = arith.constant 1 : index
    %c9_377 = arith.constant 9 : index
    %c0_378 = arith.constant 0 : index
    %343 = vector.load %arg20[%c2_375, %c1_376, %c9_377, %c0_378] : memref<4x10x24x64xf32, #tpu.memory_space<vmem>>, vector<1x8x8x64xf32>
    %344 = vector.shape_cast %343 : vector<1x8x8x64xf32> to vector<8x8x64xf32>
    %345 = tpu.concatenate %340, %342, %344 in 2 : vector<8x8x64xf32>, vector<8x8x64xf32>, vector<8x8x64xf32> -> vector<8x8x192xf32>
    %346 = arith.truncf %345 : vector<8x8x192xf32> to vector<8x8x192xbf16>
    %347 = vector.shape_cast %346 : vector<8x8x192xbf16> to vector<64x192xbf16>
    %c2_379 = arith.constant 2 : index
    %c0_380 = arith.constant 0 : index
    %c0_381 = arith.constant 0 : index
    %348 = vector.load %arg12[%c2_379, %c0_380, %c0_381] : memref<3x192x128xbf16, #tpu.memory_space<vmem>>, vector<1x192x128xbf16>
    %349 = vector.shape_cast %348 : vector<1x192x128xbf16> to vector<192x128xbf16>
    %cst_382 = arith.constant dense<0.000000e+00> : vector<64x128xf32>
    %350 = tpu.matmul %347, %349, %cst_382 {dimension_numbers = #tpu.dot_dimension_numbers<[1], [0], [0], [1], [0, 0, 1, 1], [], []>} : vector<64x192xbf16>, vector<192x128xbf16>, vector<64x128xf32> -> vector<64x128xf32>
    %351 = arith.addf %338, %350 : vector<64x128xf32>
    %c1_383 = arith.constant 1 : index
    %c0_384 = arith.constant 0 : index
    %c0_385 = arith.constant 0 : index
    %352 = vector.load %arg14[%c1_383, %c0_384, %c0_385] : memref<4x64x128xf32, #tpu.memory_space<vmem>>, vector<1x64x128xf32>
    %353 = vector.shape_cast %352 : vector<1x64x128xf32> to vector<64x128xf32>
    %354 = vector.shape_cast %351 : vector<64x128xf32> to vector<1x64x128xf32>
    tpu.vector_store %arg14[%c1_383, %c0_384, %c0_385], %354 {strides = array<i32>} : memref<4x64x128xf32, #tpu.memory_space<vmem>>, vector<1x64x128xf32>,
    %c0_386 = arith.constant 0 : index
    %c0_387 = arith.constant 0 : index
    %355 = vector.load %arg13[%c0_386, %c0_387] : memref<1x128xf32, #tpu.memory_space<vmem>>, vector<1x128xf32>
    %c1_388 = arith.constant 1 : index
    %c1_389 = arith.constant 1 : index
    %c7_390 = arith.constant 7 : index
    %c0_391 = arith.constant 0 : index
    %356 = vector.load %arg20[%c1_388, %c1_389, %c7_390, %c0_391] : memref<4x10x24x64xf32, #tpu.memory_space<vmem>>, vector<1x8x8x64xf32>
    %357 = vector.shape_cast %356 : vector<1x8x8x64xf32> to vector<8x8x64xf32>
    %c0_392 = arith.constant 0 : index
    %c1_393 = arith.constant 1 : index
    %c8_394 = arith.constant 8 : index
    %c0_395 = arith.constant 0 : index
    %358 = vector.load %arg20[%c0_392, %c1_393, %c8_394, %c0_395] : memref<4x10x24x64xf32, #tpu.memory_space<vmem>>, vector<1x8x8x64xf32>
    %359 = vector.shape_cast %358 : vector<1x8x8x64xf32> to vector<8x8x64xf32>
    %c1_396 = arith.constant 1 : index
    %c1_397 = arith.constant 1 : index
    %c8_398 = arith.constant 8 : index
    %c0_399 = arith.constant 0 : index
    %360 = vector.load %arg20[%c1_396, %c1_397, %c8_398, %c0_399] : memref<4x10x24x64xf32, #tpu.memory_space<vmem>>, vector<1x8x8x64xf32>
    %361 = vector.shape_cast %360 : vector<1x8x8x64xf32> to vector<8x8x64xf32>
    %362 = tpu.concatenate %357, %359, %361 in 2 : vector<8x8x64xf32>, vector<8x8x64xf32>, vector<8x8x64xf32> -> vector<8x8x192xf32>
    %363 = arith.truncf %362 : vector<8x8x192xf32> to vector<8x8x192xbf16>
    %364 = vector.shape_cast %363 : vector<8x8x192xbf16> to vector<64x192xbf16>
    %c0_400 = arith.constant 0 : index
    %c0_401 = arith.constant 0 : index
    %c0_402 = arith.constant 0 : index
    %365 = vector.load %arg12[%c0_400, %c0_401, %c0_402] : memref<3x192x128xbf16, #tpu.memory_space<vmem>>, vector<1x192x128xbf16>
    %366 = vector.shape_cast %365 : vector<1x192x128xbf16> to vector<192x128xbf16>
    %cst_403 = arith.constant dense<0.000000e+00> : vector<64x128xf32>
    %367 = tpu.matmul %364, %366, %cst_403 {dimension_numbers = #tpu.dot_dimension_numbers<[1], [0], [0], [1], [0, 0, 1, 1], [], []>} : vector<64x192xbf16>, vector<192x128xbf16>, vector<64x128xf32> -> vector<64x128xf32>
    %368 = vector.broadcast %355 : vector<1x128xf32> to vector<64x128xf32>
    %369 = arith.addf %368, %367 : vector<64x128xf32>
    %c3_404 = arith.constant 3 : index
    %c1_405 = arith.constant 1 : index
    %c7_406 = arith.constant 7 : index
    %c0_407 = arith.constant 0 : index
    %370 = vector.load %arg20[%c3_404, %c1_405, %c7_406, %c0_407] : memref<4x10x24x64xf32, #tpu.memory_space<vmem>>, vector<1x8x8x64xf32>
    %371 = vector.shape_cast %370 : vector<1x8x8x64xf32> to vector<8x8x64xf32>
    %c2_408 = arith.constant 2 : index
    %c1_409 = arith.constant 1 : index
    %c8_410 = arith.constant 8 : index
    %c0_411 = arith.constant 0 : index
    %372 = vector.load %arg20[%c2_408, %c1_409, %c8_410, %c0_411] : memref<4x10x24x64xf32, #tpu.memory_space<vmem>>, vector<1x8x8x64xf32>
    %373 = vector.shape_cast %372 : vector<1x8x8x64xf32> to vector<8x8x64xf32>
    %c3_412 = arith.constant 3 : index
    %c1_413 = arith.constant 1 : index
    %c8_414 = arith.constant 8 : index
    %c0_415 = arith.constant 0 : index
    %374 = vector.load %arg20[%c3_412, %c1_413, %c8_414, %c0_415] : memref<4x10x24x64xf32, #tpu.memory_space<vmem>>, vector<1x8x8x64xf32>
    %375 = vector.shape_cast %374 : vector<1x8x8x64xf32> to vector<8x8x64xf32>
    %376 = tpu.concatenate %371, %373, %375 in 2 : vector<8x8x64xf32>, vector<8x8x64xf32>, vector<8x8x64xf32> -> vector<8x8x192xf32>
    %377 = arith.truncf %376 : vector<8x8x192xf32> to vector<8x8x192xbf16>
    %378 = vector.shape_cast %377 : vector<8x8x192xbf16> to vector<64x192xbf16>
    %c1_416 = arith.constant 1 : index
    %c0_417 = arith.constant 0 : index
    %c0_418 = arith.constant 0 : index
    %379 = vector.load %arg12[%c1_416, %c0_417, %c0_418] : memref<3x192x128xbf16, #tpu.memory_space<vmem>>, vector<1x192x128xbf16>
    %380 = vector.shape_cast %379 : vector<1x192x128xbf16> to vector<192x128xbf16>
    %cst_419 = arith.constant dense<0.000000e+00> : vector<64x128xf32>
    %381 = tpu.matmul %378, %380, %cst_419 {dimension_numbers = #tpu.dot_dimension_numbers<[1], [0], [0], [1], [0, 0, 1, 1], [], []>} : vector<64x192xbf16>, vector<192x128xbf16>, vector<64x128xf32> -> vector<64x128xf32>
    %382 = arith.addf %369, %381 : vector<64x128xf32>
    %c1_420 = arith.constant 1 : index
    %c2_421 = arith.constant 2 : index
    %c7_422 = arith.constant 7 : index
    %c0_423 = arith.constant 0 : index
    %383 = vector.load %arg20[%c1_420, %c2_421, %c7_422, %c0_423] : memref<4x10x24x64xf32, #tpu.memory_space<vmem>>, vector<1x8x8x64xf32>
    %384 = vector.shape_cast %383 : vector<1x8x8x64xf32> to vector<8x8x64xf32>
    %c0_424 = arith.constant 0 : index
    %c2_425 = arith.constant 2 : index
    %c8_426 = arith.constant 8 : index
    %c0_427 = arith.constant 0 : index
    %385 = vector.load %arg20[%c0_424, %c2_425, %c8_426, %c0_427] : memref<4x10x24x64xf32, #tpu.memory_space<vmem>>, vector<1x8x8x64xf32>
    %386 = vector.shape_cast %385 : vector<1x8x8x64xf32> to vector<8x8x64xf32>
    %c1_428 = arith.constant 1 : index
    %c2_429 = arith.constant 2 : index
    %c8_430 = arith.constant 8 : index
    %c0_431 = arith.constant 0 : index
    %387 = vector.load %arg20[%c1_428, %c2_429, %c8_430, %c0_431] : memref<4x10x24x64xf32, #tpu.memory_space<vmem>>, vector<1x8x8x64xf32>
    %388 = vector.shape_cast %387 : vector<1x8x8x64xf32> to vector<8x8x64xf32>
    %389 = tpu.concatenate %384, %386, %388 in 2 : vector<8x8x64xf32>, vector<8x8x64xf32>, vector<8x8x64xf32> -> vector<8x8x192xf32>
    %390 = arith.truncf %389 : vector<8x8x192xf32> to vector<8x8x192xbf16>
    %391 = vector.shape_cast %390 : vector<8x8x192xbf16> to vector<64x192xbf16>
    %c2_432 = arith.constant 2 : index
    %c0_433 = arith.constant 0 : index
    %c0_434 = arith.constant 0 : index
    %392 = vector.load %arg12[%c2_432, %c0_433, %c0_434] : memref<3x192x128xbf16, #tpu.memory_space<vmem>>, vector<1x192x128xbf16>
    %393 = vector.shape_cast %392 : vector<1x192x128xbf16> to vector<192x128xbf16>
    %cst_435 = arith.constant dense<0.000000e+00> : vector<64x128xf32>
    %394 = tpu.matmul %391, %393, %cst_435 {dimension_numbers = #tpu.dot_dimension_numbers<[1], [0], [0], [1], [0, 0, 1, 1], [], []>} : vector<64x192xbf16>, vector<192x128xbf16>, vector<64x128xf32> -> vector<64x128xf32>
    %395 = arith.addf %382, %394 : vector<64x128xf32>
    %c2_436 = arith.constant 2 : index
    %c0_437 = arith.constant 0 : index
    %c0_438 = arith.constant 0 : index
    %396 = vector.load %arg14[%c2_436, %c0_437, %c0_438] : memref<4x64x128xf32, #tpu.memory_space<vmem>>, vector<1x64x128xf32>
    %397 = vector.shape_cast %396 : vector<1x64x128xf32> to vector<64x128xf32>
    %398 = vector.shape_cast %395 : vector<64x128xf32> to vector<1x64x128xf32>
    tpu.vector_store %arg14[%c2_436, %c0_437, %c0_438], %398 {strides = array<i32>} : memref<4x64x128xf32, #tpu.memory_space<vmem>>, vector<1x64x128xf32>,
    %c0_439 = arith.constant 0 : index
    %c0_440 = arith.constant 0 : index
    %399 = vector.load %arg13[%c0_439, %c0_440] : memref<1x128xf32, #tpu.memory_space<vmem>>, vector<1x128xf32>
    %c0_441 = arith.constant 0 : index
    %c1_442 = arith.constant 1 : index
    %c8_443 = arith.constant 8 : index
    %c0_444 = arith.constant 0 : index
    %400 = vector.load %arg20[%c0_441, %c1_442, %c8_443, %c0_444] : memref<4x10x24x64xf32, #tpu.memory_space<vmem>>, vector<1x8x8x64xf32>
    %401 = vector.shape_cast %400 : vector<1x8x8x64xf32> to vector<8x8x64xf32>
    %c1_445 = arith.constant 1 : index
    %c1_446 = arith.constant 1 : index
    %c8_447 = arith.constant 8 : index
    %c0_448 = arith.constant 0 : index
    %402 = vector.load %arg20[%c1_445, %c1_446, %c8_447, %c0_448] : memref<4x10x24x64xf32, #tpu.memory_space<vmem>>, vector<1x8x8x64xf32>
    %403 = vector.shape_cast %402 : vector<1x8x8x64xf32> to vector<8x8x64xf32>
    %c0_449 = arith.constant 0 : index
    %c1_450 = arith.constant 1 : index
    %c9_451 = arith.constant 9 : index
    %c0_452 = arith.constant 0 : index
    %404 = vector.load %arg20[%c0_449, %c1_450, %c9_451, %c0_452] : memref<4x10x24x64xf32, #tpu.memory_space<vmem>>, vector<1x8x8x64xf32>
    %405 = vector.shape_cast %404 : vector<1x8x8x64xf32> to vector<8x8x64xf32>
    %406 = tpu.concatenate %401, %403, %405 in 2 : vector<8x8x64xf32>, vector<8x8x64xf32>, vector<8x8x64xf32> -> vector<8x8x192xf32>
    %407 = arith.truncf %406 : vector<8x8x192xf32> to vector<8x8x192xbf16>
    %408 = vector.shape_cast %407 : vector<8x8x192xbf16> to vector<64x192xbf16>
    %c0_453 = arith.constant 0 : index
    %c0_454 = arith.constant 0 : index
    %c0_455 = arith.constant 0 : index
    %409 = vector.load %arg12[%c0_453, %c0_454, %c0_455] : memref<3x192x128xbf16, #tpu.memory_space<vmem>>, vector<1x192x128xbf16>
    %410 = vector.shape_cast %409 : vector<1x192x128xbf16> to vector<192x128xbf16>
    %cst_456 = arith.constant dense<0.000000e+00> : vector<64x128xf32>
    %411 = tpu.matmul %408, %410, %cst_456 {dimension_numbers = #tpu.dot_dimension_numbers<[1], [0], [0], [1], [0, 0, 1, 1], [], []>} : vector<64x192xbf16>, vector<192x128xbf16>, vector<64x128xf32> -> vector<64x128xf32>
    %412 = vector.broadcast %399 : vector<1x128xf32> to vector<64x128xf32>
    %413 = arith.addf %412, %411 : vector<64x128xf32>
    %c2_457 = arith.constant 2 : index
    %c1_458 = arith.constant 1 : index
    %c8_459 = arith.constant 8 : index
    %c0_460 = arith.constant 0 : index
    %414 = vector.load %arg20[%c2_457, %c1_458, %c8_459, %c0_460] : memref<4x10x24x64xf32, #tpu.memory_space<vmem>>, vector<1x8x8x64xf32>
    %415 = vector.shape_cast %414 : vector<1x8x8x64xf32> to vector<8x8x64xf32>
    %c3_461 = arith.constant 3 : index
    %c1_462 = arith.constant 1 : index
    %c8_463 = arith.constant 8 : index
    %c0_464 = arith.constant 0 : index
    %416 = vector.load %arg20[%c3_461, %c1_462, %c8_463, %c0_464] : memref<4x10x24x64xf32, #tpu.memory_space<vmem>>, vector<1x8x8x64xf32>
    %417 = vector.shape_cast %416 : vector<1x8x8x64xf32> to vector<8x8x64xf32>
    %c2_465 = arith.constant 2 : index
    %c1_466 = arith.constant 1 : index
    %c9_467 = arith.constant 9 : index
    %c0_468 = arith.constant 0 : index
    %418 = vector.load %arg20[%c2_465, %c1_466, %c9_467, %c0_468] : memref<4x10x24x64xf32, #tpu.memory_space<vmem>>, vector<1x8x8x64xf32>
    %419 = vector.shape_cast %418 : vector<1x8x8x64xf32> to vector<8x8x64xf32>
    %420 = tpu.concatenate %415, %417, %419 in 2 : vector<8x8x64xf32>, vector<8x8x64xf32>, vector<8x8x64xf32> -> vector<8x8x192xf32>
    %421 = arith.truncf %420 : vector<8x8x192xf32> to vector<8x8x192xbf16>
    %422 = vector.shape_cast %421 : vector<8x8x192xbf16> to vector<64x192xbf16>
    %c1_469 = arith.constant 1 : index
    %c0_470 = arith.constant 0 : index
    %c0_471 = arith.constant 0 : index
    %423 = vector.load %arg12[%c1_469, %c0_470, %c0_471] : memref<3x192x128xbf16, #tpu.memory_space<vmem>>, vector<1x192x128xbf16>
    %424 = vector.shape_cast %423 : vector<1x192x128xbf16> to vector<192x128xbf16>
    %cst_472 = arith.constant dense<0.000000e+00> : vector<64x128xf32>
    %425 = tpu.matmul %422, %424, %cst_472 {dimension_numbers = #tpu.dot_dimension_numbers<[1], [0], [0], [1], [0, 0, 1, 1], [], []>} : vector<64x192xbf16>, vector<192x128xbf16>, vector<64x128xf32> -> vector<64x128xf32>
    %426 = arith.addf %413, %425 : vector<64x128xf32>
    %c0_473 = arith.constant 0 : index
    %c2_474 = arith.constant 2 : index
    %c8_475 = arith.constant 8 : index
    %c0_476 = arith.constant 0 : index
    %427 = vector.load %arg20[%c0_473, %c2_474, %c8_475, %c0_476] : memref<4x10x24x64xf32, #tpu.memory_space<vmem>>, vector<1x8x8x64xf32>
    %428 = vector.shape_cast %427 : vector<1x8x8x64xf32> to vector<8x8x64xf32>
    %c1_477 = arith.constant 1 : index
    %c2_478 = arith.constant 2 : index
    %c8_479 = arith.constant 8 : index
    %c0_480 = arith.constant 0 : index
    %429 = vector.load %arg20[%c1_477, %c2_478, %c8_479, %c0_480] : memref<4x10x24x64xf32, #tpu.memory_space<vmem>>, vector<1x8x8x64xf32>
    %430 = vector.shape_cast %429 : vector<1x8x8x64xf32> to vector<8x8x64xf32>
    %c0_481 = arith.constant 0 : index
    %c2_482 = arith.constant 2 : index
    %c9_483 = arith.constant 9 : index
    %c0_484 = arith.constant 0 : index
    %431 = vector.load %arg20[%c0_481, %c2_482, %c9_483, %c0_484] : memref<4x10x24x64xf32, #tpu.memory_space<vmem>>, vector<1x8x8x64xf32>
    %432 = vector.shape_cast %431 : vector<1x8x8x64xf32> to vector<8x8x64xf32>
    %433 = tpu.concatenate %428, %430, %432 in 2 : vector<8x8x64xf32>, vector<8x8x64xf32>, vector<8x8x64xf32> -> vector<8x8x192xf32>
    %434 = arith.truncf %433 : vector<8x8x192xf32> to vector<8x8x192xbf16>
    %435 = vector.shape_cast %434 : vector<8x8x192xbf16> to vector<64x192xbf16>
    %c2_485 = arith.constant 2 : index
    %c0_486 = arith.constant 0 : index
    %c0_487 = arith.constant 0 : index
    %436 = vector.load %arg12[%c2_485, %c0_486, %c0_487] : memref<3x192x128xbf16, #tpu.memory_space<vmem>>, vector<1x192x128xbf16>
    %437 = vector.shape_cast %436 : vector<1x192x128xbf16> to vector<192x128xbf16>
    %cst_488 = arith.constant dense<0.000000e+00> : vector<64x128xf32>
    %438 = tpu.matmul %435, %437, %cst_488 {dimension_numbers = #tpu.dot_dimension_numbers<[1], [0], [0], [1], [0, 0, 1, 1], [], []>} : vector<64x192xbf16>, vector<192x128xbf16>, vector<64x128xf32> -> vector<64x128xf32>
    %439 = arith.addf %426, %438 : vector<64x128xf32>
    %c3_489 = arith.constant 3 : index
    %c0_490 = arith.constant 0 : index
    %c0_491 = arith.constant 0 : index
    %440 = vector.load %arg14[%c3_489, %c0_490, %c0_491] : memref<4x64x128xf32, #tpu.memory_space<vmem>>, vector<1x64x128xf32>
    %441 = vector.shape_cast %440 : vector<1x64x128xf32> to vector<64x128xf32>
    %442 = vector.shape_cast %439 : vector<64x128xf32> to vector<1x64x128xf32>
    tpu.vector_store %arg14[%c3_489, %c0_490, %c0_491], %442 {strides = array<i32>} : memref<4x64x128xf32, #tpu.memory_space<vmem>>, vector<1x64x128xf32>,
    return
  }
  func.func @transform_0(%arg0: i32) -> (i32, i32) {
    %c0_i32 = arith.constant 0 : i32
    %c0_i32_0 = arith.constant 0 : i32
    %c0_i32_1 = arith.constant 0 : i32
    return %c0_i32, %c0_i32_0 : i32, i32
  }
  func.func @transform_1(%arg0: i32) -> (i32, i32, i32) {
    %c0_i32 = arith.constant 0 : i32
    %c0_i32_0 = arith.constant 0 : i32
    %c0_i32_1 = arith.constant 0 : i32
    %c0_i32_2 = arith.constant 0 : i32
    return %c0_i32, %c0_i32_0, %c0_i32_1 : i32, i32, i32
  }
  func.func @transform_2(%arg0: i32) -> (i32, i32) {
    %c0_i32 = arith.constant 0 : i32
    %c0_i32_0 = arith.constant 0 : i32
    %c0_i32_1 = arith.constant 0 : i32
    return %c0_i32, %c0_i32_0 : i32, i32
  }
  func.func @transform_3(%arg0: i32) -> (i32, i32, i32) {
    %c0_i32 = arith.constant 0 : i32
    %c0_i32_0 = arith.constant 0 : i32
    %c0_i32_1 = arith.constant 0 : i32
    %c0_i32_2 = arith.constant 0 : i32
    return %c0_i32, %c0_i32_0, %c0_i32_1 : i32, i32, i32
  }
  func.func @transform_4(%arg0: i32) -> (i32, i32) {
    %c0_i32 = arith.constant 0 : i32
    %c0_i32_0 = arith.constant 0 : i32
    %c0_i32_1 = arith.constant 0 : i32
    return %c0_i32, %c0_i32_0 : i32, i32
  }
  func.func @transform_5(%arg0: i32) -> (i32, i32, i32) {
    %c0_i32 = arith.constant 0 : i32
    %c0_i32_0 = arith.constant 0 : i32
    %c0_i32_1 = arith.constant 0 : i32
    %c0_i32_2 = arith.constant 0 : i32
    return %c0_i32, %c0_i32_0, %c0_i32_1 : i32, i32, i32
  }
  func.func @transform_6(%arg0: i32) -> (i32, i32) {
    %c0_i32 = arith.constant 0 : i32
    %c0_i32_0 = arith.constant 0 : i32
    %c0_i32_1 = arith.constant 0 : i32
    return %c0_i32, %c0_i32_0 : i32, i32
  }
  func.func @transform_7(%arg0: i32) -> (i32, i32, i32) {
    %c0_i32 = arith.constant 0 : i32
    %c0_i32_0 = arith.constant 0 : i32
    %c0_i32_1 = arith.constant 0 : i32
    %c0_i32_2 = arith.constant 0 : i32
    return %c0_i32, %c0_i32_0, %c0_i32_1 : i32, i32, i32
  }
  func.func @transform_8(%arg0: i32) -> (i32, i32) {
    %c0_i32 = arith.constant 0 : i32
    %c0_i32_0 = arith.constant 0 : i32
    %c0_i32_1 = arith.constant 0 : i32
    return %c0_i32, %c0_i32_0 : i32, i32
  }
  func.func @transform_9(%arg0: i32) -> (i32, i32) {
    %c0_i32 = arith.constant 0 : i32
    %c0_i32_0 = arith.constant 0 : i32
    %c0_i32_1 = arith.constant 0 : i32
    return %c0_i32, %c0_i32_0 : i32, i32
  }
  func.func @transform_10(%arg0: i32) -> (i32, i32) {
    %c0_i32 = arith.constant 0 : i32
    %c0_i32_0 = arith.constant 0 : i32
    %c0_i32_1 = arith.constant 0 : i32
    return %c0_i32, %c0_i32_0 : i32, i32
  }
  func.func @transform_11(%arg0: i32) -> (i32, i32, i32) {
    %c0_i32 = arith.constant 0 : i32
    %c0_i32_0 = arith.constant 0 : i32
    %c0_i32_1 = arith.constant 0 : i32
    %c0_i32_2 = arith.constant 0 : i32
    return %c0_i32, %c0_i32_0, %c0_i32_1 : i32, i32, i32
  }
  func.func @transform_12(%arg0: i32) -> (i32, i32) {
    %c0_i32 = arith.constant 0 : i32
    %c0_i32_0 = arith.constant 0 : i32
    %c0_i32_1 = arith.constant 0 : i32
    return %c0_i32, %c0_i32_0 : i32, i32
  }
  func.func @transform_13(%arg0: i32) -> (i32, i32, i32) {
    %c0_i32 = arith.constant 0 : i32
    %c0_i32_0 = arith.constant 0 : i32
    %c0_i32_1 = arith.constant 0 : i32
    %c0_i32_2 = arith.constant 0 : i32
    return %c0_i32, %c0_i32_0, %c0_i32_1 : i32, i32, i32
  }
}

</mosaic_0001>

<bundles_post_ra>
// kernel: squeeze.1
= control target key start
LH: loop header
LB: loop body
LE: loop exit
PB: predicated region body
PF: predicated region fallthrough
CT: control target
= control target key end

     0   :  { %s66_s8 = smov 104   ;;  %vm7_vm0 = vcmask 64512   ;;  %s67_s11 = smov 112   ;;  %s117_s0 = inlined_call_operand.vmem [shape: f32[4,64], index: 0, kind: input, shape index: {}]   ;;  %s118_s1 = inlined_call_operand.vmem [shape: f32[2,2,8,8], index: 1, kind: output, shape index: {}]  }
   0x1   :  { %v4_v0 = vld [vmem:[%s117_s0] sm:$0xf]  ;;  %s65_s0 = smov 120   ;;  %s68_s12 = smov 96  }
   0x2   :  { %5 = vst [vmem:[#allocation0] sm:$0xf] %v4_v0  ;;  %s69_s13 = smov 88   ;;  %s70_s14 = smov 80  }
   0x3   :  { %s71_s15 = smov 72  }
   0x9   :  { %v9_v1 = vld [vmem:[#allocation0] sm:$0xf]  }
   0xa   :  { %v21_v2 = vld [vmem:[#allocation0] sm:$0xf]   ;;  %10 = vrot.lane.b32.xlu0 %v9_v1, %s65_s0 }
   0xb   :  { %22 = vrot.lane.b32.xlu1 %v21_v2, %s66_s8  ;;  %v15_v3 = vld [vmem:[#allocation0] sm:$0xf]  }
   0xc   :  { %v27_v4 = vld [vmem:[#allocation0] sm:$0xf]  }
   0xd   :  { %v6_v5 = vld [vmem:[#allocation0] sm:$0xf]  }
   0xe   :  { %8 = vst.msk [vmem:[%s118_s1] ss:$8 sm:$0xf] %vm7_vm0, %v6_v5   ;;  %16 = vrot.lane.b32.xlu0 %v15_v3, %s67_s11  ;;  %v33_v6 = vld [vmem:[#allocation0] sm:$0xf]  }
   0xf   :  { %28 = vrot.lane.b32.xlu1 %v27_v4, %s68_s12  ;;  %v39_v7 = vld [vmem:[#allocation0] sm:$0xf]  }
  0x10   :  { %v45_v8 = vld [vmem:[#allocation0] sm:$0xf]  }
  0x12   :  { %34 = vrot.lane.b32.xlu0 %v33_v6, %s69_s13 }
  0x13   :  { %40 = vrot.lane.b32.xlu1 %v39_v7, %s70_s14 }
  0x16   :  { %46 = vrot.lane.b32.xlu0 %v45_v8, %s71_s15 }
  0x7c   :  { %v11_v9 = vpop.permute.xlu0 %10  }
  0x7d   :  { %v23_v10 = vpop.permute.xlu1 %22   ;;  %51 = vst.msk [vmem:[%s118_s1 + $0x1] ss:$8 sm:$0xf] %vm7_vm0, %v11_v9  }
  0x7e   :  { %53 = vst.msk [vmem:[%s118_s1 + $0x3] ss:$8 sm:$0xf] %vm7_vm0, %v23_v10  }
  0x80   :  { %v17_v11 = vpop.permute.xlu0 %16  }
  0x81   :  { %v29_v12 = vpop.permute.xlu1 %28   ;;  %52 = vst.msk [vmem:[%s118_s1 + $0x2] ss:$8 sm:$0xf] %vm7_vm0, %v17_v11  }
  0x82   :  { %54 = vst.msk [vmem:[%s118_s1 + $0x4] ss:$8 sm:$0xf] %vm7_vm0, %v29_v12  }
  0x84   :  { %v35_v13 = vpop.permute.xlu0 %34  }
  0x85   :  { %v41_v14 = vpop.permute.xlu1 %40   ;;  %55 = vst.msk [vmem:[%s118_s1 + $0x5] ss:$8 sm:$0xf] %vm7_vm0, %v35_v13  }
  0x86   :  { %56 = vst.msk [vmem:[%s118_s1 + $0x6] ss:$8 sm:$0xf] %vm7_vm0, %v41_v14  }
  0x88   :  { %v47_v15 = vpop.permute.xlu0 %46  }
  0x89   :  { %57 = vst.msk [vmem:[%s118_s1 + $0x7] ss:$8 sm:$0xf] %vm7_vm0, %v47_v15  }

// kernel: _lambda_.1
= control target key start
LH: loop header
LB: loop body
LE: loop exit
PB: predicated region body
PF: predicated region fallthrough
CT: control target
= control target key end

     0   :  { %18 = vsyncpa [#allocation9], 0  ;;  %s14782_s0 = inlined_call_operand.hbm [shape: f32[16,16], index: 0, kind: input, shape index: {}]   ;;  %s14783_s1 = inlined_call_operand.hbm [shape: bf16[3,24,64], index: 1, kind: input, shape index: {}]   ;;  %s14784_s2 = inlined_call_operand.hbm [shape: f32[1,64], index: 2, kind: input, shape index: {}]   ;;  %s14785_s3 = inlined_call_operand.hbm [shape: bf16[3,192,64], index: 3, kind: input, shape index: {}]   ;;  %s14786_s4 = inlined_call_operand.hbm [shape: f32[1,64], index: 4, kind: input, shape index: {}]   ;;  %s14787_s5 = inlined_call_operand.hbm [shape: bf16[3,192,128], index: 5, kind: input, shape index: {}]   ;;  %s14788_s6 = inlined_call_operand.hbm [shape: f32[1,128], index: 6, kind: input, shape index: {}]   ;;  %s14789_s7 = inlined_call_operand.hbm [shape: bf16[3,384,128], index: 7, kind: input, shape index: {}]   ;;  %s14790_s8 = inlined_call_operand.hbm [shape: f32[1,128], index: 8, kind: input, shape index: {}]   ;;  %s14791_s9 = inlined_call_operand.hbm [shape: bf16[128,256], index: 9, kind: input, shape index: {}]   ;;  %s14792_s10 = inlined_call_operand.hbm [shape: f32[1,256], index: 10, kind: input, shape index: {}]   ;;  %s14793_s11 = inlined_call_operand.hbm [shape: bf16[3,192,128], index: 11, kind: input, shape index: {}]   ;;  %s14794_s12 = inlined_call_operand.hbm [shape: f32[1,128], index: 12, kind: input, shape index: {}]   ;;  %s14795_s13 = inlined_call_operand.hbm [shape: f32[4,64,128], index: 13, kind: output, shape index: {}]  }
   0x1   :  { %19 = vsyncpa [#allocation12], 0 }
   0x2   :  { %20 = vsyncpa [#allocation15], 0 }
   0x3   :  { %21 = vsyncpa [#allocation18], 0 }
   0x4   :  { %22 = vsyncpa [#allocation21], 0 }
   0x5   :  { %23 = vsyncpa [#allocation24], 0 }
   0x6   :  { %24 = vsyncpa [#allocation27], 0 }
   0x7   :  { %25 = vsyncpa [#allocation10], 0  ;;  %s12157_s25 = smov [#allocation11]   ;;  %s11833_s29 = scalar_lea.hbm %s14783_s1, 576 }
   0x8   :  { %s43_s26 = sshll.u32 %s12157_s25, 4  ;;  %p11834_p0 = scmp.ne.s32.totalorder %s14783_s1, %s11833_s29  ;;  %s44_s26 = int_to_ptr.vmem [resolvable:$true] %s43_s26 }
   0x9   :  { %p11837_p1 = scmp.lt.u32.totalorder %s11833_s29, %s14783_s1 }
   0xb   :  { %p11839_p2 = pnand %p11837_p1, %p11834_p0 }
   0xd   :  { %11842 = shalt.err (!%p11839_p2)
}
   0xe   :  { %s11843_s17 = scalar_lea.vmem %s44_s26, 576  ;;  %p11848_p4 = scmp.lt.s32.totalorder %s44_s26, %s44_s26 }
   0xf   :  { %p11844_p3 = scmp.ne.s32.totalorder %s44_s26, %s11843_s17  ;;  %p11849_p5 = scmp.lt.s32.totalorder %s11843_s17, %s11843_s17 }
  0x11   :  { %p11850_p6 = por %p11849_p5, %p11848_p4 }
  0x13   :  { %p11851_p7 = pnand %p11850_p6, %p11844_p3 }
  0x15   :  { %11854 = shalt.err (!%p11851_p7)
}
  0x16   :  { %s12158_s18 = smov 64   ;;  %s12159_s19 = smov 4  }
  0x17   :  { %49 = dma.hbm_to_vmem [thread:$0]  %s14783_s1, 576, %s44_s26, [#allocation12], %s12158_s18, %s12158_s18, %s12159_s19  }
  0x18   :  { %s12160_s22 = smov [#allocation14]   ;;  %s12161_s24 = smov [#allocation17]  }
  0x19   :  { %s65_s23 = sshll.u32 %s12160_s22, 4  ;;  %s87_s25 = sshll.u32 %s12161_s24, 4  ;;  %s66_s23 = int_to_ptr.vmem [resolvable:$true] %s65_s23  ;;  %s88_s25 = int_to_ptr.vmem [resolvable:$true] %s87_s25 }
  0x1a   :  { %s11855_s29 = scalar_lea.hbm %s14785_s3, 4608 }
  0x1b   :  { %p11856_p8 = scmp.ne.s32.totalorder %s14785_s3, %s11855_s29  ;;  %p11859_p9 = scmp.lt.u32.totalorder %s11855_s29, %s14785_s3 }
  0x1d   :  { %p11861_p10 = pnand %p11859_p9, %p11856_p8 }
  0x1f   :  { %11864 = shalt.err (!%p11861_p10)
}
  0x20   :  { %s11865_s1 = scalar_lea.vmem %s66_s23, 4608  ;;  %p11870_p12 = scmp.lt.s32.totalorder %s66_s23, %s66_s23 }
  0x21   :  { %p11866_p11 = scmp.ne.s32.totalorder %s66_s23, %s11865_s1  ;;  %p11871_p13 = scmp.lt.s32.totalorder %s11865_s1, %s11865_s1 }
  0x23   :  { %p11872_p0 = por %p11871_p13, %p11870_p12 }
  0x25   :  { %p11873_p1 = pnand %p11872_p0, %p11866_p11 }
  0x27   :  { %11876 = shalt.err (!%p11873_p1)
}
  0x28   :  { %71 = dma.hbm_to_vmem [thread:$0]  %s14785_s3, 4608, %s66_s23, [#allocation15], %s12158_s18, %s12158_s18, %s12159_s19  }
  0x29   :  { %s11877_s22 = scalar_lea.hbm %s14787_s5, 4608 }
  0x2a   :  { %p11878_p2 = scmp.ne.s32.totalorder %s14787_s5, %s11877_s22  ;;  %p11881_p3 = scmp.lt.u32.totalorder %s11877_s22, %s14787_s5 }
  0x2c   :  { %p11883_p4 = pnand %p11881_p3, %p11878_p2 }
  0x2e   :  { %11886 = shalt.err (!%p11883_p4)
}
  0x2f   :  { %s11887_s30 = scalar_lea.vmem %s88_s25, 4608  ;;  %p11892_p6 = scmp.lt.s32.totalorder %s88_s25, %s88_s25 }
  0x30   :  { %p11888_p5 = scmp.ne.s32.totalorder %s88_s25, %s11887_s30  ;;  %p11893_p7 = scmp.lt.s32.totalorder %s11887_s30, %s11887_s30 }
  0x32   :  { %p11894_p8 = por %p11893_p7, %p11892_p6 }
  0x34   :  { %p11895_p9 = pnand %p11894_p8, %p11888_p5 }
  0x36   :  { %11898 = shalt.err (!%p11895_p9)
}
  0x37   :  { %93 = dma.hbm_to_vmem [thread:$0]  %s14787_s5, 4608, %s88_s25, [#allocation18], %s12158_s18, %s12158_s18, %s12159_s19  }
  0x38   :  { %s12162_s14 = smov [#allocation20]   ;;  %s11899_s26 = scalar_lea.hbm %s14789_s7, 9216 }
  0x39   :  { %s109_s15 = sshll.u32 %s12162_s14, 4  ;;  %p11900_p10 = scmp.ne.s32.totalorder %s14789_s7, %s11899_s26  ;;  %s110_s15 = int_to_ptr.vmem [resolvable:$true] %s109_s15 }
  0x3a   :  { %p11903_p11 = scmp.lt.u32.totalorder %s11899_s26, %s14789_s7 }
  0x3c   :  { %p11905_p12 = pnand %p11903_p11, %p11900_p10 }
  0x3e   :  { %11908 = shalt.err (!%p11905_p12)
}
  0x3f   :  { %s11909_s24 = scalar_lea.vmem %s110_s15, 9216  ;;  %p11914_p0 = scmp.lt.s32.totalorder %s110_s15, %s110_s15 }
  0x40   :  { %p11910_p13 = scmp.ne.s32.totalorder %s110_s15, %s11909_s24  ;;  %p11915_p1 = scmp.lt.s32.totalorder %s11909_s24, %s11909_s24 }
  0x42   :  { %p11916_p2 = por %p11915_p1, %p11914_p0 }
  0x44   :  { %p11917_p3 = pnand %p11916_p2, %p11910_p13 }
  0x46   :  { %11920 = shalt.err (!%p11917_p3)
}
  0x47   :  { %115 = dma.hbm_to_vmem [thread:$0]  %s14789_s7, 9216, %s110_s15, [#allocation21], %s12158_s18, %s12158_s18, %s12159_s19  }
  0x48   :  { %s12163_s27 = smov [#allocation23]   ;;  %s12164_s29 = smov [#allocation26]  }
  0x49   :  { %s131_s28 = sshll.u32 %s12163_s27, 4  ;;  %s153_s30 = sshll.u32 %s12164_s29, 4  ;;  %s132_s28 = int_to_ptr.vmem [resolvable:$true] %s131_s28  ;;  %s12308_s30 = int_to_ptr.vmem [resolvable:$true] %s153_s30 }
  0x4a   :  { %s11921_s14 = scalar_lea.hbm %s14791_s9, 2048 }
  0x4b   :  { %p11922_p4 = scmp.ne.s32.totalorder %s14791_s9, %s11921_s14  ;;  %p11925_p5 = scmp.lt.u32.totalorder %s11921_s14, %s14791_s9 }
  0x4d   :  { %p11927_p6 = pnand %p11925_p5, %p11922_p4 }
  0x4f   :  { %11930 = shalt.err (!%p11927_p6)
}
  0x50   :  { %s11931_s7 = scalar_lea.vmem %s132_s28, 2048  ;;  %p11936_p8 = scmp.lt.s32.totalorder %s132_s28, %s132_s28 }
  0x51   :  { %p11932_p7 = scmp.ne.s32.totalorder %s132_s28, %s11931_s7  ;;  %p11937_p9 = scmp.lt.s32.totalorder %s11931_s7, %s11931_s7 }
  0x53   :  { %p11938_p10 = por %p11937_p9, %p11936_p8 }
  0x55   :  { %p11939_p11 = pnand %p11938_p10, %p11932_p7 }
  0x57   :  { %11942 = shalt.err (!%p11939_p11)
}
  0x58   :  { %s12165_s15 = smov 128   ;;  %s12166_s20 = smov 8  }
  0x59   :  { %137 = dma.hbm_to_vmem [thread:$0]  %s14791_s9, 2048, %s132_s28, [#allocation24], %s12165_s15, %s12165_s15, %s12166_s20  }
  0x5a   :  { %s11943_s25 = scalar_lea.hbm %s14793_s11, 4608 }
  0x5b   :  { %p11944_p12 = scmp.ne.s32.totalorder %s14793_s11, %s11943_s25  ;;  %p11947_p13 = scmp.lt.u32.totalorder %s11943_s25, %s14793_s11 }
  0x5d   :  { %p11949_p0 = pnand %p11947_p13, %p11944_p12 }
  0x5f   :  { %11952 = shalt.err (!%p11949_p0)
}
  0x60   :  { %s11953_s14 = scalar_lea.vmem %s12308_s30, 4608  ;;  %p11958_p2 = scmp.lt.s32.totalorder %s12308_s30, %s12308_s30 }
  0x61   :  { %p11954_p1 = scmp.ne.s32.totalorder %s12308_s30, %s11953_s14  ;;  %p11959_p3 = scmp.lt.s32.totalorder %s11953_s14, %s11953_s14 }
  0x63   :  { %p11960_p4 = por %p11959_p3, %p11958_p2 }
  0x65   :  { %p11961_p5 = pnand %p11960_p4, %p11954_p1 }
  0x67   :  { %11964 = shalt.err (!%p11961_p5)
}
  0x68   :  { %159 = dma.hbm_to_vmem [thread:$0]  %s14793_s11, 4608, %s12308_s30, [#allocation27], %s12158_s18, %s12158_s18, %s12159_s19  }
  0x69   :  { %s12167_s16 = smov [#allocation8]   ;;  %s12168_s26 = smov [#allocation13]  }
  0x6a   :  { %s31_s1 = sshll.u32 %s12167_s16, 4  ;;  %s56_s17 = sshll.u32 %s12168_s26, 4  ;;  %s32_s1 = int_to_ptr.vmem [resolvable:$true] %s31_s1  ;;  %s57_s17 = int_to_ptr.vmem [resolvable:$true] %s56_s17 }
  0x6b   :  { %s11965_s22 = scalar_lea.hbm %s14782_s0, 256 }
  0x6c   :  { %p11966_p6 = scmp.ne.s32.totalorder %s14782_s0, %s11965_s22  ;;  %p11969_p7 = scmp.lt.u32.totalorder %s11965_s22, %s14782_s0 }
  0x6e   :  { %p11971_p8 = pnand %p11969_p7, %p11966_p6 }
  0x70   :  { %11974 = shalt.err (!%p11971_p8)
}
  0x71   :  { %s11975_s11 = scalar_lea.vmem %s32_s1, 256  ;;  %p11980_p10 = scmp.lt.s32.totalorder %s32_s1, %s32_s1 }
  0x72   :  { %p11976_p9 = scmp.ne.s32.totalorder %s32_s1, %s11975_s11  ;;  %p11981_p11 = scmp.lt.s32.totalorder %s11975_s11, %s11975_s11 }
  0x74   :  { %p11982_p12 = por %p11981_p11, %p11980_p10 }
  0x76   :  { %p11983_p13 = pnand %p11982_p12, %p11976_p9 }
  0x78   :  { %11986 = shalt.err (!%p11983_p13)
}
  0x79   :  { %37 = dma.hbm_to_vmem [thread:$0]  %s14782_s0, 256, %s32_s1, [#allocation9], %s12165_s15, %s12165_s15, %s12166_s20  }
  0x7a   :  { %s11987_s23 = scalar_lea.hbm %s14784_s2, 16 }
  0x7b   :  { %p11988_p0 = scmp.ne.s32.totalorder %s14784_s2, %s11987_s23  ;;  %p11991_p1 = scmp.lt.u32.totalorder %s11987_s23, %s14784_s2 }
  0x7d   :  { %p11993_p2 = pnand %p11991_p1, %p11988_p0 }
  0x7f   :  { %11996 = shalt.err (!%p11993_p2)
}
  0x80   :  { %s11997_s26 = scalar_lea.vmem %s57_s17, 16  ;;  %s12001_s7 = scalar_lea.vmem %s57_s17, 32 }
  0x81   :  { %p11998_p3 = scmp.ne.s32.totalorder %s57_s17, %s11997_s26  ;;  %p12002_p4 = scmp.lt.s32.totalorder %s57_s17, %s57_s17 }
  0x82   :  { %p12003_p5 = scmp.lt.s32.totalorder %s12001_s7, %s11997_s26 }
  0x84   :  { %p12004_p6 = por %p12003_p5, %p12002_p4 }
  0x86   :  { %p12005_p7 = pnand %p12004_p6, %p11998_p3 }
  0x88   :  { %12008 = shalt.err (!%p12005_p7)
}
  0x89   :  { %59 = dma.hbm_to_vmem [thread:$0]  %s14784_s2, 16, %s57_s17, [#allocation12]  }
  0x8a   :  { %s12169_s21 = smov [#allocation16]   ;;  %s12170_s24 = smov [#allocation19]  }
  0x8b   :  { %s78_s22 = sshll.u32 %s12169_s21, 4  ;;  %s100_s5 = sshll.u32 %s12170_s24, 4  ;;  %s79_s22 = int_to_ptr.vmem [resolvable:$true] %s78_s22  ;;  %s101_s5 = int_to_ptr.vmem [resolvable:$true] %s100_s5 }
  0x8c   :  { %s12009_s11 = scalar_lea.hbm %s14786_s4, 16 }
  0x8d   :  { %p12010_p8 = scmp.ne.s32.totalorder %s14786_s4, %s12009_s11  ;;  %p12013_p9 = scmp.lt.u32.totalorder %s12009_s11, %s14786_s4 }
  0x8f   :  { %p12015_p10 = pnand %p12013_p9, %p12010_p8 }
  0x91   :  { %12018 = shalt.err (!%p12015_p10)
}
  0x92   :  { %s12019_s2 = scalar_lea.vmem %s79_s22, 16  ;;  %s12023_s17 = scalar_lea.vmem %s79_s22, 32 }
  0x93   :  { %p12020_p11 = scmp.ne.s32.totalorder %s79_s22, %s12019_s2  ;;  %p12024_p12 = scmp.lt.s32.totalorder %s79_s22, %s79_s22 }
  0x94   :  { %p12025_p13 = scmp.lt.s32.totalorder %s12023_s17, %s12019_s2 }
  0x96   :  { %p12026_p0 = por %p12025_p13, %p12024_p12 }
  0x98   :  { %p12027_p1 = pnand %p12026_p0, %p12020_p11 }
  0x9a   :  { %12030 = shalt.err (!%p12027_p1)
}
  0x9b   :  { %81 = dma.hbm_to_vmem [thread:$0]  %s14786_s4, 16, %s79_s22, [#allocation15]  }
  0x9c   :  { %s12031_s16 = scalar_lea.hbm %s14788_s6, 16 }
  0x9d   :  { %p12032_p2 = scmp.ne.s32.totalorder %s14788_s6, %s12031_s16  ;;  %p12035_p3 = scmp.lt.u32.totalorder %s12031_s16, %s14788_s6 }
  0x9f   :  { %p12037_p4 = pnand %p12035_p3, %p12032_p2 }
  0xa1   :  { %12040 = shalt.err (!%p12037_p4)
}
  0xa2   :  { %s12041_s21 = scalar_lea.vmem %s101_s5, 16  ;;  %s12045_s24 = scalar_lea.vmem %s101_s5, 32 }
  0xa3   :  { %p12042_p5 = scmp.ne.s32.totalorder %s101_s5, %s12041_s21  ;;  %p12046_p6 = scmp.lt.s32.totalorder %s101_s5, %s101_s5 }
  0xa4   :  { %p12047_p7 = scmp.lt.s32.totalorder %s12045_s24, %s12041_s21 }
  0xa6   :  { %p12048_p8 = por %p12047_p7, %p12046_p6 }
  0xa8   :  { %p12049_p9 = pnand %p12048_p8, %p12042_p5 }
  0xaa   :  { %12052 = shalt.err (!%p12049_p9)
}
  0xab   :  { %103 = dma.hbm_to_vmem [thread:$0]  %s14788_s6, 16, %s101_s5, [#allocation18]  }
  0xac   :  { %s12171_s25 = smov [#allocation22]   ;;  %s12172_s11 = smov [#allocation25]  }
  0xad   :  { %s122_s27 = sshll.u32 %s12171_s25, 4  ;;  %s144_s19 = sshll.u32 %s12172_s11, 4  ;;  %s123_s27 = int_to_ptr.vmem [resolvable:$true] %s122_s27  ;;  %s145_s19 = int_to_ptr.vmem [resolvable:$true] %s144_s19 }
  0xae   :  { %s12053_s3 = scalar_lea.hbm %s14790_s8, 16 }
  0xaf   :  { %p12054_p10 = scmp.ne.s32.totalorder %s14790_s8, %s12053_s3  ;;  %p12057_p11 = scmp.lt.u32.totalorder %s12053_s3, %s14790_s8 }
  0xb1   :  { %p12059_p12 = pnand %p12057_p11, %p12054_p10 }
  0xb3   :  { %12062 = shalt.err (!%p12059_p12)
}
  0xb4   :  { %s12063_s6 = scalar_lea.vmem %s123_s27, 16  ;;  %s12067_s5 = scalar_lea.vmem %s123_s27, 32 }
  0xb5   :  { %p12064_p13 = scmp.ne.s32.totalorder %s123_s27, %s12063_s6  ;;  %p12068_p0 = scmp.lt.s32.totalorder %s123_s27, %s123_s27 }
  0xb6   :  { %p12069_p1 = scmp.lt.s32.totalorder %s12067_s5, %s12063_s6 }
  0xb8   :  { %p12070_p2 = por %p12069_p1, %p12068_p0 }
  0xba   :  { %p12071_p3 = pnand %p12070_p2, %p12064_p13 }
  0xbc   :  { %12074 = shalt.err (!%p12071_p3)
}
  0xbd   :  { %125 = dma.hbm_to_vmem [thread:$0]  %s14790_s8, 16, %s123_s27, [#allocation21]  }
  0xbe   :  { %s12075_s7 = scalar_lea.hbm %s14792_s10, 32 }
  0xbf   :  { %p12076_p4 = scmp.ne.s32.totalorder %s14792_s10, %s12075_s7  ;;  %p12079_p5 = scmp.lt.u32.totalorder %s12075_s7, %s14792_s10 }
  0xc1   :  { %p12081_p6 = pnand %p12079_p5, %p12076_p4 }
  0xc3   :  { %12084 = shalt.err (!%p12081_p6)
}
  0xc4   :  { %s12085_s4 = scalar_lea.vmem %s145_s19, 32  ;;  %p12090_p8 = scmp.lt.s32.totalorder %s145_s19, %s145_s19 }
  0xc5   :  { %p12086_p7 = scmp.ne.s32.totalorder %s145_s19, %s12085_s4  ;;  %p12091_p9 = scmp.lt.s32.totalorder %s12085_s4, %s12085_s4 }
  0xc7   :  { %p12092_p10 = por %p12091_p9, %p12090_p8 }
  0xc9   :  { %p12093_p11 = pnand %p12092_p10, %p12086_p7 }
  0xcb   :  { %12096 = shalt.err (!%p12093_p11)
}
  0xcc   :  { %147 = dma.hbm_to_vmem [thread:$0]  %s14792_s10, 32, %s145_s19, [#allocation24]  }
  0xcd   :  { %s12173_s25 = smov [#allocation28]   ;;  %s12097_s29 = scalar_lea.hbm %s14794_s12, 16 }
  0xce   :  { %s166_s27 = sshll.u32 %s12173_s25, 4  ;;  %p12098_p12 = scmp.ne.s32.totalorder %s14794_s12, %s12097_s29  ;;  %s167_s27 = int_to_ptr.vmem [resolvable:$true] %s166_s27 }
  0xcf   :  { %p12101_p13 = scmp.lt.u32.totalorder %s12097_s29, %s14794_s12 }
  0xd1   :  { %p12103_p0 = pnand %p12101_p13, %p12098_p12 }
  0xd3   :  { %12106 = shalt.err (!%p12103_p0)
}
  0xd4   :  { %s12107_s14 = scalar_lea.vmem %s167_s27, 16  ;;  %s12111_s10 = scalar_lea.vmem %s167_s27, 32 }
  0xd5   :  { %p12108_p1 = scmp.ne.s32.totalorder %s167_s27, %s12107_s14  ;;  %p12112_p2 = scmp.lt.s32.totalorder %s167_s27, %s167_s27 }
  0xd6   :  { %p12113_p3 = scmp.lt.s32.totalorder %s12111_s10, %s12107_s14 }
  0xd8   :  { %p12114_p4 = por %p12113_p3, %p12112_p2 }
  0xda   :  { %p12115_p5 = pnand %p12114_p4, %p12108_p1 }
  0xdc   :  { %12118 = shalt.err (!%p12115_p5)
}
  0xdd   :  { %169 = dma.hbm_to_vmem [thread:$0]  %s14794_s12, 16, %s167_s27, [#allocation27]  }
  0xde   :  { %12141 = dma.done.wait [#allocation9], 256  }
  0xdf   :  { %12142 = vsyncadd [#allocation9], 4294967040 }
  0xe0   :  { %12143 = dma.done.wait [#allocation12], 592  }
  0xe1   :  { %12144 = vsyncadd [#allocation12], 4294966704 }
  0xe2   :  { %12145 = dma.done.wait [#allocation15], 4624  }
  0xe3   :  { %12146 = vsyncadd [#allocation15], 4294962672 }
  0xe4   :  { %12147 = dma.done.wait [#allocation18], 4624  }
  0xe5   :  { %12148 = vsyncadd [#allocation18], 4294962672 }
  0xe6   :  { %12149 = dma.done.wait [#allocation21], 9232  }
  0xe7   :  { %12150 = vsyncadd [#allocation21], 4294958064 }
  0xe8   :  { %12151 = dma.done.wait [#allocation24], 2080  }
  0xe9   :  { %12152 = vsyncadd [#allocation24], 4294965216 }
  0xea   :  { %12153 = dma.done.wait [#allocation27], 4624  }
  0xeb   :  { %12154 = vsyncadd [#allocation27], 4294962672  ;;  %vm256_vm0 = vcmask 523264   ;;  %v469_v0 = vlaneseq  ;;  %vm210_vm1 = vcmask 64512   ;;  %v12174_v1 = vmov 0.0   ;;  %v467_v5 = vld [vmem:[#allocation8] sm:$0xff] }
  0xec   :  { %257 = vst.msk [vmem:[#allocation3] sm:$0xff] %vm256_vm0, %v12174_v1  ;;  %258 = vst.msk [vmem:[#allocation3 + $0x8] sm:$0xff] %vm256_vm0, %v12174_v1  ;;  %v468_v19 = vld [vmem:[#allocation8 + $0x8] sm:$0xff]  ;;  %s12175_s12 = smov 16   ;;  %v11511_v37 = vld [vmem:[#allocation11] sm:$0xff]   ;;  %vm1227_vm2 = vcmask 1043456  }
  0xed   :  { %259 = vst.msk [vmem:[#allocation3 + $0x10] sm:$0xff] %vm256_vm0, %v12174_v1  ;;  %260 = vst.msk [vmem:[#allocation3 + $0x18] sm:$0xff] %vm256_vm0, %v12174_v1  ;;  %v12739_v2 = vshrl.u32 %v469_v0, 7  ;;  %10273 = vmatprep.subr.bf16.mxu0 %v11511_v37  ;;  %v11512_v40 = vld [vmem:[#allocation11 + $0x8] ss:$0 sps:$4 sm:$0xff]   ;;  %v12801_v56 = vld [vmem:[#allocation11 + $0xc] sm:$0xff]  }
  0xee   :  { %262 = vst.msk [vmem:[#allocation3 + $0x220] sm:$0xff] %vm256_vm0, %v12174_v1  ;;  %263 = vst.msk [vmem:[#allocation3 + $0x228] sm:$0xff] %vm256_vm0, %v12174_v1  ;;  %10274 = vmatpush3.bf16.msra.mxu0 %v11511_v37  ;;  %v1229_v44 = vsel %vm1227_vm2, %v11512_v40, 0  ;;  %vm1110_vm3 = vcmask 130048   ;;  %vm1178_vm4 = vcmask 195584  }
  0xef   :  { %264 = vst.msk [vmem:[#allocation3 + $0x230] sm:$0xff] %vm256_vm0, %v12174_v1  ;;  %265 = vst.msk [vmem:[#allocation3 + $0x238] sm:$0xff] %vm256_vm0, %v12174_v1  ;;  %v12774_v3 = vsub.s32 1, %v12739_v2  ;;  %v12777_v4 = vsub.s32 0, %v12739_v2  ;;  %v493_v6 = vsub.s32 2, %v12739_v2  ;;  %v504_v7 = vsub.s32 3, %v12739_v2  ;;  %10957 = vmatprep.subr.msk.bf16.mxu0 %vm1227_vm2, %v11512_v40 }
  0xf0   :  { %267 = vst.msk [vmem:[#allocation3 + $0x20] sm:$0xff] %vm256_vm0, %v12174_v1  ;;  %268 = vst.msk [vmem:[#allocation3 + $0x40] sm:$0xff] %vm256_vm0, %v12174_v1  ;;  %v515_v10 = vsub.s32 4, %v12739_v2  ;;  %v526_v11 = vsub.s32 5, %v12739_v2  ;;  %v537_v12 = vsub.s32 6, %v12739_v2  ;;  %v548_v13 = vsub.s32 7, %v12739_v2 }
  0xf1   :  { %269 = vst.msk [vmem:[#allocation3 + $0x60] sm:$0xff] %vm256_vm0, %v12174_v1  ;;  %270 = vst.msk [vmem:[#allocation3 + $0x80] sm:$0xff] %vm256_vm0, %v12174_v1  ;;  %v483_v8 = vrot.slane %v467_v5, %v12774_v3  ;;  %v472_v9 = vrot.slane %v467_v5, %v12777_v4  ;;  %v494_v14 = vrot.slane %v467_v5, %v493_v6 }
  0xf2   :  { %271 = vst.msk [vmem:[#allocation3 + $0xa0] sm:$0xff] %vm256_vm0, %v12174_v1  ;;  %272 = vst.msk [vmem:[#allocation3 + $0xc0] sm:$0xff] %vm256_vm0, %v12174_v1  ;;  %v505_v15 = vrot.slane %v467_v5, %v504_v7  ;;  %v516_v16 = vrot.slane %v467_v5, %v515_v10  ;;  %v527_v17 = vrot.slane %v467_v5, %v526_v11  ;;  %10276 = vmatpush3.bf16.msra.mxu0 %v1229_v44 }
  0xf3   :  { %273 = vst.msk [vmem:[#allocation3 + $0xe0] sm:$0xff] %vm256_vm0, %v12174_v1  ;;  %274 = vst.msk [vmem:[#allocation3 + $0x100] sm:$0xff] %vm256_vm0, %v12174_v1  ;;  %485 = vbcast.lane.b32.xlu1 %v483_v8, 256  ;;  %474 = vbcast.lane.b32.xlu0 %v472_v9, 256  ;;  %v538_v18 = vrot.slane %v467_v5, %v537_v12  ;;  %v549_v20 = vrot.slane %v467_v5, %v548_v13 }
  0xf4   :  { %275 = vst.msk [vmem:[#allocation3 + $0x120] sm:$0xff] %vm256_vm0, %v12174_v1  ;;  %276 = vst.msk [vmem:[#allocation3 + $0x140] sm:$0xff] %vm256_vm0, %v12174_v1  ;;  %v560_v21 = vrot.slane %v468_v19, %v12777_v4  ;;  %v571_v22 = vrot.slane %v468_v19, %v12774_v3  ;;  %v582_v23 = vrot.slane %v468_v19, %v493_v6  ;;  %10309 = vmatprep.subr.bf16.mxu0 %v12801_v56 }
  0xf5   :  { %277 = vst.msk [vmem:[#allocation3 + $0x160] sm:$0xff] %vm256_vm0, %v12174_v1  ;;  %278 = vst.msk [vmem:[#allocation3 + $0x180] sm:$0xff] %vm256_vm0, %v12174_v1  ;;  %v593_v24 = vrot.slane %v468_v19, %v504_v7  ;;  %v604_v25 = vrot.slane %v468_v19, %v515_v10  ;;  %v615_v26 = vrot.slane %v468_v19, %v526_v11 }
  0xf6   :  { %279 = vst.msk [vmem:[#allocation3 + $0x1a0] sm:$0xff] %vm256_vm0, %v12174_v1  ;;  %280 = vst.msk [vmem:[#allocation3 + $0x1c0] sm:$0xff] %vm256_vm0, %v12174_v1  ;;  %v626_v29 = vrot.slane %v468_v19, %v537_v12  ;;  %v637_v33 = vrot.slane %v468_v19, %v548_v13 }
  0xf7   :  { %281 = vst.msk [vmem:[#allocation3 + $0x1e0] sm:$0xff] %vm256_vm0, %v12174_v1  ;;  %282 = vst.msk [vmem:[#allocation3 + $0x200] sm:$0xff] %vm256_vm0, %v12174_v1  ;;  %489 = vbcast.lane.b32.xlu1 %v483_v8, 264  ;;  %478 = vbcast.lane.b32.xlu0 %v472_v9, 264 }
  0xf8   :  { %285 = vst.msk [vmem:[#allocation3 + $0x38] sm:$0xff] %vm256_vm0, %v12174_v1  ;;  %286 = vst.msk [vmem:[#allocation3 + $0x58] sm:$0xff] %vm256_vm0, %v12174_v1 }
  0xf9   :  { %287 = vst.msk [vmem:[#allocation3 + $0x78] sm:$0xff] %vm256_vm0, %v12174_v1  ;;  %288 = vst.msk [vmem:[#allocation3 + $0x98] sm:$0xff] %vm256_vm0, %v12174_v1 }
  0xfa   :  { %289 = vst.msk [vmem:[#allocation3 + $0xb8] sm:$0xff] %vm256_vm0, %v12174_v1  ;;  %290 = vst.msk [vmem:[#allocation3 + $0xd8] sm:$0xff] %vm256_vm0, %v12174_v1 }
  0xfb   :  { %291 = vst.msk [vmem:[#allocation3 + $0xf8] sm:$0xff] %vm256_vm0, %v12174_v1  ;;  %292 = vst.msk [vmem:[#allocation3 + $0x118] sm:$0xff] %vm256_vm0, %v12174_v1  ;;  %500 = vbcast.lane.b32.xlu1 %v494_v14, 264  ;;  %496 = vbcast.lane.b32.xlu0 %v494_v14, 256 }
  0xfc   :  { %293 = vst.msk [vmem:[#allocation3 + $0x138] sm:$0xff] %vm256_vm0, %v12174_v1  ;;  %294 = vst.msk [vmem:[#allocation3 + $0x158] sm:$0xff] %vm256_vm0, %v12174_v1 }
  0xfd   :  { %295 = vst.msk [vmem:[#allocation3 + $0x178] sm:$0xff] %vm256_vm0, %v12174_v1  ;;  %296 = vst.msk [vmem:[#allocation3 + $0x198] sm:$0xff] %vm256_vm0, %v12174_v1 }
  0xfe   :  { %297 = vst.msk [vmem:[#allocation3 + $0x1b8] sm:$0xff] %vm256_vm0, %v12174_v1  ;;  %298 = vst.msk [vmem:[#allocation3 + $0x1d8] sm:$0xff] %vm256_vm0, %v12174_v1 }
  0xff   :  { %299 = vst.msk [vmem:[#allocation3 + $0x1f8] sm:$0xff] %vm256_vm0, %v12174_v1  ;;  %300 = vst.msk [vmem:[#allocation3 + $0x218] sm:$0xff] %vm256_vm0, %v12174_v1  ;;  %511 = vbcast.lane.b32.xlu1 %v505_v15, 264  ;;  %507 = vbcast.lane.b32.xlu0 %v505_v15, 256 }
 0x100   :  { %302 = vst.msk [vmem:[#allocation5] sm:$0xff] %vm256_vm0, %v12174_v1  ;;  %303 = vst.msk [vmem:[#allocation5 + $0x8] sm:$0xff] %vm256_vm0, %v12174_v1 }
 0x101   :  { %304 = vst.msk [vmem:[#allocation5 + $0x10] sm:$0xff] %vm256_vm0, %v12174_v1  ;;  %306 = vst.msk [vmem:[#allocation5 + $0xd8] sm:$0xff] %vm256_vm0, %v12174_v1 }
 0x102   :  { %307 = vst.msk [vmem:[#allocation5 + $0xe0] sm:$0xff] %vm256_vm0, %v12174_v1  ;;  %308 = vst.msk [vmem:[#allocation5 + $0xe8] sm:$0xff] %vm256_vm0, %v12174_v1 }
 0x103   :  { %310 = vst.msk [vmem:[#allocation5 + $0x18] sm:$0xff] %vm256_vm0, %v12174_v1  ;;  %311 = vst.msk [vmem:[#allocation5 + $0x30] sm:$0xff] %vm256_vm0, %v12174_v1  ;;  %522 = vbcast.lane.b32.xlu1 %v516_v16, 264  ;;  %518 = vbcast.lane.b32.xlu0 %v516_v16, 256 }
 0x104   :  { %312 = vst.msk [vmem:[#allocation5 + $0x48] sm:$0xff] %vm256_vm0, %v12174_v1  ;;  %313 = vst.msk [vmem:[#allocation5 + $0x60] sm:$0xff] %vm256_vm0, %v12174_v1 }
 0x105   :  { %314 = vst.msk [vmem:[#allocation5 + $0x78] sm:$0xff] %vm256_vm0, %v12174_v1  ;;  %315 = vst.msk [vmem:[#allocation5 + $0x90] sm:$0xff] %vm256_vm0, %v12174_v1 }
 0x106   :  { %316 = vst.msk [vmem:[#allocation5 + $0xa8] sm:$0xff] %vm256_vm0, %v12174_v1  ;;  %317 = vst.msk [vmem:[#allocation5 + $0xc0] sm:$0xff] %vm256_vm0, %v12174_v1 }
 0x107   :  { %320 = vst.msk [vmem:[#allocation5 + $0x28] sm:$0xff] %vm256_vm0, %v12174_v1  ;;  %321 = vst.msk [vmem:[#allocation5 + $0x40] sm:$0xff] %vm256_vm0, %v12174_v1  ;;  %533 = vbcast.lane.b32.xlu1 %v527_v17, 264  ;;  %529 = vbcast.lane.b32.xlu0 %v527_v17, 256 }
 0x108   :  { %322 = vst.msk [vmem:[#allocation5 + $0x58] sm:$0xff] %vm256_vm0, %v12174_v1  ;;  %323 = vst.msk [vmem:[#allocation5 + $0x70] sm:$0xff] %vm256_vm0, %v12174_v1 }
 0x109   :  { %324 = vst.msk [vmem:[#allocation5 + $0x88] sm:$0xff] %vm256_vm0, %v12174_v1  ;;  %325 = vst.msk [vmem:[#allocation5 + $0xa0] sm:$0xff] %vm256_vm0, %v12174_v1 }
 0x10a   :  { %326 = vst.msk [vmem:[#allocation5 + $0xb8] sm:$0xff] %vm256_vm0, %v12174_v1  ;;  %327 = vst.msk [vmem:[#allocation5 + $0xd0] sm:$0xff] %vm256_vm0, %v12174_v1 }
 0x10b   :  { %330 = vst [vmem:[#allocation6 + $0x8] sm:$0xff] %v12174_v1  ;;  %334 = vst [vmem:[#allocation6 + $0xe0] sm:$0xff] %v12174_v1  ;;  %544 = vbcast.lane.b32.xlu1 %v538_v18, 264  ;;  %540 = vbcast.lane.b32.xlu0 %v538_v18, 256 }
 0x10c   :  { %337 = vst [vmem:[#allocation6 + $0x18] sm:$0xff] %v12174_v1  ;;  %338 = vst [vmem:[#allocation6 + $0x30] sm:$0xff] %v12174_v1 }
 0x10d   :  { %339 = vst [vmem:[#allocation6 + $0x48] sm:$0xff] %v12174_v1  ;;  %340 = vst [vmem:[#allocation6 + $0x60] sm:$0xff] %v12174_v1 }
 0x10e   :  { %341 = vst [vmem:[#allocation6 + $0x78] sm:$0xff] %v12174_v1  ;;  %342 = vst [vmem:[#allocation6 + $0x90] sm:$0xff] %v12174_v1 }
 0x10f   :  { %343 = vst [vmem:[#allocation6 + $0xa8] sm:$0xff] %v12174_v1  ;;  %344 = vst [vmem:[#allocation6 + $0xc0] sm:$0xff] %v12174_v1  ;;  %555 = vbcast.lane.b32.xlu1 %v549_v20, 264  ;;  %551 = vbcast.lane.b32.xlu0 %v549_v20, 256 }
 0x110   :  { %347 = vst [vmem:[#allocation6 + $0x28] sm:$0xff] %v12174_v1  ;;  %348 = vst [vmem:[#allocation6 + $0x40] sm:$0xff] %v12174_v1 }
 0x111   :  { %349 = vst [vmem:[#allocation6 + $0x58] sm:$0xff] %v12174_v1  ;;  %350 = vst [vmem:[#allocation6 + $0x70] sm:$0xff] %v12174_v1 }
 0x112   :  { %351 = vst [vmem:[#allocation6 + $0x88] sm:$0xff] %v12174_v1  ;;  %352 = vst [vmem:[#allocation6 + $0xa0] sm:$0xff] %v12174_v1 }
 0x113   :  { %353 = vst [vmem:[#allocation6 + $0xb8] sm:$0xff] %v12174_v1  ;;  %354 = vst [vmem:[#allocation6 + $0xd0] sm:$0xff] %v12174_v1  ;;  %566 = vbcast.lane.b32.xlu1 %v560_v21, 264  ;;  %562 = vbcast.lane.b32.xlu0 %v560_v21, 256 }
 0x114   :  { %361 = vst.msk [vmem:[#allocation7 + $0xe0] sm:$0xff] %vm256_vm0, %v12174_v1  ;;  %362 = vst.msk [vmem:[#allocation7 + $0xe8] sm:$0xff] %vm256_vm0, %v12174_v1 }
 0x115   :  { %374 = vst.msk [vmem:[#allocation7 + $0x28] sm:$0xff] %vm256_vm0, %v12174_v1  ;;  %375 = vst.msk [vmem:[#allocation7 + $0x40] sm:$0xff] %vm256_vm0, %v12174_v1 }
 0x116   :  { %376 = vst.msk [vmem:[#allocation7 + $0x58] sm:$0xff] %vm256_vm0, %v12174_v1  ;;  %377 = vst.msk [vmem:[#allocation7 + $0x70] sm:$0xff] %vm256_vm0, %v12174_v1 }
 0x117   :  { %378 = vst.msk [vmem:[#allocation7 + $0x88] sm:$0xff] %vm256_vm0, %v12174_v1  ;;  %379 = vst.msk [vmem:[#allocation7 + $0xa0] sm:$0xff] %vm256_vm0, %v12174_v1  ;;  %577 = vbcast.lane.b32.xlu1 %v571_v22, 264  ;;  %573 = vbcast.lane.b32.xlu0 %v571_v22, 256 }
 0x118   :  { %380 = vst.msk [vmem:[#allocation7 + $0xb8] sm:$0xff] %vm256_vm0, %v12174_v1  ;;  %381 = vst.msk [vmem:[#allocation7 + $0xd0] sm:$0xff] %vm256_vm0, %v12174_v1 }
 0x119   :  { %388 = vst.msk [vmem:[#allocation7 + $0x1c8] sm:$0xff] %vm256_vm0, %v12174_v1  ;;  %389 = vst.msk [vmem:[#allocation7 + $0x1d0] sm:$0xff] %vm256_vm0, %v12174_v1 }
 0x11a   :  { %392 = vst.msk [vmem:[#allocation7 + $0x108] sm:$0xff] %vm256_vm0, %v12174_v1  ;;  %393 = vst.msk [vmem:[#allocation7 + $0x120] sm:$0xff] %vm256_vm0, %v12174_v1 }
 0x11b   :  { %394 = vst.msk [vmem:[#allocation7 + $0x138] sm:$0xff] %vm256_vm0, %v12174_v1  ;;  %395 = vst.msk [vmem:[#allocation7 + $0x150] sm:$0xff] %vm256_vm0, %v12174_v1  ;;  %588 = vbcast.lane.b32.xlu1 %v582_v23, 264  ;;  %584 = vbcast.lane.b32.xlu0 %v582_v23, 256 }
 0x11c   :  { %396 = vst.msk [vmem:[#allocation7 + $0x168] sm:$0xff] %vm256_vm0, %v12174_v1  ;;  %397 = vst.msk [vmem:[#allocation7 + $0x180] sm:$0xff] %vm256_vm0, %v12174_v1 }
 0x11d   :  { %398 = vst.msk [vmem:[#allocation7 + $0x198] sm:$0xff] %vm256_vm0, %v12174_v1  ;;  %399 = vst.msk [vmem:[#allocation7 + $0x1b0] sm:$0xff] %vm256_vm0, %v12174_v1 }
 0x11e   :  { %413 = vst.msk [vmem:[#allocation7 + $0x1e8] sm:$0xff] %vm256_vm0, %v12174_v1  ;;  %414 = vst.msk [vmem:[#allocation7 + $0x1f0] sm:$0xff] %vm256_vm0, %v12174_v1 }
 0x11f   :  { %430 = vst.msk [vmem:[#allocation7 + $0x208] sm:$0xff] %vm256_vm0, %v12174_v1  ;;  %431 = vst.msk [vmem:[#allocation7 + $0x220] sm:$0xff] %vm256_vm0, %v12174_v1  ;;  %599 = vbcast.lane.b32.xlu1 %v593_v24, 264  ;;  %595 = vbcast.lane.b32.xlu0 %v593_v24, 256 }
 0x120   :  { %432 = vst.msk [vmem:[#allocation7 + $0x238] sm:$0xff] %vm256_vm0, %v12174_v1  ;;  %433 = vst.msk [vmem:[#allocation7 + $0x250] sm:$0xff] %vm256_vm0, %v12174_v1 }
 0x121   :  { %434 = vst.msk [vmem:[#allocation7 + $0x268] sm:$0xff] %vm256_vm0, %v12174_v1  ;;  %435 = vst.msk [vmem:[#allocation7 + $0x280] sm:$0xff] %vm256_vm0, %v12174_v1 }
 0x122   :  { %436 = vst.msk [vmem:[#allocation7 + $0x298] sm:$0xff] %vm256_vm0, %v12174_v1  ;;  %437 = vst.msk [vmem:[#allocation7 + $0x2b0] sm:$0xff] %vm256_vm0, %v12174_v1 }
 0x123   :  { %440 = vst.msk [vmem:[#allocation7 + $0x2d0] sm:$0xff] %vm256_vm0, %v12174_v1  ;;  %441 = vst.msk [vmem:[#allocation7 + $0x2d8] sm:$0xff] %vm256_vm0, %v12174_v1  ;;  %610 = vbcast.lane.b32.xlu1 %v604_v25, 264  ;;  %606 = vbcast.lane.b32.xlu0 %v604_v25, 256 }
 0x124   :  { %448 = vst.msk [vmem:[#allocation7 + $0x2e8] sm:$0xff] %vm256_vm0, %v12174_v1  ;;  %449 = vst.msk [vmem:[#allocation7 + $0x300] sm:$0xff] %vm256_vm0, %v12174_v1 }
 0x125   :  { %450 = vst.msk [vmem:[#allocation7 + $0x318] sm:$0xff] %vm256_vm0, %v12174_v1  ;;  %451 = vst.msk [vmem:[#allocation7 + $0x330] sm:$0xff] %vm256_vm0, %v12174_v1 }
 0x126   :  { %452 = vst.msk [vmem:[#allocation7 + $0x348] sm:$0xff] %vm256_vm0, %v12174_v1  ;;  %453 = vst.msk [vmem:[#allocation7 + $0x360] sm:$0xff] %vm256_vm0, %v12174_v1 }
 0x127   :  { %454 = vst.msk [vmem:[#allocation7 + $0x378] sm:$0xff] %vm256_vm0, %v12174_v1  ;;  %455 = vst.msk [vmem:[#allocation7 + $0x390] sm:$0xff] %vm256_vm0, %v12174_v1  ;;  %621 = vbcast.lane.b32.xlu1 %v615_v26, 264  ;;  %617 = vbcast.lane.b32.xlu0 %v615_v26, 256 }
 0x128   :  { %336 = vst [vmem:[#allocation6] sm:$0xff] %v12174_v1  ;;  %345 = vst [vmem:[#allocation6 + $0xd8] sm:$0xff] %v12174_v1 }
 0x129   :  { %346 = vst [vmem:[#allocation6 + $0x10] sm:$0xff] %v12174_v1  ;;  %355 = vst [vmem:[#allocation6 + $0xe8] sm:$0xff] %v12174_v1 }
 0x12a   :  { %212 = vst.msk [vmem:[#allocation2 + $0x8] sm:$0xff] %vm210_vm1, %v12174_v1  ;;  %213 = vst.msk [vmem:[#allocation2 + $0x10] sm:$0xff] %vm210_vm1, %v12174_v1 }
 0x12b   :  { %211 = vst.msk [vmem:[#allocation2] sm:$0xff] %vm210_vm1, %v12174_v1  ;;  %214 = vst.msk [vmem:[#allocation2 + $0x18] sm:$0xff] %vm210_vm1, %v12174_v1  ;;  %628 = vbcast.lane.b32.xlu0 %v626_v29, 256  ;;  %632 = vbcast.lane.b32.xlu1 %v626_v29, 264 }
 0x12c   :  { %216 = vst.msk [vmem:[#allocation2 + $0x220] sm:$0xff] %vm210_vm1, %v12174_v1  ;;  %217 = vst.msk [vmem:[#allocation2 + $0x228] sm:$0xff] %vm210_vm1, %v12174_v1 }
 0x12d   :  { %218 = vst.msk [vmem:[#allocation2 + $0x230] sm:$0xff] %vm210_vm1, %v12174_v1  ;;  %219 = vst.msk [vmem:[#allocation2 + $0x238] sm:$0xff] %vm210_vm1, %v12174_v1 }
 0x12e   :  { %221 = vst.msk [vmem:[#allocation2 + $0x20] sm:$0xff] %vm210_vm1, %v12174_v1  ;;  %222 = vst.msk [vmem:[#allocation2 + $0x40] sm:$0xff] %vm210_vm1, %v12174_v1 }
 0x12f   :  { %223 = vst.msk [vmem:[#allocation2 + $0x60] sm:$0xff] %vm210_vm1, %v12174_v1  ;;  %224 = vst.msk [vmem:[#allocation2 + $0x80] sm:$0xff] %vm210_vm1, %v12174_v1  ;;  %643 = vbcast.lane.b32.xlu1 %v637_v33, 264 }
 0x130   :  { %225 = vst.msk [vmem:[#allocation2 + $0xa0] sm:$0xff] %vm210_vm1, %v12174_v1  ;;  %226 = vst.msk [vmem:[#allocation2 + $0xc0] sm:$0xff] %vm210_vm1, %v12174_v1 }
 0x131   :  { %227 = vst.msk [vmem:[#allocation2 + $0xe0] sm:$0xff] %vm210_vm1, %v12174_v1  ;;  %228 = vst.msk [vmem:[#allocation2 + $0x100] sm:$0xff] %vm210_vm1, %v12174_v1  ;;  %v714_v27 = vld [vmem:[#allocation2 + $0x8] sm:$0xff]  ;;  %v715_v28 = vld [vmem:[#allocation2 + $0x10] sm:$0xff] }
 0x132   :  { %229 = vst.msk [vmem:[#allocation2 + $0x120] sm:$0xff] %vm210_vm1, %v12174_v1  ;;  %230 = vst.msk [vmem:[#allocation2 + $0x140] sm:$0xff] %vm210_vm1, %v12174_v1  ;;  %v750_v30 = vld [vmem:[#allocation2 + $0x9] sm:$0xff]  ;;  %v10981_v32 = vpack.i.bf16 %v715_v28, %v714_v27 }
 0x133   :  { %231 = vst.msk [vmem:[#allocation2 + $0x160] sm:$0xff] %vm210_vm1, %v12174_v1  ;;  %232 = vst.msk [vmem:[#allocation2 + $0x180] sm:$0xff] %vm210_vm1, %v12174_v1 }
 0x134   :  { %233 = vst.msk [vmem:[#allocation2 + $0x1a0] sm:$0xff] %vm210_vm1, %v12174_v1  ;;  %234 = vst.msk [vmem:[#allocation2 + $0x1c0] sm:$0xff] %vm210_vm1, %v12174_v1  ;;  %10982 = vrot.lane.b32.xlu0 %v10981_v32, %s12166_s20 }
 0x135   :  { %235 = vst.msk [vmem:[#allocation2 + $0x1e0] sm:$0xff] %vm210_vm1, %v12174_v1  ;;  %236 = vst.msk [vmem:[#allocation2 + $0x200] sm:$0xff] %vm210_vm1, %v12174_v1 }
 0x136   :  { %239 = vst.msk [vmem:[#allocation2 + $0x38] sm:$0xff] %vm210_vm1, %v12174_v1  ;;  %240 = vst.msk [vmem:[#allocation2 + $0x58] sm:$0xff] %vm210_vm1, %v12174_v1 }
 0x137   :  { %241 = vst.msk [vmem:[#allocation2 + $0x78] sm:$0xff] %vm210_vm1, %v12174_v1  ;;  %242 = vst.msk [vmem:[#allocation2 + $0x98] sm:$0xff] %vm210_vm1, %v12174_v1 }
 0x138   :  { %243 = vst.msk [vmem:[#allocation2 + $0xb8] sm:$0xff] %vm210_vm1, %v12174_v1  ;;  %244 = vst.msk [vmem:[#allocation2 + $0xd8] sm:$0xff] %vm210_vm1, %v12174_v1 }
 0x139   :  { %245 = vst.msk [vmem:[#allocation2 + $0xf8] sm:$0xff] %vm210_vm1, %v12174_v1  ;;  %246 = vst.msk [vmem:[#allocation2 + $0x118] sm:$0xff] %vm210_vm1, %v12174_v1 }
 0x13a   :  { %247 = vst.msk [vmem:[#allocation2 + $0x138] sm:$0xff] %vm210_vm1, %v12174_v1  ;;  %248 = vst.msk [vmem:[#allocation2 + $0x158] sm:$0xff] %vm210_vm1, %v12174_v1 }
 0x13b   :  { %249 = vst.msk [vmem:[#allocation2 + $0x178] sm:$0xff] %vm210_vm1, %v12174_v1  ;;  %250 = vst.msk [vmem:[#allocation2 + $0x198] sm:$0xff] %vm210_vm1, %v12174_v1 }
 0x13c   :  { %251 = vst.msk [vmem:[#allocation2 + $0x1b8] sm:$0xff] %vm210_vm1, %v12174_v1  ;;  %252 = vst.msk [vmem:[#allocation2 + $0x1d8] sm:$0xff] %vm210_vm1, %v12174_v1 }
 0x13d   :  { %253 = vst.msk [vmem:[#allocation2 + $0x1f8] sm:$0xff] %vm210_vm1, %v12174_v1  ;;  %254 = vst.msk [vmem:[#allocation2 + $0x218] sm:$0xff] %vm210_vm1, %v12174_v1 }
 0x13e   :  { %266 = vst.msk [vmem:[#allocation3] sm:$0xff] %vm256_vm0, %v12174_v1  ;;  %283 = vst.msk [vmem:[#allocation3 + $0x220] sm:$0xff] %vm256_vm0, %v12174_v1 }
 0x13f   :  { %284 = vst.msk [vmem:[#allocation3 + $0x18] sm:$0xff] %vm256_vm0, %v12174_v1  ;;  %301 = vst.msk [vmem:[#allocation3 + $0x238] sm:$0xff] %vm256_vm0, %v12174_v1 }
 0x140   :  { %309 = vst.msk [vmem:[#allocation5] sm:$0xff] %vm256_vm0, %v12174_v1  ;;  %318 = vst.msk [vmem:[#allocation5 + $0xd8] sm:$0xff] %vm256_vm0, %v12174_v1 }
 0x141   :  { %319 = vst.msk [vmem:[#allocation5 + $0x10] sm:$0xff] %vm256_vm0, %v12174_v1  ;;  %328 = vst.msk [vmem:[#allocation5 + $0xe8] sm:$0xff] %vm256_vm0, %v12174_v1 }
 0x142   :  { %382 = vst.msk [vmem:[#allocation7 + $0xe8] sm:$0xff] %vm256_vm0, %v12174_v1  ;;  %400 = vst.msk [vmem:[#allocation7 + $0x1c8] sm:$0xff] %vm256_vm0, %v12174_v1 }
 0x143   :  { %429 = vst.msk [vmem:[#allocation7 + $0x1f0] sm:$0xff] %vm256_vm0, %v12174_v1  ;;  %447 = vst.msk [vmem:[#allocation7 + $0x2d0] sm:$0xff] %vm256_vm0, %v12174_v1 }
 0x144   :  { %238 = vst.msk [vmem:[#allocation2 + $0x18] sm:$0xff] %vm210_vm1, %v12174_v1  ;;  %220 = vst.msk [vmem:[#allocation2] sm:$0xff] %vm210_vm1, %v12174_v1 }
 0x145   :  { %237 = vst.msk [vmem:[#allocation2 + $0x220] sm:$0xff] %vm210_vm1, %v12174_v1  ;;  %255 = vst.msk [vmem:[#allocation2 + $0x238] sm:$0xff] %vm210_vm1, %v12174_v1 }
 0x14b   :  { %v751_v31 = vld [vmem:[#allocation2 + $0x11] sm:$0xff] }
 0x14c   :  { %v10986_v34 = vpack.i.bf16 %v751_v31, %v750_v30 }
 0x14e   :  { %10987 = vrot.lane.b32.xlu0 %v10986_v34, %s12175_s12 }
 0x152   :  { %639 = vbcast.lane.b32.xlu0 %v637_v33, 256 }
 0x165   :  { %v486_v35 = vpop.permute.xlu1 %485  ;;  %v475_v36 = vpop.permute.xlu0 %474 }
 0x166   :  { %648 = vst.msk [vmem:[#allocation2 + $0x48] sm:$0xff] %vm210_vm1, %v486_v35  ;;  %646 = vst.msk [vmem:[#allocation2 + $0x28] sm:$0xff] %vm210_vm1, %v475_v36 }
 0x169   :  { %v490_v38 = vpop.permute.xlu1 %489  ;;  %v479_v39 = vpop.permute.xlu0 %478 }
 0x16a   :  { %649 = vst.msk [vmem:[#allocation2 + $0x50] sm:$0xff] %vm210_vm1, %v490_v38  ;;  %647 = vst.msk [vmem:[#allocation2 + $0x30] sm:$0xff] %vm210_vm1, %v479_v39 }
 0x16d   :  { %v501_v41 = vpop.permute.xlu1 %500  ;;  %v497_v42 = vpop.permute.xlu0 %496  ;;  %v718_v43 = vld [vmem:[#allocation2 + $0x48] sm:$0xff] }
 0x16e   :  { %651 = vst.msk [vmem:[#allocation2 + $0x70] sm:$0xff] %vm210_vm1, %v501_v41  ;;  %650 = vst.msk [vmem:[#allocation2 + $0x68] sm:$0xff] %vm210_vm1, %v497_v42  ;;  %v716_v47 = vld [vmem:[#allocation2 + $0x28] sm:$0xff] }
 0x171   :  { %v512_v45 = vpop.permute.xlu1 %511  ;;  %v508_v46 = vpop.permute.xlu0 %507  ;;  %v717_v48 = vld [vmem:[#allocation2 + $0x30] sm:$0xff] }
 0x172   :  { %v719_v49 = vld [vmem:[#allocation2 + $0x50] sm:$0xff]  ;;  %653 = vst.msk [vmem:[#allocation2 + $0x90] sm:$0xff] %vm210_vm1, %v512_v45  ;;  %652 = vst.msk [vmem:[#allocation2 + $0x88] sm:$0xff] %vm210_vm1, %v508_v46  ;;  %v10991_v50 = vpack.i.bf16 %v717_v48, %v716_v47 }
 0x173   :  { %v11001_v51 = vpack.i.bf16 %v719_v49, %v718_v43  ;;  %v752_v52 = vld [vmem:[#allocation2 + $0x29] sm:$0xff]  ;;  %v753_v53 = vld [vmem:[#allocation2 + $0x31] sm:$0xff] }
 0x174   :  { %v754_v54 = vld [vmem:[#allocation2 + $0x49] sm:$0xff]  ;;  %v755_v55 = vld [vmem:[#allocation2 + $0x51] sm:$0xff]  ;;  %10992 = vrot.lane.b32.xlu1 %v10991_v50, %s12166_s20  ;;  %v10996_v61 = vpack.i.bf16 %v753_v53, %v752_v52 }
 0x175   :  { %11002 = vrot.lane.b32.xlu0 %v11001_v51, %s12166_s20  ;;  %v523_v57 = vpop.permute.xlu1 %522  ;;  %v519_v58 = vpop.permute.xlu0 %518  ;;  %v720_v59 = vld [vmem:[#allocation2 + $0x68] sm:$0xff]  ;;  %v721_v60 = vld [vmem:[#allocation2 + $0x70] sm:$0xff]  ;;  %v11011_v62 = vpack.i.bf16 %v755_v55, %v754_v54 }
 0x176   :  { %655 = vst.msk [vmem:[#allocation2 + $0xb0] sm:$0xff] %vm210_vm1, %v523_v57  ;;  %654 = vst.msk [vmem:[#allocation2 + $0xa8] sm:$0xff] %vm210_vm1, %v519_v58  ;;  %v11006_v63 = vpack.i.bf16 %v721_v60, %v720_v59  ;;  %v756_v8 = vld [vmem:[#allocation2 + $0x69] sm:$0xff]  ;;  %v757_v9 = vld [vmem:[#allocation2 + $0x71] sm:$0xff] }
 0x177   :  { %v11016_v16 = vpack.i.bf16 %v757_v9, %v756_v8 }
 0x178   :  { %10997 = vrot.lane.b32.xlu1 %v10996_v61, %s12175_s12 }
 0x179   :  { %11012 = vrot.lane.b32.xlu0 %v11011_v62, %s12175_s12  ;;  %v534_v0 = vpop.permute.xlu1 %533  ;;  %v530_v1 = vpop.permute.xlu0 %529  ;;  %v722_v2 = vld [vmem:[#allocation2 + $0x88] sm:$0xff]  ;;  %v723_v5 = vld [vmem:[#allocation2 + $0x90] sm:$0xff] }
 0x17a   :  { %v758_v6 = vld [vmem:[#allocation2 + $0x89] sm:$0xff]  ;;  %657 = vst.msk [vmem:[#allocation2 + $0xd0] sm:$0xff] %vm210_vm1, %v534_v0  ;;  %656 = vst.msk [vmem:[#allocation2 + $0xc8] sm:$0xff] %vm210_vm1, %v530_v1  ;;  %v11021_v7 = vpack.i.bf16 %v723_v5, %v722_v2  ;;  %v759_v10 = vld [vmem:[#allocation2 + $0x91] sm:$0xff] }
 0x17b   :  { %v11031_v11 = vpack.i.bf16 %v759_v10, %v758_v6 }
 0x17c   :  { %11007 = vrot.lane.b32.xlu1 %v11006_v63, %s12166_s20 }
 0x17d   :  { %11022 = vrot.lane.b32.xlu0 %v11021_v7, %s12166_s20  ;;  %v545_v12 = vpop.permute.xlu1 %544  ;;  %v541_v13 = vpop.permute.xlu0 %540  ;;  %v724_v14 = vld [vmem:[#allocation2 + $0xa8] sm:$0xff]  ;;  %v725_v15 = vld [vmem:[#allocation2 + $0xb0] sm:$0xff] }
 0x17e   :  { %659 = vst.msk [vmem:[#allocation2 + $0xf0] sm:$0xff] %vm210_vm1, %v545_v12  ;;  %658 = vst.msk [vmem:[#allocation2 + $0xe8] sm:$0xff] %vm210_vm1, %v541_v13  ;;  %v11026_v17 = vpack.i.bf16 %v725_v15, %v724_v14  ;;  %v760_v24 = vld [vmem:[#allocation2 + $0xa9] sm:$0xff]  ;;  %v761_v25 = vld [vmem:[#allocation2 + $0xb1] sm:$0xff] }
 0x17f   :  { %v11036_v32 = vpack.i.bf16 %v761_v25, %v760_v24 }
 0x180   :  { %11017 = vrot.lane.b32.xlu1 %v11016_v16, %s12175_s12 }
 0x181   :  { %11032 = vrot.lane.b32.xlu0 %v11031_v11, %s12175_s12  ;;  %v556_v18 = vpop.permute.xlu1 %555  ;;  %v552_v19 = vpop.permute.xlu0 %551  ;;  %v726_v20 = vld [vmem:[#allocation2 + $0xc8] sm:$0xff]  ;;  %v727_v21 = vld [vmem:[#allocation2 + $0xd0] sm:$0xff] }
 0x182   :  { %v762_v22 = vld [vmem:[#allocation2 + $0xc9] sm:$0xff]  ;;  %661 = vst.msk [vmem:[#allocation2 + $0x110] sm:$0xff] %vm210_vm1, %v556_v18  ;;  %660 = vst.msk [vmem:[#allocation2 + $0x108] sm:$0xff] %vm210_vm1, %v552_v19  ;;  %v11041_v23 = vpack.i.bf16 %v727_v21, %v726_v20  ;;  %v763_v26 = vld [vmem:[#allocation2 + $0xd1] sm:$0xff] }
 0x183   :  { %v11051_v27 = vpack.i.bf16 %v763_v26, %v762_v22  ;;  %v678_v21 = vld [vmem:[#allocation2 + $0x7] sm:$0xff]  ;;  %v679_v22 = vld [vmem:[#allocation2 + $0xf] sm:$0xff] }
 0x184   :  { %11027 = vrot.lane.b32.xlu1 %v11026_v17, %s12166_s20 }
 0x185   :  { %11042 = vrot.lane.b32.xlu0 %v11041_v23, %s12166_s20  ;;  %v567_v28 = vpop.permute.xlu1 %566  ;;  %v563_v29 = vpop.permute.xlu0 %562  ;;  %v728_v30 = vld [vmem:[#allocation2 + $0xe8] sm:$0xff]  ;;  %v729_v31 = vld [vmem:[#allocation2 + $0xf0] sm:$0xff] }
 0x186   :  { %663 = vst.msk [vmem:[#allocation2 + $0x130] sm:$0xff] %vm210_vm1, %v567_v28  ;;  %662 = vst.msk [vmem:[#allocation2 + $0x128] sm:$0xff] %vm210_vm1, %v563_v29  ;;  %v11046_v33 = vpack.i.bf16 %v729_v31, %v728_v30  ;;  %v764_v40 = vld [vmem:[#allocation2 + $0xe9] sm:$0xff]  ;;  %v765_v41 = vld [vmem:[#allocation2 + $0xf1] sm:$0xff] }
 0x187   :  { %v11056_v48 = vpack.i.bf16 %v765_v41, %v764_v40 }
 0x188   :  { %11037 = vrot.lane.b32.xlu1 %v11036_v32, %s12175_s12 }
 0x189   :  { %11052 = vrot.lane.b32.xlu0 %v11051_v27, %s12175_s12  ;;  %v578_v34 = vpop.permute.xlu1 %577  ;;  %v574_v35 = vpop.permute.xlu0 %573  ;;  %v730_v36 = vld [vmem:[#allocation2 + $0x108] sm:$0xff]  ;;  %v731_v37 = vld [vmem:[#allocation2 + $0x110] sm:$0xff] }
 0x18a   :  { %v766_v38 = vld [vmem:[#allocation2 + $0x109] sm:$0xff]  ;;  %665 = vst.msk [vmem:[#allocation2 + $0x150] sm:$0xff] %vm210_vm1, %v578_v34  ;;  %664 = vst.msk [vmem:[#allocation2 + $0x148] sm:$0xff] %vm210_vm1, %v574_v35  ;;  %v11061_v39 = vpack.i.bf16 %v731_v37, %v730_v36  ;;  %v767_v42 = vld [vmem:[#allocation2 + $0x111] sm:$0xff] }
 0x18b   :  { %v11071_v43 = vpack.i.bf16 %v767_v42, %v766_v38 }
 0x18c   :  { %11047 = vrot.lane.b32.xlu1 %v11046_v33, %s12166_s20 }
 0x18d   :  { %11062 = vrot.lane.b32.xlu0 %v11061_v39, %s12166_s20  ;;  %v589_v44 = vpop.permute.xlu1 %588  ;;  %v585_v45 = vpop.permute.xlu0 %584  ;;  %v732_v46 = vld [vmem:[#allocation2 + $0x128] sm:$0xff]  ;;  %v733_v47 = vld [vmem:[#allocation2 + $0x130] sm:$0xff] }
 0x18e   :  { %667 = vst.msk [vmem:[#allocation2 + $0x170] sm:$0xff] %vm210_vm1, %v589_v44  ;;  %666 = vst.msk [vmem:[#allocation2 + $0x168] sm:$0xff] %vm210_vm1, %v585_v45  ;;  %v11066_v49 = vpack.i.bf16 %v733_v47, %v732_v46  ;;  %v768_v57 = vld [vmem:[#allocation2 + $0x129] sm:$0xff]  ;;  %v769_v59 = vld [vmem:[#allocation2 + $0x131] sm:$0xff] }
 0x18f   :  { %v11076_v1 = vpack.i.bf16 %v769_v59, %v768_v57  ;;  %v785_v59 = vld [vmem:[#allocation2 + $0x231] sm:$0xff] }
 0x190   :  { %11057 = vrot.lane.b32.xlu1 %v11056_v48, %s12175_s12 }
 0x191   :  { %11072 = vrot.lane.b32.xlu0 %v11071_v43, %s12175_s12  ;;  %v600_v50 = vpop.permute.xlu1 %599  ;;  %v596_v51 = vpop.permute.xlu0 %595  ;;  %v734_v52 = vld [vmem:[#allocation2 + $0x148] sm:$0xff]  ;;  %v735_v53 = vld [vmem:[#allocation2 + $0x150] sm:$0xff] }
 0x192   :  { %v770_v54 = vld [vmem:[#allocation2 + $0x149] sm:$0xff]  ;;  %669 = vst.msk [vmem:[#allocation2 + $0x190] sm:$0xff] %vm210_vm1, %v600_v50  ;;  %668 = vst.msk [vmem:[#allocation2 + $0x188] sm:$0xff] %vm210_vm1, %v596_v51  ;;  %v11081_v55 = vpack.i.bf16 %v735_v53, %v734_v52  ;;  %v771_v58 = vld [vmem:[#allocation2 + $0x151] sm:$0xff] }
 0x193   :  { %v11091_v60 = vpack.i.bf16 %v771_v58, %v770_v54  ;;  %v748_v53 = vld [vmem:[#allocation2 + $0x228] sm:$0xff]  ;;  %v749_v54 = vld [vmem:[#allocation2 + $0x230] sm:$0xff] }
 0x194   :  { %11067 = vrot.lane.b32.xlu1 %v11066_v49, %s12166_s20 }
 0x195   :  { %11082 = vrot.lane.b32.xlu0 %v11081_v55, %s12166_s20  ;;  %v611_v61 = vpop.permute.xlu1 %610  ;;  %v607_v62 = vpop.permute.xlu0 %606  ;;  %v736_v63 = vld [vmem:[#allocation2 + $0x168] sm:$0xff]  ;;  %v737_v0 = vld [vmem:[#allocation2 + $0x170] sm:$0xff] }
 0x196   :  { %671 = vst.msk [vmem:[#allocation2 + $0x1b0] sm:$0xff] %vm210_vm1, %v611_v61  ;;  %670 = vst.msk [vmem:[#allocation2 + $0x1a8] sm:$0xff] %vm210_vm1, %v607_v62  ;;  %v11086_v2 = vpack.i.bf16 %v737_v0, %v736_v63  ;;  %v772_v11 = vld [vmem:[#allocation2 + $0x169] sm:$0xff]  ;;  %v773_v12 = vld [vmem:[#allocation2 + $0x171] sm:$0xff]  ;;  %v11151_v62 = vpack.i.bf16 %v749_v54, %v748_v53 }
 0x197   :  { %v11096_v19 = vpack.i.bf16 %v773_v12, %v772_v11  ;;  %v784_v55 = vld [vmem:[#allocation2 + $0x229] sm:$0xff] }
 0x198   :  { %11077 = vrot.lane.b32.xlu1 %v11076_v1, %s12175_s12  ;;  %v11156_v63 = vpack.i.bf16 %v785_v59, %v784_v55  ;;  %v681_v11 = vld [vmem:[#allocation2 + $0x2f] sm:$0xff]  ;;  %v682_v12 = vld [vmem:[#allocation2 + $0x47] sm:$0xff] }
 0x199   :  { %11092 = vrot.lane.b32.xlu0 %v11091_v60, %s12175_s12  ;;  %v622_v5 = vpop.permute.xlu1 %621  ;;  %v618_v6 = vpop.permute.xlu0 %617  ;;  %v738_v7 = vld [vmem:[#allocation2 + $0x188] sm:$0xff]  ;;  %v739_v8 = vld [vmem:[#allocation2 + $0x190] sm:$0xff] }
 0x19a   :  { %v774_v9 = vld [vmem:[#allocation2 + $0x189] sm:$0xff]  ;;  %673 = vst.msk [vmem:[#allocation2 + $0x1d0] sm:$0xff] %vm210_vm1, %v622_v5  ;;  %672 = vst.msk [vmem:[#allocation2 + $0x1c8] sm:$0xff] %vm210_vm1, %v618_v6  ;;  %v11101_v10 = vpack.i.bf16 %v739_v8, %v738_v7  ;;  %v775_v13 = vld [vmem:[#allocation2 + $0x191] sm:$0xff] }
 0x19b   :  { %v11111_v14 = vpack.i.bf16 %v775_v13, %v774_v9  ;;  %v680_v8 = vld [vmem:[#allocation2 + $0x27] sm:$0xff]  ;;  %v683_v13 = vld [vmem:[#allocation2 + $0x4f] sm:$0xff] }
 0x19c   :  { %11087 = vrot.lane.b32.xlu1 %v11086_v2, %s12166_s20 }
 0x19d   :  { %11102 = vrot.lane.b32.xlu0 %v11101_v10, %s12166_s20  ;;  %v629_v15 = vpop.permute.xlu0 %628  ;;  %v633_v16 = vpop.permute.xlu1 %632  ;;  %v740_v17 = vld [vmem:[#allocation2 + $0x1a8] sm:$0xff]  ;;  %v741_v18 = vld [vmem:[#allocation2 + $0x1b0] sm:$0xff] }
 0x19e   :  { %674 = vst.msk [vmem:[#allocation2 + $0x1e8] sm:$0xff] %vm210_vm1, %v629_v15  ;;  %675 = vst.msk [vmem:[#allocation2 + $0x1f0] sm:$0xff] %vm210_vm1, %v633_v16  ;;  %v11106_v20 = vpack.i.bf16 %v741_v18, %v740_v17  ;;  %v776_v31 = vld [vmem:[#allocation2 + $0x1a9] sm:$0xff]  ;;  %v777_v32 = vld [vmem:[#allocation2 + $0x1b1] sm:$0xff] }
 0x19f   :  { %v11116_v42 = vpack.i.bf16 %v777_v32, %v776_v31 }
 0x1a0   :  { %11097 = vrot.lane.b32.xlu1 %v11096_v19, %s12175_s12 }
 0x1a1   :  { %11112 = vrot.lane.b32.xlu0 %v11111_v14, %s12175_s12  ;;  %v742_v24 = vld [vmem:[#allocation2 + $0x1c8] sm:$0xff]  ;;  %v743_v25 = vld [vmem:[#allocation2 + $0x1d0] sm:$0xff]  ;;  %v644_v27 = vpop.permute.xlu1 %643 }
 0x1a2   :  { %v778_v26 = vld [vmem:[#allocation2 + $0x1c9] sm:$0xff]  ;;  %v11121_v30 = vpack.i.bf16 %v743_v25, %v742_v24  ;;  %v779_v33 = vld [vmem:[#allocation2 + $0x1d1] sm:$0xff]  ;;  %677 = vst.msk [vmem:[#allocation2 + $0x210] sm:$0xff] %vm210_vm1, %v644_v27 }
 0x1a3   :  { %v11131_v34 = vpack.i.bf16 %v779_v33, %v778_v26 }
 0x1a4   :  { %11107 = vrot.lane.b32.xlu1 %v11106_v20, %s12166_s20 }
 0x1a5   :  { %11122 = vrot.lane.b32.xlu0 %v11121_v30, %s12166_s20  ;;  %v744_v36 = vld [vmem:[#allocation2 + $0x1e8] sm:$0xff]  ;;  %v745_v37 = vld [vmem:[#allocation2 + $0x1f0] sm:$0xff]  ;;  %v11514_v30 = vld [vmem:[#allocation11 + $0x14] ss:$0 sps:$4 sm:$0xff]  }
 0x1a6   :  { %v10983_v23 = vpop.permute.xlu0 %10982  ;;  %v11126_v43 = vpack.i.bf16 %v745_v37, %v744_v36  ;;  %v780_v48 = vld [vmem:[#allocation2 + $0x1e9] sm:$0xff]  ;;  %v781_v49 = vld [vmem:[#allocation2 + $0x1f1] sm:$0xff] }
 0x1a7   :  { %v10985_v28 = vunpack.i.h.bf16 %v10983_v23  ;;  %v10984_v29 = vunpack.i.l.bf16 %v10983_v23  ;;  %v11136_v52 = vpack.i.bf16 %v781_v49, %v780_v48 }
 0x1a8   :  { %11117 = vrot.lane.b32.xlu1 %v11116_v42, %s12175_s12  ;;  %v687_v42 = vld [vmem:[#allocation2 + $0x8f] sm:$0xff] }
 0x1a9   :  { %v1074_v38 = vsel %vm210_vm1, %v678_v21, %v10984_v29  ;;  %v1075_v39 = vsel %vm210_vm1, %v679_v22, %v10985_v28  ;;  %11132 = vrot.lane.b32.xlu0 %v11131_v34, %s12175_s12  ;;  %v747_v50 = vld [vmem:[#allocation2 + $0x210] sm:$0xff] }
 0x1aa   :  { %v783_v51 = vld [vmem:[#allocation2 + $0x211] sm:$0xff] }
 0x1ac   :  { %11127 = vrot.lane.b32.xlu1 %v11126_v43, %s12166_s20 }
 0x1b0   :  { %11137 = vrot.lane.b32.xlu1 %v11136_v52, %s12175_s12 }
 0x1c0   :  { %v10988_v35 = vpop.permute.xlu0 %10987 }
 0x1c1   :  { %v10990_v40 = vunpack.i.h.bf16 %v10988_v35  ;;  %v10989_v41 = vunpack.i.l.bf16 %v10988_v35  ;;  %v685_v35 = vld [vmem:[#allocation2 + $0x6f] sm:$0xff] }
 0x1c3   :  { %v1111_v44 = vsel %vm1110_vm3, %v1074_v38, %v10989_v41  ;;  %v1112_v45 = vsel %vm1110_vm3, %v1075_v39, %v10990_v40  ;;  %v1447_v38 = vsel %vm1227_vm2, %v11514_v30, 0  ;;  %v12886_v39 = vld [vmem:[#allocation11 + $0x18] sm:$0xff]  }
 0x1c4   :  { %v640_v46 = vpop.permute.xlu0 %639  ;;  %v1147_v47 = vpack.c.bf16 %v1112_v45, %v1111_v44  ;;  %v684_v40 = vld [vmem:[#allocation2 + $0x67] sm:$0xff] }
 0x1c5   :  { %676 = vst.msk [vmem:[#allocation2 + $0x208] sm:$0xff] %vm210_vm1, %v640_v46  ;;  %v686_v41 = vld [vmem:[#allocation2 + $0x87] sm:$0xff] }
 0x1c6   :  { %10277 = vmatprep.mubr.msk.bf16.mxu0 %vm1178_vm4, %v1147_v47 }
 0x1cc   :  { %v746_v57 = vld [vmem:[#allocation2 + $0x208] sm:$0xff] }
 0x1cd   :  { %v782_v58 = vld [vmem:[#allocation2 + $0x209] sm:$0xff]  ;;  %v11141_v60 = vpack.i.bf16 %v747_v50, %v746_v57 }
 0x1ce   :  { %v11146_v61 = vpack.i.bf16 %v783_v51, %v782_v58 }
 0x1cf   :  { %11142 = vrot.lane.b32.xlu0 %v11141_v60, %s12166_s20 }
 0x1d0   :  { %11147 = vrot.lane.b32.xlu1 %v11146_v61, %s12175_s12 }
 0x1d3   :  { %11152 = vrot.lane.b32.xlu0 %v11151_v62, %s12166_s20 }
 0x1d4   :  { %11157 = vrot.lane.b32.xlu1 %v11156_v63, %s12175_s12  ;;  %v689_v63 = vld [vmem:[#allocation2 + $0xaf] sm:$0xff] }
 0x1e6   :  { %v10993_v0 = vpop.permute.xlu1 %10992 }
 0x1e7   :  { %v11003_v1 = vpop.permute.xlu0 %11002  ;;  %v10995_v2 = vunpack.i.h.bf16 %v10993_v0  ;;  %v10994_v5 = vunpack.i.l.bf16 %v10993_v0 }
 0x1e8   :  { %v11005_v6 = vunpack.i.h.bf16 %v11003_v1  ;;  %v11004_v7 = vunpack.i.l.bf16 %v11003_v1 }
 0x1e9   :  { %v1076_v18 = vsel %vm210_vm1, %v680_v8, %v10994_v5  ;;  %v1077_v19 = vsel %vm210_vm1, %v681_v11, %v10995_v2  ;;  %v688_v2 = vld [vmem:[#allocation2 + $0xa7] sm:$0xff] }
 0x1ea   :  { %v10998_v9 = vpop.permute.xlu1 %10997  ;;  %v1079_v20 = vsel %vm210_vm1, %v683_v13, %v11005_v6  ;;  %v1078_v21 = vsel %vm210_vm1, %v682_v12, %v11004_v7  ;;  %v690_v5 = vld [vmem:[#allocation2 + $0xc7] sm:$0xff]  ;;  %v691_v6 = vld [vmem:[#allocation2 + $0xcf] sm:$0xff] }
 0x1eb   :  { %v11013_v10 = vpop.permute.xlu0 %11012  ;;  %v11000_v14 = vunpack.i.h.bf16 %v10998_v9  ;;  %v10999_v15 = vunpack.i.l.bf16 %v10998_v9 }
 0x1ec   :  { %v11015_v16 = vunpack.i.h.bf16 %v11013_v10  ;;  %v11014_v17 = vunpack.i.l.bf16 %v11013_v10 }
 0x1ed   :  { %v1114_v22 = vsel %vm1110_vm3, %v1077_v19, %v11000_v14  ;;  %v1113_v23 = vsel %vm1110_vm3, %v1076_v18, %v10999_v15 }
 0x1ee   :  { %v1115_v24 = vsel %vm1110_vm3, %v1078_v21, %v11014_v17  ;;  %v1116_v25 = vsel %vm1110_vm3, %v1079_v20, %v11015_v16  ;;  %v11008_v26 = vpop.permute.xlu1 %11007  ;;  %v12875_v28 = vpack.c.bf16 %v1114_v22, %v1113_v23 }
 0x1ef   :  { %v11023_v27 = vpop.permute.xlu0 %11022  ;;  %v12877_v29 = vpack.c.bf16 %v1116_v25, %v1115_v24  ;;  %v11010_v31 = vunpack.i.h.bf16 %v11008_v26  ;;  %v11009_v32 = vunpack.i.l.bf16 %v11008_v26 }
 0x1f0   :  { %v11025_v33 = vunpack.i.h.bf16 %v11023_v27  ;;  %v11024_v34 = vunpack.i.l.bf16 %v11023_v27  ;;  %10278 = vmatmul.mubr.msk.bf16.vlgmr.msra.gmra.mrb[0].mxu0 %vm1178_vm4, %v12875_v28  ;;  %v693_v27 = vld [vmem:[#allocation2 + $0xef] sm:$0xff] }
 0x1f1   :  { %10310 = vmatpush3.bf16.msra.mxu0 %v12801_v56  ;;  %10281 = vmatprep.mubr.msk.bf16.mxu0 %vm1178_vm4, %v12877_v29  ;;  %v1081_v56 = vsel %vm210_vm1, %v685_v35, %v11010_v31  ;;  %v1080_v47 = vsel %vm210_vm1, %v684_v40, %v11009_v32  ;;  %v692_v32 = vld [vmem:[#allocation2 + $0xe7] sm:$0xff] }
 0x1f2   :  { %v11018_v36 = vpop.permute.xlu1 %11017  ;;  %10958 = vmatprep.subr.msk.bf16.mxu0 %vm1227_vm2, %v11514_v30  ;;  %v1083_v48 = vsel %vm210_vm1, %v687_v42, %v11025_v33  ;;  %v1082_v49 = vsel %vm210_vm1, %v686_v41, %v11024_v34  ;;  %v694_v33 = vld [vmem:[#allocation2 + $0x107] sm:$0xff]  ;;  %v695_v34 = vld [vmem:[#allocation2 + $0x10f] sm:$0xff] }
 0x1f3   :  { %v11033_v37 = vpop.permute.xlu0 %11032  ;;  %v11020_v43 = vunpack.i.h.bf16 %v11018_v36  ;;  %v11019_v44 = vunpack.i.l.bf16 %v11018_v36 }
 0x1f4   :  { %v11035_v45 = vunpack.i.h.bf16 %v11033_v37  ;;  %v11034_v46 = vunpack.i.l.bf16 %v11033_v37 }
 0x1f5   :  { %v1117_v50 = vsel %vm1110_vm3, %v1080_v47, %v11019_v44  ;;  %v1118_v51 = vsel %vm1110_vm3, %v1081_v56, %v11020_v43  ;;  %10312 = vmatpush3.bf16.msra.mxu0 %v1447_v38 }
 0x1f6   :  { %v1119_v52 = vsel %vm1110_vm3, %v1082_v49, %v11034_v46  ;;  %v1120_v53 = vsel %vm1110_vm3, %v1083_v48, %v11035_v45  ;;  %v11028_v54 = vpop.permute.xlu1 %11027  ;;  %v12896_v57 = vpack.c.bf16 %v1118_v51, %v1117_v50  ;;  %10345 = vmatprep.subr.bf16.mxu0 %v12886_v39 }
 0x1f7   :  { %v11043_v55 = vpop.permute.xlu0 %11042  ;;  %v12898_v58 = vpack.c.bf16 %v1120_v53, %v1119_v52  ;;  %v11030_v59 = vunpack.i.h.bf16 %v11028_v54  ;;  %v11029_v60 = vunpack.i.l.bf16 %v11028_v54 }
 0x1f8   :  { %v11045_v61 = vunpack.i.h.bf16 %v11043_v55  ;;  %v11044_v62 = vunpack.i.l.bf16 %v11043_v55  ;;  %10282 = vmatmul.mubr.msk.bf16.gmra.mrb[4].mxu0 %vm1178_vm4, %v12896_v57  ;;  %v697_v55 = vld [vmem:[#allocation2 + $0x12f] sm:$0xff] }
 0x1f9   :  { %10285 = vmatprep.mubr.msk.bf16.mxu0 %vm1178_vm4, %v12898_v58  ;;  %v1085_v11 = vsel %vm210_vm1, %v689_v63, %v11030_v59  ;;  %v1084_v12 = vsel %vm210_vm1, %v688_v2, %v11029_v60  ;;  %v699_v63 = vld [vmem:[#allocation2 + $0x14f] sm:$0xff] }
 0x1fa   :  { %v11038_v0 = vpop.permute.xlu1 %11037  ;;  %v1087_v13 = vsel %vm210_vm1, %v691_v6, %v11045_v61  ;;  %v1086_v14 = vsel %vm210_vm1, %v690_v5, %v11044_v62  ;;  %v696_v61 = vld [vmem:[#allocation2 + $0x127] sm:$0xff] }
 0x1fb   :  { %v11053_v1 = vpop.permute.xlu0 %11052  ;;  %v11040_v7 = vunpack.i.h.bf16 %v11038_v0  ;;  %v11039_v8 = vunpack.i.l.bf16 %v11038_v0  ;;  %v698_v62 = vld [vmem:[#allocation2 + $0x147] sm:$0xff] }
 0x1fc   :  { %v11055_v9 = vunpack.i.h.bf16 %v11053_v1  ;;  %v11054_v10 = vunpack.i.l.bf16 %v11053_v1 }
 0x1fd   :  { %v1121_v15 = vsel %vm1110_vm3, %v1084_v12, %v11039_v8  ;;  %v1122_v16 = vsel %vm1110_vm3, %v1085_v11, %v11040_v7 }
 0x1fe   :  { %v1123_v17 = vsel %vm1110_vm3, %v1086_v14, %v11054_v10  ;;  %v1124_v18 = vsel %vm1110_vm3, %v1087_v13, %v11055_v9  ;;  %v11048_v19 = vpop.permute.xlu1 %11047  ;;  %v12913_v21 = vpack.c.bf16 %v1122_v16, %v1121_v15 }
 0x1ff   :  { %v11063_v20 = vpop.permute.xlu0 %11062  ;;  %v12915_v22 = vpack.c.bf16 %v1124_v18, %v1123_v17  ;;  %v11050_v23 = vunpack.i.h.bf16 %v11048_v19  ;;  %v11049_v24 = vunpack.i.l.bf16 %v11048_v19 }
 0x200   :  { %v11065_v25 = vunpack.i.h.bf16 %v11063_v20  ;;  %v11064_v26 = vunpack.i.l.bf16 %v11063_v20  ;;  %10286 = vmatmul.mubr.msk.bf16.gmra.mrb[8].mxu0 %vm1178_vm4, %v12913_v21 }
 0x201   :  { %10289 = vmatprep.mubr.msk.bf16.mxu0 %vm1178_vm4, %v12915_v22  ;;  %v1089_v40 = vsel %vm210_vm1, %v693_v27, %v11050_v23  ;;  %v1088_v41 = vsel %vm210_vm1, %v692_v32, %v11049_v24  ;;  %v701_v24 = vld [vmem:[#allocation2 + $0x16f] sm:$0xff]  ;;  %v700_v27 = vld [vmem:[#allocation2 + $0x167] sm:$0xff] }
 0x202   :  { %v11058_v30 = vpop.permute.xlu1 %11057  ;;  %v1091_v42 = vsel %vm210_vm1, %v695_v34, %v11065_v25  ;;  %v1090_v43 = vsel %vm210_vm1, %v694_v33, %v11064_v26 }
 0x203   :  { %v11073_v31 = vpop.permute.xlu0 %11072  ;;  %v11060_v35 = vunpack.i.h.bf16 %v11058_v30  ;;  %v11059_v36 = vunpack.i.l.bf16 %v11058_v30  ;;  %v702_v30 = vld [vmem:[#allocation2 + $0x187] sm:$0xff] }
 0x204   :  { %v11075_v37 = vunpack.i.h.bf16 %v11073_v31  ;;  %v11074_v38 = vunpack.i.l.bf16 %v11073_v31  ;;  %v703_v31 = vld [vmem:[#allocation2 + $0x18f] sm:$0xff] }
 0x205   :  { %v1125_v44 = vsel %vm1110_vm3, %v1088_v41, %v11059_v36  ;;  %v1126_v45 = vsel %vm1110_vm3, %v1089_v40, %v11060_v35 }
 0x206   :  { %v1127_v46 = vsel %vm1110_vm3, %v1090_v43, %v11074_v38  ;;  %v1128_v56 = vsel %vm1110_vm3, %v1091_v42, %v11075_v37  ;;  %v11068_v47 = vpop.permute.xlu1 %11067  ;;  %v12929_v49 = vpack.c.bf16 %v1126_v45, %v1125_v44 }
 0x207   :  { %v11083_v48 = vpop.permute.xlu0 %11082  ;;  %v12931_v50 = vpack.c.bf16 %v1128_v56, %v1127_v46  ;;  %v11070_v51 = vunpack.i.h.bf16 %v11068_v47  ;;  %v11069_v52 = vunpack.i.l.bf16 %v11068_v47 }
 0x208   :  { %v11085_v53 = vunpack.i.h.bf16 %v11083_v48  ;;  %v11084_v54 = vunpack.i.l.bf16 %v11083_v48  ;;  %10290 = vmatmul.mubr.msk.bf16.gmra.mrb[12].mxu0 %vm1178_vm4, %v12929_v49 }
 0x209   :  { %10293 = vmatprep.mubr.msk.bf16.mxu0 %vm1178_vm4, %v12931_v50  ;;  %v1093_v6 = vsel %vm210_vm1, %v697_v55, %v11070_v51  ;;  %v1092_v7 = vsel %vm210_vm1, %v696_v61, %v11069_v52  ;;  %v706_v61 = vld [vmem:[#allocation2 + $0x1c7] sm:$0xff] }
 0x20a   :  { %v11078_v59 = vpop.permute.xlu1 %11077  ;;  %v1095_v8 = vsel %vm210_vm1, %v699_v63, %v11085_v53  ;;  %v1094_v9 = vsel %vm210_vm1, %v698_v62, %v11084_v54  ;;  %v705_v54 = vld [vmem:[#allocation2 + $0x1af] sm:$0xff] }
 0x20b   :  { %v11093_v60 = vpop.permute.xlu0 %11092  ;;  %v11080_v0 = vunpack.i.h.bf16 %v11078_v59  ;;  %v11079_v1 = vunpack.i.l.bf16 %v11078_v59  ;;  %v707_v62 = vld [vmem:[#allocation2 + $0x1cf] sm:$0xff] }
 0x20c   :  { %v11095_v2 = vunpack.i.h.bf16 %v11093_v60  ;;  %v11094_v5 = vunpack.i.l.bf16 %v11093_v60  ;;  %v704_v60 = vld [vmem:[#allocation2 + $0x1a7] sm:$0xff] }
 0x20d   :  { %v1129_v10 = vsel %vm1110_vm3, %v1092_v7, %v11079_v1  ;;  %v1130_v11 = vsel %vm1110_vm3, %v1093_v6, %v11080_v0 }
 0x20e   :  { %v1131_v12 = vsel %vm1110_vm3, %v1094_v9, %v11094_v5  ;;  %v1132_v13 = vsel %vm1110_vm3, %v1095_v8, %v11095_v2  ;;  %v11088_v14 = vpop.permute.xlu1 %11087  ;;  %v12945_v16 = vpack.c.bf16 %v1130_v11, %v1129_v10 }
 0x20f   :  { %v11103_v15 = vpop.permute.xlu0 %11102  ;;  %v12947_v17 = vpack.c.bf16 %v1132_v13, %v1131_v12  ;;  %v11090_v18 = vunpack.i.h.bf16 %v11088_v14  ;;  %v11089_v19 = vunpack.i.l.bf16 %v11088_v14 }
 0x210   :  { %v11105_v20 = vunpack.i.h.bf16 %v11103_v15  ;;  %v11104_v23 = vunpack.i.l.bf16 %v11103_v15  ;;  %10294 = vmatmul.mubr.msk.bf16.gmra.mrb[16].mxu0 %vm1178_vm4, %v12945_v16 }
 0x211   :  { %10297 = vmatprep.mubr.msk.bf16.mxu0 %vm1178_vm4, %v12947_v17  ;;  %v1097_v36 = vsel %vm210_vm1, %v701_v24, %v11090_v18  ;;  %v1096_v37 = vsel %vm210_vm1, %v700_v27, %v11089_v19  ;;  %v708_v24 = vld [vmem:[#allocation2 + $0x1e7] sm:$0xff] }
 0x212   :  { %v11098_v25 = vpop.permute.xlu1 %11097  ;;  %v1099_v38 = vsel %vm210_vm1, %v703_v31, %v11105_v20  ;;  %v1098_v40 = vsel %vm210_vm1, %v702_v30, %v11104_v23  ;;  %v709_v23 = vld [vmem:[#allocation2 + $0x1ef] sm:$0xff] }
 0x213   :  { %v11113_v26 = vpop.permute.xlu0 %11112  ;;  %v11100_v32 = vunpack.i.h.bf16 %v11098_v25  ;;  %v11099_v33 = vunpack.i.l.bf16 %v11098_v25 }
 0x214   :  { %v11115_v34 = vunpack.i.h.bf16 %v11113_v26  ;;  %v11114_v35 = vunpack.i.l.bf16 %v11113_v26 }
 0x215   :  { %v1133_v41 = vsel %vm1110_vm3, %v1096_v37, %v11099_v33  ;;  %v1134_v42 = vsel %vm1110_vm3, %v1097_v36, %v11100_v32  ;;  %v11517_v36 = vld [vmem:[#allocation14] sm:$0xff]  }
 0x216   :  { %v1135_v43 = vsel %vm1110_vm3, %v1098_v40, %v11114_v35  ;;  %v1136_v44 = vsel %vm1110_vm3, %v1099_v38, %v11115_v34  ;;  %v11108_v46 = vpop.permute.xlu1 %11107  ;;  %v12963_v47 = vpack.c.bf16 %v1134_v42, %v1133_v41  ;;  %v1955_v34 = vld [vmem:[#allocation3 + $0x8] sm:$0xff]  ;;  %v1956_v35 = vld [vmem:[#allocation3 + $0x10] sm:$0xff]  ;;  %v12176_v38 = vmov 0   ;;  %v11518_v40 = vld [vmem:[#allocation14 + $0x8] sm:$0xff]  }
 0x217   :  { %v12961_v45 = vpack.c.bf16 %v1136_v44, %v1135_v43  ;;  %v11123_v56 = vpop.permute.xlu0 %11122  ;;  %v11110_v48 = vunpack.i.h.bf16 %v11108_v46  ;;  %v11109_v51 = vunpack.i.l.bf16 %v11108_v46  ;;  %v11161_v37 = vpack.i.bf16 %v1956_v35, %v1955_v34  ;;  %2388 = vmatprep.subr.bf16.mxu1 %v12176_v38  ;;  %v11516_v41 = vld [vmem:[#allocation11 + $0x20] ss:$0 sps:$4 sm:$0xff]   ;;  %v11519_v42 = vld [vmem:[#allocation14 + $0x10] sm:$0xff]   ;;  %v11521_v44 = vld [vmem:[#allocation14 + $0x20] sm:$0xff]  }
 0x218   :  { %v11125_v52 = vunpack.i.h.bf16 %v11123_v56  ;;  %v11124_v53 = vunpack.i.l.bf16 %v11123_v56  ;;  %10298 = vmatmul.mubr.msk.bf16.gmra.mrb[20].mxu0 %vm1178_vm4, %v12963_v47  ;;  %2389 = vmatpush1.bf16.msra.mxu1 %v11517_v36  ;;  %v11520_v43 = vld [vmem:[#allocation14 + $0x18] sm:$0xff]   ;;  %v11523_v46 = vld [vmem:[#allocation14 + $0x30] sm:$0xff]  }
 0x219   :  { %10301 = vmatprep.mubr.msk.bf16.mxu0 %vm1178_vm4, %v12961_v45  ;;  %v1101_v5 = vsel %vm210_vm1, %v705_v54, %v11110_v48  ;;  %v1100_v6 = vsel %vm210_vm1, %v704_v60, %v11109_v51  ;;  %11162 = vrot.lane.b32.xlu0 %v11161_v37, %s12158_s18  ;;  %v11524_v56 = vld [vmem:[#allocation14 + $0x38] sm:$0xff]  }
 0x21a   :  { %v11118_v55 = vpop.permute.xlu1 %11117  ;;  %v1103_v7 = vsel %vm210_vm1, %v707_v62, %v11125_v52  ;;  %v1102_v8 = vsel %vm210_vm1, %v706_v61, %v11124_v53  ;;  %2390 = vmatprep.subr.bf16.mxu1 %v12176_v38  ;;  %v710_v54 = vld [vmem:[#allocation2 + $0x207] sm:$0xff] }
 0x21b   :  { %v11133_v59 = vpop.permute.xlu0 %11132  ;;  %v11120_v63 = vunpack.i.h.bf16 %v11118_v55  ;;  %v11119_v0 = vunpack.i.l.bf16 %v11118_v55  ;;  %v711_v55 = vld [vmem:[#allocation2 + $0x20f] sm:$0xff] }
 0x21c   :  { %v11135_v1 = vunpack.i.h.bf16 %v11133_v59  ;;  %v11134_v2 = vunpack.i.l.bf16 %v11133_v59  ;;  %2391 = vmatpush1.bf16.msra.mxu1 %v11518_v40 }
 0x21d   :  { %v1137_v9 = vsel %vm1110_vm3, %v1100_v6, %v11119_v0  ;;  %v1138_v10 = vsel %vm1110_vm3, %v1101_v5, %v11120_v63  ;;  %2392 = vmatprep.subr.bf16.mxu1 %v12176_v38  ;;  %v11525_v6 = vld [vmem:[#allocation14 + $0x40] sm:$0xff]  }
 0x21e   :  { %v1139_v11 = vsel %vm1110_vm3, %v1102_v8, %v11134_v2  ;;  %v1140_v12 = vsel %vm1110_vm3, %v1103_v7, %v11135_v1  ;;  %v12977_v13 = vpack.c.bf16 %v1138_v10, %v1137_v9  ;;  %v11128_v15 = vpop.permute.xlu1 %11127  ;;  %v11526_v7 = vld [vmem:[#allocation14 + $0x48] sm:$0xff]   ;;  %v11527_v8 = vld [vmem:[#allocation14 + $0x50] sm:$0xff]  }
 0x21f   :  { %v12979_v14 = vpack.c.bf16 %v1140_v12, %v1139_v11  ;;  %v11130_v18 = vunpack.i.h.bf16 %v11128_v15  ;;  %v11129_v19 = vunpack.i.l.bf16 %v11128_v15  ;;  %v11528_v12 = vld [vmem:[#allocation14 + $0x58] sm:$0xff]  }
 0x220   :  { %10302 = vmatmul.mubr.msk.bf16.gmra.mrb[24].mxu0 %vm1178_vm4, %v12977_v13  ;;  %2393 = vmatpush1.bf16.msra.mxu1 %v11519_v42  ;;  %v1919_v15 = vld [vmem:[#allocation3 + $0x7] sm:$0xff] }
 0x221   :  { %10305 = vmatprep.mubr.msk.bf16.mxu0 %vm1178_vm4, %v12979_v14  ;;  %v1105_v27 = vsel %vm210_vm1, %v709_v23, %v11130_v18  ;;  %v1104_v30 = vsel %vm210_vm1, %v708_v24, %v11129_v19  ;;  %2394 = vmatprep.subr.bf16.mxu1 %v12176_v38  ;;  %v1920_v19 = vld [vmem:[#allocation3 + $0xf] sm:$0xff] }
 0x222   :  { %v11138_v20 = vpop.permute.xlu1 %11137 }
 0x223   :  { %v11140_v25 = vunpack.i.h.bf16 %v11138_v20  ;;  %v11139_v26 = vunpack.i.l.bf16 %v11138_v20 }
 0x224   :  { %2395 = vmatpush1.bf16.msra.mxu1 %v11520_v43 }
 0x225   :  { %v1141_v31 = vsel %vm1110_vm3, %v1104_v30, %v11139_v26  ;;  %v1142_v32 = vsel %vm1110_vm3, %v1105_v27, %v11140_v25  ;;  %2396 = vmatprep.subr.bf16.mxu1 %v12176_v38  ;;  %v11529_v25 = vld [vmem:[#allocation14 + $0x60] sm:$0xff]   ;;  %v13084_v26 = vld [vmem:[#allocation13] ss:$0 sm:$0xff] }
 0x226   :  { %v12989_v33 = vpack.c.bf16 %v1142_v32, %v1141_v31 }
 0x228   :  { %10306 = vmatmul.mubr.msk.bf16.gmra.mrb[28].mxu0 %vm1178_vm4, %v12989_v33  ;;  %2397 = vmatpush1.bf16.msra.mxu1 %v11521_v44 }
 0x229   :  { %10313 = vmatprep.mubr.msk.bf16.mxu0 %vm1178_vm4, %v12875_v28  ;;  %v1659_v28 = vsel %vm1227_vm2, %v11516_v41, 0  ;;  %2398 = vmatprep.subr.bf16.mxu1 %v12176_v38 }
 0x230   :  { %10314 = vmatmul.mubr.msk.bf16.vlgmr.msra.gmra.mrb[0].mxu0 %vm1178_vm4, %v12877_v29 }
 0x231   :  { %10346 = vmatpush3.bf16.msra.mxu0 %v12886_v39  ;;  %10317 = vmatprep.mubr.msk.bf16.mxu0 %vm1178_vm4, %v12896_v57  ;;  %v11522_v39 = vld [vmem:[#allocation14 + $0x28] sm:$0xff]  }
 0x232   :  { %10959 = vmatprep.subr.msk.bf16.mxu0 %vm1227_vm2, %v11516_v41  ;;  %2399 = vmatpush1.bf16.msra.mxu1 %v11522_v39 }
 0x233   :  { %2400 = vmatprep.subr.bf16.mxu1 %v12176_v38 }
 0x235   :  { %10348 = vmatpush3.bf16.msra.mxu0 %v1659_v28 }
 0x236   :  { %3586 = vmatprep.subr.bf16.mxu0 %v12176_v38  ;;  %2401 = vmatpush1.bf16.msra.mxu1 %v11523_v46 }
 0x237   :  { %2402 = vmatprep.subr.bf16.mxu1 %v12176_v38 }
 0x238   :  { %10318 = vmatmul.mubr.msk.bf16.gmra.mrb[4].mxu0 %vm1178_vm4, %v12898_v58 }
 0x239   :  { %10321 = vmatprep.mubr.msk.bf16.mxu0 %vm1178_vm4, %v12913_v21 }
 0x23a   :  { %2403 = vmatpush1.bf16.msra.mxu1 %v11524_v56 }
 0x23b   :  { %2404 = vmatprep.subr.bf16.mxu1 %v12176_v38 }
 0x23e   :  { %2405 = vmatpush1.bf16.msra.mxu1 %v11525_v6 }
 0x23f   :  { %2406 = vmatprep.subr.bf16.mxu1 %v12176_v38 }
 0x240   :  { %10322 = vmatmul.mubr.msk.bf16.gmra.mrb[8].mxu0 %vm1178_vm4, %v12915_v22 }
 0x241   :  { %10325 = vmatprep.mubr.msk.bf16.mxu0 %vm1178_vm4, %v12929_v49  ;;  %v11143_v48 = vpop.permute.xlu0 %11142 }
 0x242   :  { %v11145_v51 = vunpack.i.h.bf16 %v11143_v48  ;;  %v11144_v52 = vunpack.i.l.bf16 %v11143_v48  ;;  %v11148_v53 = vpop.permute.xlu1 %11147  ;;  %2407 = vmatpush1.bf16.msra.mxu1 %v11526_v7  ;;  %v11531_v7 = vld [vmem:[#allocation14 + $0x70] sm:$0xff]  }
 0x243   :  { %v11150_v59 = vunpack.i.h.bf16 %v11148_v53  ;;  %v11149_v60 = vunpack.i.l.bf16 %v11148_v53  ;;  %2408 = vmatprep.subr.bf16.mxu1 %v12176_v38 }
 0x244   :  { %v1107_v61 = vsel %vm210_vm1, %v711_v55, %v11145_v51  ;;  %v1106_v62 = vsel %vm210_vm1, %v710_v54, %v11144_v52  ;;  %v11530_v55 = vld [vmem:[#allocation14 + $0x68] sm:$0xff]  }
 0x245   :  { %v1143_v63 = vsel %vm1110_vm3, %v1106_v62, %v11149_v60  ;;  %v1144_v0 = vsel %vm1110_vm3, %v1107_v61, %v11150_v59 }
 0x246   :  { %v1163_v1 = vpack.c.bf16 %v1144_v0, %v1143_v63  ;;  %2409 = vmatpush1.bf16.msra.mxu1 %v11527_v8 }
 0x247   :  { %2410 = vmatprep.subr.bf16.mxu1 %v12176_v38 }
 0x248   :  { %10326 = vmatmul.mubr.msk.bf16.gmra.mrb[12].mxu0 %vm1178_vm4, %v12931_v50 }
 0x249   :  { %10329 = vmatprep.mubr.msk.bf16.mxu0 %vm1178_vm4, %v12945_v16 }
 0x24a   :  { %2411 = vmatpush1.bf16.msra.mxu1 %v11528_v12 }
 0x24b   :  { %2687 = vmatprep.subr.bf16.mxu1 %v12176_v38 }
 0x250   :  { %10330 = vmatmul.mubr.msk.bf16.gmra.mrb[16].mxu0 %vm1178_vm4, %v12947_v17 }
 0x251   :  { %10333 = vmatprep.mubr.msk.bf16.mxu0 %vm1178_vm4, %v12963_v47 }
 0x258   :  { %10334 = vmatmul.mubr.msk.bf16.gmra.mrb[20].mxu0 %vm1178_vm4, %v12961_v45 }
 0x259   :  { %10337 = vmatprep.mubr.msk.bf16.mxu0 %vm1178_vm4, %v12977_v13 }
 0x260   :  { %10338 = vmatmul.mubr.msk.bf16.gmra.mrb[24].mxu0 %vm1178_vm4, %v12979_v14 }
 0x261   :  { %10341 = vmatprep.mubr.msk.bf16.mxu0 %vm1178_vm4, %v12989_v33 }
 0x268   :  { %10342 = vmatmul.mubr.msk.bf16.gmra.mrb[28].mxu0 %vm1178_vm4, %v1163_v1 }
 0x269   :  { %10349 = vmatprep.mubr.msk.bf16.mxu0 %vm1178_vm4, %v12877_v29  ;;  %v11153_v29 = vpop.permute.xlu0 %11152 }
 0x270   :  { %10350 = vmatmul.mubr.msk.bf16.vlgmr.msra.gmra.mrb[0].mxu0 %vm1178_vm4, %v12896_v57  ;;  %v11155_v57 = vunpack.i.h.bf16 %v11153_v29 }
 0x271   :  { %10353 = vmatprep.mubr.msk.bf16.mxu0 %vm1178_vm4, %v12898_v58  ;;  %v11154_v58 = vunpack.i.l.bf16 %v11153_v29 }
 0x278   :  { %10354 = vmatmul.mubr.msk.bf16.gmra.mrb[4].mxu0 %vm1178_vm4, %v12913_v21  ;;  %v11158_v21 = vpop.permute.xlu1 %11157 }
 0x279   :  { %10357 = vmatprep.mubr.msk.bf16.mxu0 %vm1178_vm4, %v12915_v22  ;;  %v712_v22 = vld [vmem:[#allocation2 + $0x227] sm:$0xff] }
 0x280   :  { %10358 = vmatmul.mubr.msk.bf16.gmra.mrb[8].mxu0 %vm1178_vm4, %v12929_v49  ;;  %v713_v49 = vld [vmem:[#allocation2 + $0x22f] sm:$0xff] }
 0x281   :  { %10361 = vmatprep.mubr.msk.bf16.mxu0 %vm1178_vm4, %v12931_v50  ;;  %v11160_v50 = vunpack.i.h.bf16 %v11158_v21 }
 0x288   :  { %10362 = vmatmul.mubr.msk.bf16.gmra.mrb[12].mxu0 %vm1178_vm4, %v12945_v16  ;;  %v11159_v16 = vunpack.i.l.bf16 %v11158_v21 }
 0x289   :  { %10365 = vmatprep.mubr.msk.bf16.mxu0 %vm1178_vm4, %v12947_v17  ;;  %v1109_v17 = vsel %vm210_vm1, %v713_v49, %v11155_v57 }
 0x28a   :  { %v1146_v2 = vsel %vm1110_vm3, %v1109_v17, %v11160_v50 }
 0x28b   :  { %v11163_v9 = vpop.permute.xlu0 %11162 }
 0x28c   :  { %v11165_v10 = vunpack.i.h.bf16 %v11163_v9  ;;  %v11164_v11 = vunpack.i.l.bf16 %v11163_v9 }
 0x28e   :  { %v2171_v20 = vsel %vm256_vm0, %v1919_v15, %v11164_v11  ;;  %v2172_v23 = vsel %vm256_vm0, %v1920_v19, %v11165_v10 }
 0x28f   :  { %v2207_v24 = vpack.c.bf16 %v2172_v23, %v2171_v20 }
 0x290   :  { %10366 = vmatmul.mubr.msk.bf16.gmra.mrb[16].mxu0 %vm1178_vm4, %v12963_v47  ;;  %v1108_v47 = vsel %vm210_vm1, %v712_v22, %v11154_v58 }
 0x291   :  { %10369 = vmatprep.mubr.msk.bf16.mxu0 %vm1178_vm4, %v12961_v45  ;;  %v1145_v45 = vsel %vm1110_vm3, %v1108_v47, %v11159_v16 }
 0x292   :  { %v1164_v5 = vpack.c.bf16 %v1146_v2, %v1145_v45 }
 0x298   :  { %10370 = vmatmul.mubr.msk.bf16.gmra.mrb[20].mxu0 %vm1178_vm4, %v12977_v13  ;;  %v1991_v13 = vld [vmem:[#allocation3 + $0x9] sm:$0xff] }
 0x299   :  { %10373 = vmatprep.mubr.msk.bf16.mxu0 %vm1178_vm4, %v12979_v14  ;;  %v1992_v14 = vld [vmem:[#allocation3 + $0x11] sm:$0xff] }
 0x29a   :  { %v2208_v18 = vpack.c.bf16 %v1992_v14, %v1991_v13 }
 0x29c   :  { %9374 = vmatprep.mubr.msk.bf16.mxu1 %vm256_vm0, %v2208_v18 }
 0x29d   :  { %2421 = vmatmul.mubr.bf16.vlgmr.msra.gmra.mrb[0].mxu1 %v2207_v24 }
 0x29e   :  { %2688 = vmatpush1.bf16.msra.mxu1 %v11529_v25 }
 0x29f   :  { %2689 = vmatprep.subr.bf16.mxu1 %v12176_v38 }
 0x2a0   :  { %10374 = vmatmul.mubr.msk.bf16.gmra.mrb[24].mxu0 %vm1178_vm4, %v12989_v33 }
 0x2a1   :  { %10377 = vmatprep.mubr.msk.bf16.mxu0 %vm1178_vm4, %v1163_v1 }
 0x2a2   :  { %2690 = vmatpush1.bf16.msra.mxu1 %v11530_v55 }
 0x2a3   :  { %2691 = vmatprep.subr.bf16.mxu1 %v12176_v38 }
 0x2a6   :  { %2692 = vmatpush1.bf16.msra.mxu1 %v11531_v7 }
 0x2a7   :  { %2693 = vmatprep.subr.bf16.mxu1 %v12176_v38 }
 0x2a8   :  { %10378 = vmatmul.mubr.msk.bf16.gmra.mrb[28].mxu0 %vm1178_vm4, %v1164_v5 }
 0x343   :  { %v10351_v27 = vpop.f32.mrb[0].mxu0 }
 0x344   :  { %v10453_v30 = vadd.f32 %v10351_v27, %v13084_v26  ;;  %v1695_v31 = vpop.f32.mrb[1].mxu0 }
 0x345   :  { %v10454_v32 = vadd.f32 %v13084_v26, %v1695_v31  ;;  %v10352_v33 = vpop.f32.mrb[2].mxu0 }
 0x346   :  { %v1856_v34 = vmax.f32 %v10453_v30, 0.0  ;;  %v10455_v35 = vadd.f32 %v10352_v33, %v13084_v26  ;;  %v1698_v36 = vpop.f32.mrb[3].mxu0 }
 0x347   :  { %v1854_v37 = vmax.f32 %v10454_v32, 0.0  ;;  %v10456_v40 = vadd.f32 %v13084_v26, %v1698_v36 }
 0x348   :  { %1889 = vst.msk [vmem:[#allocation3 + $0x48] sm:$0xff] %vm256_vm0, %v1856_v34  ;;  %v1857_v41 = vmax.f32 %v10455_v35, 0.0 }
 0x349   :  { %1887 = vst.msk [vmem:[#allocation3 + $0x28] sm:$0xff] %vm256_vm0, %v1854_v37  ;;  %v1855_v42 = vmax.f32 %v10456_v40, 0.0 }
 0x34a   :  { %1890 = vst.msk [vmem:[#allocation3 + $0x50] sm:$0xff] %vm256_vm0, %v1857_v41 }
 0x34b   :  { %1888 = vst.msk [vmem:[#allocation3 + $0x30] sm:$0xff] %vm256_vm0, %v1855_v42  ;;  %v10355_v28 = vpop.f32.mrb[4].mxu0 }
 0x34c   :  { %v10457_v43 = vadd.f32 %v10355_v28, %v13084_v26  ;;  %v1711_v44 = vpop.f32.mrb[5].mxu0 }
 0x34d   :  { %v10458_v39 = vadd.f32 %v13084_v26, %v1711_v44  ;;  %v10356_v46 = vpop.f32.mrb[6].mxu0 }
 0x34e   :  { %v1860_v56 = vmax.f32 %v10457_v43, 0.0  ;;  %v10459_v48 = vadd.f32 %v10356_v46, %v13084_v26  ;;  %v1714_v51 = vpop.f32.mrb[7].mxu0  ;;  %v11532_v46 = vld [vmem:[#allocation14 + $0x78] sm:$0xff]  }
 0x34f   :  { %v1858_v52 = vmax.f32 %v10458_v39, 0.0  ;;  %v10460_v53 = vadd.f32 %v13084_v26, %v1714_v51  ;;  %v1959_v60 = vld [vmem:[#allocation3 + $0x48] sm:$0xff]  ;;  %2694 = vmatpush1.bf16.msra.mxu1 %v11532_v46 }
 0x350   :  { %1893 = vst.msk [vmem:[#allocation3 + $0x88] sm:$0xff] %vm256_vm0, %v1860_v56  ;;  %v1861_v54 = vmax.f32 %v10459_v48, 0.0  ;;  %v1957_v62 = vld [vmem:[#allocation3 + $0x28] sm:$0xff]  ;;  %2695 = vmatprep.subr.bf16.mxu1 %v12176_v38 }
 0x351   :  { %1891 = vst.msk [vmem:[#allocation3 + $0x68] sm:$0xff] %vm256_vm0, %v1858_v52  ;;  %v1859_v59 = vmax.f32 %v10460_v53, 0.0  ;;  %v1960_v61 = vld [vmem:[#allocation3 + $0x50] sm:$0xff] }
 0x352   :  { %1894 = vst.msk [vmem:[#allocation3 + $0x90] sm:$0xff] %vm256_vm0, %v1861_v54  ;;  %v11171_v63 = vpack.i.bf16 %v1960_v61, %v1959_v60  ;;  %v1993_v0 = vld [vmem:[#allocation3 + $0x29] sm:$0xff]  ;;  %v1994_v1 = vld [vmem:[#allocation3 + $0x31] sm:$0xff] }
 0x353   :  { %v1958_v29 = vld [vmem:[#allocation3 + $0x30] sm:$0xff]  ;;  %1892 = vst.msk [vmem:[#allocation3 + $0x70] sm:$0xff] %vm256_vm0, %v1859_v59  ;;  %v10359_v57 = vpop.f32.mrb[8].mxu0  ;;  %v13102_v58 = vpack.c.bf16 %v1994_v1, %v1993_v0 }
 0x354   :  { %v11166_v21 = vpack.i.bf16 %v1958_v29, %v1957_v62  ;;  %v10461_v22 = vadd.f32 %v10359_v57, %v13084_v26  ;;  %11172 = vrot.lane.b32.xlu0 %v11171_v63, %s12158_s18  ;;  %v1727_v49 = vpop.f32.mrb[9].mxu0 }
 0x355   :  { %v10462_v50 = vadd.f32 %v13084_v26, %v1727_v49  ;;  %9375 = vmatprep.mubr.msk.bf16.mxu1 %vm256_vm0, %v13102_v58  ;;  %v10360_v16 = vpop.f32.mrb[10].mxu0 }
 0x356   :  { %11167 = vrot.lane.b32.xlu1 %v11166_v21, %s12158_s18  ;;  %v1864_v17 = vmax.f32 %v10461_v22, 0.0  ;;  %v10463_v47 = vadd.f32 %v10360_v16, %v13084_v26  ;;  %v1730_v45 = vpop.f32.mrb[11].mxu0 }
 0x357   :  { %v1862_v2 = vmax.f32 %v10462_v50, 0.0  ;;  %v10464_v5 = vadd.f32 %v13084_v26, %v1730_v45  ;;  %v1963_v9 = vld [vmem:[#allocation3 + $0x88] sm:$0xff] }
 0x358   :  { %1897 = vst.msk [vmem:[#allocation3 + $0xc8] sm:$0xff] %vm256_vm0, %v1864_v17  ;;  %v1865_v6 = vmax.f32 %v10463_v47, 0.0  ;;  %v1961_v12 = vld [vmem:[#allocation3 + $0x68] sm:$0xff] }
 0x359   :  { %1895 = vst.msk [vmem:[#allocation3 + $0xa8] sm:$0xff] %vm256_vm0, %v1862_v2  ;;  %v1863_v8 = vmax.f32 %v10464_v5, 0.0  ;;  %v1964_v10 = vld [vmem:[#allocation3 + $0x90] sm:$0xff] }
 0x35a   :  { %1898 = vst.msk [vmem:[#allocation3 + $0xd0] sm:$0xff] %vm256_vm0, %v1865_v6  ;;  %v11181_v11 = vpack.i.bf16 %v1964_v10, %v1963_v9  ;;  %v1962_v13 = vld [vmem:[#allocation3 + $0x70] sm:$0xff] }
 0x35b   :  { %1896 = vst.msk [vmem:[#allocation3 + $0xb0] sm:$0xff] %vm256_vm0, %v1863_v8  ;;  %v10363_v14 = vpop.f32.mrb[12].mxu0  ;;  %v11176_v15 = vpack.i.bf16 %v1962_v13, %v1961_v12  ;;  %v11533_v2 = vld [vmem:[#allocation14 + $0x80] sm:$0xff]  }
 0x35c   :  { %v10465_v18 = vadd.f32 %v10363_v14, %v13084_v26  ;;  %11182 = vrot.lane.b32.xlu0 %v11181_v11, %s12158_s18  ;;  %v1743_v19 = vpop.f32.mrb[13].mxu0  ;;  %2696 = vmatpush1.bf16.msra.mxu1 %v11533_v2  ;;  %v1921_v2 = vld [vmem:[#allocation3 + $0x27] sm:$0xff] }
 0x35d   :  { %v10466_v20 = vadd.f32 %v13084_v26, %v1743_v19  ;;  %11177 = vrot.lane.b32.xlu1 %v11176_v15, %s12158_s18  ;;  %v10364_v23 = vpop.f32.mrb[14].mxu0  ;;  %2697 = vmatprep.subr.bf16.mxu1 %v12176_v38 }
 0x35e   :  { %v1868_v24 = vmax.f32 %v10465_v18, 0.0  ;;  %v10467_v25 = vadd.f32 %v10364_v23, %v13084_v26  ;;  %v1746_v27 = vpop.f32.mrb[15].mxu0 }
 0x35f   :  { %v1866_v30 = vmax.f32 %v10466_v20, 0.0  ;;  %v10468_v31 = vadd.f32 %v13084_v26, %v1746_v27  ;;  %v1967_v34 = vld [vmem:[#allocation3 + $0xc8] sm:$0xff] }
 0x360   :  { %1901 = vst.msk [vmem:[#allocation3 + $0x108] sm:$0xff] %vm256_vm0, %v1868_v24  ;;  %v1869_v32 = vmax.f32 %v10467_v25, 0.0  ;;  %v1965_v37 = vld [vmem:[#allocation3 + $0xa8] sm:$0xff] }
 0x361   :  { %1899 = vst.msk [vmem:[#allocation3 + $0xe8] sm:$0xff] %vm256_vm0, %v1866_v30  ;;  %v1867_v33 = vmax.f32 %v10468_v31, 0.0  ;;  %v1968_v35 = vld [vmem:[#allocation3 + $0xd0] sm:$0xff]  ;;  %v11534_v30 = vld [vmem:[#allocation14 + $0x88] sm:$0xff]  }
 0x362   :  { %1902 = vst.msk [vmem:[#allocation3 + $0x110] sm:$0xff] %vm256_vm0, %v1869_v32  ;;  %v11191_v36 = vpack.i.bf16 %v1968_v35, %v1967_v34  ;;  %v1966_v40 = vld [vmem:[#allocation3 + $0xb0] sm:$0xff]  ;;  %2698 = vmatpush1.bf16.msra.mxu1 %v11534_v30 }
 0x363   :  { %1900 = vst.msk [vmem:[#allocation3 + $0xf0] sm:$0xff] %vm256_vm0, %v1867_v33  ;;  %v10367_v41 = vpop.f32.mrb[16].mxu0  ;;  %v11186_v42 = vpack.i.bf16 %v1966_v40, %v1965_v37  ;;  %2699 = vmatprep.subr.bf16.mxu1 %v12176_v38 }
 0x364   :  { %v10469_v28 = vadd.f32 %v10367_v41, %v13084_v26  ;;  %11192 = vrot.lane.b32.xlu0 %v11191_v36, %s12158_s18  ;;  %v1759_v43 = vpop.f32.mrb[17].mxu0 }
 0x365   :  { %v10470_v44 = vadd.f32 %v13084_v26, %v1759_v43  ;;  %11187 = vrot.lane.b32.xlu1 %v11186_v42, %s12158_s18  ;;  %v10368_v39 = vpop.f32.mrb[18].mxu0 }
 0x366   :  { %v1872_v56 = vmax.f32 %v10469_v28, 0.0  ;;  %v10471_v48 = vadd.f32 %v10368_v39, %v13084_v26  ;;  %v1762_v51 = vpop.f32.mrb[19].mxu0 }
 0x367   :  { %v1870_v52 = vmax.f32 %v10470_v44, 0.0  ;;  %v10472_v53 = vadd.f32 %v13084_v26, %v1762_v51  ;;  %v1971_v59 = vld [vmem:[#allocation3 + $0x108] sm:$0xff] }
 0x368   :  { %1905 = vst.msk [vmem:[#allocation3 + $0x148] sm:$0xff] %vm256_vm0, %v1872_v56  ;;  %v1873_v54 = vmax.f32 %v10471_v48, 0.0  ;;  %v1969_v62 = vld [vmem:[#allocation3 + $0xe8] sm:$0xff] }
 0x369   :  { %1903 = vst.msk [vmem:[#allocation3 + $0x128] sm:$0xff] %vm256_vm0, %v1870_v52  ;;  %v1871_v55 = vmax.f32 %v10472_v53, 0.0  ;;  %v1972_v60 = vld [vmem:[#allocation3 + $0x110] sm:$0xff] }
 0x36a   :  { %1906 = vst.msk [vmem:[#allocation3 + $0x150] sm:$0xff] %vm256_vm0, %v1873_v54  ;;  %v11201_v61 = vpack.i.bf16 %v1972_v60, %v1971_v59  ;;  %v1970_v63 = vld [vmem:[#allocation3 + $0xf0] sm:$0xff] }
 0x36b   :  { %1904 = vst.msk [vmem:[#allocation3 + $0x130] sm:$0xff] %vm256_vm0, %v1871_v55  ;;  %v10371_v0 = vpop.f32.mrb[20].mxu0  ;;  %v11196_v1 = vpack.i.bf16 %v1970_v63, %v1969_v62 }
 0x36c   :  { %v10473_v29 = vadd.f32 %v10371_v0, %v13084_v26  ;;  %11202 = vrot.lane.b32.xlu0 %v11201_v61, %s12158_s18  ;;  %v1775_v57 = vpop.f32.mrb[21].mxu0 }
 0x36d   :  { %v10474_v21 = vadd.f32 %v13084_v26, %v1775_v57  ;;  %11197 = vrot.lane.b32.xlu1 %v11196_v1, %s12158_s18  ;;  %v10372_v22 = vpop.f32.mrb[22].mxu0 }
 0x36e   :  { %v1876_v49 = vmax.f32 %v10473_v29, 0.0  ;;  %v10475_v50 = vadd.f32 %v10372_v22, %v13084_v26  ;;  %v1778_v16 = vpop.f32.mrb[23].mxu0  ;;  %v11537_v22 = vld [vmem:[#allocation14 + $0xa0] sm:$0xff]  }
 0x36f   :  { %v1874_v17 = vmax.f32 %v10474_v21, 0.0  ;;  %v10476_v47 = vadd.f32 %v13084_v26, %v1778_v16  ;;  %v1975_v6 = vld [vmem:[#allocation3 + $0x148] sm:$0xff] }
 0x370   :  { %1909 = vst.msk [vmem:[#allocation3 + $0x188] sm:$0xff] %vm256_vm0, %v1876_v49  ;;  %v1877_v45 = vmax.f32 %v10475_v50, 0.0  ;;  %v1973_v9 = vld [vmem:[#allocation3 + $0x128] sm:$0xff]  ;;  %v11538_v49 = vld [vmem:[#allocation14 + $0xa8] sm:$0xff]  }
 0x371   :  { %1907 = vst.msk [vmem:[#allocation3 + $0x168] sm:$0xff] %vm256_vm0, %v1874_v17  ;;  %v1875_v5 = vmax.f32 %v10476_v47, 0.0  ;;  %v1976_v7 = vld [vmem:[#allocation3 + $0x150] sm:$0xff]  ;;  %v11539_v50 = vld [vmem:[#allocation14 + $0xb0] sm:$0xff]  }
 0x372   :  { %1910 = vst.msk [vmem:[#allocation3 + $0x190] sm:$0xff] %vm256_vm0, %v1877_v45  ;;  %v11211_v8 = vpack.i.bf16 %v1976_v7, %v1975_v6  ;;  %v1974_v10 = vld [vmem:[#allocation3 + $0x130] sm:$0xff] }
 0x373   :  { %1908 = vst.msk [vmem:[#allocation3 + $0x170] sm:$0xff] %vm256_vm0, %v1875_v5  ;;  %v10375_v11 = vpop.f32.mrb[24].mxu0  ;;  %v11206_v12 = vpack.i.bf16 %v1974_v10, %v1973_v9  ;;  %v11536_v21 = vld [vmem:[#allocation14 + $0x98] sm:$0xff]  }
 0x374   :  { %v10477_v13 = vadd.f32 %v10375_v11, %v13084_v26  ;;  %11212 = vrot.lane.b32.xlu0 %v11211_v8, %s12158_s18  ;;  %v1791_v14 = vpop.f32.mrb[25].mxu0  ;;  %v11540_v16 = vld [vmem:[#allocation14 + $0xb8] sm:$0xff]  }
 0x375   :  { %v10478_v15 = vadd.f32 %v13084_v26, %v1791_v14  ;;  %11207 = vrot.lane.b32.xlu1 %v11206_v12, %s12158_s18  ;;  %v10376_v18 = vpop.f32.mrb[26].mxu0  ;;  %v1922_v6 = vld [vmem:[#allocation3 + $0x2f] sm:$0xff] }
 0x376   :  { %v1880_v19 = vmax.f32 %v10477_v13, 0.0  ;;  %v10479_v20 = vadd.f32 %v10376_v18, %v13084_v26  ;;  %v1794_v23 = vpop.f32.mrb[27].mxu0  ;;  %v1995_v7 = vld [vmem:[#allocation3 + $0x49] sm:$0xff]  ;;  %v1996_v8 = vld [vmem:[#allocation3 + $0x51] sm:$0xff] }
 0x377   :  { %v1878_v24 = vmax.f32 %v10478_v15, 0.0  ;;  %v10480_v25 = vadd.f32 %v13084_v26, %v1794_v23  ;;  %v1979_v32 = vld [vmem:[#allocation3 + $0x188] sm:$0xff]  ;;  %v13185_v14 = vpack.c.bf16 %v1996_v8, %v1995_v7 }
 0x378   :  { %1913 = vst.msk [vmem:[#allocation3 + $0x1c8] sm:$0xff] %vm256_vm0, %v1880_v19  ;;  %v1881_v27 = vmax.f32 %v10479_v20, 0.0  ;;  %v1977_v35 = vld [vmem:[#allocation3 + $0x168] sm:$0xff] }
 0x379   :  { %1911 = vst.msk [vmem:[#allocation3 + $0x1a8] sm:$0xff] %vm256_vm0, %v1878_v24  ;;  %v1879_v31 = vmax.f32 %v10480_v25, 0.0  ;;  %v1980_v33 = vld [vmem:[#allocation3 + $0x190] sm:$0xff]  ;;  %v1923_v15 = vld [vmem:[#allocation3 + $0x47] sm:$0xff] }
 0x37a   :  { %1914 = vst.msk [vmem:[#allocation3 + $0x1d0] sm:$0xff] %vm256_vm0, %v1881_v27  ;;  %v11221_v34 = vpack.i.bf16 %v1980_v33, %v1979_v32  ;;  %v1978_v36 = vld [vmem:[#allocation3 + $0x170] sm:$0xff]  ;;  %v1925_v33 = vld [vmem:[#allocation3 + $0x67] sm:$0xff] }
 0x37b   :  { %1912 = vst.msk [vmem:[#allocation3 + $0x1b0] sm:$0xff] %vm256_vm0, %v1879_v31  ;;  %v10379_v37 = vpop.f32.mrb[28].mxu0  ;;  %v11216_v40 = vpack.i.bf16 %v1978_v36, %v1977_v35  ;;  %v1924_v18 = vld [vmem:[#allocation3 + $0x4f] sm:$0xff] }
 0x37c   :  { %v10481_v41 = vadd.f32 %v10379_v37, %v13084_v26  ;;  %11222 = vrot.lane.b32.xlu0 %v11221_v34, %s12158_s18  ;;  %v1807_v42 = vpop.f32.mrb[29].mxu0  ;;  %v1997_v24 = vld [vmem:[#allocation3 + $0x69] sm:$0xff]  ;;  %v1998_v25 = vld [vmem:[#allocation3 + $0x71] sm:$0xff] }
 0x37d   :  { %v10482_v28 = vadd.f32 %v13084_v26, %v1807_v42  ;;  %11217 = vrot.lane.b32.xlu1 %v11216_v40, %s12158_s18  ;;  %v10380_v43 = vpop.f32.mrb[30].mxu0  ;;  %v13194_v32 = vpack.c.bf16 %v1998_v25, %v1997_v24  ;;  %v1926_v34 = vld [vmem:[#allocation3 + $0x6f] sm:$0xff] }
 0x37e   :  { %v1884_v44 = vmax.f32 %v10481_v41, 0.0  ;;  %v10483_v39 = vadd.f32 %v10380_v43, %v13084_v26  ;;  %v1810_v46 = vpop.f32.mrb[31].mxu0  ;;  %v1999_v40 = vld [vmem:[#allocation3 + $0x89] sm:$0xff]  ;;  %v2000_v41 = vld [vmem:[#allocation3 + $0x91] sm:$0xff] }
 0x37f   :  { %v1882_v56 = vmax.f32 %v10482_v28, 0.0  ;;  %v10484_v48 = vadd.f32 %v13084_v26, %v1810_v46  ;;  %v1983_v53 = vld [vmem:[#allocation3 + $0x1c8] sm:$0xff] }
 0x380   :  { %1917 = vst.msk [vmem:[#allocation3 + $0x208] sm:$0xff] %vm256_vm0, %v1884_v44  ;;  %v1885_v51 = vmax.f32 %v10483_v39, 0.0  ;;  %v1981_v59 = vld [vmem:[#allocation3 + $0x1a8] sm:$0xff]  ;;  %v13203_v44 = vpack.c.bf16 %v2000_v41, %v1999_v40  ;;  %v2010_v40 = vld [vmem:[#allocation3 + $0x131] sm:$0xff] }
 0x381   :  { %1915 = vst.msk [vmem:[#allocation3 + $0x1e8] sm:$0xff] %vm256_vm0, %v1882_v56  ;;  %v1883_v52 = vmax.f32 %v10484_v48, 0.0  ;;  %v1984_v54 = vld [vmem:[#allocation3 + $0x1d0] sm:$0xff]  ;;  %v11535_v26 = vld [vmem:[#allocation14 + $0x90] sm:$0xff]  }
 0x382   :  { %1918 = vst.msk [vmem:[#allocation3 + $0x210] sm:$0xff] %vm256_vm0, %v1885_v51  ;;  %v11231_v55 = vpack.i.bf16 %v1984_v54, %v1983_v53  ;;  %v1982_v60 = vld [vmem:[#allocation3 + $0x1b0] sm:$0xff]  ;;  %2700 = vmatpush1.bf16.msra.mxu1 %v11535_v26  ;;  %v1927_v39 = vld [vmem:[#allocation3 + $0x87] sm:$0xff] }
 0x383   :  { %1916 = vst.msk [vmem:[#allocation3 + $0x1f0] sm:$0xff] %vm256_vm0, %v1883_v52  ;;  %v11226_v61 = vpack.i.bf16 %v1982_v60, %v1981_v59  ;;  %2701 = vmatprep.subr.bf16.mxu1 %v12176_v38  ;;  %v1928_v46 = vld [vmem:[#allocation3 + $0x8f] sm:$0xff] }
 0x384   :  { %11232 = vrot.lane.b32.xlu0 %v11231_v55, %s12158_s18  ;;  %v2001_v52 = vld [vmem:[#allocation3 + $0xa9] sm:$0xff]  ;;  %v2002_v53 = vld [vmem:[#allocation3 + $0xb1] sm:$0xff] }
 0x385   :  { %11227 = vrot.lane.b32.xlu1 %v11226_v61, %s12158_s18  ;;  %v13212_v60 = vpack.c.bf16 %v2002_v53, %v2001_v52  ;;  %v1929_v61 = vld [vmem:[#allocation3 + $0xa7] sm:$0xff]  ;;  %v1930_v26 = vld [vmem:[#allocation3 + $0xaf] sm:$0xff] }
 0x386   :  { %2702 = vmatpush1.bf16.msra.mxu1 %v11536_v21  ;;  %v2011_v53 = vld [vmem:[#allocation3 + $0x149] sm:$0xff] }
 0x387   :  { %v1987_v62 = vld [vmem:[#allocation3 + $0x208] sm:$0xff]  ;;  %2703 = vmatprep.subr.bf16.mxu1 %v12176_v38 }
 0x388   :  { %v1985_v1 = vld [vmem:[#allocation3 + $0x1e8] sm:$0xff] }
 0x389   :  { %v1988_v63 = vld [vmem:[#allocation3 + $0x210] sm:$0xff] }
 0x38a   :  { %v11241_v0 = vpack.i.bf16 %v1988_v63, %v1987_v62  ;;  %v1986_v29 = vld [vmem:[#allocation3 + $0x1f0] sm:$0xff]  ;;  %2704 = vmatpush1.bf16.msra.mxu1 %v11537_v22 }
 0x38b   :  { %v11236_v57 = vpack.i.bf16 %v1986_v29, %v1985_v1  ;;  %2705 = vmatprep.subr.bf16.mxu1 %v12176_v38  ;;  %v2003_v1 = vld [vmem:[#allocation3 + $0xc9] sm:$0xff]  ;;  %v2004_v29 = vld [vmem:[#allocation3 + $0xd1] sm:$0xff] }
 0x38c   :  { %11242 = vrot.lane.b32.xlu0 %v11241_v0, %s12158_s18 }
 0x38d   :  { %11237 = vrot.lane.b32.xlu1 %v11236_v57, %s12158_s18 }
 0x38e   :  { %2706 = vmatpush1.bf16.msra.mxu1 %v11538_v49  ;;  %v13221_v49 = vpack.c.bf16 %v2004_v29, %v2003_v1 }
 0x38f   :  { %2707 = vmatprep.subr.bf16.mxu1 %v12176_v38 }
 0x392   :  { %2708 = vmatpush1.bf16.msra.mxu1 %v11539_v50  ;;  %v1931_v50 = vld [vmem:[#allocation3 + $0xc7] sm:$0xff] }
 0x393   :  { %2709 = vmatprep.subr.bf16.mxu1 %v12176_v38 }
 0x396   :  { %2710 = vmatpush1.bf16.msra.mxu1 %v11540_v16  ;;  %v1932_v16 = vld [vmem:[#allocation3 + $0xcf] sm:$0xff] }
 0x397   :  { %2980 = vmatprep.subr.bf16.mxu1 %v12176_v38 }
 0x3c6   :  { %v11173_v5 = vpop.permute.xlu0 %11172 }
 0x3c7   :  { %v11175_v12 = vunpack.i.h.bf16 %v11173_v5  ;;  %v11174_v13 = vunpack.i.l.bf16 %v11173_v5  ;;  %v2006_v5 = vld [vmem:[#allocation3 + $0xf1] sm:$0xff] }
 0x3c8   :  { %v11168_v17 = vpop.permute.xlu1 %11167 }
 0x3c9   :  { %v11170_v47 = vunpack.i.h.bf16 %v11168_v17  ;;  %v11169_v45 = vunpack.i.l.bf16 %v11168_v17  ;;  %v2175_v19 = vsel %vm256_vm0, %v1923_v15, %v11174_v13  ;;  %v2176_v20 = vsel %vm256_vm0, %v1924_v18, %v11175_v12  ;;  %v1934_v12 = vld [vmem:[#allocation3 + $0xef] sm:$0xff] }
 0x3ca   :  { %v13192_v27 = vpack.c.bf16 %v2176_v20, %v2175_v19  ;;  %v2007_v19 = vld [vmem:[#allocation3 + $0x109] sm:$0xff]  ;;  %v2008_v20 = vld [vmem:[#allocation3 + $0x111] sm:$0xff] }
 0x3cb   :  { %v2173_v9 = vsel %vm256_vm0, %v1921_v2, %v11169_v45  ;;  %v2174_v10 = vsel %vm256_vm0, %v1922_v6, %v11170_v47  ;;  %v2005_v2 = vld [vmem:[#allocation3 + $0xe9] sm:$0xff] }
 0x3cc   :  { %v13183_v11 = vpack.c.bf16 %v2174_v10, %v2173_v9  ;;  %v13230_v9 = vpack.c.bf16 %v2006_v5, %v2005_v2  ;;  %v1933_v10 = vld [vmem:[#allocation3 + $0xe7] sm:$0xff]  ;;  %v1942_v5 = vld [vmem:[#allocation3 + $0x16f] sm:$0xff] }
 0x3cd   :  { %v1941_v2 = vld [vmem:[#allocation3 + $0x167] sm:$0xff] }
 0x3ce   :  { %2429 = vmatmul.mubr.bf16.gmra.mrb[4].mxu1 %v13183_v11  ;;  %v11183_v37 = vpop.permute.xlu0 %11182 }
 0x3cf   :  { %9376 = vmatprep.mubr.msk.bf16.mxu1 %vm256_vm0, %v13185_v14  ;;  %v11178_v23 = vpop.permute.xlu1 %11177  ;;  %v11185_v28 = vunpack.i.h.bf16 %v11183_v37  ;;  %v11184_v43 = vunpack.i.l.bf16 %v11183_v37  ;;  %v2009_v37 = vld [vmem:[#allocation3 + $0x129] sm:$0xff] }
 0x3d0   :  { %v11180_v30 = vunpack.i.h.bf16 %v11178_v23  ;;  %v11179_v31 = vunpack.i.l.bf16 %v11178_v23 }
 0x3d1   :  { %v2179_v56 = vsel %vm256_vm0, %v1927_v39, %v11184_v43  ;;  %v2180_v48 = vsel %vm256_vm0, %v1928_v46, %v11185_v28  ;;  %v13248_v39 = vpack.c.bf16 %v2010_v40, %v2009_v37  ;;  %v1937_v46 = vld [vmem:[#allocation3 + $0x127] sm:$0xff] }
 0x3d2   :  { %v2177_v35 = vsel %vm256_vm0, %v1925_v33, %v11179_v31  ;;  %v2178_v36 = vsel %vm256_vm0, %v1926_v34, %v11180_v30  ;;  %v13210_v54 = vpack.c.bf16 %v2180_v48, %v2179_v56  ;;  %v13239_v30 = vpack.c.bf16 %v2008_v20, %v2007_v19  ;;  %v1935_v31 = vld [vmem:[#allocation3 + $0x107] sm:$0xff]  ;;  %v1936_v33 = vld [vmem:[#allocation3 + $0x10f] sm:$0xff] }
 0x3d3   :  { %v13201_v42 = vpack.c.bf16 %v2178_v36, %v2177_v35  ;;  %v1938_v56 = vld [vmem:[#allocation3 + $0x12f] sm:$0xff] }
 0x3d6   :  { %2437 = vmatmul.mubr.bf16.gmra.mrb[8].mxu1 %v13192_v27  ;;  %v11193_v0 = vpop.permute.xlu0 %11192 }
 0x3d7   :  { %9377 = vmatprep.mubr.msk.bf16.mxu1 %vm256_vm0, %v13194_v32  ;;  %v11188_v51 = vpop.permute.xlu1 %11187  ;;  %v11195_v21 = vunpack.i.h.bf16 %v11193_v0  ;;  %v11194_v22 = vunpack.i.l.bf16 %v11193_v0  ;;  %v1940_v0 = vld [vmem:[#allocation3 + $0x14f] sm:$0xff] }
 0x3d8   :  { %v11190_v55 = vunpack.i.h.bf16 %v11188_v51  ;;  %v11189_v59 = vunpack.i.l.bf16 %v11188_v51 }
 0x3d9   :  { %v2183_v17 = vsel %vm256_vm0, %v1931_v50, %v11194_v22  ;;  %v2184_v47 = vsel %vm256_vm0, %v1932_v16, %v11195_v21  ;;  %v2013_v22 = vld [vmem:[#allocation3 + $0x169] sm:$0xff]  ;;  %v2014_v50 = vld [vmem:[#allocation3 + $0x171] sm:$0xff] }
 0x3da   :  { %v2181_v62 = vsel %vm256_vm0, %v1929_v61, %v11189_v59  ;;  %v2182_v63 = vsel %vm256_vm0, %v1930_v26, %v11190_v55  ;;  %v13228_v6 = vpack.c.bf16 %v2184_v47, %v2183_v17  ;;  %v2012_v55 = vld [vmem:[#allocation3 + $0x151] sm:$0xff] }
 0x3db   :  { %v13219_v57 = vpack.c.bf16 %v2182_v63, %v2181_v62  ;;  %v13257_v62 = vpack.c.bf16 %v2012_v55, %v2011_v53  ;;  %v1939_v63 = vld [vmem:[#allocation3 + $0x147] sm:$0xff]  ;;  %v2020_v55 = vld [vmem:[#allocation3 + $0x1d1] sm:$0xff] }
 0x3dc   :  { %v2019_v53 = vld [vmem:[#allocation3 + $0x1c9] sm:$0xff] }
 0x3de   :  { %2445 = vmatmul.mubr.bf16.gmra.mrb[12].mxu1 %v13201_v42  ;;  %v11203_v18 = vpop.permute.xlu0 %11202 }
 0x3df   :  { %9378 = vmatprep.mubr.msk.bf16.mxu1 %vm256_vm0, %v13203_v44  ;;  %v11198_v45 = vpop.permute.xlu1 %11197  ;;  %v11205_v24 = vunpack.i.h.bf16 %v11203_v18  ;;  %v11204_v25 = vunpack.i.l.bf16 %v11203_v18 }
 0x3e0   :  { %v11200_v7 = vunpack.i.h.bf16 %v11198_v45  ;;  %v11199_v8 = vunpack.i.l.bf16 %v11198_v45  ;;  %v13266_v45 = vpack.c.bf16 %v2014_v50, %v2013_v22 }
 0x3e1   :  { %v2187_v34 = vsel %vm256_vm0, %v1935_v31, %v11204_v25  ;;  %v2188_v35 = vsel %vm256_vm0, %v1936_v33, %v11205_v24  ;;  %v1943_v24 = vld [vmem:[#allocation3 + $0x187] sm:$0xff]  ;;  %v1944_v25 = vld [vmem:[#allocation3 + $0x18f] sm:$0xff] }
 0x3e2   :  { %v2185_v13 = vsel %vm256_vm0, %v1933_v10, %v11199_v8  ;;  %v2186_v15 = vsel %vm256_vm0, %v1934_v12, %v11200_v7  ;;  %v13246_v41 = vpack.c.bf16 %v2188_v35, %v2187_v34  ;;  %v2015_v12 = vld [vmem:[#allocation3 + $0x189] sm:$0xff] }
 0x3e3   :  { %v13237_v23 = vpack.c.bf16 %v2186_v15, %v2185_v13  ;;  %v2016_v13 = vld [vmem:[#allocation3 + $0x191] sm:$0xff]  ;;  %v2017_v35 = vld [vmem:[#allocation3 + $0x1a9] sm:$0xff] }
 0x3e4   :  { %v13275_v20 = vpack.c.bf16 %v2016_v13, %v2015_v12  ;;  %v1950_v12 = vld [vmem:[#allocation3 + $0x1ef] sm:$0xff] }
 0x3e6   :  { %2453 = vmatmul.mubr.bf16.gmra.mrb[16].mxu1 %v13210_v54  ;;  %v11213_v52 = vpop.permute.xlu0 %11212 }
 0x3e7   :  { %9379 = vmatprep.mubr.msk.bf16.mxu1 %vm256_vm0, %v13212_v60  ;;  %v11208_v36 = vpop.permute.xlu1 %11207  ;;  %v11215_v61 = vunpack.i.h.bf16 %v11213_v52  ;;  %v11214_v26 = vunpack.i.l.bf16 %v11213_v52 }
 0x3e8   :  { %v11210_v28 = vunpack.i.h.bf16 %v11208_v36  ;;  %v11209_v43 = vunpack.i.l.bf16 %v11208_v36  ;;  %v2018_v36 = vld [vmem:[#allocation3 + $0x1b1] sm:$0xff] }
 0x3e9   :  { %v2191_v1 = vsel %vm256_vm0, %v1939_v63, %v11214_v26  ;;  %v2192_v29 = vsel %vm256_vm0, %v1940_v0, %v11215_v61  ;;  %v13293_v0 = vpack.c.bf16 %v2020_v55, %v2019_v53  ;;  %v2023_v53 = vld [vmem:[#allocation3 + $0x209] sm:$0xff]  ;;  %v2024_v55 = vld [vmem:[#allocation3 + $0x211] sm:$0xff] }
 0x3ea   :  { %v2189_v48 = vsel %vm256_vm0, %v1937_v46, %v11209_v43  ;;  %v2190_v51 = vsel %vm256_vm0, %v1938_v56, %v11210_v28  ;;  %v13264_v16 = vpack.c.bf16 %v2192_v29, %v2191_v1  ;;  %v13284_v43 = vpack.c.bf16 %v2018_v36, %v2017_v35  ;;  %v1945_v46 = vld [vmem:[#allocation3 + $0x1a7] sm:$0xff]  ;;  %v1946_v56 = vld [vmem:[#allocation3 + $0x1af] sm:$0xff]  ;;  %v11546_v36 = vld [vmem:[#allocation14 + $0xe8] sm:$0xff]  }
 0x3eb   :  { %v13255_v59 = vpack.c.bf16 %v2190_v51, %v2189_v48  ;;  %v1947_v1 = vld [vmem:[#allocation3 + $0x1c7] sm:$0xff]  ;;  %v1948_v29 = vld [vmem:[#allocation3 + $0x1cf] sm:$0xff] }
 0x3ec   :  { %v11543_v35 = vld [vmem:[#allocation14 + $0xd0] sm:$0xff]  }
 0x3ee   :  { %2461 = vmatmul.mubr.bf16.gmra.mrb[20].mxu1 %v13219_v57  ;;  %v11223_v10 = vpop.permute.xlu0 %11222 }
 0x3ef   :  { %9380 = vmatprep.mubr.msk.bf16.mxu1 %vm256_vm0, %v13221_v49  ;;  %v11218_v21 = vpop.permute.xlu1 %11217  ;;  %v11225_v18 = vunpack.i.h.bf16 %v11223_v10  ;;  %v11224_v19 = vunpack.i.l.bf16 %v11223_v10  ;;  %v1949_v10 = vld [vmem:[#allocation3 + $0x1e7] sm:$0xff] }
 0x3f0   :  { %v11220_v17 = vunpack.i.h.bf16 %v11218_v21  ;;  %v11219_v47 = vunpack.i.l.bf16 %v11218_v21 }
 0x3f1   :  { %v2195_v31 = vsel %vm256_vm0, %v1943_v24, %v11224_v19  ;;  %v2196_v33 = vsel %vm256_vm0, %v1944_v25, %v11225_v18  ;;  %v1989_v24 = vld [vmem:[#allocation3 + $0x228] sm:$0xff]  ;;  %v1990_v25 = vld [vmem:[#allocation3 + $0x230] sm:$0xff] }
 0x3f2   :  { %v2193_v7 = vsel %vm256_vm0, %v1941_v2, %v11219_v47  ;;  %v2194_v8 = vsel %vm256_vm0, %v1942_v5, %v11220_v17  ;;  %v13282_v37 = vpack.c.bf16 %v2196_v33, %v2195_v31  ;;  %v2021_v17 = vld [vmem:[#allocation3 + $0x1e9] sm:$0xff]  ;;  %v2022_v47 = vld [vmem:[#allocation3 + $0x1f1] sm:$0xff]  ;;  %v11246_v31 = vpack.i.bf16 %v1990_v25, %v1989_v24 }
 0x3f3   :  { %v13273_v15 = vpack.c.bf16 %v2194_v8, %v2193_v7  ;;  %v13302_v8 = vpack.c.bf16 %v2022_v47, %v2021_v17  ;;  %v11541_v33 = vld [vmem:[#allocation14 + $0xc0] sm:$0xff]  }
 0x3f4   :  { %11247 = vrot.lane.b32.xlu1 %v11246_v31, %s12158_s18  ;;  %v11561_v24 = vld [vmem:[#allocation17 + $0x40] sm:$0xff]  }
 0x3f6   :  { %2469 = vmatmul.mubr.bf16.gmra.mrb[24].mxu1 %v13228_v6  ;;  %v11233_v52 = vpop.permute.xlu0 %11232 }
 0x3f7   :  { %9381 = vmatprep.mubr.msk.bf16.mxu1 %vm256_vm0, %v13230_v9  ;;  %v11228_v34 = vpop.permute.xlu1 %11227  ;;  %v11235_v26 = vunpack.i.h.bf16 %v11233_v52  ;;  %v11234_v63 = vunpack.i.l.bf16 %v11233_v52 }
 0x3f8   :  { %v11230_v40 = vunpack.i.h.bf16 %v11228_v34  ;;  %v11229_v28 = vunpack.i.l.bf16 %v11228_v34  ;;  %v11542_v34 = vld [vmem:[#allocation14 + $0xc8] sm:$0xff]  }
 0x3f9   :  { %v2199_v21 = vsel %vm256_vm0, %v1947_v1, %v11234_v63  ;;  %v2200_v22 = vsel %vm256_vm0, %v1948_v29, %v11235_v26  ;;  %v2240_v1 = vpack.c.bf16 %v2024_v55, %v2023_v53  ;;  %v1951_v29 = vld [vmem:[#allocation3 + $0x207] sm:$0xff] }
 0x3fa   :  { %v2197_v48 = vsel %vm256_vm0, %v1945_v46, %v11229_v28  ;;  %v2198_v51 = vsel %vm256_vm0, %v1946_v56, %v11230_v40  ;;  %v13300_v2 = vpack.c.bf16 %v2200_v22, %v2199_v21  ;;  %v11547_v40 = vld [vmem:[#allocation14 + $0xf0] sm:$0xff]   ;;  %v11548_v28 = vld [vmem:[#allocation14 + $0xf8] sm:$0xff]   ;;  %v11549_v46 = vld [vmem:[#allocation14 + $0x100] sm:$0xff]  }
 0x3fb   :  { %v13291_v61 = vpack.c.bf16 %v2198_v51, %v2197_v48  ;;  %v11550_v56 = vld [vmem:[#allocation14 + $0x108] sm:$0xff]   ;;  %v11551_v48 = vld [vmem:[#allocation14 + $0x110] sm:$0xff]   ;;  %v11552_v51 = vld [vmem:[#allocation14 + $0x118] sm:$0xff]  }
 0x3fc   :  { %v1952_v21 = vld [vmem:[#allocation3 + $0x20f] sm:$0xff] }
 0x3fe   :  { %2477 = vmatmul.mubr.bf16.gmra.mrb[28].mxu1 %v13237_v23  ;;  %v11243_v52 = vpop.permute.xlu0 %11242 }
 0x3ff   :  { %9382 = vmatprep.mubr.msk.bf16.mxu1 %vm256_vm0, %v13239_v30  ;;  %v11238_v50 = vpop.permute.xlu1 %11237  ;;  %v11245_v26 = vunpack.i.h.bf16 %v11243_v52  ;;  %v11244_v63 = vunpack.i.l.bf16 %v11243_v52 }
 0x400   :  { %v11240_v5 = vunpack.i.h.bf16 %v11238_v50  ;;  %v11239_v7 = vunpack.i.l.bf16 %v11238_v50 }
 0x401   :  { %v2203_v22 = vsel %vm256_vm0, %v1951_v29, %v11244_v63  ;;  %v2204_v50 = vsel %vm256_vm0, %v1952_v21, %v11245_v26 }
 0x402   :  { %v2201_v13 = vsel %vm256_vm0, %v1949_v10, %v11239_v7  ;;  %v2202_v18 = vsel %vm256_vm0, %v1950_v12, %v11240_v5  ;;  %v2239_v17 = vpack.c.bf16 %v2204_v50, %v2203_v22  ;;  %v11560_v7 = vld [vmem:[#allocation17 + $0x38] sm:$0xff]  }
 0x403   :  { %v13309_v19 = vpack.c.bf16 %v2202_v18, %v2201_v13  ;;  %v11564_v22 = vld [vmem:[#allocation17 + $0x58] sm:$0xff]  }
 0x406   :  { %2485 = vmatmul.mubr.bf16.gmra.mrb[32].mxu1 %v13246_v41 }
 0x407   :  { %9383 = vmatprep.mubr.msk.bf16.mxu1 %vm256_vm0, %v13248_v39 }
 0x40e   :  { %2493 = vmatmul.mubr.bf16.gmra.mrb[36].mxu1 %v13255_v59 }
 0x40f   :  { %9384 = vmatprep.mubr.msk.bf16.mxu1 %vm256_vm0, %v13257_v62 }
 0x416   :  { %2501 = vmatmul.mubr.bf16.gmra.mrb[40].mxu1 %v13264_v16 }
 0x417   :  { %9385 = vmatprep.mubr.msk.bf16.mxu1 %vm256_vm0, %v13266_v45 }
 0x41e   :  { %2509 = vmatmul.mubr.bf16.gmra.mrb[44].mxu1 %v13273_v15 }
 0x41f   :  { %9386 = vmatprep.mubr.msk.bf16.mxu1 %vm256_vm0, %v13275_v20 }
 0x426   :  { %2517 = vmatmul.mubr.bf16.gmra.mrb[48].mxu1 %v13282_v37 }
 0x427   :  { %9387 = vmatprep.mubr.msk.bf16.mxu1 %vm256_vm0, %v13284_v43 }
 0x42e   :  { %2525 = vmatmul.mubr.bf16.gmra.mrb[52].mxu1 %v13291_v61 }
 0x42f   :  { %9388 = vmatprep.mubr.msk.bf16.mxu1 %vm256_vm0, %v13293_v0 }
 0x436   :  { %2533 = vmatmul.mubr.bf16.gmra.mrb[56].mxu1 %v13300_v2 }
 0x437   :  { %9389 = vmatprep.mubr.msk.bf16.mxu1 %vm256_vm0, %v13302_v8 }
 0x43e   :  { %2541 = vmatmul.mubr.bf16.gmra.mrb[60].mxu1 %v13309_v19 }
 0x43f   :  { %9403 = vmatprep.mubr.msk.bf16.mxu1 %vm256_vm0, %v13102_v58  ;;  %v11544_v58 = vld [vmem:[#allocation14 + $0xd8] sm:$0xff]  }
 0x446   :  { %2720 = vmatmul.mubr.bf16.vlgmr.msra.gmra.mrb[0].mxu1 %v13183_v11  ;;  %v11545_v11 = vld [vmem:[#allocation14 + $0xe0] sm:$0xff]  }
 0x447   :  { %2981 = vmatpush1.bf16.msra.mxu1 %v11541_v33  ;;  %9404 = vmatprep.mubr.msk.bf16.mxu1 %vm256_vm0, %v13185_v14  ;;  %v11562_v33 = vld [vmem:[#allocation17 + $0x48] sm:$0xff]  }
 0x448   :  { %2982 = vmatprep.subr.bf16.mxu1 %v12176_v38 }
 0x44b   :  { %2983 = vmatpush1.bf16.msra.mxu1 %v11542_v34 }
 0x44c   :  { %2984 = vmatprep.subr.bf16.mxu1 %v12176_v38 }
 0x44e   :  { %2728 = vmatmul.mubr.bf16.gmra.mrb[4].mxu1 %v13192_v27 }
 0x44f   :  { %9405 = vmatprep.mubr.msk.bf16.mxu1 %vm256_vm0, %v13194_v32  ;;  %2985 = vmatpush1.bf16.msra.mxu1 %v11543_v35 }
 0x450   :  { %2986 = vmatprep.subr.bf16.mxu1 %v12176_v38 }
 0x453   :  { %2987 = vmatpush1.bf16.msra.mxu1 %v11544_v58 }
 0x454   :  { %2988 = vmatprep.subr.bf16.mxu1 %v12176_v38 }
 0x456   :  { %2736 = vmatmul.mubr.bf16.gmra.mrb[8].mxu1 %v13201_v42 }
 0x457   :  { %9406 = vmatprep.mubr.msk.bf16.mxu1 %vm256_vm0, %v13203_v44  ;;  %2989 = vmatpush1.bf16.msra.mxu1 %v11545_v11 }
 0x458   :  { %2990 = vmatprep.subr.bf16.mxu1 %v12176_v38 }
 0x45b   :  { %2991 = vmatpush1.bf16.msra.mxu1 %v11546_v36 }
 0x45c   :  { %2992 = vmatprep.subr.bf16.mxu1 %v12176_v38 }
 0x45e   :  { %2744 = vmatmul.mubr.bf16.gmra.mrb[12].mxu1 %v13210_v54 }
 0x45f   :  { %9407 = vmatprep.mubr.msk.bf16.mxu1 %vm256_vm0, %v13212_v60  ;;  %2993 = vmatpush1.bf16.msra.mxu1 %v11547_v40 }
 0x460   :  { %2994 = vmatprep.subr.bf16.mxu1 %v12176_v38 }
 0x463   :  { %2995 = vmatpush1.bf16.msra.mxu1 %v11548_v28 }
 0x464   :  { %2996 = vmatprep.subr.bf16.mxu1 %v12176_v38 }
 0x466   :  { %2752 = vmatmul.mubr.bf16.gmra.mrb[16].mxu1 %v13219_v57 }
 0x467   :  { %9408 = vmatprep.mubr.msk.bf16.mxu1 %vm256_vm0, %v13221_v49  ;;  %2997 = vmatpush1.bf16.msra.mxu1 %v11549_v46 }
 0x468   :  { %2998 = vmatprep.subr.bf16.mxu1 %v12176_v38 }
 0x46b   :  { %2999 = vmatpush1.bf16.msra.mxu1 %v11550_v56  ;;  %v11563_v56 = vld [vmem:[#allocation17 + $0x50] sm:$0xff]  }
 0x46c   :  { %3000 = vmatprep.subr.bf16.mxu1 %v12176_v38 }
 0x46e   :  { %2760 = vmatmul.mubr.bf16.gmra.mrb[20].mxu1 %v13228_v6 }
 0x46f   :  { %9409 = vmatprep.mubr.msk.bf16.mxu1 %vm256_vm0, %v13230_v9  ;;  %3001 = vmatpush1.bf16.msra.mxu1 %v11551_v48 }
 0x470   :  { %3002 = vmatprep.subr.bf16.mxu1 %v12176_v38 }
 0x473   :  { %3003 = vmatpush1.bf16.msra.mxu1 %v11552_v51 }
 0x476   :  { %2768 = vmatmul.mubr.bf16.gmra.mrb[24].mxu1 %v13237_v23 }
 0x477   :  { %9410 = vmatprep.mubr.msk.bf16.mxu1 %vm256_vm0, %v13239_v30 }
 0x47e   :  { %2776 = vmatmul.mubr.bf16.gmra.mrb[28].mxu1 %v13246_v41 }
 0x47f   :  { %9411 = vmatprep.mubr.msk.bf16.mxu1 %vm256_vm0, %v13248_v39 }
 0x486   :  { %2784 = vmatmul.mubr.bf16.gmra.mrb[32].mxu1 %v13255_v59 }
 0x487   :  { %9412 = vmatprep.mubr.msk.bf16.mxu1 %vm256_vm0, %v13257_v62 }
 0x48e   :  { %2792 = vmatmul.mubr.bf16.gmra.mrb[36].mxu1 %v13264_v16 }
 0x48f   :  { %9413 = vmatprep.mubr.msk.bf16.mxu1 %vm256_vm0, %v13266_v45 }
 0x496   :  { %2800 = vmatmul.mubr.bf16.gmra.mrb[40].mxu1 %v13273_v15 }
 0x497   :  { %9414 = vmatprep.mubr.msk.bf16.mxu1 %vm256_vm0, %v13275_v20 }
 0x49e   :  { %2808 = vmatmul.mubr.bf16.gmra.mrb[44].mxu1 %v13282_v37 }
 0x49f   :  { %9415 = vmatprep.mubr.msk.bf16.mxu1 %vm256_vm0, %v13284_v43 }
 0x4a6   :  { %2816 = vmatmul.mubr.bf16.gmra.mrb[48].mxu1 %v13291_v61 }
 0x4a7   :  { %9416 = vmatprep.mubr.msk.bf16.mxu1 %vm256_vm0, %v13293_v0 }
 0x4ae   :  { %2824 = vmatmul.mubr.bf16.gmra.mrb[52].mxu1 %v13300_v2 }
 0x4af   :  { %9417 = vmatprep.mubr.msk.bf16.mxu1 %vm256_vm0, %v13302_v8 }
 0x4b6   :  { %2832 = vmatmul.mubr.bf16.gmra.mrb[56].mxu1 %v13309_v19 }
 0x4b7   :  { %9418 = vmatprep.mubr.msk.bf16.mxu1 %vm256_vm0, %v2240_v1 }
 0x4be   :  { %2840 = vmatmul.mubr.bf16.gmra.mrb[60].mxu1 %v2239_v17 }
 0x4bf   :  { %9431 = vmatprep.mubr.msk.bf16.mxu1 %vm256_vm0, %v13185_v14  ;;  %v11248_v14 = vpop.permute.xlu1 %11247 }
 0x4c6   :  { %3013 = vmatmul.mubr.bf16.vlgmr.msra.gmra.mrb[0].mxu1 %v13192_v27  ;;  %v2025_v27 = vld [vmem:[#allocation3 + $0x229] sm:$0xff] }
 0x4c7   :  { %9432 = vmatprep.mubr.msk.bf16.mxu1 %vm256_vm0, %v13194_v32  ;;  %v2026_v32 = vld [vmem:[#allocation3 + $0x231] sm:$0xff] }
 0x4ce   :  { %3021 = vmatmul.mubr.bf16.gmra.mrb[4].mxu1 %v13201_v42  ;;  %v11250_v42 = vunpack.i.h.bf16 %v11248_v14 }
 0x4cf   :  { %9433 = vmatprep.mubr.msk.bf16.mxu1 %vm256_vm0, %v13203_v44  ;;  %v11249_v44 = vunpack.i.l.bf16 %v11248_v14 }
 0x4d6   :  { %3029 = vmatmul.mubr.bf16.gmra.mrb[8].mxu1 %v13210_v54  ;;  %v2242_v54 = vpack.c.bf16 %v2026_v32, %v2025_v27 }
 0x4d7   :  { %9434 = vmatprep.mubr.msk.bf16.mxu1 %vm256_vm0, %v13212_v60  ;;  %v1953_v60 = vld [vmem:[#allocation3 + $0x227] sm:$0xff] }
 0x4de   :  { %3037 = vmatmul.mubr.bf16.gmra.mrb[12].mxu1 %v13219_v57  ;;  %v1954_v57 = vld [vmem:[#allocation3 + $0x22f] sm:$0xff] }
 0x4df   :  { %9435 = vmatprep.mubr.msk.bf16.mxu1 %vm256_vm0, %v13221_v49  ;;  %v2205_v49 = vsel %vm256_vm0, %v1953_v60, %v11249_v44  ;;  %v3343_v44 = vld [vmem:[#allocation5 + $0x8] sm:$0xff] }
 0x4e6   :  { %3045 = vmatmul.mubr.bf16.gmra.mrb[16].mxu1 %v13228_v6  ;;  %v2206_v6 = vsel %vm256_vm0, %v1954_v57, %v11250_v42  ;;  %v3353_v42 = vld [vmem:[#allocation5 + $0x9] sm:$0xff] }
 0x4e7   :  { %9436 = vmatprep.mubr.msk.bf16.mxu1 %vm256_vm0, %v13230_v9  ;;  %v2241_v9 = vpack.c.bf16 %v2206_v6, %v2205_v49 }
 0x4ee   :  { %3053 = vmatmul.mubr.bf16.gmra.mrb[20].mxu1 %v13237_v23  ;;  %v11553_v23 = vld [vmem:[#allocation17] sm:$0xff]  }
 0x4ef   :  { %9437 = vmatprep.mubr.msk.bf16.mxu1 %vm256_vm0, %v13239_v30  ;;  %3587 = vmatpush1.bf16.msra.mxu0 %v11553_v23  ;;  %v11554_v30 = vld [vmem:[#allocation17 + $0x8] sm:$0xff]  }
 0x4f0   :  { %3588 = vmatprep.subr.bf16.mxu0 %v12176_v38 }
 0x4f3   :  { %3589 = vmatpush1.bf16.msra.mxu0 %v11554_v30 }
 0x4f4   :  { %3590 = vmatprep.subr.bf16.mxu0 %v12176_v38 }
 0x4f6   :  { %3061 = vmatmul.mubr.bf16.gmra.mrb[24].mxu1 %v13246_v41  ;;  %v11555_v41 = vld [vmem:[#allocation17 + $0x10] sm:$0xff]  }
 0x4f7   :  { %9438 = vmatprep.mubr.msk.bf16.mxu1 %vm256_vm0, %v13248_v39  ;;  %3591 = vmatpush1.bf16.msra.mxu0 %v11555_v41  ;;  %v11556_v39 = vld [vmem:[#allocation17 + $0x18] sm:$0xff]  }
 0x4f8   :  { %3592 = vmatprep.subr.bf16.mxu0 %v12176_v38 }
 0x4fb   :  { %3593 = vmatpush1.bf16.msra.mxu0 %v11556_v39 }
 0x4fc   :  { %3594 = vmatprep.subr.bf16.mxu0 %v12176_v38 }
 0x4fe   :  { %3069 = vmatmul.mubr.bf16.gmra.mrb[28].mxu1 %v13255_v59  ;;  %v13422_v59 = vld [vmem:[#allocation16] ss:$0 sm:$0xff] }
 0x4ff   :  { %9439 = vmatprep.mubr.msk.bf16.mxu1 %vm256_vm0, %v13257_v62  ;;  %v11557_v62 = vld [vmem:[#allocation17 + $0x20] sm:$0xff]  }
 0x500   :  { %3595 = vmatpush1.bf16.msra.mxu0 %v11557_v62 }
 0x501   :  { %3596 = vmatprep.subr.bf16.mxu0 %v12176_v38 }
 0x506   :  { %3077 = vmatmul.mubr.bf16.gmra.mrb[32].mxu1 %v13264_v16 }
 0x507   :  { %9440 = vmatprep.mubr.msk.bf16.mxu1 %vm256_vm0, %v13266_v45 }
 0x50e   :  { %3085 = vmatmul.mubr.bf16.gmra.mrb[36].mxu1 %v13273_v15 }
 0x50f   :  { %9441 = vmatprep.mubr.msk.bf16.mxu1 %vm256_vm0, %v13275_v20 }
 0x516   :  { %3093 = vmatmul.mubr.bf16.gmra.mrb[40].mxu1 %v13282_v37  ;;  %v11558_v37 = vld [vmem:[#allocation17 + $0x28] sm:$0xff]  }
 0x517   :  { %9442 = vmatprep.mubr.msk.bf16.mxu1 %vm256_vm0, %v13284_v43  ;;  %3597 = vmatpush1.bf16.msra.mxu0 %v11558_v37 }
 0x518   :  { %3598 = vmatprep.subr.bf16.mxu0 %v12176_v38 }
 0x51e   :  { %3101 = vmatmul.mubr.bf16.gmra.mrb[44].mxu1 %v13291_v61 }
 0x51f   :  { %9443 = vmatprep.mubr.msk.bf16.mxu1 %vm256_vm0, %v13293_v0 }
 0x526   :  { %3109 = vmatmul.mubr.bf16.gmra.mrb[48].mxu1 %v13300_v2  ;;  %v11559_v2 = vld [vmem:[#allocation17 + $0x30] sm:$0xff]  }
 0x527   :  { %9444 = vmatprep.mubr.msk.bf16.mxu1 %vm256_vm0, %v13302_v8  ;;  %3599 = vmatpush1.bf16.msra.mxu0 %v11559_v2 }
 0x528   :  { %3600 = vmatprep.subr.bf16.mxu0 %v12176_v38 }
 0x52b   :  { %3601 = vmatpush1.bf16.msra.mxu0 %v11560_v7 }
 0x52c   :  { %3602 = vmatprep.subr.bf16.mxu0 %v12176_v38 }
 0x52e   :  { %3117 = vmatmul.mubr.bf16.gmra.mrb[52].mxu1 %v13309_v19 }
 0x52f   :  { %9445 = vmatprep.mubr.msk.bf16.mxu1 %vm256_vm0, %v2240_v1  ;;  %3603 = vmatpush1.bf16.msra.mxu0 %v11561_v24 }
 0x530   :  { %3604 = vmatprep.subr.bf16.mxu0 %v12176_v38 }
 0x533   :  { %3605 = vmatpush1.bf16.msra.mxu0 %v11562_v33 }
 0x534   :  { %3606 = vmatprep.subr.bf16.mxu0 %v12176_v38 }
 0x536   :  { %3125 = vmatmul.mubr.bf16.gmra.mrb[56].mxu1 %v2239_v17 }
 0x537   :  { %9446 = vmatprep.mubr.msk.bf16.mxu1 %vm256_vm0, %v2242_v54  ;;  %3607 = vmatpush1.bf16.msra.mxu0 %v11563_v56 }
 0x538   :  { %3608 = vmatprep.subr.bf16.mxu0 %v12176_v38 }
 0x53b   :  { %3609 = vmatpush1.bf16.msra.mxu0 %v11564_v22 }
 0x53c   :  { %3790 = vmatprep.subr.bf16.mxu0 %v12176_v38 }
 0x53e   :  { %3133 = vmatmul.mubr.bf16.gmra.mrb[60].mxu1 %v2241_v9 }
 0x599   :  { %v3014_v16 = vpop.f32.mrb[0].mxu1 }
 0x59a   :  { %v10485_v45 = vadd.f32 %v13422_v59, %v3014_v16  ;;  %v3016_v15 = vpop.f32.mrb[1].mxu1 }
 0x59b   :  { %v3017_v20 = vpop.f32.mrb[2].mxu1 }
 0x59c   :  { %v3173_v43 = vmax.f32 %v10485_v45, 0.0  ;;  %v10486_v61 = vadd.f32 %v13422_v59, %v3017_v20  ;;  %v3019_v0 = vpop.f32.mrb[3].mxu1 }
 0x59e   :  { %3205 = vst.msk [vmem:[#allocation4] sm:$0xff] %vm256_vm0, %v3173_v43  ;;  %v3174_v47 = vmax.f32 %v10486_v61, 0.0 }
 0x5a0   :  { %3206 = vst.msk [vmem:[#allocation4 + $0x8] sm:$0xff] %vm256_vm0, %v3174_v47 }
 0x5a1   :  { %v3022_v5 = vpop.f32.mrb[4].mxu1 }
 0x5a2   :  { %v10487_v8 = vadd.f32 %v13422_v59, %v3022_v5  ;;  %v3024_v10 = vpop.f32.mrb[5].mxu1 }
 0x5a3   :  { %v3025_v12 = vpop.f32.mrb[6].mxu1 }
 0x5a4   :  { %v3175_v13 = vmax.f32 %v10487_v8, 0.0  ;;  %v10488_v18 = vadd.f32 %v13422_v59, %v3025_v12  ;;  %v3027_v19 = vpop.f32.mrb[7].mxu1 }
 0x5a6   :  { %3207 = vst.msk [vmem:[#allocation4 + $0x10] sm:$0xff] %vm256_vm0, %v3175_v13  ;;  %v3176_v25 = vmax.f32 %v10488_v18, 0.0 }
 0x5a7   :  { %v3237_v28 = vld [vmem:[#allocation4] ss:$2 sm:$0xff]  ;;  %v3253_v46 = vld [vmem:[#allocation4 + $0x1] ss:$2 sm:$0xff] }
 0x5a8   :  { %3208 = vst.msk [vmem:[#allocation4 + $0x18] sm:$0xff] %vm256_vm0, %v3176_v25  ;;  %v3300_v53 = vmax.f32 %v3237_v28, %v3253_v46 }
 0x5a9   :  { %v3030_v31 = vpop.f32.mrb[8].mxu1 }
 0x5aa   :  { %v10489_v34 = vadd.f32 %v13422_v59, %v3030_v31  ;;  %v3032_v35 = vpop.f32.mrb[9].mxu1 }
 0x5ab   :  { %v3033_v58 = vpop.f32.mrb[10].mxu1 }
 0x5ac   :  { %v3177_v11 = vmax.f32 %v10489_v34, 0.0  ;;  %v10490_v36 = vadd.f32 %v13422_v59, %v3033_v58  ;;  %v3035_v40 = vpop.f32.mrb[11].mxu1 }
 0x5ae   :  { %3209 = vst.msk [vmem:[#allocation4 + $0x20] sm:$0xff] %vm256_vm0, %v3177_v11  ;;  %v3178_v48 = vmax.f32 %v10490_v36, 0.0 }
 0x5af   :  { %v3269_v51 = vld [vmem:[#allocation4 + $0x10] ss:$2 sm:$0xff]  ;;  %v3285_v52 = vld [vmem:[#allocation4 + $0x11] ss:$2 sm:$0xff] }
 0x5b0   :  { %v3308_v55 = vmax.f32 %v3269_v51, %v3285_v52  ;;  %3210 = vst.msk [vmem:[#allocation4 + $0x28] sm:$0xff] %vm256_vm0, %v3178_v48 }
 0x5b1   :  { %v3038_v26 = vpop.f32.mrb[12].mxu1 }
 0x5b2   :  { %v3316_v63 = vmax.f32 %v3300_v53, %v3308_v55  ;;  %v10491_v1 = vadd.f32 %v13422_v59, %v3038_v26  ;;  %v3040_v29 = vpop.f32.mrb[13].mxu1 }
 0x5b3   :  { %v3041_v21 = vpop.f32.mrb[14].mxu1 }
 0x5b4   :  { %3325 = vst.msk [vmem:[#allocation5 + $0x20] sm:$0xff] %vm256_vm0, %v3316_v63  ;;  %v3179_v50 = vmax.f32 %v10491_v1, 0.0  ;;  %v10492_v17 = vadd.f32 %v13422_v59, %v3041_v21  ;;  %v3043_v14 = vpop.f32.mrb[15].mxu1 }
 0x5b6   :  { %3211 = vst.msk [vmem:[#allocation4 + $0x30] sm:$0xff] %vm256_vm0, %v3179_v50  ;;  %v3180_v27 = vmax.f32 %v10492_v17, 0.0 }
 0x5b7   :  { %v3239_v62 = vld [vmem:[#allocation4 + $0x20] ss:$2 sm:$0xff]  ;;  %v3255_v16 = vld [vmem:[#allocation4 + $0x21] ss:$2 sm:$0xff] }
 0x5b8   :  { %3212 = vst.msk [vmem:[#allocation4 + $0x38] sm:$0xff] %vm256_vm0, %v3180_v27  ;;  %v3301_v37 = vmax.f32 %v3239_v62, %v3255_v16 }
 0x5b9   :  { %v3046_v32 = vpop.f32.mrb[16].mxu1 }
 0x5ba   :  { %v10493_v54 = vadd.f32 %v13422_v59, %v3046_v32  ;;  %v3048_v60 = vpop.f32.mrb[17].mxu1 }
 0x5bb   :  { %v3049_v57 = vpop.f32.mrb[18].mxu1  ;;  %v13450_v49 = vld [vmem:[#allocation5 + $0x21] sm:$0xff] }
 0x5bc   :  { %v3344_v6 = vld [vmem:[#allocation5 + $0x20] sm:$0xff]  ;;  %v3181_v9 = vmax.f32 %v10493_v54, 0.0  ;;  %v10494_v23 = vadd.f32 %v13422_v59, %v3049_v57  ;;  %v3051_v30 = vpop.f32.mrb[19].mxu1  ;;  %v9923_v41 = vpack.c.bf16 %v13450_v49, %v3353_v42 }
 0x5bd   :  { %v11251_v39 = vpack.i.bf16 %v3344_v6, %v3343_v44 }
 0x5be   :  { %3213 = vst.msk [vmem:[#allocation4 + $0x40] sm:$0xff] %vm256_vm0, %v3181_v9  ;;  %v3182_v45 = vmax.f32 %v10494_v23, 0.0  ;;  %9467 = vmatprep.mubr.msk.bf16.mxu0 %vm256_vm0, %v9923_v41 }
 0x5bf   :  { %11252 = vrot.lane.b32.xlu0 %v11251_v39, %s12158_s18  ;;  %v3271_v15 = vld [vmem:[#allocation4 + $0x30] ss:$2 sm:$0xff]  ;;  %v3287_v20 = vld [vmem:[#allocation4 + $0x31] ss:$2 sm:$0xff] }
 0x5c0   :  { %v3309_v43 = vmax.f32 %v3271_v15, %v3287_v20  ;;  %3214 = vst.msk [vmem:[#allocation4 + $0x48] sm:$0xff] %vm256_vm0, %v3182_v45 }
 0x5c1   :  { %v3054_v61 = vpop.f32.mrb[20].mxu1 }
 0x5c2   :  { %v10495_v0 = vadd.f32 %v13422_v59, %v3054_v61  ;;  %v3056_v47 = vpop.f32.mrb[21].mxu1  ;;  %v3317_v2 = vmax.f32 %v3301_v37, %v3309_v43 }
 0x5c3   :  { %v3057_v5 = vpop.f32.mrb[22].mxu1 }
 0x5c4   :  { %v3183_v7 = vmax.f32 %v10495_v0, 0.0  ;;  %v10496_v8 = vadd.f32 %v13422_v59, %v3057_v5  ;;  %v3059_v10 = vpop.f32.mrb[23].mxu1  ;;  %3326 = vst.msk [vmem:[#allocation5 + $0x38] sm:$0xff] %vm256_vm0, %v3317_v2 }
 0x5c6   :  { %3215 = vst.msk [vmem:[#allocation4 + $0x50] sm:$0xff] %vm256_vm0, %v3183_v7  ;;  %v3184_v12 = vmax.f32 %v10496_v8, 0.0 }
 0x5c7   :  { %v3241_v58 = vld [vmem:[#allocation4 + $0x40] ss:$2 sm:$0xff]  ;;  %v3257_v11 = vld [vmem:[#allocation4 + $0x41] ss:$2 sm:$0xff] }
 0x5c8   :  { %3216 = vst.msk [vmem:[#allocation4 + $0x58] sm:$0xff] %vm256_vm0, %v3184_v12  ;;  %v3302_v46 = vmax.f32 %v3241_v58, %v3257_v11 }
 0x5c9   :  { %v3062_v13 = vpop.f32.mrb[24].mxu1 }
 0x5ca   :  { %v10497_v18 = vadd.f32 %v13422_v59, %v3062_v13  ;;  %v3064_v19 = vpop.f32.mrb[25].mxu1 }
 0x5cb   :  { %v3065_v24 = vpop.f32.mrb[26].mxu1  ;;  %v13464_v25 = vld [vmem:[#allocation5 + $0x39] sm:$0xff] }
 0x5cc   :  { %v3185_v31 = vmax.f32 %v10497_v18, 0.0  ;;  %v10498_v33 = vadd.f32 %v13422_v59, %v3065_v24  ;;  %v3067_v34 = vpop.f32.mrb[27].mxu1  ;;  %v9931_v35 = vpack.c.bf16 %v13464_v25, %v13450_v49  ;;  %v3345_v14 = vld [vmem:[#allocation5 + $0x38] sm:$0xff] }
 0x5ce   :  { %3217 = vst.msk [vmem:[#allocation4 + $0x60] sm:$0xff] %vm256_vm0, %v3185_v31  ;;  %v3186_v36 = vmax.f32 %v10498_v33, 0.0 }
 0x5cf   :  { %v3273_v40 = vld [vmem:[#allocation4 + $0x50] ss:$2 sm:$0xff]  ;;  %v3289_v28 = vld [vmem:[#allocation4 + $0x51] ss:$2 sm:$0xff] }
 0x5d0   :  { %v3310_v56 = vmax.f32 %v3273_v40, %v3289_v28  ;;  %3218 = vst.msk [vmem:[#allocation4 + $0x68] sm:$0xff] %vm256_vm0, %v3186_v36 }
 0x5d1   :  { %v3070_v48 = vpop.f32.mrb[28].mxu1 }
 0x5d2   :  { %v10499_v51 = vadd.f32 %v13422_v59, %v3070_v48  ;;  %v3072_v52 = vpop.f32.mrb[29].mxu1  ;;  %v3318_v53 = vmax.f32 %v3302_v46, %v3310_v56 }
 0x5d3   :  { %v3073_v55 = vpop.f32.mrb[30].mxu1 }
 0x5d4   :  { %v3187_v26 = vmax.f32 %v10499_v51, 0.0  ;;  %v10500_v63 = vadd.f32 %v13422_v59, %v3073_v55  ;;  %v3075_v1 = vpop.f32.mrb[31].mxu1  ;;  %3327 = vst.msk [vmem:[#allocation5 + $0x50] sm:$0xff] %vm256_vm0, %v3318_v53 }
 0x5d6   :  { %3219 = vst.msk [vmem:[#allocation4 + $0x70] sm:$0xff] %vm256_vm0, %v3187_v26  ;;  %v3188_v29 = vmax.f32 %v10500_v63, 0.0 }
 0x5d7   :  { %v3243_v60 = vld [vmem:[#allocation4 + $0x60] ss:$2 sm:$0xff]  ;;  %v3259_v57 = vld [vmem:[#allocation4 + $0x61] ss:$2 sm:$0xff] }
 0x5d8   :  { %3220 = vst.msk [vmem:[#allocation4 + $0x78] sm:$0xff] %vm256_vm0, %v3188_v29  ;;  %v3303_v30 = vmax.f32 %v3243_v60, %v3259_v57 }
 0x5d9   :  { %v3078_v21 = vpop.f32.mrb[32].mxu1 }
 0x5da   :  { %v10501_v22 = vadd.f32 %v13422_v59, %v3078_v21  ;;  %v3080_v50 = vpop.f32.mrb[33].mxu1 }
 0x5db   :  { %v3081_v17 = vpop.f32.mrb[34].mxu1  ;;  %v3346_v27 = vld [vmem:[#allocation5 + $0x50] sm:$0xff] }
 0x5dc   :  { %v3189_v32 = vmax.f32 %v10501_v22, 0.0  ;;  %v10502_v42 = vadd.f32 %v13422_v59, %v3081_v17  ;;  %v3083_v44 = vpop.f32.mrb[35].mxu1  ;;  %v11256_v54 = vpack.i.bf16 %v3346_v27, %v3345_v14  ;;  %v13487_v7 = vld [vmem:[#allocation5 + $0x51] sm:$0xff] }
 0x5de   :  { %3221 = vst.msk [vmem:[#allocation4 + $0x80] sm:$0xff] %vm256_vm0, %v3189_v32  ;;  %v3190_v6 = vmax.f32 %v10502_v42, 0.0  ;;  %11257 = vrot.lane.b32.xlu1 %v11256_v54, %s12158_s18 }
 0x5df   :  { %v3275_v9 = vld [vmem:[#allocation4 + $0x70] ss:$2 sm:$0xff]  ;;  %v3291_v23 = vld [vmem:[#allocation4 + $0x71] ss:$2 sm:$0xff] }
 0x5e0   :  { %v3311_v41 = vmax.f32 %v3275_v9, %v3291_v23  ;;  %3222 = vst.msk [vmem:[#allocation4 + $0x88] sm:$0xff] %vm256_vm0, %v3190_v6 }
 0x5e1   :  { %v3086_v39 = vpop.f32.mrb[36].mxu1 }
 0x5e2   :  { %v10503_v62 = vadd.f32 %v13422_v59, %v3086_v39  ;;  %v3088_v16 = vpop.f32.mrb[37].mxu1  ;;  %v3319_v45 = vmax.f32 %v3303_v30, %v3311_v41 }
 0x5e3   :  { %v3089_v15 = vpop.f32.mrb[38].mxu1 }
 0x5e4   :  { %v3191_v20 = vmax.f32 %v10503_v62, 0.0  ;;  %v10504_v37 = vadd.f32 %v13422_v59, %v3089_v15  ;;  %v3091_v43 = vpop.f32.mrb[39].mxu1  ;;  %3328 = vst.msk [vmem:[#allocation5 + $0x68] sm:$0xff] %vm256_vm0, %v3319_v45 }
 0x5e6   :  { %3223 = vst.msk [vmem:[#allocation4 + $0x90] sm:$0xff] %vm256_vm0, %v3191_v20  ;;  %v3192_v61 = vmax.f32 %v10504_v37, 0.0 }
 0x5e7   :  { %v3245_v19 = vld [vmem:[#allocation4 + $0x80] ss:$2 sm:$0xff]  ;;  %v3261_v24 = vld [vmem:[#allocation4 + $0x81] ss:$2 sm:$0xff] }
 0x5e8   :  { %3224 = vst.msk [vmem:[#allocation4 + $0x98] sm:$0xff] %vm256_vm0, %v3192_v61  ;;  %v3304_v58 = vmax.f32 %v3245_v19, %v3261_v24 }
 0x5e9   :  { %v3094_v0 = vpop.f32.mrb[40].mxu1 }
 0x5ea   :  { %v10505_v47 = vadd.f32 %v13422_v59, %v3094_v0  ;;  %v3096_v2 = vpop.f32.mrb[41].mxu1 }
 0x5eb   :  { %v3097_v5 = vpop.f32.mrb[42].mxu1  ;;  %v13489_v8 = vld [vmem:[#allocation5 + $0x69] sm:$0xff] }
 0x5ec   :  { %v3193_v10 = vmax.f32 %v10505_v47, 0.0  ;;  %v10506_v12 = vadd.f32 %v13422_v59, %v3097_v5  ;;  %v3099_v13 = vpop.f32.mrb[43].mxu1  ;;  %v9933_v18 = vpack.c.bf16 %v13489_v8, %v13487_v7  ;;  %v3347_v29 = vld [vmem:[#allocation5 + $0x68] sm:$0xff] }
 0x5ee   :  { %3225 = vst.msk [vmem:[#allocation4 + $0xa0] sm:$0xff] %vm256_vm0, %v3193_v10  ;;  %v3194_v31 = vmax.f32 %v10506_v12, 0.0 }
 0x5ef   :  { %v3277_v33 = vld [vmem:[#allocation4 + $0x90] ss:$2 sm:$0xff]  ;;  %v3293_v34 = vld [vmem:[#allocation4 + $0x91] ss:$2 sm:$0xff] }
 0x5f0   :  { %v3312_v11 = vmax.f32 %v3277_v33, %v3293_v34  ;;  %3226 = vst.msk [vmem:[#allocation4 + $0xa8] sm:$0xff] %vm256_vm0, %v3194_v31 }
 0x5f1   :  { %v3102_v36 = vpop.f32.mrb[44].mxu1 }
 0x5f2   :  { %v10507_v40 = vadd.f32 %v13422_v59, %v3102_v36  ;;  %v3104_v28 = vpop.f32.mrb[45].mxu1  ;;  %v3320_v46 = vmax.f32 %v3304_v58, %v3312_v11 }
 0x5f3   :  { %v3105_v56 = vpop.f32.mrb[46].mxu1 }
 0x5f4   :  { %v3195_v48 = vmax.f32 %v10507_v40, 0.0  ;;  %v10508_v51 = vadd.f32 %v13422_v59, %v3105_v56  ;;  %v3107_v52 = vpop.f32.mrb[47].mxu1  ;;  %3329 = vst.msk [vmem:[#allocation5 + $0x80] sm:$0xff] %vm256_vm0, %v3320_v46 }
 0x5f6   :  { %3227 = vst.msk [vmem:[#allocation4 + $0xb0] sm:$0xff] %vm256_vm0, %v3195_v48  ;;  %v3196_v53 = vmax.f32 %v10508_v51, 0.0 }
 0x5f7   :  { %v3247_v27 = vld [vmem:[#allocation4 + $0xa0] ss:$2 sm:$0xff]  ;;  %v3263_v32 = vld [vmem:[#allocation4 + $0xa1] ss:$2 sm:$0xff] }
 0x5f8   :  { %3228 = vst.msk [vmem:[#allocation4 + $0xb8] sm:$0xff] %vm256_vm0, %v3196_v53  ;;  %v3305_v60 = vmax.f32 %v3247_v27, %v3263_v32  ;;  %v3334_v27 = vld [vmem:[#allocation5 + $0x1f] sm:$0xff] }
 0x5f9   :  { %v3110_v55 = vpop.f32.mrb[48].mxu1 }
 0x5fa   :  { %v10509_v26 = vadd.f32 %v13422_v59, %v3110_v55  ;;  %v3112_v63 = vpop.f32.mrb[49].mxu1 }
 0x5fb   :  { %v3113_v1 = vpop.f32.mrb[50].mxu1  ;;  %v3348_v21 = vld [vmem:[#allocation5 + $0x80] sm:$0xff] }
 0x5fc   :  { %v3197_v22 = vmax.f32 %v10509_v26, 0.0  ;;  %v10510_v50 = vadd.f32 %v13422_v59, %v3113_v1  ;;  %v3115_v17 = vpop.f32.mrb[51].mxu1  ;;  %v11261_v14 = vpack.i.bf16 %v3348_v21, %v3347_v29  ;;  %v3352_v63 = vld [vmem:[#allocation5 + $0xe0] sm:$0xff] }
 0x5fe   :  { %3229 = vst.msk [vmem:[#allocation4 + $0xc0] sm:$0xff] %vm256_vm0, %v3197_v22  ;;  %v3198_v42 = vmax.f32 %v10510_v50, 0.0  ;;  %11262 = vrot.lane.b32.xlu0 %v11261_v14, %s12158_s18  ;;  %v3333_v22 = vld [vmem:[#allocation5 + $0x7] sm:$0xff] }
 0x5ff   :  { %v3279_v44 = vld [vmem:[#allocation4 + $0xb0] ss:$2 sm:$0xff]  ;;  %v3295_v54 = vld [vmem:[#allocation4 + $0xb1] ss:$2 sm:$0xff] }
 0x600   :  { %v3313_v57 = vmax.f32 %v3279_v44, %v3295_v54  ;;  %3230 = vst.msk [vmem:[#allocation4 + $0xc8] sm:$0xff] %vm256_vm0, %v3198_v42  ;;  %v11565_v44 = vld [vmem:[#allocation17 + $0x60] sm:$0xff]  }
 0x601   :  { %v3118_v6 = vpop.f32.mrb[52].mxu1 }
 0x602   :  { %v10511_v9 = vadd.f32 %v13422_v59, %v3118_v6  ;;  %v3120_v23 = vpop.f32.mrb[53].mxu1  ;;  %v3321_v30 = vmax.f32 %v3305_v60, %v3313_v57  ;;  %v13531_v60 = vpack.c.bf16 %v13487_v7, %v13464_v25  ;;  %v11566_v57 = vld [vmem:[#allocation17 + $0x68] sm:$0xff]   ;;  %v11567_v6 = vld [vmem:[#allocation17 + $0x70] sm:$0xff]   ;;  %v11580_v25 = vld [vmem:[#allocation17 + $0xd8] sm:$0xff]  }
 0x603   :  { %v3121_v41 = vpop.f32.mrb[54].mxu1  ;;  %v11569_v23 = vld [vmem:[#allocation17 + $0x80] sm:$0xff]  }
 0x604   :  { %v3199_v39 = vmax.f32 %v10511_v9, 0.0  ;;  %v10512_v62 = vadd.f32 %v13422_v59, %v3121_v41  ;;  %v3123_v16 = vpop.f32.mrb[55].mxu1  ;;  %3330 = vst.msk [vmem:[#allocation5 + $0x98] sm:$0xff] %vm256_vm0, %v3321_v30  ;;  %v11568_v9 = vld [vmem:[#allocation17 + $0x78] sm:$0xff]   ;;  %v11570_v30 = vld [vmem:[#allocation17 + $0x88] sm:$0xff]   ;;  %v11571_v41 = vld [vmem:[#allocation17 + $0x90] sm:$0xff]  }
 0x605   :  { %v11581_v7 = vld [vmem:[#allocation17 + $0xe0] sm:$0xff]  }
 0x606   :  { %3231 = vst.msk [vmem:[#allocation4 + $0xd0] sm:$0xff] %vm256_vm0, %v3199_v39  ;;  %v3200_v45 = vmax.f32 %v10512_v62, 0.0  ;;  %v11572_v39 = vld [vmem:[#allocation17 + $0x98] sm:$0xff]  }
 0x607   :  { %v3249_v2 = vld [vmem:[#allocation4 + $0xc0] ss:$2 sm:$0xff]  ;;  %v3265_v5 = vld [vmem:[#allocation4 + $0xc1] ss:$2 sm:$0xff] }
 0x608   :  { %3232 = vst.msk [vmem:[#allocation4 + $0xd8] sm:$0xff] %vm256_vm0, %v3200_v45  ;;  %v3306_v19 = vmax.f32 %v3249_v2, %v3265_v5 }
 0x609   :  { %v3126_v15 = vpop.f32.mrb[56].mxu1 }
 0x60a   :  { %v10513_v20 = vadd.f32 %v13422_v59, %v3126_v15  ;;  %v3128_v37 = vpop.f32.mrb[57].mxu1  ;;  %v3335_v15 = vld [vmem:[#allocation5 + $0x37] sm:$0xff] }
 0x60b   :  { %v3129_v43 = vpop.f32.mrb[58].mxu1  ;;  %v3349_v56 = vld [vmem:[#allocation5 + $0x98] sm:$0xff]  ;;  %v13542_v37 = vld [vmem:[#allocation5 + $0x81] sm:$0xff] }
 0x60c   :  { %v3201_v61 = vmax.f32 %v10513_v20, 0.0  ;;  %v10514_v0 = vadd.f32 %v13422_v59, %v3129_v43  ;;  %v3131_v47 = vpop.f32.mrb[59].mxu1  ;;  %v3336_v20 = vld [vmem:[#allocation5 + $0x4f] sm:$0xff]  ;;  %v13552_v5 = vpack.c.bf16 %v13542_v37, %v13489_v8 }
 0x60e   :  { %3233 = vst.msk [vmem:[#allocation4 + $0xe0] sm:$0xff] %vm256_vm0, %v3201_v61  ;;  %v3202_v10 = vmax.f32 %v10514_v0, 0.0  ;;  %v11573_v0 = vld [vmem:[#allocation17 + $0xa0] sm:$0xff]  }
 0x60f   :  { %v3281_v12 = vld [vmem:[#allocation4 + $0xd0] ss:$2 sm:$0xff]  ;;  %v3297_v13 = vld [vmem:[#allocation4 + $0xd1] ss:$2 sm:$0xff] }
 0x610   :  { %v3314_v24 = vmax.f32 %v3281_v12, %v3297_v13  ;;  %3234 = vst.msk [vmem:[#allocation4 + $0xe8] sm:$0xff] %vm256_vm0, %v3202_v10  ;;  %v11574_v10 = vld [vmem:[#allocation17 + $0xa8] sm:$0xff]   ;;  %v11575_v12 = vld [vmem:[#allocation17 + $0xb0] sm:$0xff]   ;;  %v11576_v13 = vld [vmem:[#allocation17 + $0xb8] sm:$0xff]  }
 0x611   :  { %v3134_v31 = vpop.f32.mrb[60].mxu1 }
 0x612   :  { %v10515_v33 = vadd.f32 %v13422_v59, %v3134_v31  ;;  %v3136_v34 = vpop.f32.mrb[61].mxu1  ;;  %v3322_v58 = vmax.f32 %v3306_v19, %v3314_v24  ;;  %v11595_v19 = vld [vmem:[#allocation20 + $0x1c0] sm:$0xff]   ;;  %v11599_v31 = vld [vmem:[#allocation20 + $0x1c8] sm:$0xff]  }
 0x613   :  { %v3137_v11 = vpop.f32.mrb[62].mxu1  ;;  %v11596_v24 = vld [vmem:[#allocation20 + $0x180] sm:$0xff]   ;;  %10221 = vmatprep.subr.bf16.mxu1 %v11595_v19  ;;  %v11604_v19 = vld [vmem:[#allocation20 + $0x190] sm:$0xff]  }
 0x614   :  { %v3203_v36 = vmax.f32 %v10515_v33, 0.0  ;;  %v10516_v40 = vadd.f32 %v13422_v59, %v3137_v11  ;;  %v3139_v28 = vpop.f32.mrb[63].mxu1  ;;  %3331 = vst.msk [vmem:[#allocation5 + $0xb0] sm:$0xff] %vm256_vm0, %v3322_v58  ;;  %10222 = vmatpush3.bf16.msra.mxu1 %v11596_v24  ;;  %v11600_v33 = vld [vmem:[#allocation20 + $0x188] sm:$0xff]  }
 0x615   :  { %10223 = vmatprep.subr.bf16.mxu1 %v11599_v31  ;;  %v11605_v24 = vld [vmem:[#allocation20 + $0x68] sm:$0xff]  }
 0x616   :  { %3235 = vst.msk [vmem:[#allocation4 + $0xf0] sm:$0xff] %vm256_vm0, %v3203_v36  ;;  %v3204_v46 = vmax.f32 %v10516_v40, 0.0  ;;  %v3337_v36 = vld [vmem:[#allocation5 + $0x67] sm:$0xff]  ;;  %v3338_v40 = vld [vmem:[#allocation5 + $0x7f] sm:$0xff] }
 0x617   :  { %v3251_v52 = vld [vmem:[#allocation4 + $0xe0] ss:$2 sm:$0xff]  ;;  %v3267_v53 = vld [vmem:[#allocation4 + $0xe1] ss:$2 sm:$0xff] }
 0x618   :  { %3236 = vst.msk [vmem:[#allocation4 + $0xf8] sm:$0xff] %vm256_vm0, %v3204_v46  ;;  %v3307_v1 = vmax.f32 %v3251_v52, %v3267_v53  ;;  %10224 = vmatpush3.bf16.msra.mxu1 %v11600_v33  ;;  %v11606_v31 = vld [vmem:[#allocation20 + $0x28] sm:$0xff]   ;;  %v11607_v33 = vld [vmem:[#allocation20 + $0x1d8] sm:$0xff]  }
 0x61b   :  { %v3350_v48 = vld [vmem:[#allocation5 + $0xb0] sm:$0xff] }
 0x61c   :  { %v11266_v51 = vpack.i.bf16 %v3350_v48, %v3349_v56  ;;  %v3360_v28 = vld [vmem:[#allocation5 + $0xb1] sm:$0xff] }
 0x61e   :  { %11267 = vrot.lane.b32.xlu1 %v11266_v51, %s12158_s18  ;;  %v3359_v51 = vld [vmem:[#allocation5 + $0x99] sm:$0xff] }
 0x61f   :  { %v3283_v55 = vld [vmem:[#allocation4 + $0xf0] ss:$2 sm:$0xff]  ;;  %v3299_v26 = vld [vmem:[#allocation4 + $0xf1] ss:$2 sm:$0xff]  ;;  %v13565_v52 = vpack.c.bf16 %v3360_v28, %v3359_v51  ;;  %v9935_v49 = vpack.c.bf16 %v3359_v51, %v13542_v37 }
 0x620   :  { %v3315_v59 = vmax.f32 %v3283_v55, %v3299_v26  ;;  %v11598_v37 = vld [vmem:[#allocation20 + $0x18] sm:$0xff]   ;;  %v11617_v51 = vld [vmem:[#allocation20 + $0x80] sm:$0xff]  }
 0x622   :  { %3391 = vrot.lane.b32.xlu1 %v3352_v63, %s12158_s18  ;;  %v3323_v29 = vmax.f32 %v3307_v1, %v3315_v59  ;;  %v3339_v63 = vld [vmem:[#allocation5 + $0x97] sm:$0xff]  ;;  %v3340_v1 = vld [vmem:[#allocation5 + $0xaf] sm:$0xff] }
 0x624   :  { %3332 = vst.msk [vmem:[#allocation5 + $0xc8] sm:$0xff] %vm256_vm0, %v3323_v29 }
 0x62b   :  { %v3351_v21 = vld [vmem:[#allocation5 + $0xc8] sm:$0xff] }
 0x62c   :  { %3389 = vrot.lane.b32.xlu0 %v3351_v21, %s12158_s18 }
 0x631   :  { %v11253_v50 = vpop.permute.xlu0 %11252 }
 0x632   :  { %v11255_v17 = vunpack.i.h.bf16 %v11253_v50  ;;  %v11254_v14 = vunpack.i.l.bf16 %v11253_v50  ;;  %v11578_v50 = vld [vmem:[#allocation17 + $0xc8] sm:$0xff]  }
 0x634   :  { %v3403_v32 = vsel %vm256_vm0, %v3333_v22, %v11254_v14  ;;  %v13526_v42 = vsel %vm256_vm0, %v3334_v27, %v11255_v17  ;;  %v11577_v22 = vld [vmem:[#allocation17 + $0xc0] sm:$0xff]   ;;  %v11579_v17 = vld [vmem:[#allocation17 + $0xd0] sm:$0xff]  }
 0x635   :  { %v9922_v54 = vpack.c.bf16 %v13526_v42, %v3403_v32  ;;  %v11582_v32 = vld [vmem:[#allocation17 + $0xe8] sm:$0xff]  }
 0x637   :  { %3619 = vmatmul.mubr.bf16.vlgmr.msra.gmra.mrb[32].mxu0 %v9922_v54  ;;  %v11583_v54 = vld [vmem:[#allocation17 + $0xf0] sm:$0xff]  }
 0x638   :  { %9468 = vmatprep.mubr.msk.bf16.mxu0 %vm256_vm0, %v13531_v60  ;;  %3791 = vmatpush1.bf16.msra.mxu0 %v11565_v44 }
 0x639   :  { %3792 = vmatprep.subr.bf16.mxu0 %v12176_v38 }
 0x63c   :  { %3793 = vmatpush1.bf16.msra.mxu0 %v11566_v57 }
 0x63d   :  { %3794 = vmatprep.subr.bf16.mxu0 %v12176_v38 }
 0x640   :  { %3795 = vmatpush1.bf16.msra.mxu0 %v11567_v6  ;;  %v11584_v6 = vld [vmem:[#allocation17 + $0xf8] sm:$0xff]  }
 0x641   :  { %3796 = vmatprep.subr.bf16.mxu0 %v12176_v38 }
 0x644   :  { %3797 = vmatpush1.bf16.msra.mxu0 %v11568_v9  ;;  %v11585_v9 = vld [vmem:[#allocation17 + $0x100] sm:$0xff]  }
 0x645   :  { %3798 = vmatprep.subr.bf16.mxu0 %v12176_v38 }
 0x648   :  { %3799 = vmatpush1.bf16.msra.mxu0 %v11569_v23  ;;  %v11586_v23 = vld [vmem:[#allocation17 + $0x108] sm:$0xff]  }
 0x649   :  { %3800 = vmatprep.subr.bf16.mxu0 %v12176_v38 }
 0x64c   :  { %3801 = vmatpush1.bf16.msra.mxu0 %v11570_v30  ;;  %v11587_v30 = vld [vmem:[#allocation17 + $0x110] sm:$0xff]  }
 0x64d   :  { %3802 = vmatprep.subr.bf16.mxu0 %v12176_v38 }
 0x650   :  { %3803 = vmatpush1.bf16.msra.mxu0 %v11571_v41  ;;  %v11258_v62 = vpop.permute.xlu1 %11257  ;;  %v11588_v41 = vld [vmem:[#allocation17 + $0x118] sm:$0xff]  }
 0x651   :  { %3804 = vmatprep.subr.bf16.mxu0 %v12176_v38  ;;  %v11260_v16 = vunpack.i.h.bf16 %v11258_v62  ;;  %v11259_v45 = vunpack.i.l.bf16 %v11258_v62  ;;  %v11591_v62 = vld [vmem:[#allocation20 + $0x48] sm:$0xff]  }
 0x653   :  { %v3405_v43 = vsel %vm256_vm0, %v3335_v15, %v11259_v45  ;;  %v3406_v61 = vsel %vm256_vm0, %v3336_v20, %v11260_v16  ;;  %v11592_v16 = vld [vmem:[#allocation20 + $0x8] sm:$0xff]   ;;  %v11593_v45 = vld [vmem:[#allocation20 + $0x50] sm:$0xff]   ;;  %v11597_v20 = vld [vmem:[#allocation20 + $0x58] sm:$0xff]  }
 0x654   :  { %3805 = vmatpush1.bf16.msra.mxu0 %v11572_v39  ;;  %v13546_v47 = vpack.c.bf16 %v3406_v61, %v3405_v43  ;;  %v9930_v2 = vpack.c.bf16 %v3405_v43, %v13526_v42  ;;  %v3341_v42 = vld [vmem:[#allocation5 + $0xc7] sm:$0xff]  ;;  %v11590_v39 = vld [vmem:[#allocation20] sm:$0xff]  }
 0x655   :  { %3806 = vmatprep.subr.bf16.mxu0 %v12176_v38  ;;  %v11594_v15 = vld [vmem:[#allocation20 + $0x10] sm:$0xff]   ;;  %v11601_v43 = vld [vmem:[#allocation20 + $0x60] sm:$0xff]  }
 0x656   :  { %3627 = vmatmul.mubr.bf16.gmra.mrb[36].mxu0 %v13546_v47 }
 0x657   :  { %9469 = vmatprep.mubr.msk.bf16.mxu0 %vm256_vm0, %v13552_v5 }
 0x658   :  { %3807 = vmatpush1.bf16.msra.mxu0 %v11573_v0 }
 0x659   :  { %3808 = vmatprep.subr.bf16.mxu0 %v12176_v38 }
 0x65c   :  { %3809 = vmatpush1.bf16.msra.mxu0 %v11574_v10 }
 0x65d   :  { %3810 = vmatprep.subr.bf16.mxu0 %v12176_v38 }
 0x660   :  { %3811 = vmatpush1.bf16.msra.mxu0 %v11575_v12  ;;  %v11602_v12 = vld [vmem:[#allocation20 + $0x20] sm:$0xff]  }
 0x661   :  { %3812 = vmatprep.subr.bf16.mxu0 %v12176_v38 }
 0x664   :  { %3813 = vmatpush1.bf16.msra.mxu0 %v11576_v13  ;;  %v11603_v13 = vld [vmem:[#allocation20 + $0x1d0] sm:$0xff]  }
 0x665   :  { %3970 = vmatprep.subr.bf16.mxu0 %v12176_v38  ;;  %10225 = vmatprep.subr.bf16.mxu1 %v11603_v13 }
 0x666   :  { %10226 = vmatpush3.bf16.msra.mxu1 %v11604_v19 }
 0x667   :  { %10227 = vmatprep.subr.bf16.mxu1 %v11607_v33 }
 0x670   :  { %v11263_v34 = vpop.permute.xlu0 %11262 }
 0x671   :  { %v11265_v58 = vunpack.i.h.bf16 %v11263_v34  ;;  %v11264_v11 = vunpack.i.l.bf16 %v11263_v34  ;;  %v11608_v34 = vld [vmem:[#allocation20 + $0x198] sm:$0xff]  }
 0x672   :  { %10228 = vmatpush3.bf16.msra.mxu1 %v11608_v34 }
 0x673   :  { %v3407_v46 = vsel %vm256_vm0, %v3337_v36, %v11264_v11  ;;  %v3408_v56 = vsel %vm256_vm0, %v3338_v40, %v11265_v58  ;;  %v11609_v58 = vld [vmem:[#allocation20 + $0x70] sm:$0xff]   ;;  %v11611_v36 = vld [vmem:[#allocation20 + $0x1e0] sm:$0xff]  }
 0x674   :  { %v13563_v48 = vpack.c.bf16 %v3408_v56, %v3407_v46  ;;  %v9932_v14 = vpack.c.bf16 %v3407_v46, %v3406_v61  ;;  %v3362_v61 = vld [vmem:[#allocation5 + $0xe1] sm:$0xff]  ;;  %v11610_v11 = vld [vmem:[#allocation20 + $0x30] sm:$0xff]   ;;  %10229 = vmatprep.subr.bf16.mxu1 %v11611_v36  ;;  %v11614_v46 = vld [vmem:[#allocation20 + $0x38] sm:$0xff]  }
 0x675   :  { %v11612_v40 = vld [vmem:[#allocation20 + $0x1a0] sm:$0xff]  }
 0x676   :  { %3635 = vmatmul.mubr.bf16.gmra.mrb[40].mxu0 %v13563_v48  ;;  %10230 = vmatpush3.bf16.msra.mxu1 %v11612_v40 }
 0x677   :  { %9470 = vmatprep.mubr.msk.bf16.mxu0 %vm256_vm0, %v13565_v52 }
 0x690   :  { %v11268_v53 = vpop.permute.xlu1 %11267 }
 0x691   :  { %v11270_v55 = vunpack.i.h.bf16 %v11268_v53  ;;  %v11269_v26 = vunpack.i.l.bf16 %v11268_v53  ;;  %v11619_v53 = vld [vmem:[#allocation20 + $0x1b0] sm:$0xff]  }
 0x693   :  { %v3409_v59 = vsel %vm256_vm0, %v3339_v63, %v11269_v26  ;;  %v3410_v29 = vsel %vm256_vm0, %v3340_v1, %v11270_v55  ;;  %v11621_v55 = vld [vmem:[#allocation20 + $0x1f8] sm:$0xff]  }
 0x694   :  { %v13572_v21 = vpack.c.bf16 %v3410_v29, %v3409_v59  ;;  %v9934_v8 = vpack.c.bf16 %v3409_v59, %v3408_v56  ;;  %v11615_v56 = vld [vmem:[#allocation20 + $0x1e8] sm:$0xff]   ;;  %v11622_v26 = vld [vmem:[#allocation20 + $0x1b8] sm:$0xff]  }
 0x695   :  { %10231 = vmatprep.subr.bf16.mxu1 %v11615_v56  ;;  %v13613_v63 = vld [vmem:[#allocation19] ss:$0 sm:$0xff] }
 0x696   :  { %3643 = vmatmul.mubr.bf16.gmra.mrb[44].mxu0 %v13572_v21 }
 0x697   :  { %9492 = vmatprep.mubr.msk.bf16.mxu0 %vm256_vm0, %v9931_v35  ;;  %v13588_v35 = vld [vmem:[#allocation5 + $0xc9] sm:$0xff] }
 0x698   :  { %v9939_v0 = vpack.c.bf16 %v3362_v61, %v13588_v35 }
 0x69e   :  { %3823 = vmatmul.mubr.bf16.vlgmr.msra.gmra.mrb[32].mxu0 %v9930_v2  ;;  %v3390_v27 = vpop.permute.xlu0 %3389  ;;  %v3392_v2 = vpop.permute.xlu1 %3391 }
 0x69f   :  { %3971 = vmatpush1.bf16.msra.mxu0 %v11577_v22  ;;  %9493 = vmatprep.mubr.msk.bf16.mxu0 %vm256_vm0, %v9933_v18  ;;  %v9937_v18 = vpack.c.bf16 %v13588_v35, %v3360_v28  ;;  %v3411_v44 = vsel %vm256_vm0, %v3341_v42, %v3390_v27  ;;  %v11613_v28 = vld [vmem:[#allocation20 + $0x78] sm:$0xff]  }
 0x6a0   :  { %3972 = vmatprep.subr.bf16.mxu0 %v12176_v38  ;;  %v9936_v57 = vpack.c.bf16 %v3411_v44, %v3410_v29 }
 0x6a3   :  { %3973 = vmatpush1.bf16.msra.mxu0 %v11578_v50 }
 0x6a4   :  { %3974 = vmatprep.subr.bf16.mxu0 %v12176_v38 }
 0x6a6   :  { %3831 = vmatmul.mubr.bf16.gmra.mrb[36].mxu0 %v9932_v14 }
 0x6a7   :  { %3975 = vmatpush1.bf16.msra.mxu0 %v11579_v17  ;;  %9494 = vmatprep.mubr.msk.bf16.mxu0 %vm256_vm0, %v9935_v49  ;;  %v13622_v49 = vld [vmem:[#allocation6 + $0x8] sm:$0xff] }
 0x6a8   :  { %3976 = vmatprep.subr.bf16.mxu0 %v12176_v38 }
 0x6ab   :  { %3977 = vmatpush1.bf16.msra.mxu0 %v11580_v25 }
 0x6ac   :  { %3978 = vmatprep.subr.bf16.mxu0 %v12176_v38 }
 0x6ae   :  { %3839 = vmatmul.mubr.bf16.gmra.mrb[40].mxu0 %v9934_v8 }
 0x6af   :  { %3979 = vmatpush1.bf16.msra.mxu0 %v11581_v7  ;;  %9495 = vmatprep.mubr.msk.bf16.mxu0 %vm256_vm0, %v9937_v18 }
 0x6b0   :  { %3980 = vmatprep.subr.bf16.mxu0 %v12176_v38 }
 0x6b3   :  { %3981 = vmatpush1.bf16.msra.mxu0 %v11582_v32  ;;  %v4060_v32 = vld [vmem:[#allocation6 + $0x7] sm:$0xff] }
 0x6b4   :  { %3982 = vmatprep.subr.bf16.mxu0 %v12176_v38 }
 0x6b6   :  { %3847 = vmatmul.mubr.bf16.gmra.mrb[44].mxu0 %v9936_v57 }
 0x6b7   :  { %3983 = vmatpush1.bf16.msra.mxu0 %v11583_v54  ;;  %9510 = vmatprep.mubr.msk.bf16.mxu0 %vm256_vm0, %v13531_v60  ;;  %v11589_v60 = vld [vmem:[#allocation20 + $0x40] sm:$0xff]  }
 0x6b8   :  { %3984 = vmatprep.subr.bf16.mxu0 %v12176_v38 }
 0x6bb   :  { %3985 = vmatpush1.bf16.msra.mxu0 %v11584_v6 }
 0x6bc   :  { %3986 = vmatprep.subr.bf16.mxu0 %v12176_v38 }
 0x6bf   :  { %3987 = vmatpush1.bf16.msra.mxu0 %v11585_v9 }
 0x6c0   :  { %3988 = vmatprep.subr.bf16.mxu0 %v12176_v38 }
 0x6c3   :  { %3989 = vmatpush1.bf16.msra.mxu0 %v11586_v23  ;;  %v11620_v23 = vld [vmem:[#allocation20 + $0x88] sm:$0xff]  }
 0x6c4   :  { %3990 = vmatprep.subr.bf16.mxu0 %v12176_v38 }
 0x6c7   :  { %3991 = vmatpush1.bf16.msra.mxu0 %v11587_v30 }
 0x6c8   :  { %3992 = vmatprep.subr.bf16.mxu0 %v12176_v38 }
 0x6cb   :  { %3993 = vmatpush1.bf16.msra.mxu0 %v11588_v41 }
 0x6cc   :  { %10117 = vmatprep.subr.bf16.mxu0 %v11589_v60 }
 0x6ce   :  { %4003 = vmatmul.mubr.bf16.vlgmr.msra.gmra.mrb[32].mxu0 %v13546_v47  ;;  %v3342_v47 = vld [vmem:[#allocation5 + $0xdf] sm:$0xff] }
 0x6cf   :  { %9511 = vmatprep.mubr.msk.bf16.mxu0 %vm256_vm0, %v13552_v5  ;;  %10118 = vmatpush3.bf16.msra.mxu0 %v11590_v39  ;;  %v3412_v5 = vsel %vm256_vm0, %v3342_v47, %v3392_v2  ;;  %v11624_v2 = vld [vmem:[#allocation20 + $0x98] sm:$0xff]  }
 0x6d0   :  { %10119 = vmatprep.subr.bf16.mxu0 %v11591_v62  ;;  %v9938_v10 = vpack.c.bf16 %v3412_v5, %v3411_v44 }
 0x6d3   :  { %10120 = vmatpush3.bf16.msra.mxu0 %v11592_v16  ;;  %v11623_v16 = vld [vmem:[#allocation20 + $0x90] sm:$0xff]  }
 0x6d4   :  { %10121 = vmatprep.subr.bf16.mxu0 %v11593_v45 }
 0x6d6   :  { %4011 = vmatmul.mubr.bf16.gmra.mrb[36].mxu0 %v13563_v48  ;;  %v11616_v48 = vld [vmem:[#allocation20 + $0x1a8] sm:$0xff]  }
 0x6d7   :  { %9512 = vmatprep.mubr.msk.bf16.mxu0 %vm256_vm0, %v13565_v52  ;;  %10122 = vmatpush3.bf16.msra.mxu0 %v11594_v15  ;;  %v11618_v52 = vld [vmem:[#allocation20 + $0x1f0] sm:$0xff]  }
 0x6d8   :  { %10123 = vmatprep.subr.bf16.mxu0 %v11597_v20  ;;  %10232 = vmatpush3.bf16.msra.mxu1 %v11616_v48 }
 0x6d9   :  { %10233 = vmatprep.subr.bf16.mxu1 %v11618_v52  ;;  %v4080_v52 = vld [vmem:[#allocation6 + $0x9] sm:$0xff] }
 0x6db   :  { %10124 = vmatpush3.bf16.msra.mxu0 %v11598_v37 }
 0x6dc   :  { %10125 = vmatprep.subr.bf16.mxu0 %v11601_v43  ;;  %10234 = vmatpush3.bf16.msra.mxu1 %v11619_v53 }
 0x6dd   :  { %10235 = vmatprep.subr.bf16.mxu1 %v11621_v55 }
 0x6de   :  { %4019 = vmatmul.mubr.bf16.gmra.mrb[40].mxu0 %v13572_v21 }
 0x6df   :  { %9513 = vmatprep.mubr.msk.bf16.mxu0 %vm256_vm0, %v9939_v0  ;;  %10126 = vmatpush3.bf16.msra.mxu0 %v11602_v12 }
 0x6e0   :  { %10127 = vmatprep.subr.bf16.mxu0 %v11605_v24  ;;  %10236 = vmatpush3.bf16.msra.mxu1 %v11622_v26  ;;  %v11625_v24 = vld [vmem:[#allocation20 + $0xa0] sm:$0xff]  }
 0x6e3   :  { %10128 = vmatpush3.bf16.msra.mxu0 %v11606_v31 }
 0x6e4   :  { %10129 = vmatprep.subr.bf16.mxu0 %v11609_v58 }
 0x6e6   :  { %4027 = vmatmul.mubr.bf16.gmra.mrb[44].mxu0 %v9938_v10 }
 0x6e7   :  { %10130 = vmatpush3.bf16.msra.mxu0 %v11610_v11 }
 0x6e8   :  { %10131 = vmatprep.subr.bf16.mxu0 %v11613_v28 }
 0x6eb   :  { %10132 = vmatpush3.bf16.msra.mxu0 %v11614_v46  ;;  %v11626_v46 = vld [vmem:[#allocation20 + $0xa8] sm:$0xff]  }
 0x6ec   :  { %10381 = vmatprep.subr.bf16.mxu0 %v11617_v51 }
 0x7a1   :  { %v4004_v1 = vpop.f32.mrb[32].mxu0 }
 0x7a2   :  { %v10517_v59 = vadd.f32 %v13613_v63, %v4004_v1  ;;  %v4006_v29 = vpop.f32.mrb[33].mxu0  ;;  %v11628_v1 = vld [vmem:[#allocation20 + $0xb8] sm:$0xff]  }
 0x7a3   :  { %v4007_v21 = vpop.f32.mrb[34].mxu0 }
 0x7a4   :  { %v13616_v22 = vmax.f32 %v10517_v59, 0.0  ;;  %v10518_v50 = vadd.f32 %v13613_v63, %v4007_v21  ;;  %v4009_v17 = vpop.f32.mrb[35].mxu0  ;;  %v11629_v21 = vld [vmem:[#allocation20 + $0x100] sm:$0xff]  }
 0x7a6   :  { %4052 = vst [vmem:[#allocation6 + $0x20] sm:$0xff] %v13616_v22  ;;  %v13620_v14 = vmax.f32 %v10518_v50, 0.0  ;;  %v9941_v25 = vpack.c.bf16 %v13616_v22, %v13622_v49 }
 0x7a8   :  { %4053 = vst [vmem:[#allocation6 + $0x38] sm:$0xff] %v13620_v14  ;;  %4417 = vmatprep.mubr.bf16.mxu0 %v9941_v25  ;;  %v9953_v35 = vpack.c.bf16 %v13620_v14, %v13616_v22  ;;  %v4069_v25 = vld [vmem:[#allocation6 + $0xdf] sm:$0xff]  ;;  %v11645_v22 = vld [vmem:[#allocation20 + $0x140] sm:$0xff]  }
 0x7a9   :  { %v4012_v7 = vpop.f32.mrb[36].mxu0 }
 0x7aa   :  { %v10519_v8 = vadd.f32 %v13613_v63, %v4012_v7  ;;  %v4014_v18 = vpop.f32.mrb[37].mxu0 }
 0x7ab   :  { %v4015_v27 = vpop.f32.mrb[38].mxu0  ;;  %v11630_v18 = vld [vmem:[#allocation20 + $0xc0] sm:$0xff]  }
 0x7ac   :  { %v13630_v42 = vmax.f32 %v10519_v8, 0.0  ;;  %v10520_v44 = vadd.f32 %v13613_v63, %v4015_v27  ;;  %v4017_v54 = vpop.f32.mrb[39].mxu0 }
 0x7ad   :  { %v13633_v57 = vld [vmem:[#allocation6 + $0x1f] sm:$0xff] }
 0x7ae   :  { %4054 = vst [vmem:[#allocation6 + $0x50] sm:$0xff] %v13630_v42  ;;  %v13636_v6 = vmax.f32 %v10520_v44, 0.0  ;;  %v9940_v9 = vpack.c.bf16 %v13633_v57, %v4060_v32  ;;  %v9944_v30 = vpack.c.bf16 %v13630_v42, %v13620_v14  ;;  %v13680_v53 = vld [vmem:[#allocation6 + $0x21] sm:$0xff]  ;;  %v11631_v44 = vld [vmem:[#allocation20 + $0x108] sm:$0xff]  }
 0x7af   :  { %v13648_v43 = vld [vmem:[#allocation6 + $0x37] sm:$0xff]  ;;  %v9942_v59 = vpack.c.bf16 %v13680_v53, %v4080_v52  ;;  %v4089_v52 = vld [vmem:[#allocation6 + $0xe1] sm:$0xff] }
 0x7b0   :  { %4055 = vst [vmem:[#allocation6 + $0x68] sm:$0xff] %v13636_v6  ;;  %4418 = vmatmul.mubr.bf16.vlgmr.msra.gmra.mrb[48].mxu0 %v9940_v9  ;;  %5127 = vmatprep.mubr.bf16.mxu1 %v9944_v30  ;;  %v9956_v41 = vpack.c.bf16 %v13636_v6, %v13630_v42  ;;  %v13697_v8 = vld [vmem:[#allocation6 + $0x39] sm:$0xff]  ;;  %v9952_v14 = vpack.c.bf16 %v13648_v43, %v13633_v57  ;;  %v11649_v57 = vld [vmem:[#allocation20 + $0x160] sm:$0xff]  }
 0x7b1   :  { %v4020_v60 = vpop.f32.mrb[40].mxu0  ;;  %10382 = vmatpush3.bf16.msra.mxu0 %v11617_v51  ;;  %4425 = vmatprep.mubr.bf16.mxu0 %v9944_v30  ;;  %v11627_v51 = vld [vmem:[#allocation20 + $0xb0] sm:$0xff]   ;;  %v11632_v9 = vld [vmem:[#allocation20 + $0xc8] sm:$0xff]  }
 0x7b2   :  { %v10521_v39 = vadd.f32 %v13613_v63, %v4020_v60  ;;  %v4022_v62 = vpop.f32.mrb[41].mxu0  ;;  %10383 = vmatprep.subr.bf16.mxu0 %v11620_v23 }
 0x7b3   :  { %v4023_v45 = vpop.f32.mrb[42].mxu0 }
 0x7b4   :  { %v13645_v15 = vmax.f32 %v10521_v39, 0.0  ;;  %v10522_v20 = vadd.f32 %v13613_v63, %v4023_v45  ;;  %v4025_v37 = vpop.f32.mrb[43].mxu0  ;;  %v11634_v39 = vld [vmem:[#allocation20 + $0xd0] sm:$0xff]   ;;  %v11636_v45 = vld [vmem:[#allocation20 + $0xd8] sm:$0xff]  }
 0x7b5   :  { %10384 = vmatpush3.bf16.msra.mxu0 %v11620_v23  ;;  %v13650_v61 = vld [vmem:[#allocation6 + $0x4f] sm:$0xff]  ;;  %v11633_v23 = vld [vmem:[#allocation20 + $0x110] sm:$0xff]  }
 0x7b6   :  { %4056 = vst [vmem:[#allocation6 + $0x80] sm:$0xff] %v13645_v15  ;;  %v13653_v0 = vmax.f32 %v10522_v20, 0.0  ;;  %10385 = vmatprep.subr.bf16.mxu0 %v11623_v16  ;;  %v9943_v47 = vpack.c.bf16 %v13650_v61, %v13648_v43  ;;  %v9947_v5 = vpack.c.bf16 %v13645_v15, %v13636_v6  ;;  %v13691_v50 = vld [vmem:[#allocation6 + $0x51] sm:$0xff]  ;;  %v11652_v43 = vld [vmem:[#allocation20 + $0x178] sm:$0xff]  }
 0x7b7   :  { %v13666_v11 = vld [vmem:[#allocation6 + $0x67] sm:$0xff]  ;;  %v11650_v6 = vld [vmem:[#allocation20 + $0x168] sm:$0xff]  }
 0x7b8   :  { %4057 = vst [vmem:[#allocation6 + $0x98] sm:$0xff] %v13653_v0  ;;  %4426 = vmatmul.mubr.bf16.gmra.mrb[52].mxu0 %v9943_v47  ;;  %5128 = vmatmul.mubr.bf16.vlgmr.msra.gmra.mrb[64].mxu1 %v9943_v47  ;;  %v9959_v10 = vpack.c.bf16 %v13653_v0, %v13645_v15  ;;  %v13704_v32 = vld [vmem:[#allocation6 + $0x69] sm:$0xff]  ;;  %v11639_v47 = vld [vmem:[#allocation20 + $0x128] sm:$0xff]  }
 0x7b9   :  { %v4028_v12 = vpop.f32.mrb[44].mxu0  ;;  %10386 = vmatpush3.bf16.msra.mxu0 %v11623_v16  ;;  %4433 = vmatprep.mubr.bf16.mxu0 %v9947_v5  ;;  %v11635_v16 = vld [vmem:[#allocation20 + $0x118] sm:$0xff]   ;;  %v11637_v20 = vld [vmem:[#allocation20 + $0x120] sm:$0xff]  }
 0x7ba   :  { %v10523_v13 = vadd.f32 %v13613_v63, %v4028_v12  ;;  %v4030_v19 = vpop.f32.mrb[45].mxu0  ;;  %10387 = vmatprep.subr.bf16.mxu0 %v11624_v2  ;;  %5135 = vmatprep.mubr.bf16.mxu1 %v9947_v5  ;;  %v11638_v37 = vld [vmem:[#allocation20 + $0xe0] sm:$0xff]   ;;  %v11641_v5 = vld [vmem:[#allocation20 + $0x130] sm:$0xff]  }
 0x7bb   :  { %v4031_v31 = vpop.f32.mrb[46].mxu0  ;;  %v11642_v12 = vld [vmem:[#allocation20 + $0xf0] sm:$0xff]   ;;  %v11644_v19 = vld [vmem:[#allocation20 + $0xf8] sm:$0xff]  }
 0x7bc   :  { %v13663_v33 = vmax.f32 %v10523_v13, 0.0  ;;  %v10524_v34 = vadd.f32 %v13613_v63, %v4031_v31  ;;  %v4033_v58 = vpop.f32.mrb[47].mxu0  ;;  %v11643_v13 = vld [vmem:[#allocation20 + $0x138] sm:$0xff]   ;;  %v9955_v31 = vpack.c.bf16 %v13666_v11, %v13650_v61  ;;  %v9954_v61 = vpack.c.bf16 %v13697_v8, %v13680_v53 }
 0x7bd   :  { %10388 = vmatpush3.bf16.msra.mxu0 %v11624_v2  ;;  %v13668_v36 = vld [vmem:[#allocation6 + $0x7f] sm:$0xff]  ;;  %v11640_v2 = vld [vmem:[#allocation20 + $0xe8] sm:$0xff]  }
 0x7be   :  { %4058 = vst [vmem:[#allocation6 + $0xb0] sm:$0xff] %v13663_v33  ;;  %v13671_v40 = vmax.f32 %v10524_v34, 0.0  ;;  %10389 = vmatprep.subr.bf16.mxu0 %v11625_v24  ;;  %v9946_v28 = vpack.c.bf16 %v13668_v36, %v13666_v11  ;;  %v9950_v56 = vpack.c.bf16 %v13663_v33, %v13653_v0  ;;  %v13695_v7 = vld [vmem:[#allocation6 + $0x81] sm:$0xff]  ;;  %v11653_v0 = vld [vmem:[#allocation20 + $0x200] sm:$0xff]  }
 0x7bf   :  { %v13682_v55 = vld [vmem:[#allocation6 + $0x97] sm:$0xff]  ;;  %v13708_v54 = vpack.c.bf16 %v13695_v7, %v13704_v32  ;;  %v11648_v34 = vld [vmem:[#allocation20 + $0x158] sm:$0xff]  }
 0x7c0   :  { %4059 = vst [vmem:[#allocation6 + $0xc8] sm:$0xff] %v13671_v40  ;;  %4434 = vmatmul.mubr.bf16.gmra.mrb[56].mxu0 %v9946_v28  ;;  %5136 = vmatmul.mubr.bf16.gmra.mrb[68].mxu1 %v9946_v28  ;;  %v9962_v48 = vpack.c.bf16 %v13671_v40, %v13663_v33  ;;  %v9965_v29 = vpack.c.bf16 %v13622_v49, %v13671_v40  ;;  %v13715_v60 = vld [vmem:[#allocation6 + $0x99] sm:$0xff]  ;;  %v11656_v28 = vld [vmem:[#allocation20 + $0x218] sm:$0xff]  }
 0x7c1   :  { %10390 = vmatpush3.bf16.msra.mxu0 %v11625_v24  ;;  %4441 = vmatprep.mubr.bf16.mxu0 %v9950_v56  ;;  %v13701_v49 = vpack.c.bf16 %v13691_v50, %v13697_v8  ;;  %v11647_v24 = vld [vmem:[#allocation20 + $0x150] sm:$0xff]   ;;  %v9958_v42 = vpack.c.bf16 %v13682_v55, %v13668_v36  ;;  %v11654_v33 = vld [vmem:[#allocation20 + $0x208] sm:$0xff]   ;;  %v9960_v58 = vpack.c.bf16 %v13715_v60, %v13695_v7 }
 0x7c2   :  { %10391 = vmatprep.subr.bf16.mxu0 %v11626_v46  ;;  %5143 = vmatprep.mubr.bf16.mxu1 %v9950_v56  ;;  %v11655_v11 = vld [vmem:[#allocation20 + $0x210] sm:$0xff]   ;;  %v11658_v56 = vld [vmem:[#allocation20 + $0x228] sm:$0xff]  }
 0x7c3   :  { %v11678_v7 = vld [vmem:[#allocation23 + $0x54] ss:$8 sps:$4 sm:$0xff]   ;;  %v11676_v8 = vld [vmem:[#allocation23 + $0x50] ss:$8 sps:$4 sm:$0xff]  }
 0x7c5   :  { %10392 = vmatpush3.bf16.msra.mxu0 %v11626_v46  ;;  %v13684_v26 = vld [vmem:[#allocation6 + $0xaf] sm:$0xff] }
 0x7c6   :  { %10393 = vmatprep.subr.bf16.mxu0 %v11627_v51  ;;  %v9949_v63 = vpack.c.bf16 %v13684_v26, %v13682_v55  ;;  %v13713_v30 = vld [vmem:[#allocation6 + $0xb1] sm:$0xff] }
 0x7c7   :  { %v13693_v17 = vld [vmem:[#allocation6 + $0xc7] sm:$0xff]  ;;  %v13719_v62 = vpack.c.bf16 %v13713_v30, %v13715_v60 }
 0x7c8   :  { %4442 = vmatmul.mubr.bf16.gmra.mrb[60].mxu0 %v9949_v63  ;;  %5144 = vmatmul.mubr.bf16.gmra.mrb[72].mxu1 %v9949_v63  ;;  %v9964_v27 = vpack.c.bf16 %v4069_v25, %v13693_v17  ;;  %v9961_v15 = vpack.c.bf16 %v13693_v17, %v13684_v26  ;;  %v4088_v36 = vld [vmem:[#allocation6 + $0xc9] sm:$0xff]  ;;  %v11682_v60 = vld [vmem:[#allocation23 + $0x70] ss:$8 sps:$4 sm:$0xff]  }
 0x7c9   :  { %10394 = vmatpush3.bf16.msra.mxu0 %v11627_v51  ;;  %10397 = vmatprep.mubr.bf16.mxu0 %v9942_v59  ;;  %v9963_v40 = vpack.c.bf16 %v4088_v36, %v13713_v30  ;;  %v11657_v46 = vld [vmem:[#allocation20 + $0x220] sm:$0xff]   ;;  %v11660_v51 = vld [vmem:[#allocation20 + $0x238] sm:$0xff]   ;;  %v9966_v53 = vpack.c.bf16 %v4089_v52, %v4088_v36 }
 0x7ca   :  { %5151 = vmatprep.mubr.bf16.mxu1 %v9965_v29  ;;  %10395 = vmatprep.subr.bf16.mxu0 %v11628_v1  ;;  %v11661_v55 = vld [vmem:[#allocation23] ss:$8 sps:$4 sm:$0xff]   ;;  %v11663_v26 = vld [vmem:[#allocation23 + $0x4] ss:$8 sps:$4 sm:$0xff]   ;;  %v11666_v63 = vld [vmem:[#allocation23 + $0x14] ss:$8 sps:$4 sm:$0xff]  }
 0x7cb   :  { %5353 = vmatprep.subr.bf16.mxu1 %v11663_v26  ;;  %v11669_v59 = vld [vmem:[#allocation23 + $0x24] ss:$8 sps:$4 sm:$0xff]   ;;  %v11667_v29 = vld [vmem:[#allocation23 + $0x20] ss:$8 sps:$4 sm:$0xff]   ;;  %v11684_v30 = vld [vmem:[#allocation23 + $0x74] ss:$8 sps:$4 sm:$0xff]  }
 0x7cc   :  { %5354 = vmatpush1.bf16.msra.mxu1 %v11661_v55  ;;  %v11675_v17 = vld [vmem:[#allocation23 + $0x44] ss:$8 sps:$4 sm:$0xff]   ;;  %v11673_v25 = vld [vmem:[#allocation23 + $0x40] ss:$8 sps:$4 sm:$0xff]  }
 0x7cd   :  { %10396 = vmatpush3.bf16.msra.mxu0 %v11628_v1  ;;  %v11664_v1 = vld [vmem:[#allocation23 + $0x10] ss:$8 sps:$4 sm:$0xff]   ;;  %5355 = vmatprep.subr.bf16.mxu1 %v11666_v63 }
 0x7ce   :  { %10169 = vmatprep.subr.bf16.mxu0 %v11629_v21  ;;  %v11672_v21 = vld [vmem:[#allocation23 + $0x34] ss:$8 sps:$4 sm:$0xff]  }
 0x7d0   :  { %10398 = vmatmul.mubr.bf16.vlgmr.msra.gmra.mrb[64].mxu0 %v13701_v49  ;;  %5152 = vmatmul.mubr.bf16.gmra.mrb[76].mxu1 %v9964_v27 }
 0x7d1   :  { %10170 = vmatpush3.bf16.msra.mxu0 %v11630_v18  ;;  %10401 = vmatprep.mubr.bf16.mxu0 %v13708_v54 }
 0x7d2   :  { %10171 = vmatprep.subr.bf16.mxu0 %v11631_v44  ;;  %5385 = vmatprep.mubr.bf16.mxu1 %v12176_v38 }
 0x7d3   :  { %5356 = vmatpush1.bf16.msra.mxu1 %v11664_v1  ;;  %v9550_v1 = vld [vmem:[#allocation22] ss:$0 sm:$0xff] }
 0x7d4   :  { %5357 = vmatprep.subr.bf16.mxu1 %v11669_v59 }
 0x7d5   :  { %10172 = vmatpush3.bf16.msra.mxu0 %v11632_v9 }
 0x7d6   :  { %10173 = vmatprep.subr.bf16.mxu0 %v11633_v23 }
 0x7d7   :  { %5358 = vmatpush1.bf16.msra.mxu1 %v11667_v29 }
 0x7d8   :  { %10402 = vmatmul.mubr.bf16.gmra.mrb[68].mxu0 %v13719_v62  ;;  %5359 = vmatprep.subr.bf16.mxu1 %v11672_v21 }
 0x7d9   :  { %10174 = vmatpush3.bf16.msra.mxu0 %v11634_v39  ;;  %4784 = vmatprep.mubr.bf16.mxu0 %v9953_v35  ;;  %v11646_v35 = vld [vmem:[#allocation20 + $0x148] sm:$0xff]  }
 0x7da   :  { %10175 = vmatprep.subr.bf16.mxu0 %v11635_v16 }
 0x7dd   :  { %10176 = vmatpush3.bf16.msra.mxu0 %v11636_v45 }
 0x7de   :  { %10177 = vmatprep.subr.bf16.mxu0 %v11637_v20 }
 0x7e1   :  { %10178 = vmatpush3.bf16.msra.mxu0 %v11638_v37 }
 0x7e2   :  { %10179 = vmatprep.subr.bf16.mxu0 %v11639_v47 }
 0x7e5   :  { %10180 = vmatpush3.bf16.msra.mxu0 %v11640_v2 }
 0x7e6   :  { %10181 = vmatprep.subr.bf16.mxu0 %v11641_v5 }
 0x7e9   :  { %10182 = vmatpush3.bf16.msra.mxu0 %v11642_v12 }
 0x7ea   :  { %10183 = vmatprep.subr.bf16.mxu0 %v11643_v13 }
 0x7ed   :  { %10184 = vmatpush3.bf16.msra.mxu0 %v11644_v19 }
 0x7ee   :  { %10405 = vmatprep.subr.bf16.mxu0 %v11645_v22 }
 0x7f0   :  { %4785 = vmatmul.mubr.bf16.vlgmr.msra.gmra.mrb[72].mxu0 %v9952_v14 }
 0x7f1   :  { %4792 = vmatprep.mubr.bf16.mxu0 %v9956_v41  ;;  %10406 = vmatpush3.bf16.msra.mxu0 %v11645_v22  ;;  %v11651_v41 = vld [vmem:[#allocation20 + $0x170] sm:$0xff]  }
 0x7f2   :  { %10407 = vmatprep.subr.bf16.mxu0 %v11646_v35 }
 0x7f5   :  { %10408 = vmatpush3.bf16.msra.mxu0 %v11646_v35 }
 0x7f6   :  { %10409 = vmatprep.subr.bf16.mxu0 %v11647_v24 }
 0x7f8   :  { %4793 = vmatmul.mubr.bf16.gmra.mrb[76].mxu0 %v9955_v31 }
 0x7f9   :  { %4800 = vmatprep.mubr.bf16.mxu0 %v9959_v10  ;;  %10410 = vmatpush3.bf16.msra.mxu0 %v11647_v24  ;;  %v9957_v10 = vpack.c.bf16 %v13704_v32, %v13691_v50  ;;  %v11670_v50 = vld [vmem:[#allocation23 + $0x30] ss:$8 sps:$4 sm:$0xff]   ;;  %v11679_v32 = vld [vmem:[#allocation23 + $0x60] ss:$8 sps:$4 sm:$0xff]  }
 0x7fa   :  { %10411 = vmatprep.subr.bf16.mxu0 %v11648_v34  ;;  %5360 = vmatpush1.bf16.msra.mxu1 %v11670_v50 }
 0x7fb   :  { %5361 = vmatprep.subr.bf16.mxu1 %v11675_v17 }
 0x7fd   :  { %10412 = vmatpush3.bf16.msra.mxu0 %v11648_v34 }
 0x7fe   :  { %10413 = vmatprep.subr.bf16.mxu0 %v11649_v57  ;;  %5362 = vmatpush1.bf16.msra.mxu1 %v11673_v25 }
 0x7ff   :  { %5363 = vmatprep.subr.bf16.mxu1 %v11678_v7 }
 0x800   :  { %4801 = vmatmul.mubr.bf16.gmra.mrb[80].mxu0 %v9958_v42 }
 0x801   :  { %4808 = vmatprep.mubr.bf16.mxu0 %v9962_v48  ;;  %10414 = vmatpush3.bf16.msra.mxu0 %v11649_v57  ;;  %v11659_v48 = vld [vmem:[#allocation20 + $0x230] sm:$0xff]  }
 0x802   :  { %10415 = vmatprep.subr.bf16.mxu0 %v11650_v6  ;;  %5364 = vmatpush1.bf16.msra.mxu1 %v11676_v8 }
 0x805   :  { %10416 = vmatpush3.bf16.msra.mxu0 %v11650_v6 }
 0x806   :  { %10417 = vmatprep.subr.bf16.mxu0 %v11651_v41 }
 0x808   :  { %4809 = vmatmul.mubr.bf16.gmra.mrb[84].mxu0 %v9961_v15 }
 0x809   :  { %10418 = vmatpush3.bf16.msra.mxu0 %v11651_v41  ;;  %10421 = vmatprep.mubr.bf16.mxu0 %v9954_v61 }
 0x80a   :  { %10419 = vmatprep.subr.bf16.mxu0 %v11652_v43 }
 0x80d   :  { %10420 = vmatpush3.bf16.msra.mxu0 %v11652_v43 }
 0x80e   :  { %10429 = vmatprep.subr.bf16.mxu0 %v11653_v0 }
 0x810   :  { %10422 = vmatmul.mubr.bf16.vlgmr.msra.gmra.mrb[64].mxu0 %v9957_v10 }
 0x811   :  { %10425 = vmatprep.mubr.bf16.mxu0 %v9960_v58  ;;  %10430 = vmatpush3.bf16.msra.mxu0 %v11653_v0 }
 0x812   :  { %10431 = vmatprep.subr.bf16.mxu0 %v11654_v33 }
 0x815   :  { %10432 = vmatpush3.bf16.msra.mxu0 %v11654_v33 }
 0x816   :  { %10433 = vmatprep.subr.bf16.mxu0 %v11655_v11 }
 0x818   :  { %10426 = vmatmul.mubr.bf16.gmra.mrb[68].mxu0 %v9963_v40 }
 0x819   :  { %10434 = vmatpush3.bf16.msra.mxu0 %v11655_v11  ;;  %10445 = vmatprep.mubr.bf16.mxu0 %v13701_v49  ;;  %v11681_v49 = vld [vmem:[#allocation23 + $0x64] ss:$8 sps:$4 sm:$0xff]  }
 0x81a   :  { %10435 = vmatprep.subr.bf16.mxu0 %v11656_v28  ;;  %5365 = vmatprep.subr.bf16.mxu1 %v11681_v49 }
 0x81b   :  { %5366 = vmatpush1.bf16.msra.mxu1 %v11679_v32 }
 0x81c   :  { %5367 = vmatprep.subr.bf16.mxu1 %v11684_v30 }
 0x81d   :  { %10436 = vmatpush3.bf16.msra.mxu0 %v11656_v28 }
 0x81e   :  { %10437 = vmatprep.subr.bf16.mxu0 %v11657_v46 }
 0x81f   :  { %5368 = vmatpush1.bf16.msra.mxu1 %v11682_v60 }
 0x820   :  { %6707 = vmatprep.subr.bf16.mxu1 %v12176_v38 }
 0x821   :  { %10438 = vmatpush3.bf16.msra.mxu0 %v11657_v46 }
 0x822   :  { %10439 = vmatprep.subr.bf16.mxu0 %v11658_v56 }
 0x825   :  { %10440 = vmatpush3.bf16.msra.mxu0 %v11658_v56 }
 0x826   :  { %10441 = vmatprep.subr.bf16.mxu0 %v11659_v48 }
 0x829   :  { %10442 = vmatpush3.bf16.msra.mxu0 %v11659_v48 }
 0x82a   :  { %10443 = vmatprep.subr.bf16.mxu0 %v11660_v51 }
 0x82d   :  { %10444 = vmatpush3.bf16.msra.mxu0 %v11660_v51 }
 0x82e   :  { %5775 = vmatprep.subr.bf16.mxu0 %v12176_v38 }
 0x830   :  { %10446 = vmatmul.mubr.bf16.vlgmr.msra.gmra.mrb[64].mxu0 %v13708_v54 }
 0x831   :  { %10449 = vmatprep.mubr.bf16.mxu0 %v13719_v62 }
 0x838   :  { %10450 = vmatmul.mubr.bf16.gmra.mrb[68].mxu0 %v9966_v53 }
 0x883   :  { %v10133_v18 = vpop.f32.mrb[48].mxu0 }
 0x884   :  { %v10134_v27 = vpop.f32.mrb[49].mxu0 }
 0x885   :  { %v10135_v44 = vadd.f32 %v10134_v27, %v10133_v18  ;;  %v10136_v54 = vpop.f32.mrb[50].mxu0 }
 0x886   :  { %v10137_v9 = vpop.f32.mrb[51].mxu0 }
 0x887   :  { %v10138_v23 = vadd.f32 %v10137_v9, %v10136_v54  ;;  %v10529_v21 = vadd.f32 %v10135_v44, %v9550_v1 }
 0x889   :  { %v10537_v7 = vadd.f32 %v10138_v23, %v9550_v1 }
 0x88b   :  { %v10139_v39 = vpop.f32.mrb[52].mxu0  ;;  %v10237_v62 = vpop.f32.mrb[64].mxu1 }
 0x88c   :  { %v10140_v16 = vpop.f32.mrb[53].mxu0  ;;  %v10238_v45 = vpop.f32.mrb[65].mxu1 }
 0x88d   :  { %v10141_v20 = vadd.f32 %v10140_v16, %v10139_v39  ;;  %v10239_v37 = vadd.f32 %v10238_v45, %v10237_v62  ;;  %v10142_v47 = vpop.f32.mrb[54].mxu0  ;;  %v10240_v2 = vpop.f32.mrb[66].mxu1 }
 0x88e   :  { %v10143_v5 = vpop.f32.mrb[55].mxu0  ;;  %v10241_v12 = vpop.f32.mrb[67].mxu1 }
 0x88f   :  { %v10144_v13 = vadd.f32 %v10143_v5, %v10142_v47  ;;  %v10242_v19 = vadd.f32 %v10241_v12, %v10240_v2  ;;  %v10525_v30 = vadd.f32 %v10141_v20, %v9550_v1 }
 0x891   :  { %v10533_v16 = vadd.f32 %v10144_v13, %v9550_v1 }
 0x893   :  { %v10145_v22 = vpop.f32.mrb[56].mxu0  ;;  %v10243_v14 = vpop.f32.mrb[68].mxu1 }
 0x894   :  { %v10146_v35 = vpop.f32.mrb[57].mxu0  ;;  %v10244_v24 = vpop.f32.mrb[69].mxu1 }
 0x895   :  { %v10147_v31 = vadd.f32 %v10146_v35, %v10145_v22  ;;  %v10245_v34 = vadd.f32 %v10244_v24, %v10243_v14  ;;  %v10148_v57 = vpop.f32.mrb[58].mxu0  ;;  %v10246_v42 = vpop.f32.mrb[70].mxu1 }
 0x896   :  { %v10149_v6 = vpop.f32.mrb[59].mxu0  ;;  %v10247_v41 = vpop.f32.mrb[71].mxu1 }
 0x897   :  { %v10150_v15 = vadd.f32 %v10149_v6, %v10148_v57  ;;  %v10248_v43 = vadd.f32 %v10247_v41, %v10246_v42  ;;  %v10545_v23 = vadd.f32 %v10147_v31, %v9550_v1 }
 0x89b   :  { %v10151_v61 = vpop.f32.mrb[60].mxu0  ;;  %v10249_v0 = vpop.f32.mrb[72].mxu1 }
 0x89c   :  { %v10152_v10 = vpop.f32.mrb[61].mxu0  ;;  %v10250_v33 = vpop.f32.mrb[73].mxu1 }
 0x89d   :  { %v10153_v58 = vadd.f32 %v10152_v10, %v10151_v61  ;;  %v10251_v11 = vadd.f32 %v10250_v33, %v10249_v0  ;;  %v10154_v36 = vpop.f32.mrb[62].mxu0  ;;  %v10252_v40 = vpop.f32.mrb[74].mxu1 }
 0x89e   :  { %v10155_v28 = vpop.f32.mrb[63].mxu0  ;;  %v10253_v46 = vpop.f32.mrb[75].mxu1 }
 0x89f   :  { %v10156_v56 = vadd.f32 %v10155_v28, %v10154_v36  ;;  %v10254_v48 = vadd.f32 %v10253_v46, %v10252_v40  ;;  %v10541_v13 = vadd.f32 %v10153_v58, %v9550_v1 }
 0x8a3   :  { %v10255_v51 = vpop.f32.mrb[76].mxu1 }
 0x8a4   :  { %v10256_v52 = vpop.f32.mrb[77].mxu1 }
 0x8a5   :  { %v10257_v53 = vadd.f32 %v10256_v52, %v10255_v51  ;;  %v10258_v55 = vpop.f32.mrb[78].mxu1 }
 0x8a6   :  { %v10259_v26 = vpop.f32.mrb[79].mxu1 }
 0x8a7   :  { %v10260_v63 = vadd.f32 %v10259_v26, %v10258_v55 }
 0x8c3   :  { %v10185_v59 = vpop.f32.mrb[72].mxu0 }
 0x8c4   :  { %v10186_v29 = vpop.f32.mrb[73].mxu0 }
 0x8c5   :  { %v10187_v50 = vadd.f32 %v10186_v29, %v10185_v59  ;;  %v10188_v17 = vpop.f32.mrb[74].mxu0 }
 0x8c6   :  { %v10189_v25 = vpop.f32.mrb[75].mxu0 }
 0x8c7   :  { %v10530_v8 = vadd.f32 %v10529_v21, %v10187_v50  ;;  %v10190_v18 = vadd.f32 %v10189_v25, %v10188_v17 }
 0x8c9   :  { %v10538_v49 = vadd.f32 %v10537_v7, %v10190_v18  ;;  %v10531_v27 = vadd.f32 %v10530_v8, %v10239_v37  ;;  %v10553_v37 = vadd.f32 %v10150_v15, %v9550_v1 }
 0x8cb   :  { %v10191_v32 = vpop.f32.mrb[76].mxu0  ;;  %v10539_v54 = vadd.f32 %v10538_v49, %v10242_v19 }
 0x8cc   :  { %v10192_v9 = vpop.f32.mrb[77].mxu0 }
 0x8cd   :  { %v10193_v60 = vadd.f32 %v10192_v9, %v10191_v32  ;;  %v10194_v39 = vpop.f32.mrb[78].mxu0 }
 0x8ce   :  { %v10195_v62 = vpop.f32.mrb[79].mxu0 }
 0x8cf   :  { %v10526_v45 = vadd.f32 %v10525_v30, %v10193_v60  ;;  %v10196_v47 = vadd.f32 %v10195_v62, %v10194_v39  ;;  %v11685_v60 = vld [vmem:[#allocation26] sm:$0xff]   ;;  %v11686_v39 = vld [vmem:[#allocation26 + $0x8] sm:$0xff]   ;;  %v11687_v62 = vld [vmem:[#allocation26 + $0x10] sm:$0xff]  }
 0x8d0   :  { %5776 = vmatpush1.bf16.msra.mxu0 %v11685_v60 }
 0x8d1   :  { %v10534_v2 = vadd.f32 %v10533_v16, %v10196_v47  ;;  %v10527_v44 = vadd.f32 %v10526_v45, %v10245_v34  ;;  %v10549_v34 = vadd.f32 %v10156_v56, %v9550_v1  ;;  %5777 = vmatprep.subr.bf16.mxu0 %v12176_v38  ;;  %v11688_v16 = vld [vmem:[#allocation26 + $0x18] sm:$0xff]   ;;  %v11689_v45 = vld [vmem:[#allocation26 + $0x20] sm:$0xff]  }
 0x8d2   :  { %v5261_v47 = vld [vmem:[#allocation25] sm:$0x3] }
 0x8d3   :  { %v10197_v5 = vpop.f32.mrb[80].mxu0  ;;  %v10535_v12 = vadd.f32 %v10534_v2, %v10248_v43  ;;  %v11690_v2 = vld [vmem:[#allocation26 + $0x28] sm:$0xff]  }
 0x8d4   :  { %v10198_v22 = vpop.f32.mrb[81].mxu0  ;;  %5778 = vmatpush1.bf16.msra.mxu0 %v11686_v39 }
 0x8d5   :  { %v10199_v14 = vadd.f32 %v10198_v22, %v10197_v5  ;;  %v10200_v35 = vpop.f32.mrb[82].mxu0  ;;  %5779 = vmatprep.subr.bf16.mxu0 %v12176_v38  ;;  %v13763_v5 = vrot.slane %v5261_v47, %v12777_v4 }
 0x8d6   :  { %v10201_v24 = vpop.f32.mrb[83].mxu0 }
 0x8d7   :  { %v10546_v57 = vadd.f32 %v10545_v23, %v10199_v14  ;;  %v10202_v19 = vadd.f32 %v10201_v24, %v10200_v35 }
 0x8d8   :  { %5780 = vmatpush1.bf16.msra.mxu0 %v11687_v62  ;;  %v13842_v62 = vld [vmem:[#allocation7 + $0x1e8] sm:$0xff] }
 0x8d9   :  { %v10554_v42 = vadd.f32 %v10553_v37, %v10202_v19  ;;  %v10547_v20 = vadd.f32 %v10546_v57, %v10251_v11  ;;  %5781 = vmatprep.subr.bf16.mxu0 %v12176_v38  ;;  %v11692_v37 = vld [vmem:[#allocation26 + $0x38] sm:$0xff]  }
 0x8db   :  { %v10203_v6 = vpop.f32.mrb[84].mxu0  ;;  %v10555_v41 = vadd.f32 %v10554_v42, %v10254_v48 }
 0x8dc   :  { %v10204_v61 = vpop.f32.mrb[85].mxu0  ;;  %5782 = vmatpush1.bf16.msra.mxu0 %v11688_v16 }
 0x8dd   :  { %v10205_v0 = vadd.f32 %v10204_v61, %v10203_v6  ;;  %v10206_v10 = vpop.f32.mrb[86].mxu0  ;;  %5783 = vmatprep.subr.bf16.mxu0 %v12176_v38 }
 0x8de   :  { %v10207_v33 = vpop.f32.mrb[87].mxu0 }
 0x8df   :  { %v10542_v36 = vadd.f32 %v10541_v13, %v10205_v0  ;;  %v10208_v43 = vadd.f32 %v10207_v33, %v10206_v10 }
 0x8e0   :  { %5784 = vmatpush1.bf16.msra.mxu0 %v11689_v45 }
 0x8e1   :  { %v10550_v40 = vadd.f32 %v10549_v34, %v10208_v43  ;;  %v10543_v31 = vadd.f32 %v10542_v36, %v10257_v53  ;;  %5785 = vmatprep.subr.bf16.mxu0 %v12176_v38  ;;  %v11694_v34 = vld [vmem:[#allocation26 + $0x48] sm:$0xff]  }
 0x8e3   :  { %v10551_v28 = vadd.f32 %v10550_v40, %v10260_v63 }
 0x8e4   :  { %5786 = vmatpush1.bf16.msra.mxu0 %v11690_v2 }
 0x8e5   :  { %5787 = vmatprep.subr.bf16.mxu0 %v12176_v38 }
 0x903   :  { %v10447_v46 = vpop.f32.mrb[64].mxu0 }
 0x904   :  { %v10528_v51 = vadd.f32 %v10527_v44, %v10447_v46  ;;  %v5194_v15 = vpop.f32.mrb[65].mxu0  ;;  %v11691_v44 = vld [vmem:[#allocation26 + $0x30] sm:$0xff]  }
 0x905   :  { %v10532_v52 = vadd.f32 %v10531_v27, %v5194_v15  ;;  %v10448_v55 = vpop.f32.mrb[66].mxu0  ;;  %5788 = vmatpush1.bf16.msra.mxu0 %v11691_v44 }
 0x906   :  { %v10536_v26 = vadd.f32 %v10535_v12, %v10448_v55  ;;  %v5197_v11 = vpop.f32.mrb[67].mxu0  ;;  %v5235_v48 = vmax.f32 %v10528_v51, 0.0  ;;  %v13767_v12 = vrot.slane %v5261_v47, %v12774_v3  ;;  %5789 = vmatprep.subr.bf16.mxu0 %v12176_v38 }
 0x907   :  { %v10540_v59 = vadd.f32 %v10539_v54, %v5197_v11  ;;  %v5233_v58 = vmax.f32 %v10532_v52, 0.0 }
 0x908   :  { %v5236_v29 = vmax.f32 %v10536_v26, 0.0  ;;  %v11695_v26 = vld [vmem:[#allocation26 + $0x50] sm:$0xff]  }
 0x909   :  { %v5234_v21 = vmax.f32 %v10540_v59, 0.0  ;;  %5790 = vmatpush1.bf16.msra.mxu0 %v11692_v37 }
 0x90a   :  { %v5242_v50 = vpack.c.bf16 %v5236_v29, %v5235_v48  ;;  %5791 = vmatprep.subr.bf16.mxu0 %v12176_v38 }
 0x90b   :  { %v5241_v17 = vpack.c.bf16 %v5234_v21, %v5233_v58  ;;  %v10451_v56 = vpop.f32.mrb[68].mxu0  ;;  %v11696_v21 = vld [vmem:[#allocation26 + $0x58] sm:$0xff]  }
 0x90c   :  { %v10544_v1 = vadd.f32 %v10543_v31, %v10451_v56  ;;  %v5210_v25 = vpop.f32.mrb[69].mxu0  ;;  %v6491_v31 = vld [vmem:[#allocation7 + $0x1e9] sm:$0xff] }
 0x90d   :  { %v10548_v7 = vadd.f32 %v10547_v20, %v5210_v25  ;;  %v10452_v53 = vpop.f32.mrb[70].mxu0  ;;  %5386 = vmatmul.mubr.bf16.vlgmr.msra.gmra.mrb[80].mxu1 %v5241_v17 }
 0x90e   :  { %v10552_v63 = vadd.f32 %v10551_v28, %v10452_v53  ;;  %v5213_v8 = vpop.f32.mrb[71].mxu0  ;;  %5395 = vmatprep.mubr.bf16.mxu1 %v12176_v38  ;;  %v5239_v49 = vmax.f32 %v10544_v1, 0.0 }
 0x90f   :  { %v10556_v18 = vadd.f32 %v10555_v41, %v5213_v8  ;;  %v5237_v32 = vmax.f32 %v10548_v7, 0.0  ;;  %v11693_v41 = vld [vmem:[#allocation26 + $0x40] sm:$0xff]  }
 0x910   :  { %v5240_v27 = vmax.f32 %v10552_v63, 0.0  ;;  %5792 = vmatpush1.bf16.msra.mxu0 %v11693_v41  ;;  %v11711_v41 = vld [vmem:[#allocation26 + $0x10] sm:$0xff]  }
 0x911   :  { %v5238_v54 = vmax.f32 %v10556_v18, 0.0  ;;  %5793 = vmatprep.subr.bf16.mxu0 %v12176_v38 }
 0x912   :  { %v5244_v9 = vpack.c.bf16 %v5240_v27, %v5239_v49 }
 0x913   :  { %v5243_v30 = vpack.c.bf16 %v5238_v54, %v5237_v32 }
 0x914   :  { %5794 = vmatpush1.bf16.msra.mxu0 %v11694_v34  ;;  %v11717_v34 = vld [vmem:[#allocation26 + $0x40] sm:$0xff]  }
 0x915   :  { %5396 = vmatmul.mubr.bf16.gmra.mrb[84].mxu1 %v5242_v50  ;;  %5795 = vmatprep.subr.bf16.mxu0 %v12176_v38 }
 0x916   :  { %5405 = vmatprep.mubr.bf16.mxu1 %v12176_v38 }
 0x918   :  { %5796 = vmatpush1.bf16.msra.mxu0 %v11695_v26 }
 0x919   :  { %5797 = vmatprep.subr.bf16.mxu0 %v12176_v38 }
 0x91c   :  { %5798 = vmatpush1.bf16.msra.mxu0 %v11696_v21 }
 0x91d   :  { %5406 = vmatmul.mubr.bf16.gmra.mrb[88].mxu1 %v5243_v30  ;;  %6087 = vmatprep.subr.bf16.mxu0 %v12176_v38 }
 0x91e   :  { %5415 = vmatprep.mubr.bf16.mxu1 %v12176_v38 }
 0x925   :  { %5416 = vmatmul.mubr.bf16.gmra.mrb[92].mxu1 %v5244_v9 }
 0x9e0   :  { %v5387_v22 = vpop.f32.mrb[80].mxu1 }
 0x9e1   :  { %v13770_v23 = vadd.f32 %v5387_v22, %v13763_v5  ;;  %v5389_v14 = vpop.f32.mrb[81].mxu1 }
 0x9e2   :  { %v5390_v35 = vadd.f32 %v5389_v14, %v13767_v12  ;;  %v5391_v24 = vpop.f32.mrb[82].mxu1 }
 0x9e3   :  { %v5426_v4 = vmax.f32 %v13770_v23, 0.0  ;;  %v13776_v57 = vadd.f32 %v5391_v24, %v13763_v5  ;;  %v5393_v19 = vpop.f32.mrb[83].mxu1 }
 0x9e4   :  { %v5427_v3 = vmax.f32 %v5390_v35, 0.0  ;;  %v5394_v42 = vadd.f32 %v5393_v19, %v13767_v12 }
 0x9e5   :  { %5443 = vst.msk [vmem:[#allocation7 + $0x20] sm:$0xff] %vm256_vm0, %v5426_v4  ;;  %v5428_v20 = vmax.f32 %v13776_v57, 0.0 }
 0x9e6   :  { %5493 = vst.msk [vmem:[#allocation7 + $0x200] sm:$0xff] %vm256_vm0, %v5427_v3  ;;  %v5429_v6 = vmax.f32 %v5394_v42, 0.0  ;;  %5509 = vrot.lane.b32.xlu0 %v5427_v3, %s12158_s18 }
 0x9e7   :  { %5444 = vst.msk [vmem:[#allocation7 + $0x38] sm:$0xff] %vm256_vm0, %v5428_v20 }
 0x9e8   :  { %5494 = vst.msk [vmem:[#allocation7 + $0x218] sm:$0xff] %vm256_vm0, %v5429_v6  ;;  %v5397_v61 = vpop.f32.mrb[84].mxu1  ;;  %5511 = vrot.lane.b32.xlu1 %v5429_v6, %s12158_s18  ;;  %v11710_v6 = vld [vmem:[#allocation26 + $0x8] sm:$0xff]  }
 0x9e9   :  { %v13792_v13 = vadd.f32 %v5397_v61, %v13763_v5  ;;  %v5399_v0 = vpop.f32.mrb[85].mxu1  ;;  %v11712_v61 = vld [vmem:[#allocation26 + $0x18] sm:$0xff]  }
 0x9ea   :  { %v5400_v10 = vadd.f32 %v5399_v0, %v13767_v12  ;;  %v5401_v33 = vpop.f32.mrb[86].mxu1  ;;  %v11714_v0 = vld [vmem:[#allocation26 + $0x28] sm:$0xff]  }
 0x9eb   :  { %v5430_v36 = vmax.f32 %v13792_v13, 0.0  ;;  %v13798_v43 = vadd.f32 %v5401_v33, %v13763_v5  ;;  %v5403_v40 = vpop.f32.mrb[87].mxu1  ;;  %v11713_v13 = vld [vmem:[#allocation26 + $0x20] sm:$0xff]   ;;  %v11716_v33 = vld [vmem:[#allocation26 + $0x38] sm:$0xff]  }
 0x9ec   :  { %v5431_v28 = vmax.f32 %v5400_v10, 0.0  ;;  %v5404_v46 = vadd.f32 %v5403_v40, %v13767_v12  ;;  %v13892_v3 = vld [vmem:[#allocation7 + $0x20] sm:$0xff]  ;;  %v11715_v10 = vld [vmem:[#allocation26 + $0x30] sm:$0xff]  }
 0x9ed   :  { %5445 = vst.msk [vmem:[#allocation7 + $0x50] sm:$0xff] %vm256_vm0, %v5430_v36  ;;  %v5432_v51 = vmax.f32 %v13798_v43, 0.0  ;;  %v6492_v15 = vld [vmem:[#allocation7 + $0x201] sm:$0xff]  ;;  %v11719_v40 = vld [vmem:[#allocation26 + $0x50] sm:$0xff]  }
 0x9ee   :  { %5495 = vst.msk [vmem:[#allocation7 + $0x230] sm:$0xff] %vm256_vm0, %v5431_v28  ;;  %v5433_v52 = vmax.f32 %v5404_v46, 0.0  ;;  %5513 = vrot.lane.b32.xlu0 %v5431_v28, %s12158_s18  ;;  %v9992_v55 = vpack.c.bf16 %v6492_v15, %v6491_v31  ;;  %v13832_v49 = vld [vmem:[#allocation7 + $0x39] sm:$0xff] }
 0x9ef   :  { %5446 = vst.msk [vmem:[#allocation7 + $0x68] sm:$0xff] %vm256_vm0, %v5432_v51  ;;  %v13844_v16 = vld [vmem:[#allocation7 + $0x200] sm:$0xff]  ;;  %v13871_v22 = vld [vmem:[#allocation7 + $0x218] sm:$0xff] }
 0x9f0   :  { %5496 = vst.msk [vmem:[#allocation7 + $0x248] sm:$0xff] %vm256_vm0, %v5433_v52  ;;  %v5407_v11 = vpop.f32.mrb[88].mxu1  ;;  %5515 = vrot.lane.b32.xlu1 %v5433_v52, %s12158_s18  ;;  %9723 = vmatprep.mubr.msk.bf16.mxu1 %vm256_vm0, %v9992_v55  ;;  %v13889_v19 = vld [vmem:[#allocation7 + $0x38] sm:$0xff] }
 0x9f1   :  { %v5408_v59 = vadd.f32 %v5407_v11, %v13763_v5  ;;  %v5409_v48 = vpop.f32.mrb[89].mxu1  ;;  %v13896_v42 = vpack.i.bf16 %v13889_v19, %v13892_v3  ;;  %v11720_v31 = vld [vmem:[#allocation26 + $0x58] sm:$0xff]  }
 0x9f2   :  { %v5410_v29 = vadd.f32 %v5409_v48, %v13767_v12  ;;  %v5411_v58 = vpop.f32.mrb[90].mxu1  ;;  %v6483_v15 = vld [vmem:[#allocation7 + $0x2d8] sm:$0xff] }
 0x9f3   :  { %v5434_v50 = vmax.f32 %v5408_v59, 0.0  ;;  %v13818_v17 = vadd.f32 %v5411_v58, %v13763_v5  ;;  %v5413_v56 = vpop.f32.mrb[91].mxu1 }
 0x9f4   :  { %v5435_v1 = vmax.f32 %v5410_v29, 0.0  ;;  %v5414_v25 = vadd.f32 %v5413_v56, %v13767_v12  ;;  %v13834_v27 = vld [vmem:[#allocation7 + $0x51] sm:$0xff] }
 0x9f5   :  { %5447 = vst.msk [vmem:[#allocation7 + $0x80] sm:$0xff] %vm256_vm0, %v5434_v50  ;;  %v5436_v7 = vmax.f32 %v13818_v17, 0.0  ;;  %v10056_v9 = vpack.c.bf16 %v13834_v27, %v13832_v49  ;;  %v11826_v27 = vld [vmem:[#allocation26 + $0x108] sm:$0xff]  }
 0x9f6   :  { %5497 = vst.msk [vmem:[#allocation7 + $0x260] sm:$0xff] %vm256_vm0, %v5435_v1  ;;  %v5437_v53 = vmax.f32 %v5414_v25, 0.0  ;;  %5517 = vrot.lane.b32.xlu0 %v5435_v1, %s12158_s18 }
 0x9f7   :  { %5448 = vst.msk [vmem:[#allocation7 + $0x98] sm:$0xff] %vm256_vm0, %v5436_v7  ;;  %v13878_v35 = vld [vmem:[#allocation7 + $0x248] sm:$0xff] }
 0x9f8   :  { %5498 = vst.msk [vmem:[#allocation7 + $0x278] sm:$0xff] %vm256_vm0, %v5437_v53  ;;  %v5417_v63 = vpop.f32.mrb[92].mxu1  ;;  %5519 = vrot.lane.b32.xlu1 %v5437_v53, %s12158_s18  ;;  %v5543_v53 = vld [vmem:[#allocation7 + $0x2d7] sm:$0xff] }
 0x9f9   :  { %v5418_v8 = vadd.f32 %v5417_v63, %v13763_v5  ;;  %v5419_v18 = vpop.f32.mrb[93].mxu1 }
 0x9fa   :  { %v5420_v32 = vadd.f32 %v5419_v18, %v13767_v12  ;;  %v5421_v54 = vpop.f32.mrb[94].mxu1 }
 0x9fb   :  { %v5438_v30 = vmax.f32 %v5418_v8, 0.0  ;;  %v13840_v60 = vadd.f32 %v5421_v54, %v13763_v5  ;;  %v5423_v39 = vpop.f32.mrb[95].mxu1  ;;  %v11271_v5 = vpack.i.bf16 %v13844_v16, %v13842_v62 }
 0x9fc   :  { %v5439_v45 = vmax.f32 %v5420_v32, 0.0  ;;  %v5424_v47 = vadd.f32 %v5423_v39, %v13767_v12  ;;  %5459 = vrot.lane.b32.xlu1 %v5426_v4, %s12158_s18  ;;  %v13868_v12 = vld [vmem:[#allocation7 + $0x230] sm:$0xff] }
 0x9fd   :  { %5449 = vst.msk [vmem:[#allocation7 + $0xb0] sm:$0xff] %vm256_vm0, %v5438_v30  ;;  %v5440_v2 = vmax.f32 %v13840_v60, 0.0  ;;  %v11281_v23 = vpack.i.bf16 %v13868_v12, %v13871_v22  ;;  %v13875_v14 = vld [vmem:[#allocation7 + $0x260] sm:$0xff] }
 0x9fe   :  { %5499 = vst.msk [vmem:[#allocation7 + $0x290] sm:$0xff] %vm256_vm0, %v5439_v45  ;;  %v5441_v44 = vmax.f32 %v5424_v47, 0.0  ;;  %5521 = vrot.lane.b32.xlu0 %v5439_v45, %s12158_s18  ;;  %v11291_v24 = vpack.i.bf16 %v13875_v14, %v13878_v35  ;;  %v11697_v47 = vld [vmem:[#allocation26 + $0x60] sm:$0xff]  }
 0x9ff   :  { %5450 = vst.msk [vmem:[#allocation7 + $0xc8] sm:$0xff] %vm256_vm0, %v5440_v2  ;;  %v13885_v4 = vld [vmem:[#allocation7 + $0x278] sm:$0xff] }
 0xa00   :  { %5500 = vst.msk [vmem:[#allocation7 + $0x2a8] sm:$0xff] %vm256_vm0, %v5441_v44  ;;  %11272 = vrot.lane.b32.xlu1 %v11271_v5, %s12158_s18 }
 0xa02   :  { %5461 = vrot.lane.b32.xlu0 %v5428_v20, %s12158_s18  ;;  %v11709_v20 = vld [vmem:[#allocation26] sm:$0xff]  }
 0xa03   :  { %6708 = vmatpush1.bf16.msra.mxu1 %v11709_v20 }
 0xa04   :  { %5463 = vrot.lane.b32.xlu1 %v5430_v36, %s12158_s18  ;;  %6709 = vmatprep.subr.bf16.mxu1 %v12176_v38  ;;  %v11718_v36 = vld [vmem:[#allocation26 + $0x48] sm:$0xff]  }
 0xa05   :  { %v13882_v37 = vld [vmem:[#allocation7 + $0x290] sm:$0xff] }
 0xa06   :  { %v11301_v57 = vpack.i.bf16 %v13882_v37, %v13885_v4 }
 0xa07   :  { %6710 = vmatpush1.bf16.msra.mxu1 %v11710_v6 }
 0xa08   :  { %5467 = vrot.lane.b32.xlu1 %v5434_v50, %s12158_s18  ;;  %6711 = vmatprep.subr.bf16.mxu1 %v12176_v38 }
 0xa0b   :  { %6712 = vmatpush1.bf16.msra.mxu1 %v11711_v41 }
 0xa0c   :  { %5471 = vrot.lane.b32.xlu1 %v5438_v30, %s12158_s18  ;;  %6713 = vmatprep.subr.bf16.mxu1 %v12176_v38 }
 0xa0f   :  { %6714 = vmatpush1.bf16.msra.mxu1 %v11712_v61 }
 0xa10   :  { %11282 = vrot.lane.b32.xlu1 %v11281_v23, %s12158_s18  ;;  %6715 = vmatprep.subr.bf16.mxu1 %v12176_v38 }
 0xa13   :  { %6716 = vmatpush1.bf16.msra.mxu1 %v11713_v13  ;;  %v11699_v13 = vld [vmem:[#allocation26 + $0x70] sm:$0xff]  }
 0xa14   :  { %11292 = vrot.lane.b32.xlu1 %v11291_v24, %s12158_s18  ;;  %6717 = vmatprep.subr.bf16.mxu1 %v12176_v38 }
 0xa17   :  { %6718 = vmatpush1.bf16.msra.mxu1 %v11714_v0 }
 0xa18   :  { %11302 = vrot.lane.b32.xlu1 %v11301_v57, %s12158_s18  ;;  %6719 = vmatprep.subr.bf16.mxu1 %v12176_v38  ;;  %v11698_v57 = vld [vmem:[#allocation26 + $0x68] sm:$0xff]  }
 0xa1b   :  { %6720 = vmatpush1.bf16.msra.mxu1 %v11715_v10  ;;  %v13984_v10 = vld [vmem:[#allocation7 + $0x68] sm:$0xff] }
 0xa1c   :  { %11312 = vrot.lane.b32.xlu1 %v13896_v42, %s12158_s18  ;;  %6721 = vmatprep.subr.bf16.mxu1 %v12176_v38 }
 0xa1f   :  { %6722 = vmatpush1.bf16.msra.mxu1 %v11716_v33  ;;  %v13989_v33 = vld [vmem:[#allocation7 + $0x50] sm:$0xff] }
 0xa20   :  { %5523 = vrot.lane.b32.xlu1 %v5441_v44, %s12158_s18  ;;  %6723 = vmatprep.subr.bf16.mxu1 %v12176_v38 }
 0xa23   :  { %6724 = vmatpush1.bf16.msra.mxu1 %v11717_v34  ;;  %v13993_v34 = vpack.i.bf16 %v13984_v10, %v13989_v33 }
 0xa24   :  { %6725 = vmatprep.subr.bf16.mxu1 %v12176_v38 }
 0xa27   :  { %6726 = vmatpush1.bf16.msra.mxu1 %v11718_v36  ;;  %v11700_v36 = vld [vmem:[#allocation26 + $0x78] sm:$0xff]  }
 0xa28   :  { %6727 = vmatprep.subr.bf16.mxu1 %v12176_v38 }
 0xa2b   :  { %6728 = vmatpush1.bf16.msra.mxu1 %v11719_v40 }
 0xa2c   :  { %6729 = vmatprep.subr.bf16.mxu1 %v12176_v38 }
 0xa2f   :  { %6730 = vmatpush1.bf16.msra.mxu1 %v11720_v31  ;;  %v13996_v31 = vld [vmem:[#allocation7 + $0x98] sm:$0xff] }
 0xa30   :  { %7018 = vmatprep.subr.bf16.mxu1 %v12176_v38 }
 0xa58   :  { %v5510_v28 = vpop.permute.xlu0 %5509 }
 0xa59   :  { %5534 = vst.msk [vmem:[#allocation7 + $0x2f0] sm:$0xff] %vm256_vm0, %v5510_v28 }
 0xa5a   :  { %v5512_v46 = vpop.permute.xlu1 %5511 }
 0xa5b   :  { %5535 = vst.msk [vmem:[#allocation7 + $0x308] sm:$0xff] %vm256_vm0, %v5512_v46 }
 0xa60   :  { %v5514_v52 = vpop.permute.xlu0 %5513  ;;  %v13915_v55 = vld [vmem:[#allocation7 + $0x2f0] sm:$0xff] }
 0xa61   :  { %5536 = vst.msk [vmem:[#allocation7 + $0x320] sm:$0xff] %vm256_vm0, %v5514_v52  ;;  %v11276_v26 = vpack.i.bf16 %v13915_v55, %v6483_v15  ;;  %v9968_v11 = vpack.c.bf16 %v13915_v55, %v6483_v15  ;;  %v13955_v54 = vld [vmem:[#allocation7 + $0x2ef] sm:$0xff]  ;;  %v14000_v15 = vld [vmem:[#allocation7 + $0x80] sm:$0xff] }
 0xa62   :  { %v5516_v59 = vpop.permute.xlu1 %5515  ;;  %v13920_v48 = vld [vmem:[#allocation7 + $0x308] sm:$0xff] }
 0xa63   :  { %5537 = vst.msk [vmem:[#allocation7 + $0x338] sm:$0xff] %vm256_vm0, %v5516_v59  ;;  %11277 = vrot.lane.b32.xlu0 %v11276_v26, %s12158_s18  ;;  %9650 = vmatprep.mubr.msk.bf16.mxu0 %vm256_vm0, %v9968_v11  ;;  %v11356_v29 = vpack.i.bf16 %v13920_v48, %v13915_v55  ;;  %v14002_v52 = vld [vmem:[#allocation7 + $0x307] sm:$0xff]  ;;  %v14006_v11 = vpack.i.bf16 %v13996_v31, %v14000_v15 }
 0xa67   :  { %5465 = vrot.lane.b32.xlu0 %v5432_v51, %s12158_s18 }
 0xa68   :  { %v5518_v58 = vpop.permute.xlu0 %5517  ;;  %v13931_v50 = vld [vmem:[#allocation7 + $0x320] sm:$0xff] }
 0xa69   :  { %5538 = vst.msk [vmem:[#allocation7 + $0x350] sm:$0xff] %vm256_vm0, %v5518_v58  ;;  %v11286_v51 = vpack.i.bf16 %v13931_v50, %v13920_v48  ;;  %v9970_v5 = vpack.c.bf16 %v13931_v50, %v13920_v48  ;;  %v5546_v26 = vld [vmem:[#allocation7 + $0x31f] sm:$0xff] }
 0xa6a   :  { %v5520_v21 = vpop.permute.xlu1 %5519  ;;  %v13933_v56 = vld [vmem:[#allocation7 + $0x338] sm:$0xff] }
 0xa6b   :  { %5539 = vst.msk [vmem:[#allocation7 + $0x368] sm:$0xff] %vm256_vm0, %v5520_v21  ;;  %5469 = vrot.lane.b32.xlu0 %v5436_v7, %s12158_s18  ;;  %v11366_v1 = vpack.i.bf16 %v13933_v56, %v13931_v50  ;;  %v11701_v21 = vld [vmem:[#allocation26 + $0x80] sm:$0xff]  }
 0xa6c   :  { %v6481_v48 = vld [vmem:[#allocation7 + $0x278] sm:$0xff] }
 0xa6e   :  { %v5460_v25 = vpop.permute.xlu1 %5459 }
 0xa6f   :  { %5484 = vst.msk [vmem:[#allocation7 + $0x110] sm:$0xff] %vm256_vm0, %v5460_v25  ;;  %5473 = vrot.lane.b32.xlu0 %v5440_v2, %s12158_s18 }
 0xa70   :  { %v5522_v43 = vpop.permute.xlu0 %5521  ;;  %v13948_v17 = vld [vmem:[#allocation7 + $0x350] sm:$0xff] }
 0xa71   :  { %5540 = vst.msk [vmem:[#allocation7 + $0x380] sm:$0xff] %vm256_vm0, %v5522_v43  ;;  %v11296_v45 = vpack.i.bf16 %v13948_v17, %v13933_v56 }
 0xa72   :  { %v11273_v63 = vpop.permute.xlu1 %11272  ;;  %v13950_v7 = vld [vmem:[#allocation7 + $0x368] sm:$0xff] }
 0xa73   :  { %v11275_v8 = vunpack.i.h.bf16 %v11273_v63  ;;  %v11274_v18 = vunpack.i.l.bf16 %v11273_v63  ;;  %11287 = vrot.lane.b32.xlu0 %v11286_v51, %s12158_s18  ;;  %v11376_v32 = vpack.i.bf16 %v13950_v7, %v13948_v17  ;;  %v14012_v51 = vld [vmem:[#allocation7 + $0xc8] sm:$0xff] }
 0xa74   :  { %v5462_v30 = vpop.permute.xlu0 %5461 }
 0xa75   :  { %v5600_v60 = vsel %vm256_vm0, %v13955_v54, %v11275_v8  ;;  %v5599_v39 = vsel %vm256_vm0, %v5543_v53, %v11274_v18  ;;  %5485 = vst.msk [vmem:[#allocation7 + $0x128] sm:$0xff] %vm256_vm0, %v5462_v30  ;;  %v9972_v8 = vpack.c.bf16 %v13948_v17, %v13933_v56  ;;  %v14018_v18 = vld [vmem:[#allocation7 + $0xb0] sm:$0xff]  ;;  %v11738_v17 = vld [vmem:[#allocation26 + $0xa8] sm:$0xff]  }
 0xa76   :  { %v9967_v2 = vpack.c.bf16 %v5600_v60, %v5599_v39  ;;  %v5464_v44 = vpop.permute.xlu1 %5463  ;;  %v13975_v6 = vld [vmem:[#allocation7 + $0x110] sm:$0xff]  ;;  %v14023_v30 = vpack.i.bf16 %v14012_v51, %v14018_v18  ;;  %v11702_v60 = vld [vmem:[#allocation26 + $0x88] sm:$0xff]  }
 0xa77   :  { %5486 = vst.msk [vmem:[#allocation7 + $0x140] sm:$0xff] %vm256_vm0, %v5464_v44  ;;  %11297 = vrot.lane.b32.xlu0 %v11296_v45, %s12158_s18  ;;  %v14026_v45 = vld [vmem:[#allocation7 + $0x337] sm:$0xff] }
 0xa78   :  { %5808 = vmatmul.mubr.bf16.vlgmr.msra.gmra.mrb[88].mxu0 %v9967_v2  ;;  %v13967_v23 = vld [vmem:[#allocation7 + $0x380] sm:$0xff] }
 0xa79   :  { %6088 = vmatpush1.bf16.msra.mxu0 %v11697_v47  ;;  %9651 = vmatprep.mubr.msk.bf16.mxu0 %vm256_vm0, %v9970_v5  ;;  %v11306_v24 = vpack.i.bf16 %v13967_v23, %v13950_v7  ;;  %v5548_v47 = vld [vmem:[#allocation7 + $0x34f] sm:$0xff]  ;;  %v14035_v5 = vpack.i.bf16 %v13871_v22, %v13844_v16 }
 0xa7a   :  { %v5468_v20 = vpop.permute.xlu1 %5467  ;;  %6089 = vmatprep.subr.bf16.mxu0 %v12176_v38 }
 0xa7b   :  { %5488 = vst.msk [vmem:[#allocation7 + $0x170] sm:$0xff] %vm256_vm0, %v5468_v20  ;;  %11307 = vrot.lane.b32.xlu0 %v11306_v24, %s12158_s18  ;;  %v11703_v24 = vld [vmem:[#allocation26 + $0x90] sm:$0xff]  }
 0xa7c   :  { %v13977_v41 = vld [vmem:[#allocation7 + $0x128] sm:$0xff] }
 0xa7d   :  { %6090 = vmatpush1.bf16.msra.mxu0 %v11698_v57  ;;  %v13981_v61 = vpack.i.bf16 %v13977_v41, %v13975_v6 }
 0xa7e   :  { %v5472_v0 = vpop.permute.xlu1 %5471  ;;  %6091 = vmatprep.subr.bf16.mxu0 %v12176_v38 }
 0xa7f   :  { %5490 = vst.msk [vmem:[#allocation7 + $0x1a0] sm:$0xff] %vm256_vm0, %v5472_v0  ;;  %11317 = vrot.lane.b32.xlu0 %v13981_v61, %s12158_s18 }
 0xa81   :  { %6092 = vmatpush1.bf16.msra.mxu0 %v11699_v13 }
 0xa82   :  { %v11283_v40 = vpop.permute.xlu1 %11282  ;;  %6093 = vmatprep.subr.bf16.mxu0 %v12176_v38 }
 0xa83   :  { %v11285_v28 = vunpack.i.h.bf16 %v11283_v40  ;;  %v11284_v46 = vunpack.i.l.bf16 %v11283_v40  ;;  %11322 = vrot.lane.b32.xlu0 %v13993_v34, %s12158_s18  ;;  %v11361_v40 = vpack.i.bf16 %v13878_v35, %v13868_v12 }
 0xa85   :  { %6094 = vmatpush1.bf16.msra.mxu0 %v11700_v36  ;;  %v5601_v59 = vsel %vm256_vm0, %v14002_v52, %v11284_v46  ;;  %v5602_v58 = vsel %vm256_vm0, %v5546_v26, %v11285_v28  ;;  %v9974_v36 = vpack.c.bf16 %v13967_v23, %v13950_v7  ;;  %v11704_v28 = vld [vmem:[#allocation26 + $0x98] sm:$0xff]   ;;  %v5549_v26 = vld [vmem:[#allocation7 + $0x367] sm:$0xff] }
 0xa86   :  { %v11293_v25 = vpop.permute.xlu1 %11292  ;;  %6095 = vmatprep.subr.bf16.mxu0 %v12176_v38  ;;  %v9969_v43 = vpack.c.bf16 %v5602_v58, %v5601_v59  ;;  %v5550_v59 = vld [vmem:[#allocation7 + $0x37f] sm:$0xff] }
 0xa87   :  { %v11295_v53 = vunpack.i.h.bf16 %v11293_v25  ;;  %v11294_v63 = vunpack.i.l.bf16 %v11293_v25  ;;  %11332 = vrot.lane.b32.xlu0 %v14006_v11, %s12158_s18  ;;  %v11371_v25 = vpack.i.bf16 %v13885_v4, %v13875_v14  ;;  %v11707_v4 = vld [vmem:[#allocation26 + $0xb0] sm:$0xff]  }
 0xa88   :  { %5816 = vmatmul.mubr.bf16.gmra.mrb[92].mxu0 %v9969_v43  ;;  %v11705_v43 = vld [vmem:[#allocation26 + $0xa0] sm:$0xff]  }
 0xa89   :  { %6096 = vmatpush1.bf16.msra.mxu0 %v11701_v21  ;;  %9652 = vmatprep.mubr.msk.bf16.mxu0 %vm256_vm0, %v9972_v8  ;;  %v5603_v2 = vsel %vm256_vm0, %v14026_v45, %v11294_v63  ;;  %v5604_v44 = vsel %vm256_vm0, %v5548_v47, %v11295_v53  ;;  %v6175_v63 = vld [vmem:[#allocation7 + $0x2a8] sm:$0xff]  ;;  %v9976_v8 = vpack.c.bf16 %v13977_v41, %v13975_v6  ;;  %v11708_v6 = vld [vmem:[#allocation26 + $0xb8] sm:$0xff]  }
 0xa8a   :  { %v11303_v39 = vpop.permute.xlu1 %11302  ;;  %6097 = vmatprep.subr.bf16.mxu0 %v12176_v38  ;;  %v9971_v20 = vpack.c.bf16 %v5604_v44, %v5603_v2  ;;  %v14063_v41 = vld [vmem:[#allocation7 + $0x10f] sm:$0xff]  ;;  %v14065_v44 = vld [vmem:[#allocation7 + $0x127] sm:$0xff] }
 0xa8b   :  { %11342 = vrot.lane.b32.xlu0 %v14023_v30, %s12158_s18  ;;  %v11305_v13 = vunpack.i.h.bf16 %v11303_v39  ;;  %v11304_v0 = vunpack.i.l.bf16 %v11303_v39  ;;  %v11706_v39 = vld [vmem:[#allocation26 + $0xa8] sm:$0xff]  }
 0xa8d   :  { %6098 = vmatpush1.bf16.msra.mxu0 %v11702_v60  ;;  %v5605_v58 = vsel %vm256_vm0, %v5549_v26, %v11304_v0  ;;  %v5606_v21 = vsel %vm256_vm0, %v5550_v59, %v11305_v13  ;;  %v11381_v60 = vpack.i.bf16 %v6175_v63, %v13882_v37  ;;  %v11727_v13 = vld [vmem:[#allocation26 + $0xd0] sm:$0xff]  }
 0xa8e   :  { %v11313_v57 = vpop.permute.xlu1 %11312  ;;  %6099 = vmatprep.subr.bf16.mxu0 %v12176_v38  ;;  %v9973_v53 = vpack.c.bf16 %v5606_v21, %v5605_v58  ;;  %v11735_v0 = vld [vmem:[#allocation26 + $0xf0] sm:$0xff]  }
 0xa8f   :  { %11352 = vrot.lane.b32.xlu0 %v14035_v5, %s12158_s18  ;;  %v11315_v47 = vunpack.i.h.bf16 %v11313_v57  ;;  %v11314_v2 = vunpack.i.l.bf16 %v11313_v57  ;;  %v11723_v57 = vld [vmem:[#allocation26 + $0xc0] sm:$0xff]  }
 0xa90   :  { %5824 = vmatmul.mubr.bf16.gmra.mrb[96].mxu0 %v9971_v20  ;;  %v11725_v20 = vld [vmem:[#allocation26 + $0xc8] sm:$0xff]  }
 0xa91   :  { %6100 = vmatpush1.bf16.msra.mxu0 %v11703_v24  ;;  %9653 = vmatprep.mubr.msk.bf16.mxu0 %vm256_vm0, %v9974_v36  ;;  %v5911_v37 = vsel %vm256_vm0, %v14065_v44, %v11315_v47  ;;  %v5910_v24 = vsel %vm256_vm0, %v14063_v41, %v11314_v2  ;;  %v11481_v36 = vpack.i.bf16 %v14000_v15, %v13984_v10  ;;  %v11741_v10 = vld [vmem:[#allocation26 + $0x108] sm:$0xff]   ;;  %v11743_v15 = vld [vmem:[#allocation26 + $0x110] sm:$0xff]  }
 0xa92   :  { %v5524_v46 = vpop.permute.xlu1 %5523  ;;  %6101 = vmatprep.subr.bf16.mxu0 %v12176_v38  ;;  %v14116_v47 = vld [vmem:[#allocation7 + $0x140] sm:$0xff] }
 0xa93   :  { %5541 = vst.msk [vmem:[#allocation7 + $0x398] sm:$0xff] %vm256_vm0, %v5524_v46  ;;  %11362 = vrot.lane.b32.xlu0 %v11361_v40, %s12158_s18  ;;  %v8039_v46 = vld [vmem:[#allocation7 + $0xe0] sm:$0xff] }
 0xa94   :  { %v11501_v26 = vpack.i.bf16 %v8039_v46, %v14012_v51  ;;  %v6494_v51 = vld [vmem:[#allocation7 + $0x231] sm:$0xff]  ;;  %v14149_v46 = vld [vmem:[#allocation7 + $0x1a0] sm:$0xff] }
 0xa95   :  { %6102 = vmatpush1.bf16.msra.mxu0 %v11704_v28  ;;  %v11491_v28 = vpack.i.bf16 %v14018_v18, %v13996_v31  ;;  %v11744_v31 = vld [vmem:[#allocation26 + $0x118] sm:$0xff]  }
 0xa96   :  { %6103 = vmatprep.subr.bf16.mxu0 %v12176_v38 }
 0xa97   :  { %11372 = vrot.lane.b32.xlu0 %v11371_v25, %s12158_s18 }
 0xa98   :  { %5832 = vmatmul.mubr.bf16.gmra.mrb[100].mxu0 %v9973_v53 }
 0xa99   :  { %6104 = vmatpush1.bf16.msra.mxu0 %v11705_v43  ;;  %9675 = vmatprep.mubr.msk.bf16.mxu0 %vm256_vm0, %v9976_v8  ;;  %v11721_v43 = vld [vmem:[#allocation26 + $0x60] sm:$0xff]  }
 0xa9a   :  { %6105 = vmatprep.subr.bf16.mxu0 %v12176_v38  ;;  %v6493_v8 = vld [vmem:[#allocation7 + $0x219] sm:$0xff] }
 0xa9b   :  { %11382 = vrot.lane.b32.xlu0 %v11381_v60, %s12158_s18 }
 0xa9d   :  { %6106 = vmatpush1.bf16.msra.mxu0 %v11706_v39  ;;  %v11722_v39 = vld [vmem:[#allocation26 + $0x68] sm:$0xff]  }
 0xa9e   :  { %6107 = vmatprep.subr.bf16.mxu0 %v12176_v38 }
 0xa9f   :  { %11392 = vrot.lane.b32.xlu0 %v13896_v42, %s12158_s18  ;;  %v9975_v42 = vpack.c.bf16 %v5911_v37, %v5910_v24  ;;  %v11726_v24 = vld [vmem:[#allocation26 + $0x78] sm:$0xff]  }
 0xaa1   :  { %6108 = vmatpush1.bf16.msra.mxu0 %v11707_v4 }
 0xaa2   :  { %6109 = vmatprep.subr.bf16.mxu0 %v12176_v38 }
 0xaa3   :  { %11402 = vrot.lane.b32.xlu0 %v13993_v34, %s12158_s18  ;;  %v11729_v34 = vld [vmem:[#allocation26 + $0xd8] sm:$0xff]  }
 0xaa5   :  { %6110 = vmatpush1.bf16.msra.mxu0 %v11708_v6 }
 0xaa6   :  { %6393 = vmatprep.subr.bf16.mxu0 %v12176_v38 }
 0xaa7   :  { %11412 = vrot.lane.b32.xlu0 %v14006_v11, %s12158_s18  ;;  %v11731_v11 = vld [vmem:[#allocation26 + $0xe0] sm:$0xff]  }
 0xaa8   :  { %6120 = vmatmul.mubr.bf16.vlgmr.msra.gmra.mrb[88].mxu0 %v9975_v42  ;;  %v14134_v42 = vld [vmem:[#allocation7 + $0x170] sm:$0xff] }
 0xaa9   :  { %6394 = vmatpush1.bf16.msra.mxu0 %v11723_v57 }
 0xaaa   :  { %6395 = vmatprep.subr.bf16.mxu0 %v12176_v38 }
 0xaab   :  { %11422 = vrot.lane.b32.xlu0 %v14023_v30, %s12158_s18  ;;  %v11733_v30 = vld [vmem:[#allocation26 + $0xe8] sm:$0xff]  }
 0xaad   :  { %6396 = vmatpush1.bf16.msra.mxu0 %v11725_v20 }
 0xaae   :  { %6397 = vmatprep.subr.bf16.mxu0 %v12176_v38 }
 0xaaf   :  { %11432 = vrot.lane.b32.xlu0 %v14035_v5, %s12158_s18  ;;  %v11471_v5 = vpack.i.bf16 %v13989_v33, %v13889_v19  ;;  %v11739_v33 = vld [vmem:[#allocation26 + $0x100] sm:$0xff]  }
 0xab1   :  { %6398 = vmatpush1.bf16.msra.mxu0 %v11727_v13 }
 0xab2   :  { %6399 = vmatprep.subr.bf16.mxu0 %v12176_v38 }
 0xab3   :  { %11442 = vrot.lane.b32.xlu0 %v11361_v40, %s12158_s18  ;;  %v11737_v40 = vld [vmem:[#allocation26 + $0xf8] sm:$0xff]  }
 0xab5   :  { %6400 = vmatpush1.bf16.msra.mxu0 %v11729_v34 }
 0xab6   :  { %6401 = vmatprep.subr.bf16.mxu0 %v12176_v38 }
 0xab7   :  { %11452 = vrot.lane.b32.xlu0 %v11371_v25, %s12158_s18 }
 0xab9   :  { %6402 = vmatpush1.bf16.msra.mxu0 %v11731_v11 }
 0xaba   :  { %6403 = vmatprep.subr.bf16.mxu0 %v12176_v38 }
 0xabb   :  { %11462 = vrot.lane.b32.xlu0 %v11381_v60, %s12158_s18  ;;  %v9994_v60 = vpack.c.bf16 %v6494_v51, %v6493_v8  ;;  %v6498_v51 = vld [vmem:[#allocation7 + $0x291] sm:$0xff] }
 0xabd   :  { %6404 = vmatpush1.bf16.msra.mxu0 %v11733_v30  ;;  %v6496_v30 = vld [vmem:[#allocation7 + $0x261] sm:$0xff] }
 0xabe   :  { %6405 = vmatprep.subr.bf16.mxu0 %v12176_v38 }
 0xabf   :  { %11472 = vrot.lane.b32.xlu0 %v11471_v5, %s12158_s18 }
 0xac1   :  { %6406 = vmatpush1.bf16.msra.mxu0 %v11735_v0 }
 0xac2   :  { %6407 = vmatprep.subr.bf16.mxu0 %v12176_v38 }
 0xac3   :  { %11482 = vrot.lane.b32.xlu0 %v11481_v36, %s12158_s18  ;;  %v11728_v36 = vld [vmem:[#allocation26 + $0x80] sm:$0xff]  }
 0xac5   :  { %6408 = vmatpush1.bf16.msra.mxu0 %v11737_v40 }
 0xac6   :  { %6409 = vmatprep.subr.bf16.mxu0 %v12176_v38 }
 0xac7   :  { %11492 = vrot.lane.b32.xlu0 %v11491_v28, %s12158_s18 }
 0xac9   :  { %6410 = vmatpush1.bf16.msra.mxu0 %v11739_v33  ;;  %v6495_v33 = vld [vmem:[#allocation7 + $0x249] sm:$0xff] }
 0xaca   :  { %6411 = vmatprep.subr.bf16.mxu0 %v12176_v38 }
 0xacb   :  { %11502 = vrot.lane.b32.xlu0 %v11501_v26, %s12158_s18 }
 0xacd   :  { %6412 = vmatpush1.bf16.msra.mxu0 %v11741_v10 }
 0xace   :  { %6413 = vmatprep.subr.bf16.mxu0 %v12176_v38 }
 0xad1   :  { %6414 = vmatpush1.bf16.msra.mxu0 %v11743_v15 }
 0xad2   :  { %6415 = vmatprep.subr.bf16.mxu0 %v12176_v38 }
 0xad5   :  { %v11278_v18 = vpop.permute.xlu0 %11277  ;;  %6416 = vmatpush1.bf16.msra.mxu0 %v11744_v31  ;;  %v9996_v31 = vpack.c.bf16 %v6496_v30, %v6495_v33 }
 0xad6   :  { %v11280_v59 = vunpack.i.h.bf16 %v11278_v18  ;;  %v11279_v58 = vunpack.i.l.bf16 %v11278_v18  ;;  %7638 = vmatprep.subr.bf16.mxu0 %v12176_v38 }
 0xad8   :  { %v6531_v21 = vsel %vm256_vm0, %v13842_v62, %v11279_v58  ;;  %v6532_v25 = vsel %vm256_vm0, %v13844_v16, %v11280_v59  ;;  %v11724_v62 = vld [vmem:[#allocation26 + $0x70] sm:$0xff]  }
 0xad9   :  { %v9991_v53 = vpack.c.bf16 %v6532_v25, %v6531_v21  ;;  %v5466_v63 = vpop.permute.xlu0 %5465  ;;  %v11732_v21 = vld [vmem:[#allocation26 + $0x90] sm:$0xff]  }
 0xada   :  { %5487 = vst.msk [vmem:[#allocation7 + $0x158] sm:$0xff] %vm256_vm0, %v5466_v63 }
 0xadb   :  { %6740 = vmatmul.mubr.bf16.vlgmr.msra.gmra.mrb[96].mxu1 %v9991_v53  ;;  %v6497_v53 = vld [vmem:[#allocation7 + $0x279] sm:$0xff] }
 0xadc   :  { %7019 = vmatpush1.bf16.msra.mxu1 %v11721_v43  ;;  %9724 = vmatprep.mubr.msk.bf16.mxu1 %vm256_vm0, %v9994_v60 }
 0xadd   :  { %v5470_v4 = vpop.permute.xlu0 %5469  ;;  %7020 = vmatprep.subr.bf16.mxu1 %v12176_v38 }
 0xade   :  { %5489 = vst.msk [vmem:[#allocation7 + $0x188] sm:$0xff] %vm256_vm0, %v5470_v4 }
 0xae0   :  { %7021 = vmatpush1.bf16.msra.mxu1 %v11722_v39 }
 0xae1   :  { %v5474_v16 = vpop.permute.xlu0 %5473  ;;  %7022 = vmatprep.subr.bf16.mxu1 %v12176_v38  ;;  %v14118_v2 = vld [vmem:[#allocation7 + $0x158] sm:$0xff] }
 0xae2   :  { %5491 = vst.msk [vmem:[#allocation7 + $0x1b8] sm:$0xff] %vm256_vm0, %v5474_v16  ;;  %v14123_v6 = vpack.i.bf16 %v14118_v2, %v14116_v47  ;;  %v14127_v37 = vpack.c.bf16 %v14118_v2, %v14116_v47  ;;  %v14180_v16 = vld [vmem:[#allocation7 + $0x13f] sm:$0xff] }
 0xae4   :  { %7023 = vmatpush1.bf16.msra.mxu1 %v11724_v62  ;;  %11327 = vrot.lane.b32.xlu1 %v14123_v6, %s12158_s18 }
 0xae5   :  { %9676 = vmatprep.mubr.msk.bf16.mxu0 %vm256_vm0, %v14127_v37  ;;  %v11288_v57 = vpop.permute.xlu0 %11287  ;;  %7024 = vmatprep.subr.bf16.mxu1 %v12176_v38  ;;  %v14136_v20 = vld [vmem:[#allocation7 + $0x188] sm:$0xff] }
 0xae6   :  { %v11290_v13 = vunpack.i.h.bf16 %v11288_v57  ;;  %v11289_v34 = vunpack.i.l.bf16 %v11288_v57  ;;  %v14140_v11 = vpack.i.bf16 %v14136_v20, %v14134_v42  ;;  %v6803_v57 = vld [vmem:[#allocation7 + $0x39] sm:$0xff] }
 0xae8   :  { %7025 = vmatpush1.bf16.msra.mxu1 %v11726_v24  ;;  %11337 = vrot.lane.b32.xlu1 %v14140_v11, %s12158_s18  ;;  %v6533_v5 = vsel %vm256_vm0, %v13871_v22, %v11289_v34  ;;  %v6534_v0 = vsel %vm256_vm0, %v13868_v12, %v11290_v13  ;;  %v11730_v12 = vld [vmem:[#allocation26 + $0x88] sm:$0xff]   ;;  %v14182_v24 = vld [vmem:[#allocation7 + $0x157] sm:$0xff] }
 0xae9   :  { %v11298_v40 = vpop.permute.xlu0 %11297  ;;  %7026 = vmatprep.subr.bf16.mxu1 %v12176_v38  ;;  %v9993_v28 = vpack.c.bf16 %v6534_v0, %v6533_v5  ;;  %v14151_v26 = vld [vmem:[#allocation7 + $0x1b8] sm:$0xff]  ;;  %v6802_v0 = vld [vmem:[#allocation7 + $0x21] sm:$0xff] }
 0xaea   :  { %v11300_v10 = vunpack.i.h.bf16 %v11298_v40  ;;  %v11299_v15 = vunpack.i.l.bf16 %v11298_v40  ;;  %v14155_v18 = vpack.i.bf16 %v14151_v26, %v14149_v46  ;;  %v14188_v13 = vld [vmem:[#allocation7 + $0x398] sm:$0xff] }
 0xaeb   :  { %6748 = vmatmul.mubr.bf16.gmra.mrb[100].mxu1 %v9993_v28  ;;  %v10000_v28 = vpack.c.bf16 %v6803_v57, %v6802_v0  ;;  %v11386_v33 = vpack.i.bf16 %v14188_v13, %v13967_v23 }
 0xaec   :  { %7027 = vmatpush1.bf16.msra.mxu1 %v11728_v36  ;;  %9725 = vmatprep.mubr.msk.bf16.mxu1 %vm256_vm0, %v9996_v31  ;;  %v6535_v59 = vsel %vm256_vm0, %v13878_v35, %v11299_v15  ;;  %v6536_v58 = vsel %vm256_vm0, %v13875_v14, %v11300_v10  ;;  %v9998_v35 = vpack.c.bf16 %v6498_v51, %v6497_v53  ;;  %v11734_v14 = vld [vmem:[#allocation26 + $0x98] sm:$0xff]   ;;  %v14207_v15 = vld [vmem:[#allocation7 + $0x187] sm:$0xff] }
 0xaed   :  { %11347 = vrot.lane.b32.xlu1 %v14155_v18, %s12158_s18  ;;  %v11308_v22 = vpop.permute.xlu0 %11307  ;;  %7028 = vmatprep.subr.bf16.mxu1 %v12176_v38  ;;  %v9995_v43 = vpack.c.bf16 %v6536_v58, %v6535_v59  ;;  %v14199_v10 = vpack.c.bf16 %v14136_v20, %v14134_v42  ;;  %v14219_v58 = vpack.c.bf16 %v14151_v26, %v14149_v46 }
 0xaee   :  { %v11310_v63 = vunpack.i.h.bf16 %v11308_v22  ;;  %v11309_v8 = vunpack.i.l.bf16 %v11308_v22 }
 0xaf0   :  { %7029 = vmatpush1.bf16.msra.mxu1 %v11730_v12  ;;  %v6537_v4 = vsel %vm256_vm0, %v6481_v48, %v11309_v8  ;;  %v11740_v12 = vld [vmem:[#allocation26 + $0xb0] sm:$0xff]   ;;  %v14230_v8 = vld [vmem:[#allocation7 + $0x19f] sm:$0xff] }
 0xaf1   :  { %11357 = vrot.lane.b32.xlu1 %v11356_v29, %s12158_s18  ;;  %v14169_v25 = vpop.permute.xlu0 %11317  ;;  %7030 = vmatprep.subr.bf16.mxu1 %v12176_v38  ;;  %v6482_v29 = vld [vmem:[#allocation7 + $0x290] sm:$0xff] }
 0xaf2   :  { %v6538_v62 = vsel %vm256_vm0, %v6482_v29, %v11310_v63  ;;  %v11320_v51 = vunpack.i.h.bf16 %v14169_v25  ;;  %v6805_v48 = vld [vmem:[#allocation7 + $0x69] sm:$0xff] }
 0xaf3   :  { %6756 = vmatmul.mubr.bf16.gmra.mrb[104].mxu1 %v9995_v43  ;;  %v9997_v5 = vpack.c.bf16 %v6538_v62, %v6537_v4  ;;  %v6177_v29 = vld [vmem:[#allocation7 + $0x308] sm:$0xff]  ;;  %v6176_v62 = vld [vmem:[#allocation7 + $0x2f0] sm:$0xff] }
 0xaf4   :  { %7031 = vmatpush1.bf16.msra.mxu1 %v11732_v21  ;;  %9726 = vmatprep.mubr.msk.bf16.mxu1 %vm256_vm0, %v9998_v35  ;;  %v11319_v21 = vunpack.i.l.bf16 %v14169_v25  ;;  %v14232_v35 = vld [vmem:[#allocation7 + $0x1b7] sm:$0xff]  ;;  %v6843_v25 = vsel %vm256_vm0, %v13889_v19, %v11320_v51  ;;  %v11436_v0 = vpack.i.bf16 %v6177_v29, %v6176_v62 }
 0xaf5   :  { %11367 = vrot.lane.b32.xlu1 %v11366_v1, %s12158_s18  ;;  %v11323_v55 = vpop.permute.xlu0 %11322  ;;  %7032 = vmatprep.subr.bf16.mxu1 %v12176_v38  ;;  %v11736_v1 = vld [vmem:[#allocation26 + $0xa0] sm:$0xff]   ;;  %v6804_v19 = vld [vmem:[#allocation7 + $0x51] sm:$0xff] }
 0xaf6   :  { %v11325_v60 = vunpack.i.h.bf16 %v11323_v55  ;;  %v11324_v39 = vunpack.i.l.bf16 %v11323_v55 }
 0xaf8   :  { %7033 = vmatpush1.bf16.msra.mxu1 %v11734_v14  ;;  %v5912_v50 = vsel %vm256_vm0, %v14180_v16, %v11324_v39  ;;  %v5913_v56 = vsel %vm256_vm0, %v14182_v24, %v11325_v60  ;;  %v6842_v14 = vsel %vm256_vm0, %v13892_v3, %v11319_v21  ;;  %v11758_v3 = vld [vmem:[#allocation26 + $0xc0] sm:$0xff]  }
 0xaf9   :  { %11377 = vrot.lane.b32.xlu1 %v11376_v32, %s12158_s18  ;;  %v11333_v34 = vpop.permute.xlu0 %11332  ;;  %7034 = vmatprep.subr.bf16.mxu1 %v12176_v38  ;;  %v9977_v30 = vpack.c.bf16 %v5913_v56, %v5912_v50  ;;  %v14205_v32 = vld [vmem:[#allocation7 + $0x16f] sm:$0xff]  ;;  %v9999_v60 = vpack.c.bf16 %v6843_v25, %v6842_v14  ;;  %v10002_v56 = vpack.c.bf16 %v6805_v48, %v6804_v19 }
 0xafa   :  { %v11335_v36 = vunpack.i.h.bf16 %v11333_v34  ;;  %v11334_v40 = vunpack.i.l.bf16 %v11333_v34  ;;  %v11760_v34 = vld [vmem:[#allocation26 + $0xc8] sm:$0xff]   ;;  %v11747_v14 = vld [vmem:[#allocation26 + $0x10] sm:$0xff]  }
 0xafb   :  { %6128 = vmatmul.mubr.bf16.gmra.mrb[92].mxu0 %v9977_v30  ;;  %6764 = vmatmul.mubr.bf16.gmra.mrb[108].mxu1 %v9997_v5 }
 0xafc   :  { %7035 = vmatpush1.bf16.msra.mxu1 %v11736_v1  ;;  %9748 = vmatprep.mubr.msk.bf16.mxu1 %vm256_vm0, %v10000_v28  ;;  %v5914_v23 = vsel %vm256_vm0, %v14205_v32, %v11334_v40  ;;  %v5915_v31 = vsel %vm256_vm0, %v14207_v15, %v11335_v36  ;;  %v14247_v1 = vpack.c.bf16 %v6177_v29, %v6176_v62  ;;  %v8661_v36 = vld [vmem:[#allocation7 + $0x338] sm:$0xff] }
 0xafd   :  { %11387 = vrot.lane.b32.xlu1 %v11386_v33, %s12158_s18  ;;  %9677 = vmatprep.mubr.msk.bf16.mxu0 %vm256_vm0, %v14199_v10  ;;  %v11343_v7 = vpop.permute.xlu0 %11342  ;;  %v9979_v59 = vpack.c.bf16 %v5915_v31, %v5914_v23  ;;  %v11745_v40 = vld [vmem:[#allocation26] sm:$0xff]   ;;  %v11746_v31 = vld [vmem:[#allocation26 + $0x8] sm:$0xff]  }
 0xafe   :  { %7036 = vmatprep.subr.bf16.mxu1 %v12176_v38  ;;  %v11345_v43 = vunpack.i.h.bf16 %v11343_v7  ;;  %v11344_v53 = vunpack.i.l.bf16 %v11343_v7 }
 0xb00   :  { %7037 = vmatpush1.bf16.msra.mxu1 %v11738_v17  ;;  %v5916_v55 = vsel %vm256_vm0, %v14230_v8, %v11344_v53 }
 0xb01   :  { %11397 = vrot.lane.b32.xlu1 %v13981_v61, %s12158_s18  ;;  %v11353_v22 = vpop.permute.xlu0 %11352  ;;  %7038 = vmatprep.subr.bf16.mxu1 %v12176_v38  ;;  %v11742_v61 = vld [vmem:[#allocation26 + $0xb8] sm:$0xff]  }
 0xb02   :  { %v11355_v57 = vunpack.i.h.bf16 %v11353_v22  ;;  %v11354_v50 = vunpack.i.l.bf16 %v11353_v22 }
 0xb03   :  { %6136 = vmatmul.mubr.bf16.gmra.mrb[96].mxu0 %v9979_v59  ;;  %v14273_v59 = vld [vmem:[#allocation7 + $0x31f] sm:$0xff] }
 0xb04   :  { %7039 = vmatpush1.bf16.msra.mxu1 %v11740_v12  ;;  %9678 = vmatprep.mubr.msk.bf16.mxu0 %vm256_vm0, %v14219_v58  ;;  %v6217_v30 = vsel %vm256_vm0, %v14002_v52, %v11355_v57  ;;  %v6216_v5 = vsel %vm256_vm0, %v13955_v54, %v11354_v50  ;;  %v11762_v54 = vld [vmem:[#allocation26 + $0xd0] sm:$0xff]   ;;  %v11748_v50 = vld [vmem:[#allocation26 + $0x18] sm:$0xff]  }
 0xb05   :  { %11407 = vrot.lane.b32.xlu1 %v14123_v6, %s12158_s18  ;;  %v14227_v63 = vpop.permute.xlu0 %11362  ;;  %7040 = vmatprep.subr.bf16.mxu1 %v12176_v38  ;;  %v5917_v6 = vsel %vm256_vm0, %v14232_v35, %v11345_v43  ;;  %v9983_v28 = vpack.c.bf16 %v6217_v30, %v6216_v5  ;;  %v8663_v12 = vld [vmem:[#allocation7 + $0x368] sm:$0xff]  ;;  %v8662_v43 = vld [vmem:[#allocation7 + $0x350] sm:$0xff] }
 0xb06   :  { %v9981_v4 = vpack.c.bf16 %v5917_v6, %v5916_v55  ;;  %v11365_v17 = vunpack.i.h.bf16 %v14227_v63  ;;  %v11364_v7 = vunpack.i.l.bf16 %v14227_v63  ;;  %v11764_v63 = vld [vmem:[#allocation26 + $0xd8] sm:$0xff]   ;;  %v11456_v25 = vpack.i.bf16 %v8663_v12, %v8662_v43  ;;  %v14315_v5 = vld [vmem:[#allocation7 + $0x367] sm:$0xff] }
 0xb07   :  { %v14290_v29 = vpack.c.bf16 %v8663_v12, %v8662_v43  ;;  %v14313_v30 = vld [vmem:[#allocation7 + $0x34f] sm:$0xff]  ;;  %v11750_v43 = vld [vmem:[#allocation26 + $0x28] sm:$0xff]  }
 0xb08   :  { %7041 = vmatpush1.bf16.msra.mxu1 %v11742_v61  ;;  %v6218_v53 = vsel %vm256_vm0, %v14273_v59, %v11364_v7  ;;  %v6219_v61 = vsel %vm256_vm0, %v14026_v45, %v11365_v17  ;;  %v11749_v7 = vld [vmem:[#allocation26 + $0x20] sm:$0xff]  }
 0xb09   :  { %11417 = vrot.lane.b32.xlu1 %v14140_v11, %s12158_s18  ;;  %v14244_v39 = vpop.permute.xlu0 %11372  ;;  %7323 = vmatprep.subr.bf16.mxu1 %v12176_v38  ;;  %v9985_v45 = vpack.c.bf16 %v6219_v61, %v6218_v53 }
 0xb0b   :  { %7051 = vmatmul.mubr.bf16.vlgmr.msra.gmra.mrb[96].mxu1 %v9999_v60  ;;  %6144 = vmatmul.mubr.bf16.gmra.mrb[100].mxu0 %v9981_v4  ;;  %v11375_v4 = vunpack.i.h.bf16 %v14244_v39 }
 0xb0c   :  { %9749 = vmatprep.mubr.msk.bf16.mxu1 %vm256_vm0, %v10002_v56  ;;  %9699 = vmatprep.mubr.msk.bf16.mxu0 %vm256_vm0, %v14247_v1 }
 0xb0d   :  { %11427 = vrot.lane.b32.xlu1 %v14155_v18, %s12158_s18  ;;  %v14254_v11 = vpop.permute.xlu0 %11382  ;;  %7324 = vmatpush1.bf16.msra.mxu1 %v11758_v3  ;;  %v8660_v18 = vld [vmem:[#allocation7 + $0x320] sm:$0xff] }
 0xb0e   :  { %7325 = vmatprep.subr.bf16.mxu1 %v12176_v38  ;;  %v14266_v52 = vpack.c.bf16 %v8661_v36, %v8660_v18  ;;  %v11446_v23 = vpack.i.bf16 %v8661_v36, %v8660_v18  ;;  %v14296_v3 = vld [vmem:[#allocation7 + $0x380] sm:$0xff] }
 0xb0f   :  { %v11466_v57 = vpack.i.bf16 %v14188_v13, %v14296_v3  ;;  %v11768_v18 = vld [vmem:[#allocation26 + $0xe8] sm:$0xff]  }
 0xb11   :  { %11437 = vrot.lane.b32.xlu1 %v11436_v0, %s12158_s18  ;;  %v14262_v33 = vpop.permute.xlu0 %11392  ;;  %7326 = vmatpush1.bf16.msra.mxu1 %v11760_v34 }
 0xb12   :  { %7327 = vmatprep.subr.bf16.mxu1 %v12176_v38 }
 0xb13   :  { %6426 = vmatmul.mubr.bf16.vlgmr.msra.gmra.mrb[88].mxu0 %v9983_v28  ;;  %v6221_v28 = vsel %vm256_vm0, %v14315_v5, %v11375_v4  ;;  %v7422_v4 = vld [vmem:[#allocation7 + $0x110] sm:$0xff] }
 0xb14   :  { %7639 = vmatpush1.bf16.msra.mxu0 %v11745_v40  ;;  %9700 = vmatprep.mubr.msk.bf16.mxu0 %vm256_vm0, %v14266_v52 }
 0xb15   :  { %11447 = vrot.lane.b32.xlu1 %v11446_v23, %s12158_s18  ;;  %v11403_v22 = vpop.permute.xlu0 %11402  ;;  %7640 = vmatprep.subr.bf16.mxu0 %v12176_v38 }
 0xb16   :  { %v11405_v51 = vunpack.i.h.bf16 %v11403_v22  ;;  %v11404_v21 = vunpack.i.l.bf16 %v11403_v22  ;;  %7328 = vmatpush1.bf16.msra.mxu1 %v11762_v54  ;;  %v11385_v22 = vunpack.i.h.bf16 %v14254_v11 }
 0xb17   :  { %7329 = vmatprep.subr.bf16.mxu1 %v12176_v38 }
 0xb18   :  { %7641 = vmatpush1.bf16.msra.mxu0 %v11746_v31  ;;  %v14282_v55 = vsel %vm256_vm0, %v14180_v16, %v11404_v21  ;;  %v14286_v6 = vsel %vm256_vm0, %v14182_v24, %v11405_v51  ;;  %v11374_v16 = vunpack.i.l.bf16 %v14244_v39  ;;  %v11766_v24 = vld [vmem:[#allocation26 + $0xe0] sm:$0xff]   ;;  %v11384_v51 = vunpack.i.l.bf16 %v14254_v11 }
 0xb19   :  { %11457 = vrot.lane.b32.xlu1 %v11456_v25, %s12158_s18  ;;  %v11413_v48 = vpop.permute.xlu0 %11412  ;;  %7642 = vmatprep.subr.bf16.mxu0 %v12176_v38  ;;  %v10017_v60 = vpack.c.bf16 %v14286_v6, %v14282_v55  ;;  %v11486_v21 = vpack.i.bf16 %v14134_v42, %v14118_v2  ;;  %v6166_v11 = vld [vmem:[#allocation7 + $0x37f] sm:$0xff]  ;;  %v11772_v2 = vld [vmem:[#allocation26 + $0xf8] sm:$0xff]   ;;  %v11496_v42 = vpack.i.bf16 %v14149_v46, %v14136_v20  ;;  %v11751_v25 = vld [vmem:[#allocation26 + $0x30] sm:$0xff]  }
 0xb1a   :  { %v11415_v19 = vunpack.i.h.bf16 %v11413_v48  ;;  %v11414_v62 = vunpack.i.l.bf16 %v11413_v48  ;;  %7330 = vmatpush1.bf16.msra.mxu1 %v11764_v63  ;;  %v6222_v61 = vsel %vm256_vm0, %v6166_v11, %v11384_v51  ;;  %v11752_v46 = vld [vmem:[#allocation26 + $0x38] sm:$0xff]   ;;  %v11395_v51 = vunpack.i.h.bf16 %v14262_v33 }
 0xb1b   :  { %6434 = vmatmul.mubr.bf16.gmra.mrb[92].mxu0 %v9985_v45  ;;  %7331 = vmatprep.subr.bf16.mxu1 %v12176_v38 }
 0xb1c   :  { %7643 = vmatpush1.bf16.msra.mxu0 %v11747_v14  ;;  %9701 = vmatprep.mubr.msk.bf16.mxu0 %vm256_vm0, %v14290_v29  ;;  %v14305_v39 = vsel %vm256_vm0, %v14205_v32, %v11414_v62  ;;  %v14309_v56 = vsel %vm256_vm0, %v14207_v15, %v11415_v19  ;;  %v14319_v32 = vld [vmem:[#allocation7 + $0x128] sm:$0xff]  ;;  %v6220_v15 = vsel %vm256_vm0, %v14313_v30, %v11374_v16  ;;  %v8970_v14 = vld [vmem:[#allocation7 + $0x1d0] sm:$0xff] }
 0xb1d   :  { %11467 = vrot.lane.b32.xlu1 %v11466_v57, %s12158_s18  ;;  %v11423_v34 = vpop.permute.xlu0 %11422  ;;  %7644 = vmatprep.subr.bf16.mxu0 %v12176_v38  ;;  %v10019_v0 = vpack.c.bf16 %v14309_v56, %v14305_v39  ;;  %v11476_v17 = vpack.i.bf16 %v14116_v47, %v14319_v32  ;;  %v9987_v12 = vpack.c.bf16 %v6221_v28, %v6220_v15  ;;  %v11776_v15 = vld [vmem:[#allocation26 + $0x108] sm:$0xff]   ;;  %v6807_v56 = vld [vmem:[#allocation7 + $0x99] sm:$0xff] }
 0xb1e   :  { %v11425_v36 = vunpack.i.h.bf16 %v11423_v34  ;;  %v11424_v40 = vunpack.i.l.bf16 %v11423_v34  ;;  %7332 = vmatpush1.bf16.msra.mxu1 %v11766_v24  ;;  %v10016_v62 = vpack.c.bf16 %v14319_v32, %v7422_v4  ;;  %v11774_v24 = vld [vmem:[#allocation26 + $0x100] sm:$0xff]   ;;  %v11506_v20 = vpack.i.bf16 %v8970_v14, %v14151_v26  ;;  %v11771_v4 = vld [vmem:[#allocation26 + $0x98] sm:$0xff]  }
 0xb1f   :  { %7333 = vmatprep.subr.bf16.mxu1 %v12176_v38 }
 0xb20   :  { %7645 = vmatpush1.bf16.msra.mxu0 %v11748_v50  ;;  %v14330_v54 = vsel %vm256_vm0, %v14230_v8, %v11424_v40  ;;  %v14334_v23 = vsel %vm256_vm0, %v14232_v35, %v11425_v36  ;;  %v9990_v8 = vpack.c.bf16 %v14188_v13, %v14296_v3  ;;  %v11770_v35 = vld [vmem:[#allocation26 + $0xf0] sm:$0xff]   ;;  %v6167_v13 = vld [vmem:[#allocation7 + $0x397] sm:$0xff] }
 0xb21   :  { %11477 = vrot.lane.b32.xlu1 %v11476_v17, %s12158_s18  ;;  %v14337_v31 = vpop.permute.xlu0 %11432  ;;  %7646 = vmatprep.subr.bf16.mxu0 %v12176_v38  ;;  %v10021_v47 = vpack.c.bf16 %v14334_v23, %v14330_v54  ;;  %v6223_v63 = vsel %vm256_vm0, %v6167_v13, %v11385_v22  ;;  %v11778_v17 = vld [vmem:[#allocation26 + $0x110] sm:$0xff]   ;;  %v14438_v54 = vld [vmem:[#allocation7 + $0x98] sm:$0xff] }
 0xb22   :  { %7334 = vmatpush1.bf16.msra.mxu1 %v11768_v18  ;;  %v9989_v45 = vpack.c.bf16 %v6223_v63, %v6222_v61  ;;  %v11755_v22 = vld [vmem:[#allocation26 + $0x50] sm:$0xff]   ;;  %v11773_v23 = vld [vmem:[#allocation26 + $0xa0] sm:$0xff]  }
 0xb23   :  { %6442 = vmatmul.mubr.bf16.gmra.mrb[96].mxu0 %v9987_v12  ;;  %7335 = vmatprep.subr.bf16.mxu1 %v12176_v38  ;;  %v11780_v12 = vld [vmem:[#allocation26 + $0x118] sm:$0xff]   ;;  %v11761_v61 = vld [vmem:[#allocation26 + $0x70] sm:$0xff]  }
 0xb24   :  { %7647 = vmatpush1.bf16.msra.mxu0 %v11749_v7  ;;  %9702 = vmatprep.mubr.msk.bf16.mxu0 %vm256_vm0, %v9990_v8  ;;  %v11754_v7 = vld [vmem:[#allocation26 + $0x48] sm:$0xff]   ;;  %v11394_v8 = vunpack.i.l.bf16 %v14262_v33  ;;  %v14417_v63 = vld [vmem:[#allocation7 + $0x50] sm:$0xff] }
 0xb25   :  { %11487 = vrot.lane.b32.xlu1 %v11486_v21, %s12158_s18  ;;  %v14351_v53 = vpop.permute.xlu0 %11442  ;;  %7648 = vmatprep.subr.bf16.mxu0 %v12176_v38  ;;  %v7463_v21 = vsel %vm256_vm0, %v14065_v44, %v11395_v51  ;;  %v11759_v33 = vld [vmem:[#allocation26 + $0x68] sm:$0xff]   ;;  %v11765_v44 = vld [vmem:[#allocation26 + $0x80] sm:$0xff]  }
 0xb26   :  { %7336 = vmatpush1.bf16.msra.mxu1 %v11770_v35  ;;  %v11756_v35 = vld [vmem:[#allocation26 + $0x58] sm:$0xff]  }
 0xb27   :  { %7337 = vmatprep.subr.bf16.mxu1 %v12176_v38 }
 0xb28   :  { %7649 = vmatpush1.bf16.msra.mxu0 %v11750_v43  ;;  %v7462_v43 = vsel %vm256_vm0, %v14063_v41, %v11394_v8  ;;  %v11763_v41 = vld [vmem:[#allocation26 + $0x78] sm:$0xff]  }
 0xb29   :  { %11497 = vrot.lane.b32.xlu1 %v11496_v42, %s12158_s18  ;;  %v11453_v48 = vpop.permute.xlu0 %11452  ;;  %7650 = vmatprep.subr.bf16.mxu0 %v12176_v38  ;;  %v7108_v8 = vld [vmem:[#allocation7 + $0x219] sm:$0xff] }
 0xb2a   :  { %v11455_v16 = vunpack.i.h.bf16 %v11453_v48  ;;  %v11454_v19 = vunpack.i.l.bf16 %v11453_v48  ;;  %7338 = vmatpush1.bf16.msra.mxu1 %v11772_v2  ;;  %v14419_v2 = vld [vmem:[#allocation7 + $0x68] sm:$0xff] }
 0xb2b   :  { %6450 = vmatmul.mubr.bf16.gmra.mrb[100].mxu0 %v9989_v45  ;;  %7339 = vmatprep.subr.bf16.mxu1 %v12176_v38 }
 0xb2c   :  { %7651 = vmatpush1.bf16.msra.mxu0 %v11751_v25  ;;  %9796 = vmatprep.mubr.msk.bf16.mxu0 %vm256_vm0, %v10016_v62  ;;  %v14367_v57 = vsel %vm256_vm0, %v14313_v30, %v11454_v19  ;;  %v14371_v50 = vsel %vm256_vm0, %v14315_v5, %v11455_v16  ;;  %v11753_v30 = vld [vmem:[#allocation26 + $0x40] sm:$0xff]   ;;  %v6809_v62 = vld [vmem:[#allocation7 + $0xc9] sm:$0xff] }
 0xb2d   :  { %11507 = vrot.lane.b32.xlu1 %v11506_v20, %s12158_s18  ;;  %v11463_v34 = vpop.permute.xlu0 %11462  ;;  %7652 = vmatprep.subr.bf16.mxu0 %v12176_v38  ;;  %v10027_v26 = vpack.c.bf16 %v14371_v50, %v14367_v57  ;;  %v6806_v25 = vld [vmem:[#allocation7 + $0x81] sm:$0xff]  ;;  %s12177_s18 = smov [#allocation29]  }
 0xb2e   :  { %v11465_v36 = vunpack.i.h.bf16 %v11463_v34  ;;  %v11464_v40 = vunpack.i.l.bf16 %v11463_v34  ;;  %7340 = vmatpush1.bf16.msra.mxu1 %v11774_v24  ;;  %v14431_v45 = vpack.c.bf16 %v6807_v56, %v6806_v25  ;;  %v14436_v19 = vld [vmem:[#allocation7 + $0x80] sm:$0xff]  ;;  %v7110_v25 = vld [vmem:[#allocation7 + $0x249] sm:$0xff]  ;;  %s9274_s5 = sshll.u32 %s12177_s18, 4  ;;  %s9275_s5 = int_to_ptr.vmem [resolvable:$true] %s9274_s5 }
 0xb2f   :  { %7341 = vmatprep.subr.bf16.mxu1 %v12176_v38  ;;  %s12119_s9 = scalar_lea.vmem %s9275_s5, 4096  ;;  %p12124_p7 = scmp.lt.s32.totalorder %s9275_s5, %s9275_s5 }
 0xb30   :  { %7653 = vmatpush1.bf16.msra.mxu0 %v11752_v46  ;;  %v14379_v28 = vsel %vm256_vm0, %v6166_v11, %v11464_v40  ;;  %v14382_v5 = vsel %vm256_vm0, %v6167_v13, %v11465_v36  ;;  %v11757_v11 = vld [vmem:[#allocation26 + $0x60] sm:$0xff]   ;;  %v10015_v13 = vpack.c.bf16 %v7463_v21, %v7462_v43  ;;  %v6808_v46 = vld [vmem:[#allocation7 + $0xb1] sm:$0xff]  ;;  %v11434_v21 = vunpack.i.l.bf16 %v14337_v31  ;;  %p12120_p6 = scmp.ne.s32.totalorder %s9275_s5, %s12119_s9  ;;  %p12125_p8 = scmp.lt.s32.totalorder %s12119_s9, %s12119_s9 }
 0xb31   :  { %7654 = vmatprep.subr.bf16.mxu0 %v12176_v38  ;;  %v10029_v18 = vpack.c.bf16 %v14382_v5, %v14379_v28  ;;  %v14445_v40 = vpack.c.bf16 %v6809_v62, %v6808_v46  ;;  %v11784_v46 = vld [vmem:[#allocation26 + $0x8] sm:$0xff]   ;;  %v11796_v28 = vld [vmem:[#allocation26 + $0x38] sm:$0xff]  }
 0xb32   :  { %7342 = vmatpush1.bf16.msra.mxu1 %v11776_v15  ;;  %v11775_v15 = vld [vmem:[#allocation26 + $0xa8] sm:$0xff]   ;;  %p12126_p9 = por %p12125_p8, %p12124_p7 }
 0xb33   :  { %7343 = vmatprep.subr.bf16.mxu1 %v12176_v38 }
 0xb34   :  { %7655 = vmatpush1.bf16.msra.mxu0 %v11753_v30  ;;  %p12127_p10 = pnand %p12126_p9, %p12120_p6 }
 0xb35   :  { %7656 = vmatprep.subr.bf16.mxu0 %v12176_v38 }
 0xb36   :  { %7344 = vmatpush1.bf16.msra.mxu1 %v11778_v17  ;;  %v14452_v17 = vld [vmem:[#allocation7 + $0xb0] sm:$0xff] }
 0xb37   :  { %7345 = vmatprep.subr.bf16.mxu1 %v12176_v38 }
 0xb38   :  { %7657 = vmatpush1.bf16.msra.mxu0 %v11754_v7  ;;  %v14454_v7 = vld [vmem:[#allocation7 + $0xc8] sm:$0xff] }
 0xb39   :  { %7658 = vmatprep.subr.bf16.mxu0 %v12176_v38 }
 0xb3a   :  { %7346 = vmatpush1.bf16.msra.mxu1 %v11780_v12  ;;  %v11777_v12 = vld [vmem:[#allocation26 + $0xb0] sm:$0xff]  }
 0xb3b   :  { %8571 = vmatprep.subr.bf16.mxu1 %v12176_v38 }
 0xb3c   :  { %7659 = vmatpush1.bf16.msra.mxu0 %v11755_v22 }
 0xb3d   :  { %7660 = vmatprep.subr.bf16.mxu0 %v12176_v38 }
 0xb40   :  { %7661 = vmatpush1.bf16.msra.mxu0 %v11756_v35  ;;  %v11435_v35 = vunpack.i.h.bf16 %v14337_v31  ;;  %v14472_v31 = vld [vmem:[#allocation7 + $0x200] sm:$0xff] }
 0xb41   :  { %7949 = vmatprep.subr.bf16.mxu0 %v12176_v38 }
 0xb43   :  { %7671 = vmatmul.mubr.bf16.vlgmr.msra.gmra.mrb[104].mxu0 %v10015_v13  ;;  %v7107_v13 = vld [vmem:[#allocation7 + $0x201] sm:$0xff] }
 0xb44   :  { %9797 = vmatprep.mubr.msk.bf16.mxu0 %vm256_vm0, %v14127_v37  ;;  %7950 = vmatpush1.bf16.msra.mxu0 %v11757_v11  ;;  %v11767_v37 = vld [vmem:[#allocation26 + $0x88] sm:$0xff]  }
 0xb45   :  { %7951 = vmatprep.subr.bf16.mxu0 %v12176_v38 }
 0xb48   :  { %7952 = vmatpush1.bf16.msra.mxu0 %v11759_v33 }
 0xb49   :  { %7953 = vmatprep.subr.bf16.mxu0 %v12176_v38 }
 0xb4b   :  { %7679 = vmatmul.mubr.bf16.gmra.mrb[108].mxu0 %v10017_v60  ;;  %v11769_v60 = vld [vmem:[#allocation26 + $0x90] sm:$0xff]  }
 0xb4c   :  { %9798 = vmatprep.mubr.msk.bf16.mxu0 %vm256_vm0, %v14199_v10  ;;  %7954 = vmatpush1.bf16.msra.mxu0 %v11761_v61 }
 0xb4d   :  { %7955 = vmatprep.subr.bf16.mxu0 %v12176_v38 }
 0xb50   :  { %7956 = vmatpush1.bf16.msra.mxu0 %v11763_v41  ;;  %v14465_v41 = vpack.c.bf16 %v7108_v8, %v7107_v13  ;;  %v7111_v13 = vld [vmem:[#allocation7 + $0x261] sm:$0xff] }
 0xb51   :  { %7957 = vmatprep.subr.bf16.mxu0 %v12176_v38 }
 0xb53   :  { %7687 = vmatmul.mubr.bf16.gmra.mrb[112].mxu0 %v10019_v0 }
 0xb54   :  { %9799 = vmatprep.mubr.msk.bf16.mxu0 %vm256_vm0, %v14219_v58  ;;  %7958 = vmatpush1.bf16.msra.mxu0 %v11765_v44  ;;  %v11779_v44 = vld [vmem:[#allocation26 + $0xb8] sm:$0xff]  }
 0xb55   :  { %7959 = vmatprep.subr.bf16.mxu0 %v12176_v38 }
 0xb56   :  { %v11328_v10 = vpop.permute.xlu1 %11327 }
 0xb57   :  { %v11330_v55 = vunpack.i.h.bf16 %v11328_v10  ;;  %v11329_v6 = vunpack.i.l.bf16 %v11328_v10  ;;  %v7718_v10 = vld [vmem:[#allocation7 + $0x307] sm:$0xff] }
 0xb58   :  { %7960 = vmatpush1.bf16.msra.mxu0 %v11767_v37  ;;  %v7717_v37 = vld [vmem:[#allocation7 + $0x2ef] sm:$0xff] }
 0xb59   :  { %7961 = vmatprep.subr.bf16.mxu0 %v12176_v38  ;;  %v6844_v39 = vsel %vm256_vm0, %v14417_v63, %v11329_v6  ;;  %v6845_v58 = vsel %vm256_vm0, %v14419_v2, %v11330_v55  ;;  %v7774_v55 = vsel %vm256_vm0, %v7718_v10, %v11435_v35  ;;  %v7773_v6 = vsel %vm256_vm0, %v7717_v37, %v11434_v21 }
 0xb5a   :  { %v11338_v0 = vpop.permute.xlu1 %11337  ;;  %v10001_v42 = vpack.c.bf16 %v6845_v58, %v6844_v39 }
 0xb5b   :  { %7695 = vmatmul.mubr.bf16.gmra.mrb[116].mxu0 %v10021_v47  ;;  %v11340_v14 = vunpack.i.h.bf16 %v11338_v0  ;;  %v11339_v48 = vunpack.i.l.bf16 %v11338_v0  ;;  %v11781_v0 = vld [vmem:[#allocation26 + $0xc0] sm:$0xff]  }
 0xb5c   :  { %7962 = vmatpush1.bf16.msra.mxu0 %v11769_v60  ;;  %9821 = vmatprep.mubr.msk.bf16.mxu0 %vm256_vm0, %v14247_v1  ;;  %v14474_v60 = vld [vmem:[#allocation7 + $0x218] sm:$0xff] }
 0xb5d   :  { %7059 = vmatmul.mubr.bf16.gmra.mrb[100].mxu1 %v10001_v42  ;;  %7963 = vmatprep.subr.bf16.mxu0 %v12176_v38  ;;  %v6846_v47 = vsel %vm256_vm0, %v14436_v19, %v11339_v48  ;;  %v6847_v1 = vsel %vm256_vm0, %v14438_v54, %v11340_v14  ;;  %v10023_v42 = vpack.c.bf16 %v7774_v55, %v7773_v6  ;;  %v11445_v14 = vunpack.i.h.bf16 %v14351_v53 }
 0xb5e   :  { %9750 = vmatprep.mubr.msk.bf16.mxu1 %vm256_vm0, %v14431_v45  ;;  %v10003_v20 = vpack.c.bf16 %v6847_v1, %v6846_v47  ;;  %v11444_v48 = vunpack.i.l.bf16 %v14351_v53  ;;  %v7109_v47 = vld [vmem:[#allocation7 + $0x231] sm:$0xff] }
 0xb5f   :  { %v11348_v16 = vpop.permute.xlu1 %11347  ;;  %v7720_v53 = vld [vmem:[#allocation7 + $0x337] sm:$0xff] }
 0xb60   :  { %7964 = vmatpush1.bf16.msra.mxu0 %v11771_v4  ;;  %v11350_v34 = vunpack.i.h.bf16 %v11348_v16  ;;  %v11349_v36 = vunpack.i.l.bf16 %v11348_v16  ;;  %v11782_v4 = vld [vmem:[#allocation26] sm:$0xff]  }
 0xb61   :  { %7965 = vmatprep.subr.bf16.mxu0 %v12176_v38 }
 0xb62   :  { %v6848_v22 = vsel %vm256_vm0, %v14452_v17, %v11349_v36  ;;  %v6849_v51 = vsel %vm256_vm0, %v14454_v7, %v11350_v34  ;;  %v7775_v34 = vsel %vm256_vm0, %v14273_v59, %v11444_v48  ;;  %v7776_v36 = vsel %vm256_vm0, %v7720_v53, %v11445_v14  ;;  %v7112_v59 = vld [vmem:[#allocation7 + $0x279] sm:$0xff] }
 0xb63   :  { %v11358_v24 = vpop.permute.xlu1 %11357  ;;  %v10005_v11 = vpack.c.bf16 %v6849_v51, %v6848_v22  ;;  %v11785_v51 = vld [vmem:[#allocation26 + $0xd0] sm:$0xff]   ;;  %v10025_v21 = vpack.c.bf16 %v7776_v36, %v7775_v34  ;;  %v14518_v10 = vpack.c.bf16 %v7112_v59, %v7111_v13  ;;  %v14538_v48 = vld [vmem:[#allocation7 + $0x260] sm:$0xff] }
 0xb64   :  { %7966 = vmatpush1.bf16.msra.mxu0 %v11773_v23  ;;  %v11360_v33 = vunpack.i.h.bf16 %v11358_v24  ;;  %v11359_v61 = vunpack.i.l.bf16 %v11358_v24  ;;  %v14491_v24 = vpack.c.bf16 %v7110_v25, %v7109_v47  ;;  %v7113_v34 = vld [vmem:[#allocation7 + $0x291] sm:$0xff]  ;;  %v11791_v59 = vld [vmem:[#allocation26 + $0xe8] sm:$0xff]  }
 0xb65   :  { %7067 = vmatmul.mubr.bf16.gmra.mrb[104].mxu1 %v10003_v20  ;;  %7967 = vmatprep.subr.bf16.mxu0 %v12176_v38  ;;  %v11783_v20 = vld [vmem:[#allocation26 + $0xc8] sm:$0xff]   ;;  %v7097_v13 = vld [vmem:[#allocation7 + $0x290] sm:$0xff] }
 0xb66   :  { %9751 = vmatprep.mubr.msk.bf16.mxu1 %vm256_vm0, %v14445_v40  ;;  %v7148_v58 = vsel %vm256_vm0, %v14474_v60, %v11360_v33  ;;  %v7147_v56 = vsel %vm256_vm0, %v14472_v31, %v11359_v61 }
 0xb67   :  { %v14450_v30 = vpop.permute.xlu1 %11367  ;;  %v10007_v16 = vpack.c.bf16 %v7148_v58, %v7147_v56 }
 0xb68   :  { %7968 = vmatpush1.bf16.msra.mxu0 %v11775_v15  ;;  %v11370_v1 = vunpack.i.h.bf16 %v14450_v30  ;;  %v11369_v62 = vunpack.i.l.bf16 %v14450_v30  ;;  %v14502_v30 = vld [vmem:[#allocation7 + $0x248] sm:$0xff] }
 0xb69   :  { %7969 = vmatprep.subr.bf16.mxu0 %v12176_v38 }
 0xb6a   :  { %v7150_v35 = vsel %vm256_vm0, %v14502_v30, %v11370_v1 }
 0xb6b   :  { %v14463_v43 = vpop.permute.xlu1 %11377 }
 0xb6c   :  { %7970 = vmatpush1.bf16.msra.mxu0 %v11777_v12  ;;  %v11380_v6 = vunpack.i.h.bf16 %v14463_v43  ;;  %v11379_v58 = vunpack.i.l.bf16 %v14463_v43 }
 0xb6d   :  { %7075 = vmatmul.mubr.bf16.gmra.mrb[108].mxu1 %v10005_v11  ;;  %7971 = vmatprep.subr.bf16.mxu0 %v12176_v38  ;;  %v11786_v11 = vld [vmem:[#allocation26 + $0x10] sm:$0xff]  }
 0xb6e   :  { %9772 = vmatprep.mubr.msk.bf16.mxu1 %vm256_vm0, %v14465_v41 }
 0xb6f   :  { %v14476_v39 = vpop.permute.xlu1 %11387 }
 0xb70   :  { %7972 = vmatpush1.bf16.msra.mxu0 %v11779_v44 }
 0xb71   :  { %8256 = vmatprep.subr.bf16.mxu0 %v12176_v38 }
 0xb73   :  { %v14485_v23 = vpop.permute.xlu1 %11397  ;;  %7982 = vmatmul.mubr.bf16.vlgmr.msra.gmra.mrb[104].mxu0 %v10023_v42  ;;  %v11788_v42 = vld [vmem:[#allocation26 + $0x18] sm:$0xff]  }
 0xb74   :  { %9822 = vmatprep.mubr.msk.bf16.mxu0 %vm256_vm0, %v14266_v52  ;;  %8257 = vmatpush1.bf16.msra.mxu0 %v11781_v0  ;;  %v14500_v52 = vld [vmem:[#allocation7 + $0x230] sm:$0xff] }
 0xb75   :  { %7356 = vmatmul.mubr.bf16.vlgmr.msra.gmra.mrb[96].mxu1 %v10007_v16  ;;  %8258 = vmatprep.subr.bf16.mxu0 %v12176_v38  ;;  %v7149_v8 = vsel %vm256_vm0, %v14500_v52, %v11369_v62  ;;  %v7151_v62 = vsel %vm256_vm0, %v14538_v48, %v11379_v58 }
 0xb76   :  { %8572 = vmatpush1.bf16.msra.mxu1 %v11782_v4  ;;  %9773 = vmatprep.mubr.msk.bf16.mxu1 %vm256_vm0, %v14491_v24  ;;  %v10009_v37 = vpack.c.bf16 %v7150_v35, %v7149_v8  ;;  %v14540_v4 = vld [vmem:[#allocation7 + $0x278] sm:$0xff]  ;;  %v11389_v8 = vunpack.i.l.bf16 %v14476_v39 }
 0xb77   :  { %v11408_v15 = vpop.permute.xlu1 %11407  ;;  %8573 = vmatprep.subr.bf16.mxu1 %v12176_v38 }
 0xb78   :  { %v11410_v12 = vunpack.i.h.bf16 %v11408_v15  ;;  %v11409_v22 = vunpack.i.l.bf16 %v11408_v15  ;;  %8259 = vmatpush1.bf16.msra.mxu0 %v11783_v20  ;;  %v7114_v20 = vld [vmem:[#allocation7 + $0x2a9] sm:$0xff] }
 0xb79   :  { %8260 = vmatprep.subr.bf16.mxu0 %v12176_v38 }
 0xb7a   :  { %8574 = vmatpush1.bf16.msra.mxu1 %v11784_v46  ;;  %v14511_v33 = vsel %vm256_vm0, %v14417_v63, %v11409_v22  ;;  %v14515_v61 = vsel %vm256_vm0, %v14419_v2, %v11410_v12  ;;  %v11787_v2 = vld [vmem:[#allocation26 + $0xd8] sm:$0xff]   ;;  %v11790_v46 = vld [vmem:[#allocation26 + $0x20] sm:$0xff]  }
 0xb7b   :  { %v11418_v44 = vpop.permute.xlu1 %11417  ;;  %7990 = vmatmul.mubr.bf16.gmra.mrb[108].mxu0 %v10025_v21  ;;  %8575 = vmatprep.subr.bf16.mxu1 %v12176_v38  ;;  %v10041_v55 = vpack.c.bf16 %v14515_v61, %v14511_v33 }
 0xb7c   :  { %v11420_v56 = vunpack.i.h.bf16 %v11418_v44  ;;  %v11419_v0 = vunpack.i.l.bf16 %v11418_v44  ;;  %9823 = vmatprep.mubr.msk.bf16.mxu0 %vm256_vm0, %v14290_v29  ;;  %8261 = vmatpush1.bf16.msra.mxu0 %v11785_v51  ;;  %v7740_v29 = vld [vmem:[#allocation7 + $0x398] sm:$0xff]  ;;  %v14562_v51 = vpack.c.bf16 %v7114_v20, %v7113_v34  ;;  %v7098_v44 = vld [vmem:[#allocation7 + $0x2a8] sm:$0xff] }
 0xb7d   :  { %7364 = vmatmul.mubr.bf16.gmra.mrb[100].mxu1 %v10009_v37  ;;  %8262 = vmatprep.subr.bf16.mxu0 %v12176_v38  ;;  %v10030_v53 = vpack.c.bf16 %v7740_v29, %v14296_v3  ;;  %v11797_v34 = vld [vmem:[#allocation26 + $0x100] sm:$0xff]  }
 0xb7e   :  { %8576 = vmatpush1.bf16.msra.mxu1 %v11786_v11  ;;  %9774 = vmatprep.mubr.msk.bf16.mxu1 %vm256_vm0, %v14518_v10  ;;  %v14531_v25 = vsel %vm256_vm0, %v14436_v19, %v11419_v0  ;;  %v14535_v43 = vsel %vm256_vm0, %v14438_v54, %v11420_v56  ;;  %v11789_v19 = vld [vmem:[#allocation26 + $0xe0] sm:$0xff]   ;;  %v7152_v54 = vsel %vm256_vm0, %v14540_v4, %v11380_v6  ;;  %v11793_v6 = vld [vmem:[#allocation26 + $0xf0] sm:$0xff]  }
 0xb7f   :  { %v11428_v14 = vpop.permute.xlu1 %11427  ;;  %8577 = vmatprep.subr.bf16.mxu1 %v12176_v38  ;;  %v10043_v16 = vpack.c.bf16 %v14535_v43, %v14531_v25  ;;  %v10011_v22 = vpack.c.bf16 %v7152_v54, %v7151_v62  ;;  %v8041_v11 = vld [vmem:[#allocation7 + $0x140] sm:$0xff]  ;;  %v11794_v0 = vld [vmem:[#allocation26 + $0x30] sm:$0xff]   ;;  %v11795_v62 = vld [vmem:[#allocation26 + $0xf8] sm:$0xff]  }
 0xb80   :  { %v11430_v47 = vunpack.i.h.bf16 %v11428_v14  ;;  %v11429_v1 = vunpack.i.l.bf16 %v11428_v14  ;;  %8263 = vmatpush1.bf16.msra.mxu0 %v11787_v2  ;;  %v10032_v56 = vpack.c.bf16 %v8041_v11, %v14319_v32  ;;  %v11800_v11 = vld [vmem:[#allocation26 + $0x48] sm:$0xff]   ;;  %v11813_v25 = vld [vmem:[#allocation26 + $0xa0] sm:$0xff]  }
 0xb81   :  { %8264 = vmatprep.subr.bf16.mxu0 %v12176_v38  ;;  %v11814_v43 = vld [vmem:[#allocation26 + $0xa8] sm:$0xff]  }
 0xb82   :  { %8578 = vmatpush1.bf16.msra.mxu1 %v11788_v42  ;;  %v14552_v36 = vsel %vm256_vm0, %v14452_v17, %v11429_v1  ;;  %v14556_v15 = vsel %vm256_vm0, %v14454_v7, %v11430_v47  ;;  %v11390_v17 = vunpack.i.h.bf16 %v14476_v39  ;;  %v8355_v47 = vld [vmem:[#allocation7 + $0x21] sm:$0xff] }
 0xb83   :  { %v11438_v12 = vpop.permute.xlu1 %11437  ;;  %7998 = vmatmul.mubr.bf16.gmra.mrb[112].mxu0 %v10027_v26  ;;  %8579 = vmatprep.subr.bf16.mxu1 %v12176_v38  ;;  %v10045_v3 = vpack.c.bf16 %v14556_v15, %v14552_v36  ;;  %v11792_v26 = vld [vmem:[#allocation26 + $0x28] sm:$0xff]   ;;  %v11816_v36 = vld [vmem:[#allocation26 + $0xb8] sm:$0xff]  }
 0xb84   :  { %v11440_v35 = vunpack.i.h.bf16 %v11438_v12  ;;  %v11439_v7 = vunpack.i.l.bf16 %v11438_v12  ;;  %9824 = vmatprep.mubr.msk.bf16.mxu0 %vm256_vm0, %v10030_v53  ;;  %8265 = vmatpush1.bf16.msra.mxu0 %v11789_v19  ;;  %v7154_v58 = vsel %vm256_vm0, %v7098_v44, %v11390_v17  ;;  %v11798_v12 = vld [vmem:[#allocation26 + $0x40] sm:$0xff]   ;;  %v11818_v15 = vld [vmem:[#allocation26 + $0xc8] sm:$0xff]  }
 0xb85   :  { %7372 = vmatmul.mubr.bf16.gmra.mrb[104].mxu1 %v10011_v22  ;;  %8266 = vmatprep.subr.bf16.mxu0 %v12176_v38 }
 0xb86   :  { %v14572_v57 = vsel %vm256_vm0, %v14474_v60, %v11440_v35  ;;  %v14576_v50 = vsel %vm256_vm0, %v14472_v31, %v11439_v7  ;;  %8580 = vmatpush1.bf16.msra.mxu1 %v11790_v46  ;;  %9775 = vmatprep.mubr.msk.bf16.mxu1 %vm256_vm0, %v14562_v51  ;;  %v7153_v31 = vsel %vm256_vm0, %v7097_v13, %v11389_v8  ;;  %v11799_v7 = vld [vmem:[#allocation26 + $0x108] sm:$0xff]  }
 0xb87   :  { %v10047_v39 = vpack.c.bf16 %v14572_v57, %v14576_v50  ;;  %v11448_v21 = vpop.permute.xlu1 %11447  ;;  %8581 = vmatprep.subr.bf16.mxu1 %v12176_v38  ;;  %v10013_v29 = vpack.c.bf16 %v7154_v58, %v7153_v31  ;;  %v11400_v31 = vunpack.i.h.bf16 %v14485_v23  ;;  %v11399_v58 = vunpack.i.l.bf16 %v14485_v23  ;;  %v11820_v57 = vld [vmem:[#allocation26 + $0xd8] sm:$0xff]   ;;  %v14701_v50 = vld [vmem:[#allocation28] ss:$0 sm:$0xff] }
 0xb88   :  { %v11450_v60 = vunpack.i.h.bf16 %v11448_v21  ;;  %v11449_v37 = vunpack.i.l.bf16 %v11448_v21  ;;  %8267 = vmatpush1.bf16.msra.mxu0 %v11791_v59  ;;  %v8340_v59 = vld [vmem:[#allocation7 + $0x38] sm:$0xff] }
 0xb89   :  { %8268 = vmatprep.subr.bf16.mxu0 %v12176_v38 }
 0xb8a   :  { %8582 = vmatpush1.bf16.msra.mxu1 %v11792_v26  ;;  %v14589_v2 = vsel %vm256_vm0, %v14500_v52, %v11449_v37  ;;  %v14593_v42 = vsel %vm256_vm0, %v14502_v30, %v11450_v60  ;;  %v11830_v52 = vld [vmem:[#allocation7 + $0x39] sm:$0xff]  ;;  %v11801_v60 = vld [vmem:[#allocation26 + $0x110] sm:$0xff]  }
 0xb8b   :  { %v11458_v14 = vpop.permute.xlu1 %11457  ;;  %8006 = vmatmul.mubr.bf16.gmra.mrb[116].mxu0 %v10029_v18  ;;  %8583 = vmatprep.subr.bf16.mxu1 %v12176_v38  ;;  %v10049_v32 = vpack.c.bf16 %v14593_v42, %v14589_v2  ;;  %v10040_v30 = vpack.c.bf16 %v11830_v52, %v8355_v47  ;;  %v8339_v52 = vld [vmem:[#allocation7 + $0x20] sm:$0xff] }
 0xb8c   :  { %v11460_v1 = vunpack.i.h.bf16 %v11458_v14  ;;  %v11459_v19 = vunpack.i.l.bf16 %v11458_v14  ;;  %8269 = vmatpush1.bf16.msra.mxu0 %v11793_v6  ;;  %9845 = vmatprep.mubr.msk.bf16.mxu0 %vm256_vm0, %v10032_v56  ;;  %v11803_v56 = vld [vmem:[#allocation26 + $0x118] sm:$0xff]   ;;  %v11831_v14 = vld [vmem:[#allocation7 + $0x13f] sm:$0xff]  ;;  %v8395_v23 = vsel %vm256_vm0, %v8339_v52, %v11399_v58 }
 0xb8d   :  { %7380 = vmatmul.mubr.bf16.gmra.mrb[108].mxu1 %v10013_v29  ;;  %8270 = vmatprep.subr.bf16.mxu0 %v12176_v38  ;;  %v8045_v58 = vld [vmem:[#allocation7 + $0x1a0] sm:$0xff] }
 0xb8e   :  { %8584 = vmatpush1.bf16.msra.mxu1 %v11794_v0  ;;  %9869 = vmatprep.mubr.msk.bf16.mxu1 %vm256_vm0, %v10040_v30  ;;  %v14606_v5 = vsel %vm256_vm0, %v14538_v48, %v11459_v19  ;;  %v14610_v18 = vsel %vm256_vm0, %v14540_v4, %v11460_v1  ;;  %v8023_v0 = vld [vmem:[#allocation7 + $0x127] sm:$0xff]  ;;  %v11804_v1 = vld [vmem:[#allocation26 + $0x58] sm:$0xff]  }
 0xb8f   :  { %v11468_v54 = vpop.permute.xlu1 %11467  ;;  %8585 = vmatprep.subr.bf16.mxu1 %v12176_v38  ;;  %v10051_v20 = vpack.c.bf16 %v14610_v18, %v14606_v5  ;;  %v8042_v30 = vld [vmem:[#allocation7 + $0x158] sm:$0xff] }
 0xb90   :  { %v11470_v53 = vunpack.i.h.bf16 %v11468_v54  ;;  %v11469_v46 = vunpack.i.l.bf16 %v11468_v54  ;;  %8271 = vmatpush1.bf16.msra.mxu0 %v11795_v62  ;;  %v8396_v62 = vsel %vm256_vm0, %v8340_v59, %v11400_v31  ;;  %v8043_v54 = vld [vmem:[#allocation7 + $0x170] sm:$0xff] }
 0xb91   :  { %8272 = vmatprep.subr.bf16.mxu0 %v12176_v38  ;;  %v11824_v5 = vld [vmem:[#allocation26 + $0xf8] sm:$0xff]  }
 0xb92   :  { %8586 = vmatpush1.bf16.msra.mxu1 %v11796_v28  ;;  %v14617_v48 = vsel %vm256_vm0, %v7097_v13, %v11469_v46  ;;  %v14620_v4 = vsel %vm256_vm0, %v7098_v44, %v11470_v53  ;;  %v11473_v13 = vpop.permute.xlu0 %11472  ;;  %v14646_v53 = vld [vmem:[#allocation7 + $0x69] sm:$0xff] }
 0xb93   :  { %v11478_v22 = vpop.permute.xlu1 %11477  ;;  %8587 = vmatprep.subr.bf16.mxu1 %v12176_v38  ;;  %v10053_v17 = vpack.c.bf16 %v14620_v4, %v14617_v48  ;;  %v11475_v37 = vunpack.i.h.bf16 %v11473_v13  ;;  %v11474_v6 = vunpack.i.l.bf16 %v11473_v13  ;;  %v11806_v13 = vld [vmem:[#allocation26 + $0x68] sm:$0xff]   ;;  %v11825_v48 = vld [vmem:[#allocation26 + $0x100] sm:$0xff]  }
 0xb94   :  { %v11480_v8 = vunpack.i.h.bf16 %v11478_v22  ;;  %v11479_v35 = vunpack.i.l.bf16 %v11478_v22  ;;  %8273 = vmatpush1.bf16.msra.mxu0 %v11797_v34  ;;  %v11805_v22 = vld [vmem:[#allocation26 + $0x60] sm:$0xff]  }
 0xb95   :  { %8274 = vmatprep.subr.bf16.mxu0 %v12176_v38  ;;  %v8081_v29 = vsel %vm256_vm0, %v11831_v14, %v11475_v37  ;;  %v8080_v47 = vsel %vm256_vm0, %v8023_v0, %v11474_v6 }
 0xb96   :  { %v14628_v26 = vsel %vm256_vm0, %v14417_v63, %v11480_v8  ;;  %v14631_v21 = vsel %vm256_vm0, %v8340_v59, %v11479_v35  ;;  %8588 = vmatpush1.bf16.msra.mxu1 %v11798_v12  ;;  %v11802_v63 = vld [vmem:[#allocation26 + $0x50] sm:$0xff]   ;;  %v11483_v19 = vpop.permute.xlu0 %11482  ;;  %v10031_v28 = vpack.c.bf16 %v8081_v29, %v8080_v47  ;;  %v10034_v12 = vpack.c.bf16 %v8043_v54, %v8042_v30  ;;  %v8025_v59 = vld [vmem:[#allocation7 + $0x157] sm:$0xff] }
 0xb97   :  { %v10055_v44 = vpack.c.bf16 %v14628_v26, %v14631_v21  ;;  %8589 = vmatprep.subr.bf16.mxu1 %v12176_v38  ;;  %v11485_v46 = vunpack.i.h.bf16 %v11483_v19  ;;  %v11484_v34 = vunpack.i.l.bf16 %v11483_v19  ;;  %v10039_v8 = vpack.c.bf16 %v8396_v62, %v8395_v23  ;;  %v11832_v35 = vld [vmem:[#allocation7 + $0x51] sm:$0xff]  ;;  %v8027_v47 = vld [vmem:[#allocation7 + $0x187] sm:$0xff] }
 0xb98   :  { %8275 = vmatpush1.bf16.msra.mxu0 %v11799_v7  ;;  %v10042_v7 = vpack.c.bf16 %v14646_v53, %v11832_v35  ;;  %v11807_v29 = vld [vmem:[#allocation26 + $0x70] sm:$0xff]   ;;  %v11808_v19 = vld [vmem:[#allocation26 + $0x78] sm:$0xff]  }
 0xb99   :  { %8276 = vmatprep.subr.bf16.mxu0 %v12176_v38  ;;  %v8046_v23 = vld [vmem:[#allocation7 + $0x1b8] sm:$0xff]  ;;  %v8960_v21 = vld [vmem:[#allocation7 + $0xb0] sm:$0xff] }
 0xb9a   :  { %8590 = vmatpush1.bf16.msra.mxu1 %v11800_v11  ;;  %v8026_v11 = vld [vmem:[#allocation7 + $0x16f] sm:$0xff]  ;;  %v11493_v6 = vpop.permute.xlu0 %11492  ;;  %v8959_v26 = vld [vmem:[#allocation7 + $0x98] sm:$0xff] }
 0xb9b   :  { %8591 = vmatprep.subr.bf16.mxu1 %v12176_v38  ;;  %v8083_v37 = vsel %vm256_vm0, %v8026_v11, %v11485_v46  ;;  %v11494_v0 = vunpack.i.l.bf16 %v11493_v6 }
 0xb9c   :  { %8277 = vmatpush1.bf16.msra.mxu0 %v11801_v60  ;;  %v8082_v60 = vsel %vm256_vm0, %v8025_v59, %v11484_v34  ;;  %v8029_v34 = vld [vmem:[#allocation7 + $0x1b7] sm:$0xff] }
 0xb9d   :  { %8278 = vmatprep.subr.bf16.mxu0 %v12176_v38  ;;  %v10033_v31 = vpack.c.bf16 %v8083_v37, %v8082_v60  ;;  %v8084_v52 = vsel %vm256_vm0, %v8027_v47, %v11494_v0  ;;  %v11828_v0 = vld [vmem:[#allocation26 + $0x118] sm:$0xff]  }
 0xb9e   :  { %8592 = vmatpush1.bf16.msra.mxu1 %v11802_v63  ;;  %v8044_v63 = vld [vmem:[#allocation7 + $0x188] sm:$0xff]  ;;  %v11503_v62 = vpop.permute.xlu0 %11502 }
 0xb9f   :  { %8593 = vmatprep.subr.bf16.mxu1 %v12176_v38  ;;  %v10036_v14 = vpack.c.bf16 %v8045_v58, %v8044_v63  ;;  %v11505_v46 = vunpack.i.h.bf16 %v11503_v62  ;;  %v11504_v33 = vunpack.i.l.bf16 %v11503_v62  ;;  %v11827_v58 = vld [vmem:[#allocation26 + $0x110] sm:$0xff]  }
 0xba0   :  { %8279 = vmatpush1.bf16.msra.mxu0 %v11803_v56  ;;  %v11495_v56 = vunpack.i.h.bf16 %v11493_v6 }
 0xba2   :  { %8594 = vmatpush1.bf16.msra.mxu1 %v11804_v1  ;;  %v8028_v1 = vld [vmem:[#allocation7 + $0x19f] sm:$0xff] }
 0xba3   :  { %8289 = vmatmul.mubr.bf16.vlgmr.msra.gmra.mrb[104].mxu0 %v10031_v28  ;;  %8882 = vmatprep.subr.bf16.mxu1 %v12176_v38  ;;  %v8085_v30 = vsel %vm256_vm0, %v8028_v1, %v11495_v56  ;;  %v8047_v28 = vld [vmem:[#allocation7 + $0x1d0] sm:$0xff]  ;;  %v11488_v1 = vpop.permute.xlu1 %11487 }
 0xba4   :  { %9846 = vmatprep.mubr.msk.bf16.mxu0 %vm256_vm0, %v10034_v12  ;;  %v10035_v54 = vpack.c.bf16 %v8085_v30, %v8084_v52  ;;  %v10038_v61 = vpack.c.bf16 %v8047_v28, %v8046_v23  ;;  %v11810_v12 = vld [vmem:[#allocation26 + $0x88] sm:$0xff]   ;;  %v11490_v62 = vunpack.i.h.bf16 %v11488_v1  ;;  %v11489_v23 = vunpack.i.l.bf16 %v11488_v1 }
 0xba5   :  { %8604 = vmatmul.mubr.bf16.vlgmr.msra.gmra.mrb[112].mxu1 %v10039_v8  ;;  %v8974_v30 = vld [vmem:[#allocation7 + $0x81] sm:$0xff] }
 0xba6   :  { %9870 = vmatprep.mubr.msk.bf16.mxu1 %vm256_vm0, %v10042_v7  ;;  %8883 = vmatpush1.bf16.msra.mxu1 %v11805_v22  ;;  %v8086_v22 = vsel %vm256_vm0, %v8029_v34, %v11504_v33  ;;  %v11811_v7 = vld [vmem:[#allocation26 + $0x90] sm:$0xff]   ;;  %v10058_v28 = vpack.c.bf16 %v8974_v30, %v14646_v53  ;;  %v8975_v34 = vld [vmem:[#allocation7 + $0x99] sm:$0xff] }
 0xba7   :  { %8884 = vmatprep.subr.bf16.mxu1 %v12176_v38 }
 0xbaa   :  { %8885 = vmatpush1.bf16.msra.mxu1 %v11806_v13  ;;  %v11823_v13 = vld [vmem:[#allocation26 + $0xf0] sm:$0xff]  }
 0xbab   :  { %8297 = vmatmul.mubr.bf16.gmra.mrb[108].mxu0 %v10033_v31  ;;  %8886 = vmatprep.subr.bf16.mxu1 %v12176_v38 }
 0xbac   :  { %9847 = vmatprep.mubr.msk.bf16.mxu0 %vm256_vm0, %v10036_v14 }
 0xbad   :  { %8612 = vmatmul.mubr.bf16.gmra.mrb[116].mxu1 %v10041_v55  ;;  %v11809_v55 = vld [vmem:[#allocation26 + $0x80] sm:$0xff]  }
 0xbae   :  { %9871 = vmatprep.mubr.msk.bf16.mxu1 %vm256_vm0, %v14431_v45  ;;  %8887 = vmatpush1.bf16.msra.mxu1 %v11807_v29  ;;  %v8030_v45 = vld [vmem:[#allocation7 + $0x1cf] sm:$0xff] }
 0xbaf   :  { %8888 = vmatprep.subr.bf16.mxu1 %v12176_v38  ;;  %v8087_v8 = vsel %vm256_vm0, %v8030_v45, %v11505_v46 }
 0xbb0   :  { %v10037_v35 = vpack.c.bf16 %v8087_v8, %v8086_v22 }
 0xbb2   :  { %8889 = vmatpush1.bf16.msra.mxu1 %v11808_v19 }
 0xbb3   :  { %8305 = vmatmul.mubr.bf16.gmra.mrb[112].mxu0 %v10035_v54  ;;  %8890 = vmatprep.subr.bf16.mxu1 %v12176_v38  ;;  %v8958_v54 = vld [vmem:[#allocation7 + $0x80] sm:$0xff] }
 0xbb4   :  { %9848 = vmatprep.mubr.msk.bf16.mxu0 %vm256_vm0, %v10038_v61  ;;  %v9014_v33 = vsel %vm256_vm0, %v8958_v54, %v11490_v62  ;;  %v11498_v61 = vpop.permute.xlu1 %11497 }
 0xbb5   :  { %8620 = vmatmul.mubr.bf16.gmra.mrb[120].mxu1 %v10043_v16  ;;  %v11815_v16 = vld [vmem:[#allocation26 + $0xb0] sm:$0xff]   ;;  %v11499_v22 = vunpack.i.l.bf16 %v11498_v61 }
 0xbb6   :  { %9872 = vmatprep.mubr.msk.bf16.mxu1 %vm256_vm0, %v14445_v40  ;;  %8891 = vmatpush1.bf16.msra.mxu1 %v11809_v55  ;;  %v11812_v40 = vld [vmem:[#allocation26 + $0x98] sm:$0xff]  }
 0xbb7   :  { %8892 = vmatprep.subr.bf16.mxu1 %v12176_v38  ;;  %v8976_v55 = vld [vmem:[#allocation7 + $0xb1] sm:$0xff] }
 0xbb8   :  { %v10060_v8 = vpack.c.bf16 %v8976_v55, %v8975_v34 }
 0xbba   :  { %8893 = vmatpush1.bf16.msra.mxu1 %v11810_v12  ;;  %v11500_v12 = vunpack.i.h.bf16 %v11498_v61 }
 0xbbb   :  { %8313 = vmatmul.mubr.bf16.gmra.mrb[116].mxu0 %v10037_v35  ;;  %8894 = vmatprep.subr.bf16.mxu1 %v12176_v38  ;;  %v11508_v35 = vpop.permute.xlu1 %11507 }
 0xbbc   :  { %v9016_v53 = vsel %vm256_vm0, %v8960_v21, %v11500_v12 }
 0xbbd   :  { %8628 = vmatmul.mubr.bf16.gmra.mrb[124].mxu1 %v10045_v3  ;;  %v11819_v3 = vld [vmem:[#allocation26 + $0xd0] sm:$0xff]  }
 0xbbe   :  { %8895 = vmatpush1.bf16.msra.mxu1 %v11811_v7  ;;  %9894 = vmatprep.mubr.msk.bf16.mxu1 %vm256_vm0, %v14465_v41  ;;  %v11817_v41 = vld [vmem:[#allocation26 + $0xc0] sm:$0xff]   ;;  %v8977_v7 = vld [vmem:[#allocation7 + $0xc9] sm:$0xff] }
 0xbbf   :  { %8896 = vmatprep.subr.bf16.mxu1 %v12176_v38 }
 0xbc2   :  { %8897 = vmatpush1.bf16.msra.mxu1 %v11812_v40  ;;  %v8978_v40 = vld [vmem:[#allocation7 + $0xe1] sm:$0xff] }
 0xbc3   :  { %8898 = vmatprep.subr.bf16.mxu1 %v12176_v38 }
 0xbc6   :  { %8899 = vmatpush1.bf16.msra.mxu1 %v11813_v25 }
 0xbc7   :  { %8900 = vmatprep.subr.bf16.mxu1 %v12176_v38 }
 0xbca   :  { %8901 = vmatpush1.bf16.msra.mxu1 %v11814_v43  ;;  %v11510_v43 = vunpack.i.h.bf16 %v11508_v35 }
 0xbcb   :  { %8902 = vmatprep.subr.bf16.mxu1 %v12176_v38 }
 0xbce   :  { %8903 = vmatpush1.bf16.msra.mxu1 %v11815_v16  ;;  %v11509_v16 = vunpack.i.l.bf16 %v11508_v35 }
 0xbcf   :  { %8904 = vmatprep.subr.bf16.mxu1 %v12176_v38 }
 0xbd2   :  { %8905 = vmatpush1.bf16.msra.mxu1 %v11816_v36  ;;  %v10062_v36 = vpack.c.bf16 %v8978_v40, %v8977_v7 }
 0xbd3   :  { %9187 = vmatprep.subr.bf16.mxu1 %v12176_v38 }
 0xbd5   :  { %8915 = vmatmul.mubr.bf16.vlgmr.msra.gmra.mrb[112].mxu1 %v10047_v39 }
 0xbd6   :  { %9895 = vmatprep.mubr.msk.bf16.mxu1 %vm256_vm0, %v14491_v24  ;;  %9188 = vmatpush1.bf16.msra.mxu1 %v11817_v41  ;;  %v11821_v24 = vld [vmem:[#allocation26 + $0xe0] sm:$0xff]  }
 0xbd7   :  { %9189 = vmatprep.subr.bf16.mxu1 %v12176_v38  ;;  %v8962_v41 = vld [vmem:[#allocation7 + $0xe0] sm:$0xff] }
 0xbda   :  { %9190 = vmatpush1.bf16.msra.mxu1 %v11818_v15  ;;  %v8961_v15 = vld [vmem:[#allocation7 + $0xc8] sm:$0xff] }
 0xbdb   :  { %9191 = vmatprep.subr.bf16.mxu1 %v12176_v38 }
 0xbdd   :  { %8923 = vmatmul.mubr.bf16.gmra.mrb[116].mxu1 %v10049_v32 }
 0xbde   :  { %9896 = vmatprep.mubr.msk.bf16.mxu1 %vm256_vm0, %v14518_v10  ;;  %9192 = vmatpush1.bf16.msra.mxu1 %v11819_v3  ;;  %v11822_v10 = vld [vmem:[#allocation26 + $0xe8] sm:$0xff]   ;;  %v9017_v3 = vsel %vm256_vm0, %v8961_v15, %v11509_v16 }
 0xbdf   :  { %9193 = vmatprep.subr.bf16.mxu1 %v12176_v38 }
 0xbe2   :  { %9194 = vmatpush1.bf16.msra.mxu1 %v11820_v57  ;;  %v9018_v57 = vsel %vm256_vm0, %v8962_v41, %v11510_v43 }
 0xbe3   :  { %9195 = vmatprep.subr.bf16.mxu1 %v12176_v38 }
 0xbe5   :  { %8931 = vmatmul.mubr.bf16.gmra.mrb[120].mxu1 %v10051_v20 }
 0xbe6   :  { %9897 = vmatprep.mubr.msk.bf16.mxu1 %vm256_vm0, %v14562_v51  ;;  %9196 = vmatpush1.bf16.msra.mxu1 %v11821_v24  ;;  %v6427_v39 = vpop.f32.mrb[88].mxu0  ;;  %v10061_v24 = vpack.c.bf16 %v9018_v57, %v9017_v3 }
 0xbe7   :  { %v10557_v2 = vadd.f32 %v14701_v50, %v6427_v39  ;;  %v6429_v42 = vpop.f32.mrb[89].mxu0  ;;  %9197 = vmatprep.subr.bf16.mxu1 %v12176_v38 }
 0xbe8   :  { %v6430_v32 = vpop.f32.mrb[90].mxu0 }
 0xbe9   :  { %6466 = vst [vmem:[#allocation29] sm:$0xff] %v10557_v2  ;;  %v10558_v59 = vadd.f32 %v14701_v50, %v6430_v32  ;;  %v6432_v11 = vpop.f32.mrb[91].mxu0 }
 0xbea   :  { %9198 = vmatpush1.bf16.msra.mxu1 %v11822_v10 }
 0xbeb   :  { %6467 = vst [vmem:[#allocation29 + $0x8] sm:$0xff] %v10558_v59  ;;  %9199 = vmatprep.subr.bf16.mxu1 %v12176_v38 }
 0xbed   :  { %8939 = vmatmul.mubr.bf16.gmra.mrb[124].mxu1 %v10053_v17 }
 0xbee   :  { %9200 = vmatpush1.bf16.msra.mxu1 %v11823_v13  ;;  %9918 = vmatprep.mubr.msk.bf16.mxu1 %vm256_vm0, %v10056_v9  ;;  %v6435_v51 = vpop.f32.mrb[92].mxu0 }
 0xbef   :  { %v10559_v18 = vadd.f32 %v14701_v50, %v6435_v51  ;;  %v6437_v20 = vpop.f32.mrb[93].mxu0  ;;  %9201 = vmatprep.subr.bf16.mxu1 %v12176_v38 }
 0xbf0   :  { %v6438_v60 = vpop.f32.mrb[94].mxu0 }
 0xbf1   :  { %6468 = vst [vmem:[#allocation29 + $0x10] sm:$0xff] %v10559_v18  ;;  %v10560_v37 = vadd.f32 %v14701_v50, %v6438_v60  ;;  %v6440_v6 = vpop.f32.mrb[95].mxu0 }
 0xbf2   :  { %9202 = vmatpush1.bf16.msra.mxu1 %v11824_v5 }
 0xbf3   :  { %6469 = vst [vmem:[#allocation29 + $0x18] sm:$0xff] %v10560_v37  ;;  %9203 = vmatprep.subr.bf16.mxu1 %v12176_v38 }
 0xbf6   :  { %9204 = vmatpush1.bf16.msra.mxu1 %v11825_v48  ;;  %v6443_v49 = vpop.f32.mrb[96].mxu0 }
 0xbf7   :  { %v10561_v9 = vadd.f32 %v14701_v50, %v6443_v49  ;;  %v6445_v4 = vpop.f32.mrb[97].mxu0  ;;  %9205 = vmatprep.subr.bf16.mxu1 %v12176_v38 }
 0xbf8   :  { %v6446_v17 = vpop.f32.mrb[98].mxu0 }
 0xbf9   :  { %6470 = vst [vmem:[#allocation29 + $0x20] sm:$0xff] %v10561_v9  ;;  %v10562_v63 = vadd.f32 %v14701_v50, %v6446_v17  ;;  %v6448_v31 = vpop.f32.mrb[99].mxu0 }
 0xbfa   :  { %9206 = vmatpush1.bf16.msra.mxu1 %v11826_v27 }
 0xbfb   :  { %6471 = vst [vmem:[#allocation29 + $0x28] sm:$0xff] %v10562_v63  ;;  %9207 = vmatprep.subr.bf16.mxu1 %v12176_v38 }
 0xbfe   :  { %9208 = vmatpush1.bf16.msra.mxu1 %v11827_v58  ;;  %v6451_v56 = vpop.f32.mrb[100].mxu0 }
 0xbff   :  { %v10563_v14 = vadd.f32 %v14701_v50, %v6451_v56  ;;  %v6453_v29 = vpop.f32.mrb[101].mxu0  ;;  %9209 = vmatprep.subr.bf16.mxu1 %v12176_v38  ;;  %v8957_v38 = vld [vmem:[#allocation7 + $0x68] sm:$0xff] }
 0xc00   :  { %v6454_v47 = vpop.f32.mrb[102].mxu0  ;;  %v9013_v46 = vsel %vm256_vm0, %v8957_v38, %v11489_v23 }
 0xc01   :  { %6472 = vst [vmem:[#allocation29 + $0x30] sm:$0xff] %v10563_v14  ;;  %v10564_v19 = vadd.f32 %v14701_v50, %v6454_v47  ;;  %v6456_v52 = vpop.f32.mrb[103].mxu0  ;;  %v10057_v45 = vpack.c.bf16 %v9014_v33, %v9013_v46 }
 0xc02   :  { %9210 = vmatpush1.bf16.msra.mxu1 %v11828_v0 }
 0xc03   :  { %6473 = vst [vmem:[#allocation29 + $0x38] sm:$0xff] %v10564_v19 }
 0xc05   :  { %9220 = vmatmul.mubr.bf16.vlgmr.msra.gmra.mrb[112].mxu1 %v10055_v44  ;;  %v9015_v44 = vsel %vm256_vm0, %v8959_v26, %v11499_v22 }
 0xc06   :  { %9919 = vmatprep.mubr.msk.bf16.mxu1 %vm256_vm0, %v10058_v28  ;;  %v10059_v25 = vpack.c.bf16 %v9016_v53, %v9015_v44 }
 0xc0d   :  { %9228 = vmatmul.mubr.bf16.gmra.mrb[116].mxu1 %v10057_v45 }
 0xc0e   :  { %9920 = vmatprep.mubr.msk.bf16.mxu1 %vm256_vm0, %v10060_v8 }
 0xc15   :  { %9236 = vmatmul.mubr.bf16.gmra.mrb[120].mxu1 %v10059_v25 }
 0xc16   :  { %9921 = vmatprep.mubr.msk.bf16.mxu1 %vm256_vm0, %v10062_v36 }
 0xc1d   :  { %9244 = vmatmul.mubr.bf16.gmra.mrb[124].mxu1 %v10061_v24 }
 0xc48   :  { %v7357_v39 = vpop.f32.mrb[96].mxu1 }
 0xc49   :  { %v10565_v10 = vadd.f32 %v14701_v50, %v7357_v39  ;;  %v7359_v2 = vpop.f32.mrb[97].mxu1 }
 0xc4a   :  { %v7360_v42 = vpop.f32.mrb[98].mxu1 }
 0xc4b   :  { %7397 = vst [vmem:[#allocation29 + $0x40] sm:$0xff] %v10565_v10  ;;  %v10566_v32 = vadd.f32 %v14701_v50, %v7360_v42  ;;  %v7362_v59 = vpop.f32.mrb[99].mxu1 }
 0xc4d   :  { %7398 = vst [vmem:[#allocation29 + $0x48] sm:$0xff] %v10566_v32 }
 0xc50   :  { %v7365_v11 = vpop.f32.mrb[100].mxu1 }
 0xc51   :  { %v10567_v13 = vadd.f32 %v14701_v50, %v7365_v11  ;;  %v7367_v51 = vpop.f32.mrb[101].mxu1 }
 0xc52   :  { %v7368_v5 = vpop.f32.mrb[102].mxu1 }
 0xc53   :  { %7399 = vst [vmem:[#allocation29 + $0x50] sm:$0xff] %v10567_v13  ;;  %v10568_v18 = vadd.f32 %v14701_v50, %v7368_v5  ;;  %v7370_v20 = vpop.f32.mrb[103].mxu1 }
 0xc55   :  { %7400 = vst [vmem:[#allocation29 + $0x58] sm:$0xff] %v10568_v18 }
 0xc58   :  { %v7373_v60 = vpop.f32.mrb[104].mxu1 }
 0xc59   :  { %v10569_v37 = vadd.f32 %v14701_v50, %v7373_v60  ;;  %v7375_v6 = vpop.f32.mrb[105].mxu1 }
 0xc5a   :  { %v7376_v48 = vpop.f32.mrb[106].mxu1 }
 0xc5b   :  { %7401 = vst [vmem:[#allocation29 + $0x60] sm:$0xff] %v10569_v37  ;;  %v10570_v49 = vadd.f32 %v14701_v50, %v7376_v48  ;;  %v7378_v27 = vpop.f32.mrb[107].mxu1 }
 0xc5d   :  { %7402 = vst [vmem:[#allocation29 + $0x68] sm:$0xff] %v10570_v49 }
 0xc60   :  { %v7381_v9 = vpop.f32.mrb[108].mxu1 }
 0xc61   :  { %v10571_v4 = vadd.f32 %v14701_v50, %v7381_v9  ;;  %v7383_v17 = vpop.f32.mrb[109].mxu1 }
 0xc62   :  { %v7384_v63 = vpop.f32.mrb[110].mxu1 }
 0xc63   :  { %7403 = vst [vmem:[#allocation29 + $0x70] sm:$0xff] %v10571_v4  ;;  %v10572_v31 = vadd.f32 %v14701_v50, %v7384_v63  ;;  %v7386_v58 = vpop.f32.mrb[111].mxu1 }
 0xc65   :  { %7404 = vst [vmem:[#allocation29 + $0x78] sm:$0xff] %v10572_v31 }
 0xc76   :  { %v8290_v56 = vpop.f32.mrb[104].mxu0 }
 0xc77   :  { %v10573_v0 = vadd.f32 %v14701_v50, %v8290_v56  ;;  %v8292_v14 = vpop.f32.mrb[105].mxu0 }
 0xc78   :  { %v8293_v29 = vpop.f32.mrb[106].mxu0 }
 0xc79   :  { %8330 = vst [vmem:[#allocation29 + $0x80] sm:$0xff] %v10573_v0  ;;  %v10574_v47 = vadd.f32 %v14701_v50, %v8293_v29  ;;  %v8295_v1 = vpop.f32.mrb[107].mxu0 }
 0xc7b   :  { %8331 = vst [vmem:[#allocation29 + $0x88] sm:$0xff] %v10574_v47 }
 0xc7e   :  { %v8298_v19 = vpop.f32.mrb[108].mxu0 }
 0xc7f   :  { %v10575_v52 = vadd.f32 %v14701_v50, %v8298_v19  ;;  %v8300_v30 = vpop.f32.mrb[109].mxu0 }
 0xc80   :  { %v8301_v62 = vpop.f32.mrb[110].mxu0 }
 0xc81   :  { %8332 = vst [vmem:[#allocation29 + $0x90] sm:$0xff] %v10575_v52  ;;  %v10576_v23 = vadd.f32 %v14701_v50, %v8301_v62  ;;  %v8303_v28 = vpop.f32.mrb[111].mxu0 }
 0xc83   :  { %8333 = vst [vmem:[#allocation29 + $0x98] sm:$0xff] %v10576_v23 }
 0xc86   :  { %v8306_v38 = vpop.f32.mrb[112].mxu0 }
 0xc87   :  { %v10577_v54 = vadd.f32 %v14701_v50, %v8306_v38  ;;  %v8308_v46 = vpop.f32.mrb[113].mxu0 }
 0xc88   :  { %v8309_v33 = vpop.f32.mrb[114].mxu0 }
 0xc89   :  { %8334 = vst [vmem:[#allocation29 + $0xa0] sm:$0xff] %v10577_v54  ;;  %v10578_v61 = vadd.f32 %v14701_v50, %v8309_v33  ;;  %v8311_v55 = vpop.f32.mrb[115].mxu0 }
 0xc8b   :  { %8335 = vst [vmem:[#allocation29 + $0xa8] sm:$0xff] %v10578_v61 }
 0xc8e   :  { %v8314_v45 = vpop.f32.mrb[116].mxu0 }
 0xc8f   :  { %v10579_v34 = vadd.f32 %v14701_v50, %v8314_v45  ;;  %v8316_v12 = vpop.f32.mrb[117].mxu0 }
 0xc90   :  { %v8317_v22 = vpop.f32.mrb[118].mxu0 }
 0xc91   :  { %8336 = vst [vmem:[#allocation29 + $0xb0] sm:$0xff] %v10579_v34  ;;  %v10580_v8 = vadd.f32 %v14701_v50, %v8317_v22  ;;  %v8319_v26 = vpop.f32.mrb[119].mxu0 }
 0xc93   :  { %8337 = vst [vmem:[#allocation29 + $0xb8] sm:$0xff] %v10580_v8 }
 0xcd8   :  { %v9221_v21 = vpop.f32.mrb[112].mxu1 }
 0xcd9   :  { %v10581_v44 = vadd.f32 %v14701_v50, %v9221_v21  ;;  %v9223_v53 = vpop.f32.mrb[113].mxu1 }
 0xcda   :  { %v9224_v35 = vpop.f32.mrb[114].mxu1 }
 0xcdb   :  { %9261 = vst [vmem:[#allocation29 + $0xc0] sm:$0xff] %v10581_v44  ;;  %v10582_v7 = vadd.f32 %v14701_v50, %v9224_v35  ;;  %v9226_v40 = vpop.f32.mrb[115].mxu1 }
 0xcdd   :  { %9262 = vst [vmem:[#allocation29 + $0xc8] sm:$0xff] %v10582_v7 }
 0xce0   :  { %v9229_v25 = vpop.f32.mrb[116].mxu1 }
 0xce1   :  { %v10583_v43 = vadd.f32 %v14701_v50, %v9229_v25  ;;  %v9231_v16 = vpop.f32.mrb[117].mxu1 }
 0xce2   :  { %v9232_v36 = vpop.f32.mrb[118].mxu1 }
 0xce3   :  { %9263 = vst [vmem:[#allocation29 + $0xd0] sm:$0xff] %v10583_v43  ;;  %v10584_v41 = vadd.f32 %v14701_v50, %v9232_v36  ;;  %v9234_v15 = vpop.f32.mrb[119].mxu1 }
 0xce5   :  { %9264 = vst [vmem:[#allocation29 + $0xd8] sm:$0xff] %v10584_v41 }
 0xce8   :  { %v9237_v3 = vpop.f32.mrb[120].mxu1 }
 0xce9   :  { %v10585_v57 = vadd.f32 %v14701_v50, %v9237_v3  ;;  %v9239_v24 = vpop.f32.mrb[121].mxu1 }
 0xcea   :  { %v9240_v39 = vpop.f32.mrb[122].mxu1 }
 0xceb   :  { %9265 = vst [vmem:[#allocation29 + $0xe0] sm:$0xff] %v10585_v57  ;;  %v10586_v10 = vadd.f32 %v14701_v50, %v9240_v39  ;;  %v9242_v2 = vpop.f32.mrb[123].mxu1 }
 0xced   :  { %9266 = vst [vmem:[#allocation29 + $0xe8] sm:$0xff] %v10586_v10 }
 0xcf0   :  { %v9245_v42 = vpop.f32.mrb[124].mxu1 }
 0xcf1   :  { %v10587_v32 = vadd.f32 %v14701_v50, %v9245_v42  ;;  %v9247_v59 = vpop.f32.mrb[125].mxu1 }
 0xcf2   :  { %v9248_v11 = vpop.f32.mrb[126].mxu1 }
 0xcf3   :  { %9267 = vst [vmem:[#allocation29 + $0xf0] sm:$0xff] %v10587_v32  ;;  %v10588_v13 = vadd.f32 %v14701_v50, %v9248_v11  ;;  %v9250_v51 = vpop.f32.mrb[127].mxu1 }
 0xcf5   :  { %9268 = vst [vmem:[#allocation29 + $0xf8] sm:$0xff] %v10588_v13 }
 0xcf6   :  { %12130 = shalt.err (!%p12127_p10)
}
 0xcf7   :  { %s12131_s26 = scalar_lea.hbm %s14795_s13, 4096 }
 0xcf8   :  { %p12132_p11 = scmp.ne.s32.totalorder %s14795_s13, %s12131_s26  ;;  %p12135_p12 = scmp.lt.u32.totalorder %s12131_s26, %s14795_s13 }
 0xcfa   :  { %p12137_p13 = pnand %p12135_p12, %p12132_p11 }
 0xcfc   :  { %12140 = shalt.err (!%p12137_p13)
}
 0xcfd   :  { %9280 = dma.vmem_to_hbm [thread:$0]  %s9275_s5, 4096, %s14795_s13, [#allocation10], %s12165_s15, %s12165_s15, %s12166_s20  }
 0xcfe   :  { %12155 = dma.done.wait [#allocation10], 4096  }
 0xcff   :  { %12156 = vsyncadd [#allocation10], 4294963200 }
 0xd00   :  { %9284 = vsyncpa [#allocation9], 1 }
 0xd01   :  { %9285 = vsyncpa [#allocation12], 1 }
 0xd02   :  { %9286 = vsyncpa [#allocation15], 1 }
 0xd03   :  { %9287 = vsyncpa [#allocation18], 1 }
 0xd04   :  { %9288 = vsyncpa [#allocation21], 1 }
 0xd05   :  { %9289 = vsyncpa [#allocation24], 1 }
 0xd06   :  { %9290 = vsyncpa [#allocation27], 1 }
 0xd07   :  { %9291 = vsyncpa [#allocation10], 1 }

</bundles_post_ra>
